<compile_context>
chip_gen: v5e
topology: v5e:2x2
jax: 0.10.0
libtpu: 0.0.40
codegen_flags: <defaults>
</compile_context>

<pallas_src>
import jax
import jax.numpy as jnp
import numpy as np
from jax.experimental import pallas as pl
from jax.experimental.pallas import tpu as pltpu

FEATURE_SIZE = 9
HIDDEN_SIZE = 12
NUM_LAYER = 2
N_ACTIONS = 3
FC1_SIZE = 50

PAD = 128                 # lane-tile width; every state / gate block is padded to this
GATE_W = 4 * PAD          # packed gate width: one aligned 128-lane block per gate


def _net_kernel(feat_ref, actz_ref, w0_ref, b_ref, wl1_hbm, whead_hbm,
                out_ref, wl1_vmem, whead_vmem, sem):
    """feat_ref:   (T*B, PAD)      time-major (row = t*B + b) padded features
       actz_ref:   (B, PAD)        zeros except actions at lanes [H, H+3)
       w0_ref:     (2, PAD, GATE_W)   [w_ih_l0, w_hh_l0] gate-packed
       b_ref:      (4, 1, GATE_W)     [b_l0, b_l1, b_fc1, b_out]
       wl1_hbm:    (2*PAD, GATE_W) fused [w_ih_l1; w_hh_l1]  (HBM, manual DMA)
       whead_hbm:  (2, PAD, PAD)   [fc1, out] slabs           (HBM, manual DMA)
       out_ref:    (B, PAD)        lane-dense output, cols [0,3) meaningful
       wl1_vmem / whead_vmem / sem: VMEM scratch + DMA semaphores
    """
    P = feat_ref.shape[1]
    B = actz_ref.shape[0]
    T = feat_ref.shape[0] // B

    # ---- Kick off deferred weight DMAs; they hide behind the layer-0 phase.
    cp_l1 = pltpu.make_async_copy(wl1_hbm, wl1_vmem, sem.at[0])
    cp_l1.start()
    cp_head = pltpu.make_async_copy(whead_hbm, whead_vmem, sem.at[1])
    cp_head.start()

    wih0 = w0_ref[0]
    whh0 = w0_ref[1]
    b0 = b_ref[0]
    b1 = b_ref[1]

    # ---- Phase 1a: batched layer-0 input projection (one matmul, one bias add)
    xg0_all = jnp.dot(feat_ref[...], wih0,
                      preferred_element_type=jnp.float32) + b0     # (T*B, GATE_W)

    def gate_math(gates, c):
        # PyTorch gate order [i, f, g, o]; each gate in its own aligned
        # 128-lane block -> zero-cost tile views.  Padded lanes stay exactly 0
        # through the recurrence (sigmoid(0) * 0, tanh(0) = 0).
        i = jax.nn.sigmoid(gates[:, 0 * P:1 * P])
        f = jax.nn.sigmoid(gates[:, 1 * P:2 * P])
        g = jnp.tanh(gates[:, 2 * P:3 * P])
        o = jax.nn.sigmoid(gates[:, 3 * P:4 * P])
        c_new = f * c + i * g
        h_new = o * jnp.tanh(c_new)
        return h_new, c_new

    # ---- Phase 1b: layer-0 recurrence (serial, fully unrolled; T is small).
    h0 = jnp.zeros((B, P), jnp.float32)
    c0 = jnp.zeros((B, P), jnp.float32)
    h0_seq = []
    for t in range(T):
        g0 = xg0_all[t * B:(t + 1) * B, :] + jnp.dot(
            h0, whh0, preferred_element_type=jnp.float32)
        h0, c0 = gate_math(g0, c0)
        h0_seq.append(h0)

    # ---- Phase 2: layer-1 recurrence, one fused K=2*PAD matmul per step.
    cp_l1.wait()
    wl1 = wl1_vmem[...]
    h1 = jnp.zeros((B, P), jnp.float32)
    c1 = jnp.zeros((B, P), jnp.float32)
    for t in range(T):
        hcat = jnp.concatenate([h0_seq[t], h1], axis=-1)           # (B, 2*PAD)
        g1 = jnp.dot(hcat, wl1, preferred_element_type=jnp.float32) + b1
        h1, c1 = gate_math(g1, c1)

    # ---- Phase 3: head. concat([h_last, actions]) realized as an add of the
    # action vector pre-placed in the (exactly-zero) padded lanes of h1.
    cp_head.wait()
    z = h1 + actz_ref[...]
    w_fc1 = whead_vmem[0]
    w_out = whead_vmem[1]
    b_fc1 = b_ref[2][:, 0:P]
    b_out = b_ref[3][:, 0:P]
    hidden = jnp.maximum(
        jnp.dot(z, w_fc1, preferred_element_type=jnp.float32) + b_fc1, 0.0)
    out_full = jnp.dot(hidden, w_out, preferred_element_type=jnp.float32) + b_out
    out_ref[...] = out_full.astype(out_ref.dtype)                  # lane-dense store


def init_params(key):
    """Deterministic parameter init mirroring the PyTorch module's shapes."""
    H = HIDDEN_SIZE
    ks = jax.random.split(key, 16)
    stdv = 1.0 / np.sqrt(H)

    def u(k, shape):
        return jax.random.uniform(k, shape, jnp.float32, -stdv, stdv)

    return {
        "w_ih_l0": u(ks[0], (4 * H, FEATURE_SIZE)),
        "w_hh_l0": u(ks[1], (4 * H, H)),
        "b_ih_l0": u(ks[2], (4 * H,)),
        "b_hh_l0": u(ks[3], (4 * H,)),
        "w_ih_l1": u(ks[4], (4 * H, H)),
        "w_hh_l1": u(ks[5], (4 * H, H)),
        "b_ih_l1": u(ks[6], (4 * H,)),
        "b_hh_l1": u(ks[7], (4 * H,)),
        "fc1_w": 0.1 * jax.random.normal(ks[8], (FC1_SIZE, H + N_ACTIONS), jnp.float32),
        "fc1_b": jax.random.uniform(
            ks[9], (FC1_SIZE,), jnp.float32,
            -1.0 / np.sqrt(H + N_ACTIONS), 1.0 / np.sqrt(H + N_ACTIONS)),
        "out_w": 0.1 * jax.random.normal(ks[10], (N_ACTIONS, FC1_SIZE), jnp.float32),
        "out_b": jax.random.uniform(
            ks[11], (N_ACTIONS,), jnp.float32,
            -1.0 / np.sqrt(FC1_SIZE), 1.0 / np.sqrt(FC1_SIZE)),
    }


def pack_params(params):
    """One-time packing of all weights/biases into kernel-friendly buffers."""
    H, P, G = HIDDEN_SIZE, PAD, GATE_W

    def gate_cols(w):                            # torch (4H, in) -> (P, G)
        wt = np.asarray(w, np.float32).T         # (in, 4H)
        out = np.zeros((P, G), np.float32)
        in_dim = wt.shape[0]
        for k in range(4):
            out[:in_dim, k * P:k * P + H] = wt[:, k * H:(k + 1) * H]
        return out

    def gate_bias(b):                            # (4H,) -> (1, G)
        bb = np.asarray(b, np.float32)
        out = np.zeros((1, G), np.float32)
        for k in range(4):
            out[0, k * P:k * P + H] = bb[k * H:(k + 1) * H]
        return out

    # Layer 0 weights: needed immediately -> plain VMEM input.
    w0 = jnp.asarray(np.stack([gate_cols(params["w_ih_l0"]),
                               gate_cols(params["w_hh_l0"])]))        # (2, P, G)

    # Layer 1: fused [w_ih_l1; w_hh_l1] for a single K=2P matmul per step.
    wl1 = np.zeros((2 * P, G), np.float32)
    wl1[0:P, :] = gate_cols(params["w_ih_l1"])     # contracts against h0
    wl1[P:2 * P, :] = gate_cols(params["w_hh_l1"])  # contracts against h1
    wl1 = jnp.asarray(wl1)                                             # (2P, G)

    # Head weights: dedicated 128-wide slabs (no GATE_W zero padding).
    whead = np.zeros((2, P, P), np.float32)
    whead[0, :H + N_ACTIONS, :FC1_SIZE] = np.asarray(params["fc1_w"], np.float32).T
    whead[1, :FC1_SIZE, :N_ACTIONS] = np.asarray(params["out_w"], np.float32).T
    whead = jnp.asarray(whead)                                         # (2, P, P)

    b = np.zeros((4, 1, G), np.float32)
    b[0] = gate_bias(np.asarray(params["b_ih_l0"]) + np.asarray(params["b_hh_l0"]))
    b[1] = gate_bias(np.asarray(params["b_ih_l1"]) + np.asarray(params["b_hh_l1"]))
    b[2, 0, :FC1_SIZE] = np.asarray(params["fc1_b"], np.float32)
    b[3, 0, :N_ACTIONS] = np.asarray(params["out_b"], np.float32)
    b = jnp.asarray(b)                                                 # (4, 1, G)

    return w0, wl1, whead, b


@jax.jit
def net_forward(features, actions, w0, wl1, whead, b):
    """Pallas-backed forward pass. features: (B, T, 9), actions: (B, 3)."""
    B, T, F = features.shape
    # Time-major, zero-pad to the 128-lane tile, flatten to (T*B, PAD).
    feats = jnp.transpose(features, (1, 0, 2)).astype(jnp.float32)
    feats = jnp.pad(feats, ((0, 0), (0, 0), (0, PAD - F))).reshape(T * B, PAD)
    # Actions placed at lanes [H, H+3) of a zero slab (implements the concat).
    actz = jnp.pad(actions.astype(jnp.float32),
                   ((0, 0), (HIDDEN_SIZE, PAD - HIDDEN_SIZE - N_ACTIONS)))

    vmem = pl.BlockSpec(memory_space=pltpu.MemorySpace.VMEM)
    anyspace = pl.BlockSpec(memory_space=pl.ANY)

    flops = (2 * (T * B) * PAD * GATE_W            # batched layer-0 projection
             + 2 * T * B * PAD * GATE_W            # layer-0 recurrent matmuls
             + 2 * T * B * (2 * PAD) * GATE_W      # fused layer-1 matmuls
             + 2 * 2 * B * PAD * PAD)              # head (fc1 + out)
    transcendentals = T * NUM_LAYER * B * 5 * PAD
    bytes_accessed = 4 * (feats.size + actz.size + w0.size + wl1.size
                          + whead.size + b.size + B * PAD)

    out_padded = pl.pallas_call(
        _net_kernel,
        out_shape=jax.ShapeDtypeStruct((B, PAD), jnp.float32),
        in_specs=[vmem, vmem, vmem, vmem, anyspace, anyspace],
        out_specs=vmem,
        scratch_shapes=[
            pltpu.VMEM((2 * PAD, GATE_W), jnp.float32),   # fused layer-1 slab
            pltpu.VMEM((2, PAD, PAD), jnp.float32),       # head slabs
            pltpu.SemaphoreType.DMA((2,)),
        ],
        cost_estimate=pl.CostEstimate(flops=flops,
                                      transcendentals=transcendentals,
                                      bytes_accessed=bytes_accessed),
    )(feats, actz, w0, b, wl1, whead)
    return out_padded[:, :N_ACTIONS]


def _reference_forward(features, actions, params):
    """Pure-JAX reference (same math) for a correctness check."""
    H = HIDDEN_SIZE
    B, T, _ = features.shape
    h = [jnp.zeros((B, H)), jnp.zeros((B, H))]
    c = [jnp.zeros((B, H)), jnp.zeros((B, H))]
    wih = [params["w_ih_l0"], params["w_ih_l1"]]
    whh = [params["w_hh_l0"], params["w_hh_l1"]]
    bih = [params["b_ih_l0"], params["b_ih_l1"]]
    bhh = [params["b_hh_l0"], params["b_hh_l1"]]
    for t in range(T):
        x = features[:, t, :]
        for l in range(NUM_LAYER):
            g = x @ wih[l].T + bih[l] + h[l] @ whh[l].T + bhh[l]
            i, f, gg, o = jnp.split(g, 4, axis=1)
            c[l] = jax.nn.sigmoid(f) * c[l] + jax.nn.sigmoid(i) * jnp.tanh(gg)
            h[l] = jax.nn.sigmoid(o) * jnp.tanh(c[l])
            x = h[l]
    z = jnp.concatenate([h[-1], actions], axis=1)
    z = jax.nn.relu(z @ params["fc1_w"].T + params["fc1_b"])
    return z @ params["out_w"].T + params["out_b"]


if __name__ == "__main__":
    key = jax.random.PRNGKey(0)
    k_param, k_feat, k_act = jax.random.split(key, 3)

    B, T = 2, 8
    features = jax.random.normal(k_feat, (B, T, FEATURE_SIZE), jnp.float32)
    actions = jax.random.normal(k_act, (B, N_ACTIONS), jnp.float32)
    params = init_params(k_param)
    w0, wl1, whead, b = pack_params(params)   # one-time, outside the per-call path

    out = jax.block_until_ready(net_forward(features, actions, w0, wl1, whead, b))

    ref = jax.block_until_ready(_reference_forward(features, actions, params))
    np.testing.assert_allclose(np.asarray(out), np.asarray(ref), rtol=1e-4, atol=1e-4)

    assert out.shape == (B, N_ACTIONS)
    print("KERNEL_OK")
</pallas_src>

<mosaic_0001>
module attributes {stable_mosaic.version = 11 : i64} {
  func.func @_net_kernel(%arg0: memref<16x128xf32, #tpu.memory_space<vmem>>, %arg1: memref<2x128xf32, #tpu.memory_space<vmem>>, %arg2: memref<2x128x512xf32, #tpu.memory_space<vmem>>, %arg3: memref<4x1x512xf32, #tpu.memory_space<vmem>>, %arg4: memref<256x512xf32, #tpu.memory_space<any>>, %arg5: memref<2x128x128xf32, #tpu.memory_space<any>>, %arg6: memref<2x128xf32, #tpu.memory_space<vmem>>, %arg7: memref<256x512xf32, #tpu.memory_space<vmem>>, %arg8: memref<2x128x128xf32, #tpu.memory_space<vmem>>, %arg9: memref<2x!tpu.dma_semaphore, #tpu.memory_space<semaphore_mem>>) attributes {dimension_semantics = [], scalar_prefetch = 0 : i64, scratch_operands = 3 : i64, tpu.core_type = #tpu.core_type<tc>} {
    %c0_i32 = arith.constant 0 : i32
    %0 = tpu.memref_slice %arg9[%c0_i32] : memref<2x!tpu.dma_semaphore, #tpu.memory_space<semaphore_mem>> -> memref<1x!tpu.dma_semaphore, #tpu.memory_space<semaphore_mem>>
    %1 = tpu.memref_squeeze %0 : memref<1x!tpu.dma_semaphore, #tpu.memory_space<semaphore_mem>> -> memref<!tpu.dma_semaphore, #tpu.memory_space<semaphore_mem>>
    tpu.enqueue_dma source(%arg4 : memref<256x512xf32, #tpu.memory_space<any>>) target(%arg7 : memref<256x512xf32, #tpu.memory_space<vmem>>) target_semaphore(%1 : memref<!tpu.dma_semaphore, #tpu.memory_space<semaphore_mem>>)
    %c1_i32 = arith.constant 1 : i32
    %2 = tpu.memref_slice %arg9[%c1_i32] : memref<2x!tpu.dma_semaphore, #tpu.memory_space<semaphore_mem>> -> memref<1x!tpu.dma_semaphore, #tpu.memory_space<semaphore_mem>>
    %3 = tpu.memref_squeeze %2 : memref<1x!tpu.dma_semaphore, #tpu.memory_space<semaphore_mem>> -> memref<!tpu.dma_semaphore, #tpu.memory_space<semaphore_mem>>
    tpu.enqueue_dma source(%arg5 : memref<2x128x128xf32, #tpu.memory_space<any>>) target(%arg8 : memref<2x128x128xf32, #tpu.memory_space<vmem>>) target_semaphore(%3 : memref<!tpu.dma_semaphore, #tpu.memory_space<semaphore_mem>>)
    %c0 = arith.constant 0 : index
    %c0_0 = arith.constant 0 : index
    %c0_1 = arith.constant 0 : index
    %4 = vector.load %arg2[%c0, %c0_0, %c0_1] : memref<2x128x512xf32, #tpu.memory_space<vmem>>, vector<1x128x512xf32>
    %5 = vector.shape_cast %4 : vector<1x128x512xf32> to vector<128x512xf32>
    %c1 = arith.constant 1 : index
    %c0_2 = arith.constant 0 : index
    %c0_3 = arith.constant 0 : index
    %6 = vector.load %arg2[%c1, %c0_2, %c0_3] : memref<2x128x512xf32, #tpu.memory_space<vmem>>, vector<1x128x512xf32>
    %7 = vector.shape_cast %6 : vector<1x128x512xf32> to vector<128x512xf32>
    %c0_4 = arith.constant 0 : index
    %c0_5 = arith.constant 0 : index
    %c0_6 = arith.constant 0 : index
    %8 = vector.load %arg3[%c0_4, %c0_5, %c0_6] : memref<4x1x512xf32, #tpu.memory_space<vmem>>, vector<1x1x512xf32>
    %9 = vector.shape_cast %8 : vector<1x1x512xf32> to vector<1x512xf32>
    %c1_7 = arith.constant 1 : index
    %c0_8 = arith.constant 0 : index
    %c0_9 = arith.constant 0 : index
    %10 = vector.load %arg3[%c1_7, %c0_8, %c0_9] : memref<4x1x512xf32, #tpu.memory_space<vmem>>, vector<1x1x512xf32>
    %11 = vector.shape_cast %10 : vector<1x1x512xf32> to vector<1x512xf32>
    %c0_10 = arith.constant 0 : index
    %c0_11 = arith.constant 0 : index
    %12 = vector.load %arg0[%c0_10, %c0_11] : memref<16x128xf32, #tpu.memory_space<vmem>>, vector<16x128xf32>
    %cst = arith.constant dense<0.000000e+00> : vector<16x512xf32>
    %13 = tpu.matmul %12, %5, %cst {dimension_numbers = #tpu.dot_dimension_numbers<[1], [0], [0], [1], [0, 0, 1, 1], [], []>} : vector<16x128xf32>, vector<128x512xf32>, vector<16x512xf32> -> vector<16x512xf32>
    %14 = vector.broadcast %9 : vector<1x512xf32> to vector<16x512xf32>
    %15 = arith.addf %13, %14 : vector<16x512xf32>
    %cst_12 = arith.constant 0.000000e+00 : f32
    %16 = vector.broadcast %cst_12 : f32 to vector<2x128xf32>
    %cst_13 = arith.constant 0.000000e+00 : f32
    %17 = vector.broadcast %cst_13 : f32 to vector<2x128xf32>
    %18 = vector.extract_strided_slice %15 {offsets = [0, 0], sizes = [2, 512], strides = [1, 1]} : vector<16x512xf32> to vector<2x512xf32>
    %cst_14 = arith.constant dense<0.000000e+00> : vector<2x512xf32>
    %19 = tpu.matmul %16, %7, %cst_14 {dimension_numbers = #tpu.dot_dimension_numbers<[1], [0], [0], [1], [0, 0, 1, 1], [], []>} : vector<2x128xf32>, vector<128x512xf32>, vector<2x512xf32> -> vector<2x512xf32>
    %20 = arith.addf %18, %19 : vector<2x512xf32>
    %21 = vector.extract_strided_slice %20 {offsets = [0, 0], sizes = [2, 128], strides = [1, 1]} : vector<2x512xf32> to vector<2x128xf32>
    %22 = arith.negf %21 : vector<2x128xf32>
    %23 = math.exp %22 : vector<2x128xf32>
    %cst_15 = arith.constant 1.000000e+00 : f32
    %24 = vector.broadcast %cst_15 : f32 to vector<2x128xf32>
    %25 = arith.addf %24, %23 : vector<2x128xf32>
    %26 = arith.divf %24, %25 : vector<2x128xf32>
    %27 = vector.extract_strided_slice %20 {offsets = [0, 128], sizes = [2, 128], strides = [1, 1]} : vector<2x512xf32> to vector<2x128xf32>
    %28 = arith.negf %27 : vector<2x128xf32>
    %29 = math.exp %28 : vector<2x128xf32>
    %cst_16 = arith.constant 1.000000e+00 : f32
    %30 = vector.broadcast %cst_16 : f32 to vector<2x128xf32>
    %31 = arith.addf %30, %29 : vector<2x128xf32>
    %32 = arith.divf %30, %31 : vector<2x128xf32>
    %33 = vector.extract_strided_slice %20 {offsets = [0, 256], sizes = [2, 128], strides = [1, 1]} : vector<2x512xf32> to vector<2x128xf32>
    %34 = math.tanh %33 : vector<2x128xf32>
    %35 = vector.extract_strided_slice %20 {offsets = [0, 384], sizes = [2, 128], strides = [1, 1]} : vector<2x512xf32> to vector<2x128xf32>
    %36 = arith.negf %35 : vector<2x128xf32>
    %37 = math.exp %36 : vector<2x128xf32>
    %cst_17 = arith.constant 1.000000e+00 : f32
    %38 = vector.broadcast %cst_17 : f32 to vector<2x128xf32>
    %39 = arith.addf %38, %37 : vector<2x128xf32>
    %40 = arith.divf %38, %39 : vector<2x128xf32>
    %41 = arith.mulf %32, %17 : vector<2x128xf32>
    %42 = arith.mulf %26, %34 : vector<2x128xf32>
    %43 = arith.addf %41, %42 : vector<2x128xf32>
    %44 = math.tanh %43 : vector<2x128xf32>
    %45 = arith.mulf %40, %44 : vector<2x128xf32>
    %46 = vector.extract_strided_slice %15 {offsets = [2, 0], sizes = [2, 512], strides = [1, 1]} : vector<16x512xf32> to vector<2x512xf32>
    %cst_18 = arith.constant dense<0.000000e+00> : vector<2x512xf32>
    %47 = tpu.matmul %45, %7, %cst_18 {dimension_numbers = #tpu.dot_dimension_numbers<[1], [0], [0], [1], [0, 0, 1, 1], [], []>} : vector<2x128xf32>, vector<128x512xf32>, vector<2x512xf32> -> vector<2x512xf32>
    %48 = arith.addf %46, %47 : vector<2x512xf32>
    %49 = vector.extract_strided_slice %48 {offsets = [0, 0], sizes = [2, 128], strides = [1, 1]} : vector<2x512xf32> to vector<2x128xf32>
    %50 = arith.negf %49 : vector<2x128xf32>
    %51 = math.exp %50 : vector<2x128xf32>
    %cst_19 = arith.constant 1.000000e+00 : f32
    %52 = vector.broadcast %cst_19 : f32 to vector<2x128xf32>
    %53 = arith.addf %52, %51 : vector<2x128xf32>
    %54 = arith.divf %52, %53 : vector<2x128xf32>
    %55 = vector.extract_strided_slice %48 {offsets = [0, 128], sizes = [2, 128], strides = [1, 1]} : vector<2x512xf32> to vector<2x128xf32>
    %56 = arith.negf %55 : vector<2x128xf32>
    %57 = math.exp %56 : vector<2x128xf32>
    %cst_20 = arith.constant 1.000000e+00 : f32
    %58 = vector.broadcast %cst_20 : f32 to vector<2x128xf32>
    %59 = arith.addf %58, %57 : vector<2x128xf32>
    %60 = arith.divf %58, %59 : vector<2x128xf32>
    %61 = vector.extract_strided_slice %48 {offsets = [0, 256], sizes = [2, 128], strides = [1, 1]} : vector<2x512xf32> to vector<2x128xf32>
    %62 = math.tanh %61 : vector<2x128xf32>
    %63 = vector.extract_strided_slice %48 {offsets = [0, 384], sizes = [2, 128], strides = [1, 1]} : vector<2x512xf32> to vector<2x128xf32>
    %64 = arith.negf %63 : vector<2x128xf32>
    %65 = math.exp %64 : vector<2x128xf32>
    %cst_21 = arith.constant 1.000000e+00 : f32
    %66 = vector.broadcast %cst_21 : f32 to vector<2x128xf32>
    %67 = arith.addf %66, %65 : vector<2x128xf32>
    %68 = arith.divf %66, %67 : vector<2x128xf32>
    %69 = arith.mulf %60, %43 : vector<2x128xf32>
    %70 = arith.mulf %54, %62 : vector<2x128xf32>
    %71 = arith.addf %69, %70 : vector<2x128xf32>
    %72 = math.tanh %71 : vector<2x128xf32>
    %73 = arith.mulf %68, %72 : vector<2x128xf32>
    %74 = vector.extract_strided_slice %15 {offsets = [4, 0], sizes = [2, 512], strides = [1, 1]} : vector<16x512xf32> to vector<2x512xf32>
    %cst_22 = arith.constant dense<0.000000e+00> : vector<2x512xf32>
    %75 = tpu.matmul %73, %7, %cst_22 {dimension_numbers = #tpu.dot_dimension_numbers<[1], [0], [0], [1], [0, 0, 1, 1], [], []>} : vector<2x128xf32>, vector<128x512xf32>, vector<2x512xf32> -> vector<2x512xf32>
    %76 = arith.addf %74, %75 : vector<2x512xf32>
    %77 = vector.extract_strided_slice %76 {offsets = [0, 0], sizes = [2, 128], strides = [1, 1]} : vector<2x512xf32> to vector<2x128xf32>
    %78 = arith.negf %77 : vector<2x128xf32>
    %79 = math.exp %78 : vector<2x128xf32>
    %cst_23 = arith.constant 1.000000e+00 : f32
    %80 = vector.broadcast %cst_23 : f32 to vector<2x128xf32>
    %81 = arith.addf %80, %79 : vector<2x128xf32>
    %82 = arith.divf %80, %81 : vector<2x128xf32>
    %83 = vector.extract_strided_slice %76 {offsets = [0, 128], sizes = [2, 128], strides = [1, 1]} : vector<2x512xf32> to vector<2x128xf32>
    %84 = arith.negf %83 : vector<2x128xf32>
    %85 = math.exp %84 : vector<2x128xf32>
    %cst_24 = arith.constant 1.000000e+00 : f32
    %86 = vector.broadcast %cst_24 : f32 to vector<2x128xf32>
    %87 = arith.addf %86, %85 : vector<2x128xf32>
    %88 = arith.divf %86, %87 : vector<2x128xf32>
    %89 = vector.extract_strided_slice %76 {offsets = [0, 256], sizes = [2, 128], strides = [1, 1]} : vector<2x512xf32> to vector<2x128xf32>
    %90 = math.tanh %89 : vector<2x128xf32>
    %91 = vector.extract_strided_slice %76 {offsets = [0, 384], sizes = [2, 128], strides = [1, 1]} : vector<2x512xf32> to vector<2x128xf32>
    %92 = arith.negf %91 : vector<2x128xf32>
    %93 = math.exp %92 : vector<2x128xf32>
    %cst_25 = arith.constant 1.000000e+00 : f32
    %94 = vector.broadcast %cst_25 : f32 to vector<2x128xf32>
    %95 = arith.addf %94, %93 : vector<2x128xf32>
    %96 = arith.divf %94, %95 : vector<2x128xf32>
    %97 = arith.mulf %88, %71 : vector<2x128xf32>
    %98 = arith.mulf %82, %90 : vector<2x128xf32>
    %99 = arith.addf %97, %98 : vector<2x128xf32>
    %100 = math.tanh %99 : vector<2x128xf32>
    %101 = arith.mulf %96, %100 : vector<2x128xf32>
    %102 = vector.extract_strided_slice %15 {offsets = [6, 0], sizes = [2, 512], strides = [1, 1]} : vector<16x512xf32> to vector<2x512xf32>
    %cst_26 = arith.constant dense<0.000000e+00> : vector<2x512xf32>
    %103 = tpu.matmul %101, %7, %cst_26 {dimension_numbers = #tpu.dot_dimension_numbers<[1], [0], [0], [1], [0, 0, 1, 1], [], []>} : vector<2x128xf32>, vector<128x512xf32>, vector<2x512xf32> -> vector<2x512xf32>
    %104 = arith.addf %102, %103 : vector<2x512xf32>
    %105 = vector.extract_strided_slice %104 {offsets = [0, 0], sizes = [2, 128], strides = [1, 1]} : vector<2x512xf32> to vector<2x128xf32>
    %106 = arith.negf %105 : vector<2x128xf32>
    %107 = math.exp %106 : vector<2x128xf32>
    %cst_27 = arith.constant 1.000000e+00 : f32
    %108 = vector.broadcast %cst_27 : f32 to vector<2x128xf32>
    %109 = arith.addf %108, %107 : vector<2x128xf32>
    %110 = arith.divf %108, %109 : vector<2x128xf32>
    %111 = vector.extract_strided_slice %104 {offsets = [0, 128], sizes = [2, 128], strides = [1, 1]} : vector<2x512xf32> to vector<2x128xf32>
    %112 = arith.negf %111 : vector<2x128xf32>
    %113 = math.exp %112 : vector<2x128xf32>
    %cst_28 = arith.constant 1.000000e+00 : f32
    %114 = vector.broadcast %cst_28 : f32 to vector<2x128xf32>
    %115 = arith.addf %114, %113 : vector<2x128xf32>
    %116 = arith.divf %114, %115 : vector<2x128xf32>
    %117 = vector.extract_strided_slice %104 {offsets = [0, 256], sizes = [2, 128], strides = [1, 1]} : vector<2x512xf32> to vector<2x128xf32>
    %118 = math.tanh %117 : vector<2x128xf32>
    %119 = vector.extract_strided_slice %104 {offsets = [0, 384], sizes = [2, 128], strides = [1, 1]} : vector<2x512xf32> to vector<2x128xf32>
    %120 = arith.negf %119 : vector<2x128xf32>
    %121 = math.exp %120 : vector<2x128xf32>
    %cst_29 = arith.constant 1.000000e+00 : f32
    %122 = vector.broadcast %cst_29 : f32 to vector<2x128xf32>
    %123 = arith.addf %122, %121 : vector<2x128xf32>
    %124 = arith.divf %122, %123 : vector<2x128xf32>
    %125 = arith.mulf %116, %99 : vector<2x128xf32>
    %126 = arith.mulf %110, %118 : vector<2x128xf32>
    %127 = arith.addf %125, %126 : vector<2x128xf32>
    %128 = math.tanh %127 : vector<2x128xf32>
    %129 = arith.mulf %124, %128 : vector<2x128xf32>
    %130 = vector.extract_strided_slice %15 {offsets = [8, 0], sizes = [2, 512], strides = [1, 1]} : vector<16x512xf32> to vector<2x512xf32>
    %cst_30 = arith.constant dense<0.000000e+00> : vector<2x512xf32>
    %131 = tpu.matmul %129, %7, %cst_30 {dimension_numbers = #tpu.dot_dimension_numbers<[1], [0], [0], [1], [0, 0, 1, 1], [], []>} : vector<2x128xf32>, vector<128x512xf32>, vector<2x512xf32> -> vector<2x512xf32>
    %132 = arith.addf %130, %131 : vector<2x512xf32>
    %133 = vector.extract_strided_slice %132 {offsets = [0, 0], sizes = [2, 128], strides = [1, 1]} : vector<2x512xf32> to vector<2x128xf32>
    %134 = arith.negf %133 : vector<2x128xf32>
    %135 = math.exp %134 : vector<2x128xf32>
    %cst_31 = arith.constant 1.000000e+00 : f32
    %136 = vector.broadcast %cst_31 : f32 to vector<2x128xf32>
    %137 = arith.addf %136, %135 : vector<2x128xf32>
    %138 = arith.divf %136, %137 : vector<2x128xf32>
    %139 = vector.extract_strided_slice %132 {offsets = [0, 128], sizes = [2, 128], strides = [1, 1]} : vector<2x512xf32> to vector<2x128xf32>
    %140 = arith.negf %139 : vector<2x128xf32>
    %141 = math.exp %140 : vector<2x128xf32>
    %cst_32 = arith.constant 1.000000e+00 : f32
    %142 = vector.broadcast %cst_32 : f32 to vector<2x128xf32>
    %143 = arith.addf %142, %141 : vector<2x128xf32>
    %144 = arith.divf %142, %143 : vector<2x128xf32>
    %145 = vector.extract_strided_slice %132 {offsets = [0, 256], sizes = [2, 128], strides = [1, 1]} : vector<2x512xf32> to vector<2x128xf32>
    %146 = math.tanh %145 : vector<2x128xf32>
    %147 = vector.extract_strided_slice %132 {offsets = [0, 384], sizes = [2, 128], strides = [1, 1]} : vector<2x512xf32> to vector<2x128xf32>
    %148 = arith.negf %147 : vector<2x128xf32>
    %149 = math.exp %148 : vector<2x128xf32>
    %cst_33 = arith.constant 1.000000e+00 : f32
    %150 = vector.broadcast %cst_33 : f32 to vector<2x128xf32>
    %151 = arith.addf %150, %149 : vector<2x128xf32>
    %152 = arith.divf %150, %151 : vector<2x128xf32>
    %153 = arith.mulf %144, %127 : vector<2x128xf32>
    %154 = arith.mulf %138, %146 : vector<2x128xf32>
    %155 = arith.addf %153, %154 : vector<2x128xf32>
    %156 = math.tanh %155 : vector<2x128xf32>
    %157 = arith.mulf %152, %156 : vector<2x128xf32>
    %158 = vector.extract_strided_slice %15 {offsets = [10, 0], sizes = [2, 512], strides = [1, 1]} : vector<16x512xf32> to vector<2x512xf32>
    %cst_34 = arith.constant dense<0.000000e+00> : vector<2x512xf32>
    %159 = tpu.matmul %157, %7, %cst_34 {dimension_numbers = #tpu.dot_dimension_numbers<[1], [0], [0], [1], [0, 0, 1, 1], [], []>} : vector<2x128xf32>, vector<128x512xf32>, vector<2x512xf32> -> vector<2x512xf32>
    %160 = arith.addf %158, %159 : vector<2x512xf32>
    %161 = vector.extract_strided_slice %160 {offsets = [0, 0], sizes = [2, 128], strides = [1, 1]} : vector<2x512xf32> to vector<2x128xf32>
    %162 = arith.negf %161 : vector<2x128xf32>
    %163 = math.exp %162 : vector<2x128xf32>
    %cst_35 = arith.constant 1.000000e+00 : f32
    %164 = vector.broadcast %cst_35 : f32 to vector<2x128xf32>
    %165 = arith.addf %164, %163 : vector<2x128xf32>
    %166 = arith.divf %164, %165 : vector<2x128xf32>
    %167 = vector.extract_strided_slice %160 {offsets = [0, 128], sizes = [2, 128], strides = [1, 1]} : vector<2x512xf32> to vector<2x128xf32>
    %168 = arith.negf %167 : vector<2x128xf32>
    %169 = math.exp %168 : vector<2x128xf32>
    %cst_36 = arith.constant 1.000000e+00 : f32
    %170 = vector.broadcast %cst_36 : f32 to vector<2x128xf32>
    %171 = arith.addf %170, %169 : vector<2x128xf32>
    %172 = arith.divf %170, %171 : vector<2x128xf32>
    %173 = vector.extract_strided_slice %160 {offsets = [0, 256], sizes = [2, 128], strides = [1, 1]} : vector<2x512xf32> to vector<2x128xf32>
    %174 = math.tanh %173 : vector<2x128xf32>
    %175 = vector.extract_strided_slice %160 {offsets = [0, 384], sizes = [2, 128], strides = [1, 1]} : vector<2x512xf32> to vector<2x128xf32>
    %176 = arith.negf %175 : vector<2x128xf32>
    %177 = math.exp %176 : vector<2x128xf32>
    %cst_37 = arith.constant 1.000000e+00 : f32
    %178 = vector.broadcast %cst_37 : f32 to vector<2x128xf32>
    %179 = arith.addf %178, %177 : vector<2x128xf32>
    %180 = arith.divf %178, %179 : vector<2x128xf32>
    %181 = arith.mulf %172, %155 : vector<2x128xf32>
    %182 = arith.mulf %166, %174 : vector<2x128xf32>
    %183 = arith.addf %181, %182 : vector<2x128xf32>
    %184 = math.tanh %183 : vector<2x128xf32>
    %185 = arith.mulf %180, %184 : vector<2x128xf32>
    %186 = vector.extract_strided_slice %15 {offsets = [12, 0], sizes = [2, 512], strides = [1, 1]} : vector<16x512xf32> to vector<2x512xf32>
    %cst_38 = arith.constant dense<0.000000e+00> : vector<2x512xf32>
    %187 = tpu.matmul %185, %7, %cst_38 {dimension_numbers = #tpu.dot_dimension_numbers<[1], [0], [0], [1], [0, 0, 1, 1], [], []>} : vector<2x128xf32>, vector<128x512xf32>, vector<2x512xf32> -> vector<2x512xf32>
    %188 = arith.addf %186, %187 : vector<2x512xf32>
    %189 = vector.extract_strided_slice %188 {offsets = [0, 0], sizes = [2, 128], strides = [1, 1]} : vector<2x512xf32> to vector<2x128xf32>
    %190 = arith.negf %189 : vector<2x128xf32>
    %191 = math.exp %190 : vector<2x128xf32>
    %cst_39 = arith.constant 1.000000e+00 : f32
    %192 = vector.broadcast %cst_39 : f32 to vector<2x128xf32>
    %193 = arith.addf %192, %191 : vector<2x128xf32>
    %194 = arith.divf %192, %193 : vector<2x128xf32>
    %195 = vector.extract_strided_slice %188 {offsets = [0, 128], sizes = [2, 128], strides = [1, 1]} : vector<2x512xf32> to vector<2x128xf32>
    %196 = arith.negf %195 : vector<2x128xf32>
    %197 = math.exp %196 : vector<2x128xf32>
    %cst_40 = arith.constant 1.000000e+00 : f32
    %198 = vector.broadcast %cst_40 : f32 to vector<2x128xf32>
    %199 = arith.addf %198, %197 : vector<2x128xf32>
    %200 = arith.divf %198, %199 : vector<2x128xf32>
    %201 = vector.extract_strided_slice %188 {offsets = [0, 256], sizes = [2, 128], strides = [1, 1]} : vector<2x512xf32> to vector<2x128xf32>
    %202 = math.tanh %201 : vector<2x128xf32>
    %203 = vector.extract_strided_slice %188 {offsets = [0, 384], sizes = [2, 128], strides = [1, 1]} : vector<2x512xf32> to vector<2x128xf32>
    %204 = arith.negf %203 : vector<2x128xf32>
    %205 = math.exp %204 : vector<2x128xf32>
    %cst_41 = arith.constant 1.000000e+00 : f32
    %206 = vector.broadcast %cst_41 : f32 to vector<2x128xf32>
    %207 = arith.addf %206, %205 : vector<2x128xf32>
    %208 = arith.divf %206, %207 : vector<2x128xf32>
    %209 = arith.mulf %200, %183 : vector<2x128xf32>
    %210 = arith.mulf %194, %202 : vector<2x128xf32>
    %211 = arith.addf %209, %210 : vector<2x128xf32>
    %212 = math.tanh %211 : vector<2x128xf32>
    %213 = arith.mulf %208, %212 : vector<2x128xf32>
    %214 = vector.extract_strided_slice %15 {offsets = [14, 0], sizes = [2, 512], strides = [1, 1]} : vector<16x512xf32> to vector<2x512xf32>
    %cst_42 = arith.constant dense<0.000000e+00> : vector<2x512xf32>
    %215 = tpu.matmul %213, %7, %cst_42 {dimension_numbers = #tpu.dot_dimension_numbers<[1], [0], [0], [1], [0, 0, 1, 1], [], []>} : vector<2x128xf32>, vector<128x512xf32>, vector<2x512xf32> -> vector<2x512xf32>
    %216 = arith.addf %214, %215 : vector<2x512xf32>
    %217 = vector.extract_strided_slice %216 {offsets = [0, 0], sizes = [2, 128], strides = [1, 1]} : vector<2x512xf32> to vector<2x128xf32>
    %218 = arith.negf %217 : vector<2x128xf32>
    %219 = math.exp %218 : vector<2x128xf32>
    %cst_43 = arith.constant 1.000000e+00 : f32
    %220 = vector.broadcast %cst_43 : f32 to vector<2x128xf32>
    %221 = arith.addf %220, %219 : vector<2x128xf32>
    %222 = arith.divf %220, %221 : vector<2x128xf32>
    %223 = vector.extract_strided_slice %216 {offsets = [0, 128], sizes = [2, 128], strides = [1, 1]} : vector<2x512xf32> to vector<2x128xf32>
    %224 = arith.negf %223 : vector<2x128xf32>
    %225 = math.exp %224 : vector<2x128xf32>
    %cst_44 = arith.constant 1.000000e+00 : f32
    %226 = vector.broadcast %cst_44 : f32 to vector<2x128xf32>
    %227 = arith.addf %226, %225 : vector<2x128xf32>
    %228 = arith.divf %226, %227 : vector<2x128xf32>
    %229 = vector.extract_strided_slice %216 {offsets = [0, 256], sizes = [2, 128], strides = [1, 1]} : vector<2x512xf32> to vector<2x128xf32>
    %230 = math.tanh %229 : vector<2x128xf32>
    %231 = vector.extract_strided_slice %216 {offsets = [0, 384], sizes = [2, 128], strides = [1, 1]} : vector<2x512xf32> to vector<2x128xf32>
    %232 = arith.negf %231 : vector<2x128xf32>
    %233 = math.exp %232 : vector<2x128xf32>
    %cst_45 = arith.constant 1.000000e+00 : f32
    %234 = vector.broadcast %cst_45 : f32 to vector<2x128xf32>
    %235 = arith.addf %234, %233 : vector<2x128xf32>
    %236 = arith.divf %234, %235 : vector<2x128xf32>
    %237 = arith.mulf %228, %211 : vector<2x128xf32>
    %238 = arith.mulf %222, %230 : vector<2x128xf32>
    %239 = arith.addf %237, %238 : vector<2x128xf32>
    %240 = math.tanh %239 : vector<2x128xf32>
    %241 = arith.mulf %236, %240 : vector<2x128xf32>
    %c0_i32_46 = arith.constant 0 : i32
    %242 = tpu.memref_slice %arg9[%c0_i32_46] : memref<2x!tpu.dma_semaphore, #tpu.memory_space<semaphore_mem>> -> memref<1x!tpu.dma_semaphore, #tpu.memory_space<semaphore_mem>>
    %243 = tpu.memref_squeeze %242 : memref<1x!tpu.dma_semaphore, #tpu.memory_space<semaphore_mem>> -> memref<!tpu.dma_semaphore, #tpu.memory_space<semaphore_mem>>
    tpu.wait_dma2 semaphore(%243 : memref<!tpu.dma_semaphore, #tpu.memory_space<semaphore_mem>>) src(%arg4 : memref<256x512xf32, #tpu.memory_space<any>>) dst(%arg7 : memref<256x512xf32, #tpu.memory_space<vmem>>)
    %c0_47 = arith.constant 0 : index
    %c0_48 = arith.constant 0 : index
    %244 = vector.load %arg7[%c0_47, %c0_48] : memref<256x512xf32, #tpu.memory_space<vmem>>, vector<256x512xf32>
    %cst_49 = arith.constant 0.000000e+00 : f32
    %245 = vector.broadcast %cst_49 : f32 to vector<2x128xf32>
    %cst_50 = arith.constant 0.000000e+00 : f32
    %246 = vector.broadcast %cst_50 : f32 to vector<2x128xf32>
    %247 = tpu.concatenate %45, %245 in 1 : vector<2x128xf32>, vector<2x128xf32> -> vector<2x256xf32>
    %cst_51 = arith.constant dense<0.000000e+00> : vector<2x512xf32>
    %248 = tpu.matmul %247, %244, %cst_51 {dimension_numbers = #tpu.dot_dimension_numbers<[1], [0], [0], [1], [0, 0, 1, 1], [], []>} : vector<2x256xf32>, vector<256x512xf32>, vector<2x512xf32> -> vector<2x512xf32>
    %249 = vector.broadcast %11 : vector<1x512xf32> to vector<2x512xf32>
    %250 = arith.addf %248, %249 : vector<2x512xf32>
    %251 = vector.extract_strided_slice %250 {offsets = [0, 0], sizes = [2, 128], strides = [1, 1]} : vector<2x512xf32> to vector<2x128xf32>
    %252 = arith.negf %251 : vector<2x128xf32>
    %253 = math.exp %252 : vector<2x128xf32>
    %cst_52 = arith.constant 1.000000e+00 : f32
    %254 = vector.broadcast %cst_52 : f32 to vector<2x128xf32>
    %255 = arith.addf %254, %253 : vector<2x128xf32>
    %256 = arith.divf %254, %255 : vector<2x128xf32>
    %257 = vector.extract_strided_slice %250 {offsets = [0, 128], sizes = [2, 128], strides = [1, 1]} : vector<2x512xf32> to vector<2x128xf32>
    %258 = arith.negf %257 : vector<2x128xf32>
    %259 = math.exp %258 : vector<2x128xf32>
    %cst_53 = arith.constant 1.000000e+00 : f32
    %260 = vector.broadcast %cst_53 : f32 to vector<2x128xf32>
    %261 = arith.addf %260, %259 : vector<2x128xf32>
    %262 = arith.divf %260, %261 : vector<2x128xf32>
    %263 = vector.extract_strided_slice %250 {offsets = [0, 256], sizes = [2, 128], strides = [1, 1]} : vector<2x512xf32> to vector<2x128xf32>
    %264 = math.tanh %263 : vector<2x128xf32>
    %265 = vector.extract_strided_slice %250 {offsets = [0, 384], sizes = [2, 128], strides = [1, 1]} : vector<2x512xf32> to vector<2x128xf32>
    %266 = arith.negf %265 : vector<2x128xf32>
    %267 = math.exp %266 : vector<2x128xf32>
    %cst_54 = arith.constant 1.000000e+00 : f32
    %268 = vector.broadcast %cst_54 : f32 to vector<2x128xf32>
    %269 = arith.addf %268, %267 : vector<2x128xf32>
    %270 = arith.divf %268, %269 : vector<2x128xf32>
    %271 = arith.mulf %262, %246 : vector<2x128xf32>
    %272 = arith.mulf %256, %264 : vector<2x128xf32>
    %273 = arith.addf %271, %272 : vector<2x128xf32>
    %274 = math.tanh %273 : vector<2x128xf32>
    %275 = arith.mulf %270, %274 : vector<2x128xf32>
    %276 = tpu.concatenate %73, %275 in 1 : vector<2x128xf32>, vector<2x128xf32> -> vector<2x256xf32>
    %cst_55 = arith.constant dense<0.000000e+00> : vector<2x512xf32>
    %277 = tpu.matmul %276, %244, %cst_55 {dimension_numbers = #tpu.dot_dimension_numbers<[1], [0], [0], [1], [0, 0, 1, 1], [], []>} : vector<2x256xf32>, vector<256x512xf32>, vector<2x512xf32> -> vector<2x512xf32>
    %278 = vector.broadcast %11 : vector<1x512xf32> to vector<2x512xf32>
    %279 = arith.addf %277, %278 : vector<2x512xf32>
    %280 = vector.extract_strided_slice %279 {offsets = [0, 0], sizes = [2, 128], strides = [1, 1]} : vector<2x512xf32> to vector<2x128xf32>
    %281 = arith.negf %280 : vector<2x128xf32>
    %282 = math.exp %281 : vector<2x128xf32>
    %cst_56 = arith.constant 1.000000e+00 : f32
    %283 = vector.broadcast %cst_56 : f32 to vector<2x128xf32>
    %284 = arith.addf %283, %282 : vector<2x128xf32>
    %285 = arith.divf %283, %284 : vector<2x128xf32>
    %286 = vector.extract_strided_slice %279 {offsets = [0, 128], sizes = [2, 128], strides = [1, 1]} : vector<2x512xf32> to vector<2x128xf32>
    %287 = arith.negf %286 : vector<2x128xf32>
    %288 = math.exp %287 : vector<2x128xf32>
    %cst_57 = arith.constant 1.000000e+00 : f32
    %289 = vector.broadcast %cst_57 : f32 to vector<2x128xf32>
    %290 = arith.addf %289, %288 : vector<2x128xf32>
    %291 = arith.divf %289, %290 : vector<2x128xf32>
    %292 = vector.extract_strided_slice %279 {offsets = [0, 256], sizes = [2, 128], strides = [1, 1]} : vector<2x512xf32> to vector<2x128xf32>
    %293 = math.tanh %292 : vector<2x128xf32>
    %294 = vector.extract_strided_slice %279 {offsets = [0, 384], sizes = [2, 128], strides = [1, 1]} : vector<2x512xf32> to vector<2x128xf32>
    %295 = arith.negf %294 : vector<2x128xf32>
    %296 = math.exp %295 : vector<2x128xf32>
    %cst_58 = arith.constant 1.000000e+00 : f32
    %297 = vector.broadcast %cst_58 : f32 to vector<2x128xf32>
    %298 = arith.addf %297, %296 : vector<2x128xf32>
    %299 = arith.divf %297, %298 : vector<2x128xf32>
    %300 = arith.mulf %291, %273 : vector<2x128xf32>
    %301 = arith.mulf %285, %293 : vector<2x128xf32>
    %302 = arith.addf %300, %301 : vector<2x128xf32>
    %303 = math.tanh %302 : vector<2x128xf32>
    %304 = arith.mulf %299, %303 : vector<2x128xf32>
    %305 = tpu.concatenate %101, %304 in 1 : vector<2x128xf32>, vector<2x128xf32> -> vector<2x256xf32>
    %cst_59 = arith.constant dense<0.000000e+00> : vector<2x512xf32>
    %306 = tpu.matmul %305, %244, %cst_59 {dimension_numbers = #tpu.dot_dimension_numbers<[1], [0], [0], [1], [0, 0, 1, 1], [], []>} : vector<2x256xf32>, vector<256x512xf32>, vector<2x512xf32> -> vector<2x512xf32>
    %307 = vector.broadcast %11 : vector<1x512xf32> to vector<2x512xf32>
    %308 = arith.addf %306, %307 : vector<2x512xf32>
    %309 = vector.extract_strided_slice %308 {offsets = [0, 0], sizes = [2, 128], strides = [1, 1]} : vector<2x512xf32> to vector<2x128xf32>
    %310 = arith.negf %309 : vector<2x128xf32>
    %311 = math.exp %310 : vector<2x128xf32>
    %cst_60 = arith.constant 1.000000e+00 : f32
    %312 = vector.broadcast %cst_60 : f32 to vector<2x128xf32>
    %313 = arith.addf %312, %311 : vector<2x128xf32>
    %314 = arith.divf %312, %313 : vector<2x128xf32>
    %315 = vector.extract_strided_slice %308 {offsets = [0, 128], sizes = [2, 128], strides = [1, 1]} : vector<2x512xf32> to vector<2x128xf32>
    %316 = arith.negf %315 : vector<2x128xf32>
    %317 = math.exp %316 : vector<2x128xf32>
    %cst_61 = arith.constant 1.000000e+00 : f32
    %318 = vector.broadcast %cst_61 : f32 to vector<2x128xf32>
    %319 = arith.addf %318, %317 : vector<2x128xf32>
    %320 = arith.divf %318, %319 : vector<2x128xf32>
    %321 = vector.extract_strided_slice %308 {offsets = [0, 256], sizes = [2, 128], strides = [1, 1]} : vector<2x512xf32> to vector<2x128xf32>
    %322 = math.tanh %321 : vector<2x128xf32>
    %323 = vector.extract_strided_slice %308 {offsets = [0, 384], sizes = [2, 128], strides = [1, 1]} : vector<2x512xf32> to vector<2x128xf32>
    %324 = arith.negf %323 : vector<2x128xf32>
    %325 = math.exp %324 : vector<2x128xf32>
    %cst_62 = arith.constant 1.000000e+00 : f32
    %326 = vector.broadcast %cst_62 : f32 to vector<2x128xf32>
    %327 = arith.addf %326, %325 : vector<2x128xf32>
    %328 = arith.divf %326, %327 : vector<2x128xf32>
    %329 = arith.mulf %320, %302 : vector<2x128xf32>
    %330 = arith.mulf %314, %322 : vector<2x128xf32>
    %331 = arith.addf %329, %330 : vector<2x128xf32>
    %332 = math.tanh %331 : vector<2x128xf32>
    %333 = arith.mulf %328, %332 : vector<2x128xf32>
    %334 = tpu.concatenate %129, %333 in 1 : vector<2x128xf32>, vector<2x128xf32> -> vector<2x256xf32>
    %cst_63 = arith.constant dense<0.000000e+00> : vector<2x512xf32>
    %335 = tpu.matmul %334, %244, %cst_63 {dimension_numbers = #tpu.dot_dimension_numbers<[1], [0], [0], [1], [0, 0, 1, 1], [], []>} : vector<2x256xf32>, vector<256x512xf32>, vector<2x512xf32> -> vector<2x512xf32>
    %336 = vector.broadcast %11 : vector<1x512xf32> to vector<2x512xf32>
    %337 = arith.addf %335, %336 : vector<2x512xf32>
    %338 = vector.extract_strided_slice %337 {offsets = [0, 0], sizes = [2, 128], strides = [1, 1]} : vector<2x512xf32> to vector<2x128xf32>
    %339 = arith.negf %338 : vector<2x128xf32>
    %340 = math.exp %339 : vector<2x128xf32>
    %cst_64 = arith.constant 1.000000e+00 : f32
    %341 = vector.broadcast %cst_64 : f32 to vector<2x128xf32>
    %342 = arith.addf %341, %340 : vector<2x128xf32>
    %343 = arith.divf %341, %342 : vector<2x128xf32>
    %344 = vector.extract_strided_slice %337 {offsets = [0, 128], sizes = [2, 128], strides = [1, 1]} : vector<2x512xf32> to vector<2x128xf32>
    %345 = arith.negf %344 : vector<2x128xf32>
    %346 = math.exp %345 : vector<2x128xf32>
    %cst_65 = arith.constant 1.000000e+00 : f32
    %347 = vector.broadcast %cst_65 : f32 to vector<2x128xf32>
    %348 = arith.addf %347, %346 : vector<2x128xf32>
    %349 = arith.divf %347, %348 : vector<2x128xf32>
    %350 = vector.extract_strided_slice %337 {offsets = [0, 256], sizes = [2, 128], strides = [1, 1]} : vector<2x512xf32> to vector<2x128xf32>
    %351 = math.tanh %350 : vector<2x128xf32>
    %352 = vector.extract_strided_slice %337 {offsets = [0, 384], sizes = [2, 128], strides = [1, 1]} : vector<2x512xf32> to vector<2x128xf32>
    %353 = arith.negf %352 : vector<2x128xf32>
    %354 = math.exp %353 : vector<2x128xf32>
    %cst_66 = arith.constant 1.000000e+00 : f32
    %355 = vector.broadcast %cst_66 : f32 to vector<2x128xf32>
    %356 = arith.addf %355, %354 : vector<2x128xf32>
    %357 = arith.divf %355, %356 : vector<2x128xf32>
    %358 = arith.mulf %349, %331 : vector<2x128xf32>
    %359 = arith.mulf %343, %351 : vector<2x128xf32>
    %360 = arith.addf %358, %359 : vector<2x128xf32>
    %361 = math.tanh %360 : vector<2x128xf32>
    %362 = arith.mulf %357, %361 : vector<2x128xf32>
    %363 = tpu.concatenate %157, %362 in 1 : vector<2x128xf32>, vector<2x128xf32> -> vector<2x256xf32>
    %cst_67 = arith.constant dense<0.000000e+00> : vector<2x512xf32>
    %364 = tpu.matmul %363, %244, %cst_67 {dimension_numbers = #tpu.dot_dimension_numbers<[1], [0], [0], [1], [0, 0, 1, 1], [], []>} : vector<2x256xf32>, vector<256x512xf32>, vector<2x512xf32> -> vector<2x512xf32>
    %365 = vector.broadcast %11 : vector<1x512xf32> to vector<2x512xf32>
    %366 = arith.addf %364, %365 : vector<2x512xf32>
    %367 = vector.extract_strided_slice %366 {offsets = [0, 0], sizes = [2, 128], strides = [1, 1]} : vector<2x512xf32> to vector<2x128xf32>
    %368 = arith.negf %367 : vector<2x128xf32>
    %369 = math.exp %368 : vector<2x128xf32>
    %cst_68 = arith.constant 1.000000e+00 : f32
    %370 = vector.broadcast %cst_68 : f32 to vector<2x128xf32>
    %371 = arith.addf %370, %369 : vector<2x128xf32>
    %372 = arith.divf %370, %371 : vector<2x128xf32>
    %373 = vector.extract_strided_slice %366 {offsets = [0, 128], sizes = [2, 128], strides = [1, 1]} : vector<2x512xf32> to vector<2x128xf32>
    %374 = arith.negf %373 : vector<2x128xf32>
    %375 = math.exp %374 : vector<2x128xf32>
    %cst_69 = arith.constant 1.000000e+00 : f32
    %376 = vector.broadcast %cst_69 : f32 to vector<2x128xf32>
    %377 = arith.addf %376, %375 : vector<2x128xf32>
    %378 = arith.divf %376, %377 : vector<2x128xf32>
    %379 = vector.extract_strided_slice %366 {offsets = [0, 256], sizes = [2, 128], strides = [1, 1]} : vector<2x512xf32> to vector<2x128xf32>
    %380 = math.tanh %379 : vector<2x128xf32>
    %381 = vector.extract_strided_slice %366 {offsets = [0, 384], sizes = [2, 128], strides = [1, 1]} : vector<2x512xf32> to vector<2x128xf32>
    %382 = arith.negf %381 : vector<2x128xf32>
    %383 = math.exp %382 : vector<2x128xf32>
    %cst_70 = arith.constant 1.000000e+00 : f32
    %384 = vector.broadcast %cst_70 : f32 to vector<2x128xf32>
    %385 = arith.addf %384, %383 : vector<2x128xf32>
    %386 = arith.divf %384, %385 : vector<2x128xf32>
    %387 = arith.mulf %378, %360 : vector<2x128xf32>
    %388 = arith.mulf %372, %380 : vector<2x128xf32>
    %389 = arith.addf %387, %388 : vector<2x128xf32>
    %390 = math.tanh %389 : vector<2x128xf32>
    %391 = arith.mulf %386, %390 : vector<2x128xf32>
    %392 = tpu.concatenate %185, %391 in 1 : vector<2x128xf32>, vector<2x128xf32> -> vector<2x256xf32>
    %cst_71 = arith.constant dense<0.000000e+00> : vector<2x512xf32>
    %393 = tpu.matmul %392, %244, %cst_71 {dimension_numbers = #tpu.dot_dimension_numbers<[1], [0], [0], [1], [0, 0, 1, 1], [], []>} : vector<2x256xf32>, vector<256x512xf32>, vector<2x512xf32> -> vector<2x512xf32>
    %394 = vector.broadcast %11 : vector<1x512xf32> to vector<2x512xf32>
    %395 = arith.addf %393, %394 : vector<2x512xf32>
    %396 = vector.extract_strided_slice %395 {offsets = [0, 0], sizes = [2, 128], strides = [1, 1]} : vector<2x512xf32> to vector<2x128xf32>
    %397 = arith.negf %396 : vector<2x128xf32>
    %398 = math.exp %397 : vector<2x128xf32>
    %cst_72 = arith.constant 1.000000e+00 : f32
    %399 = vector.broadcast %cst_72 : f32 to vector<2x128xf32>
    %400 = arith.addf %399, %398 : vector<2x128xf32>
    %401 = arith.divf %399, %400 : vector<2x128xf32>
    %402 = vector.extract_strided_slice %395 {offsets = [0, 128], sizes = [2, 128], strides = [1, 1]} : vector<2x512xf32> to vector<2x128xf32>
    %403 = arith.negf %402 : vector<2x128xf32>
    %404 = math.exp %403 : vector<2x128xf32>
    %cst_73 = arith.constant 1.000000e+00 : f32
    %405 = vector.broadcast %cst_73 : f32 to vector<2x128xf32>
    %406 = arith.addf %405, %404 : vector<2x128xf32>
    %407 = arith.divf %405, %406 : vector<2x128xf32>
    %408 = vector.extract_strided_slice %395 {offsets = [0, 256], sizes = [2, 128], strides = [1, 1]} : vector<2x512xf32> to vector<2x128xf32>
    %409 = math.tanh %408 : vector<2x128xf32>
    %410 = vector.extract_strided_slice %395 {offsets = [0, 384], sizes = [2, 128], strides = [1, 1]} : vector<2x512xf32> to vector<2x128xf32>
    %411 = arith.negf %410 : vector<2x128xf32>
    %412 = math.exp %411 : vector<2x128xf32>
    %cst_74 = arith.constant 1.000000e+00 : f32
    %413 = vector.broadcast %cst_74 : f32 to vector<2x128xf32>
    %414 = arith.addf %413, %412 : vector<2x128xf32>
    %415 = arith.divf %413, %414 : vector<2x128xf32>
    %416 = arith.mulf %407, %389 : vector<2x128xf32>
    %417 = arith.mulf %401, %409 : vector<2x128xf32>
    %418 = arith.addf %416, %417 : vector<2x128xf32>
    %419 = math.tanh %418 : vector<2x128xf32>
    %420 = arith.mulf %415, %419 : vector<2x128xf32>
    %421 = tpu.concatenate %213, %420 in 1 : vector<2x128xf32>, vector<2x128xf32> -> vector<2x256xf32>
    %cst_75 = arith.constant dense<0.000000e+00> : vector<2x512xf32>
    %422 = tpu.matmul %421, %244, %cst_75 {dimension_numbers = #tpu.dot_dimension_numbers<[1], [0], [0], [1], [0, 0, 1, 1], [], []>} : vector<2x256xf32>, vector<256x512xf32>, vector<2x512xf32> -> vector<2x512xf32>
    %423 = vector.broadcast %11 : vector<1x512xf32> to vector<2x512xf32>
    %424 = arith.addf %422, %423 : vector<2x512xf32>
    %425 = vector.extract_strided_slice %424 {offsets = [0, 0], sizes = [2, 128], strides = [1, 1]} : vector<2x512xf32> to vector<2x128xf32>
    %426 = arith.negf %425 : vector<2x128xf32>
    %427 = math.exp %426 : vector<2x128xf32>
    %cst_76 = arith.constant 1.000000e+00 : f32
    %428 = vector.broadcast %cst_76 : f32 to vector<2x128xf32>
    %429 = arith.addf %428, %427 : vector<2x128xf32>
    %430 = arith.divf %428, %429 : vector<2x128xf32>
    %431 = vector.extract_strided_slice %424 {offsets = [0, 128], sizes = [2, 128], strides = [1, 1]} : vector<2x512xf32> to vector<2x128xf32>
    %432 = arith.negf %431 : vector<2x128xf32>
    %433 = math.exp %432 : vector<2x128xf32>
    %cst_77 = arith.constant 1.000000e+00 : f32
    %434 = vector.broadcast %cst_77 : f32 to vector<2x128xf32>
    %435 = arith.addf %434, %433 : vector<2x128xf32>
    %436 = arith.divf %434, %435 : vector<2x128xf32>
    %437 = vector.extract_strided_slice %424 {offsets = [0, 256], sizes = [2, 128], strides = [1, 1]} : vector<2x512xf32> to vector<2x128xf32>
    %438 = math.tanh %437 : vector<2x128xf32>
    %439 = vector.extract_strided_slice %424 {offsets = [0, 384], sizes = [2, 128], strides = [1, 1]} : vector<2x512xf32> to vector<2x128xf32>
    %440 = arith.negf %439 : vector<2x128xf32>
    %441 = math.exp %440 : vector<2x128xf32>
    %cst_78 = arith.constant 1.000000e+00 : f32
    %442 = vector.broadcast %cst_78 : f32 to vector<2x128xf32>
    %443 = arith.addf %442, %441 : vector<2x128xf32>
    %444 = arith.divf %442, %443 : vector<2x128xf32>
    %445 = arith.mulf %436, %418 : vector<2x128xf32>
    %446 = arith.mulf %430, %438 : vector<2x128xf32>
    %447 = arith.addf %445, %446 : vector<2x128xf32>
    %448 = math.tanh %447 : vector<2x128xf32>
    %449 = arith.mulf %444, %448 : vector<2x128xf32>
    %450 = tpu.concatenate %241, %449 in 1 : vector<2x128xf32>, vector<2x128xf32> -> vector<2x256xf32>
    %cst_79 = arith.constant dense<0.000000e+00> : vector<2x512xf32>
    %451 = tpu.matmul %450, %244, %cst_79 {dimension_numbers = #tpu.dot_dimension_numbers<[1], [0], [0], [1], [0, 0, 1, 1], [], []>} : vector<2x256xf32>, vector<256x512xf32>, vector<2x512xf32> -> vector<2x512xf32>
    %452 = vector.broadcast %11 : vector<1x512xf32> to vector<2x512xf32>
    %453 = arith.addf %451, %452 : vector<2x512xf32>
    %454 = vector.extract_strided_slice %453 {offsets = [0, 0], sizes = [2, 128], strides = [1, 1]} : vector<2x512xf32> to vector<2x128xf32>
    %455 = arith.negf %454 : vector<2x128xf32>
    %456 = math.exp %455 : vector<2x128xf32>
    %cst_80 = arith.constant 1.000000e+00 : f32
    %457 = vector.broadcast %cst_80 : f32 to vector<2x128xf32>
    %458 = arith.addf %457, %456 : vector<2x128xf32>
    %459 = arith.divf %457, %458 : vector<2x128xf32>
    %460 = vector.extract_strided_slice %453 {offsets = [0, 128], sizes = [2, 128], strides = [1, 1]} : vector<2x512xf32> to vector<2x128xf32>
    %461 = arith.negf %460 : vector<2x128xf32>
    %462 = math.exp %461 : vector<2x128xf32>
    %cst_81 = arith.constant 1.000000e+00 : f32
    %463 = vector.broadcast %cst_81 : f32 to vector<2x128xf32>
    %464 = arith.addf %463, %462 : vector<2x128xf32>
    %465 = arith.divf %463, %464 : vector<2x128xf32>
    %466 = vector.extract_strided_slice %453 {offsets = [0, 256], sizes = [2, 128], strides = [1, 1]} : vector<2x512xf32> to vector<2x128xf32>
    %467 = math.tanh %466 : vector<2x128xf32>
    %468 = vector.extract_strided_slice %453 {offsets = [0, 384], sizes = [2, 128], strides = [1, 1]} : vector<2x512xf32> to vector<2x128xf32>
    %469 = arith.negf %468 : vector<2x128xf32>
    %470 = math.exp %469 : vector<2x128xf32>
    %cst_82 = arith.constant 1.000000e+00 : f32
    %471 = vector.broadcast %cst_82 : f32 to vector<2x128xf32>
    %472 = arith.addf %471, %470 : vector<2x128xf32>
    %473 = arith.divf %471, %472 : vector<2x128xf32>
    %474 = arith.mulf %465, %447 : vector<2x128xf32>
    %475 = arith.mulf %459, %467 : vector<2x128xf32>
    %476 = arith.addf %474, %475 : vector<2x128xf32>
    %477 = math.tanh %476 : vector<2x128xf32>
    %478 = arith.mulf %473, %477 : vector<2x128xf32>
    %c1_i32_83 = arith.constant 1 : i32
    %479 = tpu.memref_slice %arg9[%c1_i32_83] : memref<2x!tpu.dma_semaphore, #tpu.memory_space<semaphore_mem>> -> memref<1x!tpu.dma_semaphore, #tpu.memory_space<semaphore_mem>>
    %480 = tpu.memref_squeeze %479 : memref<1x!tpu.dma_semaphore, #tpu.memory_space<semaphore_mem>> -> memref<!tpu.dma_semaphore, #tpu.memory_space<semaphore_mem>>
    tpu.wait_dma2 semaphore(%480 : memref<!tpu.dma_semaphore, #tpu.memory_space<semaphore_mem>>) src(%arg5 : memref<2x128x128xf32, #tpu.memory_space<any>>) dst(%arg8 : memref<2x128x128xf32, #tpu.memory_space<vmem>>)
    %c0_84 = arith.constant 0 : index
    %c0_85 = arith.constant 0 : index
    %481 = vector.load %arg1[%c0_84, %c0_85] : memref<2x128xf32, #tpu.memory_space<vmem>>, vector<2x128xf32>
    %482 = arith.addf %478, %481 : vector<2x128xf32>
    %c0_86 = arith.constant 0 : index
    %c0_87 = arith.constant 0 : index
    %c0_88 = arith.constant 0 : index
    %483 = vector.load %arg8[%c0_86, %c0_87, %c0_88] : memref<2x128x128xf32, #tpu.memory_space<vmem>>, vector<1x128x128xf32>
    %484 = vector.shape_cast %483 : vector<1x128x128xf32> to vector<128x128xf32>
    %c1_89 = arith.constant 1 : index
    %c0_90 = arith.constant 0 : index
    %c0_91 = arith.constant 0 : index
    %485 = vector.load %arg8[%c1_89, %c0_90, %c0_91] : memref<2x128x128xf32, #tpu.memory_space<vmem>>, vector<1x128x128xf32>
    %486 = vector.shape_cast %485 : vector<1x128x128xf32> to vector<128x128xf32>
    %c2 = arith.constant 2 : index
    %c0_92 = arith.constant 0 : index
    %c0_93 = arith.constant 0 : index
    %487 = vector.load %arg3[%c2, %c0_92, %c0_93] : memref<4x1x512xf32, #tpu.memory_space<vmem>>, vector<1x1x512xf32>
    %488 = vector.shape_cast %487 : vector<1x1x512xf32> to vector<1x512xf32>
    %489 = vector.extract_strided_slice %488 {offsets = [0, 0], sizes = [1, 128], strides = [1, 1]} : vector<1x512xf32> to vector<1x128xf32>
    %c3 = arith.constant 3 : index
    %c0_94 = arith.constant 0 : index
    %c0_95 = arith.constant 0 : index
    %490 = vector.load %arg3[%c3, %c0_94, %c0_95] : memref<4x1x512xf32, #tpu.memory_space<vmem>>, vector<1x1x512xf32>
    %491 = vector.shape_cast %490 : vector<1x1x512xf32> to vector<1x512xf32>
    %492 = vector.extract_strided_slice %491 {offsets = [0, 0], sizes = [1, 128], strides = [1, 1]} : vector<1x512xf32> to vector<1x128xf32>
    %cst_96 = arith.constant dense<0.000000e+00> : vector<2x128xf32>
    %493 = tpu.matmul %482, %484, %cst_96 {dimension_numbers = #tpu.dot_dimension_numbers<[1], [0], [0], [1], [0, 0, 1, 1], [], []>} : vector<2x128xf32>, vector<128x128xf32>, vector<2x128xf32> -> vector<2x128xf32>
    %494 = vector.broadcast %489 : vector<1x128xf32> to vector<2x128xf32>
    %495 = arith.addf %493, %494 : vector<2x128xf32>
    %cst_97 = arith.constant 0.000000e+00 : f32
    %496 = vector.broadcast %cst_97 : f32 to vector<2x128xf32>
    %497 = arith.maximumf %495, %496 : vector<2x128xf32>
    %cst_98 = arith.constant dense<0.000000e+00> : vector<2x128xf32>
    %498 = tpu.matmul %497, %486, %cst_98 {dimension_numbers = #tpu.dot_dimension_numbers<[1], [0], [0], [1], [0, 0, 1, 1], [], []>} : vector<2x128xf32>, vector<128x128xf32>, vector<2x128xf32> -> vector<2x128xf32>
    %499 = vector.broadcast %492 : vector<1x128xf32> to vector<2x128xf32>
    %500 = arith.addf %498, %499 : vector<2x128xf32>
    %c0_99 = arith.constant 0 : index
    %c0_100 = arith.constant 0 : index
    %501 = vector.load %arg6[%c0_99, %c0_100] : memref<2x128xf32, #tpu.memory_space<vmem>>, vector<2x128xf32>
    tpu.vector_store %arg6[%c0_99, %c0_100], %500 {strides = array<i32>} : memref<2x128xf32, #tpu.memory_space<vmem>>, vector<2x128xf32>,
    return
  }
}

</mosaic_0001>

<bundles_post_ra>
// kernel: net_forward.1
= control target key start
LH: loop header
LB: loop body
LE: loop exit
PB: predicated region body
PF: predicated region fallthrough
CT: control target
= control target key end

     0   :  { %11 = vsyncpa [#allocation6], 0  ;;  %s7100_s0 = inlined_call_operand.vmem [shape: f32[16,128], index: 0, kind: input, shape index: {}]   ;;  %s7101_s1 = inlined_call_operand.vmem [shape: f32[2,128], index: 1, kind: input, shape index: {}]   ;;  %s7102_s2 = inlined_call_operand.hbm [shape: f32[2,128,512], index: 2, kind: input, shape index: {}]   ;;  %s7103_s3 = inlined_call_operand.vmem [shape: f32[4,1,512], index: 3, kind: input, shape index: {}]   ;;  %s7104_s4 = inlined_call_operand.hbm [shape: f32[256,512], index: 4, kind: input, shape index: {}]   ;;  %s7105_s5 = inlined_call_operand.hbm [shape: f32[2,128,128], index: 5, kind: input, shape index: {}]   ;;  %s7106_s6 = inlined_call_operand.hbm [shape: f32[2,128], index: 6, kind: output, shape index: {}]  }
   0x1   :  { %12 = vsyncpa [#allocation7], 0  ;;  %s21_s23 = sshll.u32 %s7102_s2, 4  ;;  %s4331_s24 = smov [#allocation5]   ;;  %s22_s23 = int_to_ptr.hbm [resolvable:$true] %s21_s23 }
   0x2   :  { %s23_s25 = sshll.u32 %s4331_s24, 4  ;;  %s4332_s26 = smov 512   ;;  %s24_s25 = int_to_ptr.vmem [resolvable:$true] %s23_s25 }
   0x3   :  { %s4333_s27 = smov 32  }
   0x4   :  { %29 = dma.hbm_to_vmem [thread:$0]  %s22_s23, 16384, %s24_s25, [#allocation6], %s4332_s26, %s4332_s26, %s4333_s27  }
   0x5   :  { %4323 = dma.done.wait [#allocation6], 16384  }
   0x6   :  { %4324 = vsyncadd [#allocation6], 4294950912  ;;  %v4379_v0 = vld [vmem:[%s7103_s3 + $0x4] sm:$0xf]  ;;  %v124_v2 = vld [vmem:[#allocation5 + $0x1e8] sm:$0xff]  ;;  %s43_s12 = sshll.u32 %s7104_s4, 4  ;;  %s44_s12 = int_to_ptr.hbm [resolvable:$true] %s43_s12 }
   0x7   :  { %7538 = vst [vmem:[#allocation19_spill] sm:$0xff] %v4379_v0  ;;  %v123_v1 = vld [vmem:[#allocation5 + $0x1e0] sm:$0xff]  ;;  %229 = vmatpush.msra.mxu1 %v124_v2  ;;  %v126_v3 = vld [vmem:[#allocation5 + $0x1f8] sm:$0xff]  ;;  %v125_v4 = vld [vmem:[#allocation5 + $0x1f0] sm:$0xff]  ;;  %s4335_s13 = smov [#allocation2]   ;;  %s57_s17 = sshll.u32 %s7105_s5, 4  ;;  %s58_s17 = int_to_ptr.hbm [resolvable:$true] %s57_s17 }
   0x8   :  { %206 = vmatpush.msra.mxu0 %v123_v1  ;;  %v119_v5 = vld [vmem:[#allocation5 + $0x1c0] sm:$0xff]  ;;  %275 = vmatpush.msra.mxu3 %v126_v3  ;;  %v120_v6 = vld [vmem:[#allocation5 + $0x1c8] sm:$0xff]  ;;  %v122_v7 = vld [vmem:[#allocation5 + $0x1d8] sm:$0xff]  ;;  %s45_s14 = sshll.u32 %s4335_s13, 4  ;;  %s4336_s18 = smov [#allocation3]   ;;  %s46_s14 = int_to_ptr.vmem [resolvable:$true] %s45_s14 }
   0x9   :  { %252 = vmatpush.msra.mxu2 %v125_v4  ;;  %v121_v8 = vld [vmem:[#allocation5 + $0x1d0] sm:$0xff]  ;;  %230 = vmatpush.msra.mxu1 %v120_v6  ;;  %v115_v9 = vld [vmem:[#allocation5 + $0x1a0] sm:$0xff]  ;;  %v116_v10 = vld [vmem:[#allocation5 + $0x1a8] sm:$0xff]  ;;  %48 = dma.hbm_to_vmem [thread:$0]  %s44_s12, 16384, %s46_s14, [#allocation4] }
   0xa   :  { %207 = vmatpush.msra.mxu0 %v119_v5  ;;  %v118_v11 = vld [vmem:[#allocation5 + $0x1b8] sm:$0xff]  ;;  %276 = vmatpush.msra.mxu3 %v122_v7  ;;  %v117_v12 = vld [vmem:[#allocation5 + $0x1b0] sm:$0xff]  ;;  %v111_v13 = vld [vmem:[#allocation5 + $0x180] sm:$0xff]  ;;  %s59_s19 = sshll.u32 %s4336_s18, 4  ;;  %s60_s19 = int_to_ptr.vmem [resolvable:$true] %s59_s19 }
   0xb   :  { %253 = vmatpush.msra.mxu2 %v121_v8  ;;  %v112_v14 = vld [vmem:[#allocation5 + $0x188] sm:$0xff]  ;;  %231 = vmatpush.msra.mxu1 %v116_v10  ;;  %v114_v15 = vld [vmem:[#allocation5 + $0x198] sm:$0xff]  ;;  %v113_v16 = vld [vmem:[#allocation5 + $0x190] sm:$0xff]  ;;  %62 = dma.hbm_to_vmem [thread:$0]  %s58_s17, 4096, %s60_s19, [#allocation4 + $0x1] }
   0xc   :  { %208 = vmatpush.msra.mxu0 %v115_v9  ;;  %277 = vmatpush.msra.mxu3 %v118_v11  ;;  %v107_v17 = vld [vmem:[#allocation5 + $0x160] sm:$0xff]  ;;  %v108_v18 = vld [vmem:[#allocation5 + $0x168] sm:$0xff]  ;;  %v110_v19 = vld [vmem:[#allocation5 + $0x178] sm:$0xff] }
   0xd   :  { %254 = vmatpush.msra.mxu2 %v117_v12  ;;  %232 = vmatpush.msra.mxu1 %v112_v14  ;;  %v109_v20 = vld [vmem:[#allocation5 + $0x170] sm:$0xff]  ;;  %v103_v21 = vld [vmem:[#allocation5 + $0x140] sm:$0xff]  ;;  %v104_v22 = vld [vmem:[#allocation5 + $0x148] sm:$0xff] }
   0xe   :  { %209 = vmatpush.msra.mxu0 %v111_v13  ;;  %278 = vmatpush.msra.mxu3 %v114_v15  ;;  %v106_v23 = vld [vmem:[#allocation5 + $0x158] sm:$0xff]  ;;  %v105_v24 = vld [vmem:[#allocation5 + $0x150] sm:$0xff]  ;;  %v99_v25 = vld [vmem:[#allocation5 + $0x120] sm:$0xff] }
   0xf   :  { %255 = vmatpush.msra.mxu2 %v113_v16  ;;  %233 = vmatpush.msra.mxu1 %v108_v18  ;;  %v100_v26 = vld [vmem:[#allocation5 + $0x128] sm:$0xff]  ;;  %v102_v27 = vld [vmem:[#allocation5 + $0x138] sm:$0xff]  ;;  %v101_v28 = vld [vmem:[#allocation5 + $0x130] sm:$0xff] }
  0x10   :  { %210 = vmatpush.msra.mxu0 %v107_v17  ;;  %279 = vmatpush.msra.mxu3 %v110_v19  ;;  %v95_v29 = vld [vmem:[#allocation5 + $0x100] sm:$0xff]  ;;  %v96_v30 = vld [vmem:[#allocation5 + $0x108] sm:$0xff]  ;;  %v98_v31 = vld [vmem:[#allocation5 + $0x118] sm:$0xff] }
  0x11   :  { %256 = vmatpush.msra.mxu2 %v109_v20  ;;  %234 = vmatpush.msra.mxu1 %v104_v22  ;;  %v97_v32 = vld [vmem:[#allocation5 + $0x110] sm:$0xff]  ;;  %v91_v33 = vld [vmem:[#allocation5 + $0xe0] sm:$0xff]  ;;  %v92_v34 = vld [vmem:[#allocation5 + $0xe8] sm:$0xff] }
  0x12   :  { %211 = vmatpush.msra.mxu0 %v103_v21  ;;  %280 = vmatpush.msra.mxu3 %v106_v23  ;;  %v94_v35 = vld [vmem:[#allocation5 + $0xf8] sm:$0xff]  ;;  %v93_v36 = vld [vmem:[#allocation5 + $0xf0] sm:$0xff]  ;;  %v87_v37 = vld [vmem:[#allocation5 + $0xc0] sm:$0xff] }
  0x13   :  { %257 = vmatpush.msra.mxu2 %v105_v24  ;;  %235 = vmatpush.msra.mxu1 %v100_v26  ;;  %v88_v38 = vld [vmem:[#allocation5 + $0xc8] sm:$0xff]  ;;  %v90_v39 = vld [vmem:[#allocation5 + $0xd8] sm:$0xff]  ;;  %v89_v40 = vld [vmem:[#allocation5 + $0xd0] sm:$0xff] }
  0x14   :  { %212 = vmatpush.msra.mxu0 %v99_v25  ;;  %281 = vmatpush.msra.mxu3 %v102_v27  ;;  %v83_v41 = vld [vmem:[#allocation5 + $0xa0] sm:$0xff]  ;;  %v84_v42 = vld [vmem:[#allocation5 + $0xa8] sm:$0xff]  ;;  %v86_v43 = vld [vmem:[#allocation5 + $0xb8] sm:$0xff] }
  0x15   :  { %258 = vmatpush.msra.mxu2 %v101_v28  ;;  %236 = vmatpush.msra.mxu1 %v96_v30  ;;  %v85_v44 = vld [vmem:[#allocation5 + $0xb0] sm:$0xff]  ;;  %v79_v45 = vld [vmem:[#allocation5 + $0x80] sm:$0xff]  ;;  %v80_v46 = vld [vmem:[#allocation5 + $0x88] sm:$0xff] }
  0x16   :  { %213 = vmatpush.msra.mxu0 %v95_v29  ;;  %282 = vmatpush.msra.mxu3 %v98_v31  ;;  %v82_v47 = vld [vmem:[#allocation5 + $0x98] sm:$0xff]  ;;  %v81_v48 = vld [vmem:[#allocation5 + $0x90] sm:$0xff]  ;;  %v75_v49 = vld [vmem:[#allocation5 + $0x60] sm:$0xff] }
  0x17   :  { %259 = vmatpush.msra.mxu2 %v97_v32  ;;  %237 = vmatpush.msra.mxu1 %v92_v34  ;;  %v76_v50 = vld [vmem:[#allocation5 + $0x68] sm:$0xff]  ;;  %v78_v51 = vld [vmem:[#allocation5 + $0x78] sm:$0xff]  ;;  %v77_v52 = vld [vmem:[#allocation5 + $0x70] sm:$0xff] }
  0x18   :  { %214 = vmatpush.msra.mxu0 %v91_v33  ;;  %283 = vmatpush.msra.mxu3 %v94_v35  ;;  %v71_v53 = vld [vmem:[#allocation5 + $0x40] sm:$0xff]  ;;  %v72_v54 = vld [vmem:[#allocation5 + $0x48] sm:$0xff]  ;;  %v74_v55 = vld [vmem:[#allocation5 + $0x58] sm:$0xff] }
  0x19   :  { %260 = vmatpush.msra.mxu2 %v93_v36  ;;  %238 = vmatpush.msra.mxu1 %v88_v38  ;;  %v73_v56 = vld [vmem:[#allocation5 + $0x50] sm:$0xff]  ;;  %v67_v57 = vld [vmem:[#allocation5 + $0x20] sm:$0xff]  ;;  %v68_v58 = vld [vmem:[#allocation5 + $0x28] sm:$0xff] }
  0x1a   :  { %215 = vmatpush.msra.mxu0 %v87_v37  ;;  %284 = vmatpush.msra.mxu3 %v90_v39  ;;  %v70_v59 = vld [vmem:[#allocation5 + $0x38] sm:$0xff]  ;;  %v69_v60 = vld [vmem:[#allocation5 + $0x30] sm:$0xff]  ;;  %v63_v61 = vld [vmem:[#allocation5] sm:$0xff] }
  0x1b   :  { %261 = vmatpush.msra.mxu2 %v89_v40  ;;  %239 = vmatpush.msra.mxu1 %v84_v42  ;;  %v64_v62 = vld [vmem:[#allocation5 + $0x8] sm:$0xff]  ;;  %v66_v63 = vld [vmem:[#allocation5 + $0x18] sm:$0xff]  ;;  %v65_v1 = vld [vmem:[#allocation5 + $0x10] sm:$0xff] }
  0x1c   :  { %216 = vmatpush.msra.mxu0 %v83_v41  ;;  %285 = vmatpush.msra.mxu3 %v86_v43  ;;  %v4381_v2 = vld [vmem:[#allocation5 + $0x3e0] sm:$0xff]  ;;  %v4383_v3 = vld [vmem:[#allocation5 + $0x3e8] sm:$0xff]  ;;  %v4385_v4 = vld [vmem:[#allocation5 + $0x3f8] sm:$0xff] }
  0x1d   :  { %262 = vmatpush.msra.mxu2 %v85_v44  ;;  %240 = vmatpush.msra.mxu1 %v80_v46  ;;  %v4387_v5 = vld [vmem:[#allocation5 + $0x3f0] sm:$0xff]  ;;  %v4389_v6 = vld [vmem:[#allocation5 + $0x3c0] sm:$0xff]  ;;  %v4391_v7 = vld [vmem:[#allocation5 + $0x3c8] sm:$0xff] }
  0x1e   :  { %217 = vmatpush.msra.mxu0 %v79_v45  ;;  %286 = vmatpush.msra.mxu3 %v82_v47  ;;  %v4395_v8 = vld [vmem:[#allocation5 + $0x3d8] sm:$0xff]  ;;  %v4397_v9 = vld [vmem:[#allocation5 + $0x3d0] sm:$0xff]  ;;  %v4401_v10 = vld [vmem:[#allocation5 + $0x3a0] sm:$0xff] }
  0x1f   :  { %263 = vmatpush.msra.mxu2 %v81_v48  ;;  %241 = vmatpush.msra.mxu1 %v76_v50  ;;  %v4403_v11 = vld [vmem:[#allocation5 + $0x3a8] sm:$0xff]  ;;  %v4407_v12 = vld [vmem:[#allocation5 + $0x3b8] sm:$0xff]  ;;  %v4409_v13 = vld [vmem:[#allocation5 + $0x3b0] sm:$0xff] }
  0x20   :  { %218 = vmatpush.msra.mxu0 %v75_v49  ;;  %287 = vmatpush.msra.mxu3 %v78_v51  ;;  %v4413_v14 = vld [vmem:[#allocation5 + $0x380] sm:$0xff]  ;;  %v4415_v15 = vld [vmem:[#allocation5 + $0x388] sm:$0xff]  ;;  %v4419_v16 = vld [vmem:[#allocation5 + $0x398] sm:$0xff] }
  0x21   :  { %264 = vmatpush.msra.mxu2 %v77_v52  ;;  %242 = vmatpush.msra.mxu1 %v72_v54  ;;  %v4421_v17 = vld [vmem:[#allocation5 + $0x390] sm:$0xff]  ;;  %v4425_v18 = vld [vmem:[#allocation5 + $0x360] sm:$0xff]  ;;  %v4427_v19 = vld [vmem:[#allocation5 + $0x368] sm:$0xff] }
  0x22   :  { %219 = vmatpush.msra.mxu0 %v71_v53  ;;  %288 = vmatpush.msra.mxu3 %v74_v55  ;;  %v4431_v20 = vld [vmem:[#allocation5 + $0x378] sm:$0xff]  ;;  %v4433_v21 = vld [vmem:[#allocation5 + $0x370] sm:$0xff]  ;;  %v4437_v22 = vld [vmem:[#allocation5 + $0x340] sm:$0xff] }
  0x23   :  { %265 = vmatpush.msra.mxu2 %v73_v56  ;;  %243 = vmatpush.msra.mxu1 %v68_v58  ;;  %v4439_v23 = vld [vmem:[#allocation5 + $0x348] sm:$0xff]  ;;  %v4443_v24 = vld [vmem:[#allocation5 + $0x358] sm:$0xff]  ;;  %v4445_v25 = vld [vmem:[#allocation5 + $0x350] sm:$0xff] }
  0x24   :  { %220 = vmatpush.msra.mxu0 %v67_v57  ;;  %289 = vmatpush.msra.mxu3 %v70_v59  ;;  %v4449_v26 = vld [vmem:[#allocation5 + $0x320] sm:$0xff]  ;;  %v4451_v27 = vld [vmem:[#allocation5 + $0x328] sm:$0xff]  ;;  %v4455_v28 = vld [vmem:[#allocation5 + $0x338] sm:$0xff] }
  0x25   :  { %266 = vmatpush.msra.mxu2 %v69_v60  ;;  %244 = vmatpush.msra.mxu1 %v64_v62  ;;  %v4457_v29 = vld [vmem:[#allocation5 + $0x330] sm:$0xff]  ;;  %v4461_v30 = vld [vmem:[#allocation5 + $0x300] sm:$0xff]  ;;  %v4463_v31 = vld [vmem:[#allocation5 + $0x308] sm:$0xff] }
  0x26   :  { %221 = vmatpush.msra.mxu0 %v63_v61  ;;  %290 = vmatpush.msra.mxu3 %v66_v63  ;;  %v4467_v32 = vld [vmem:[#allocation5 + $0x318] sm:$0xff]  ;;  %v195_v33 = vld [vmem:[%s7100_s0] sm:$0xff]  ;;  %v4476_v34 = vld [vmem:[#allocation5 + $0x310] sm:$0xff] }
  0x27   :  { %267 = vmatpush.msra.mxu2 %v65_v1  ;;  %318 = vmatpush.msrb.mxu1 %v4383_v3  ;;  %v4478_v35 = vld [vmem:[#allocation5 + $0x2e0] sm:$0xff]  ;;  %v4481_v36 = vld [vmem:[#allocation5 + $0x2e8] sm:$0xff]  ;;  %v4483_v37 = vld [vmem:[#allocation5 + $0x2f8] sm:$0xff] }
  0x28   :  { %298 = vmatpush.msrb.mxu0 %v4381_v2  ;;  %358 = vmatpush.msrb.mxu3 %v4385_v4  ;;  %v4485_v38 = vld [vmem:[#allocation5 + $0x2f0] sm:$0xff]  ;;  %v4489_v39 = vld [vmem:[#allocation5 + $0x2c0] sm:$0xff]  ;;  %v4491_v40 = vld [vmem:[#allocation5 + $0x2c8] sm:$0xff] }
  0x29   :  { %338 = vmatpush.msrb.mxu2 %v4387_v5  ;;  %319 = vmatpush.msrb.mxu1 %v4391_v7  ;;  %v4494_v41 = vld [vmem:[#allocation5 + $0x2d8] sm:$0xff]  ;;  %v4496_v42 = vld [vmem:[#allocation5 + $0x2d0] sm:$0xff]  ;;  %v4500_v43 = vld [vmem:[#allocation5 + $0x2a0] sm:$0xff] }
  0x2a   :  { %299 = vmatpush.msrb.mxu0 %v4389_v6  ;;  %359 = vmatpush.msrb.mxu3 %v4395_v8  ;;  %7539 = vst [vmem:[#allocation20_spill] sm:$0xff] %v4494_v41  ;;  %v4502_v44 = vld [vmem:[#allocation5 + $0x2a8] sm:$0xff]  ;;  %v4506_v45 = vld [vmem:[#allocation5 + $0x2b8] sm:$0xff]  ;;  %v4508_v46 = vld [vmem:[#allocation5 + $0x2b0] sm:$0xff] }
  0x2b   :  { %339 = vmatpush.msrb.mxu2 %v4397_v9  ;;  %320 = vmatpush.msrb.mxu1 %v4403_v11  ;;  %7540 = vst [vmem:[#allocation21_spill] sm:$0xff] %v4500_v43  ;;  %v4512_v47 = vld [vmem:[#allocation5 + $0x280] sm:$0xff]  ;;  %v4514_v48 = vld [vmem:[#allocation5 + $0x288] sm:$0xff]  ;;  %v4518_v49 = vld [vmem:[#allocation5 + $0x298] sm:$0xff] }
  0x2c   :  { %300 = vmatpush.msrb.mxu0 %v4401_v10  ;;  %360 = vmatpush.msrb.mxu3 %v4407_v12  ;;  %7541 = vst [vmem:[#allocation22_spill] sm:$0xff] %v4502_v44  ;;  %v196_v50 = vld [vmem:[%s7100_s0 + $0x8] sm:$0xff]  ;;  %v4527_v51 = vld [vmem:[#allocation5 + $0x290] sm:$0xff]  ;;  %v4529_v52 = vld [vmem:[#allocation5 + $0x260] sm:$0xff] }
  0x2d   :  { %340 = vmatpush.msrb.mxu2 %v4409_v13  ;;  %321 = vmatpush.msrb.mxu1 %v4415_v15  ;;  %7542 = vst [vmem:[#allocation23_spill] sm:$0xff] %v4506_v45  ;;  %v4532_v53 = vld [vmem:[#allocation5 + $0x268] sm:$0xff]  ;;  %v4534_v54 = vld [vmem:[#allocation5 + $0x278] sm:$0xff]  ;;  %v4536_v55 = vld [vmem:[#allocation5 + $0x270] sm:$0xff] }
  0x2e   :  { %301 = vmatpush.msrb.mxu0 %v4413_v14  ;;  %361 = vmatpush.msrb.mxu3 %v4419_v16  ;;  %7543 = vst [vmem:[#allocation24_spill] sm:$0xff] %v4508_v46  ;;  %v4540_v56 = vld [vmem:[#allocation5 + $0x240] sm:$0xff]  ;;  %v4542_v57 = vld [vmem:[#allocation5 + $0x248] sm:$0xff]  ;;  %v4545_v58 = vld [vmem:[#allocation5 + $0x258] sm:$0xff] }
  0x2f   :  { %341 = vmatpush.msrb.mxu2 %v4421_v17  ;;  %322 = vmatpush.msrb.mxu1 %v4427_v19  ;;  %7544 = vst [vmem:[#allocation25_spill] sm:$0xff] %v4512_v47  ;;  %v4547_v59 = vld [vmem:[#allocation5 + $0x250] sm:$0xff]  ;;  %v4551_v60 = vld [vmem:[#allocation5 + $0x220] sm:$0xff]  ;;  %v4553_v61 = vld [vmem:[#allocation5 + $0x228] sm:$0xff] }
  0x30   :  { %302 = vmatpush.msrb.mxu0 %v4425_v18  ;;  %362 = vmatpush.msrb.mxu3 %v4431_v20  ;;  %7545 = vst [vmem:[#allocation26_spill] sm:$0xff] %v4514_v48  ;;  %v4557_v62 = vld [vmem:[#allocation5 + $0x238] sm:$0xff]  ;;  %v4559_v63 = vld [vmem:[#allocation5 + $0x230] sm:$0xff]  ;;  %v4563_v1 = vld [vmem:[#allocation5 + $0x200] sm:$0xff] }
  0x31   :  { %342 = vmatpush.msrb.mxu2 %v4433_v21  ;;  %323 = vmatpush.msrb.mxu1 %v4439_v23  ;;  %7546 = vst [vmem:[#allocation27_spill] sm:$0xff] %v4518_v49  ;;  %v4573_v0 = vld [vmem:[#allocation5 + $0x210] sm:$0xff] }
  0x32   :  { %303 = vmatpush.msrb.mxu0 %v4437_v22  ;;  %363 = vmatpush.msrb.mxu3 %v4443_v24  ;;  %7547 = vst [vmem:[#allocation28_spill] sm:$0xff] %v4527_v51 }
  0x33   :  { %343 = vmatpush.msrb.mxu2 %v4445_v25  ;;  %324 = vmatpush.msrb.mxu1 %v4451_v27  ;;  %7548 = vst [vmem:[#allocation29_spill] sm:$0xff] %v4529_v52 }
  0x34   :  { %304 = vmatpush.msrb.mxu0 %v4449_v26  ;;  %364 = vmatpush.msrb.mxu3 %v4455_v28  ;;  %7549 = vst [vmem:[#allocation30_spill] sm:$0xff] %v4532_v53 }
  0x35   :  { %344 = vmatpush.msrb.mxu2 %v4457_v29  ;;  %325 = vmatpush.msrb.mxu1 %v4463_v31  ;;  %7550 = vst [vmem:[#allocation31_spill] sm:$0xff] %v4534_v54 }
  0x36   :  { %305 = vmatpush.msrb.mxu0 %v4461_v30  ;;  %365 = vmatpush.msrb.mxu3 %v4467_v32  ;;  %7551 = vst [vmem:[#allocation32_spill] sm:$0xff] %v4536_v55 }
  0x37   :  { %222 = vmatmul.f32.vlgmr.msra.gmra.mxu0 %v195_v33  ;;  %245 = vmatmul.f32.vlgmr.msra.gmra.mxu1 %v195_v33  ;;  %7552 = vst [vmem:[#allocation33_spill] sm:$0xff] %v4540_v56 }
  0x38   :  { %291 = vmatmul.f32.vlgmr.msra.gmra.mxu3 %v195_v33  ;;  %345 = vmatpush.msrb.mxu2 %v4476_v34  ;;  %7553 = vst [vmem:[#allocation34_spill] sm:$0xff] %v4542_v57 }
  0x39   :  { %306 = vmatpush.msrb.mxu0 %v4478_v35  ;;  %268 = vmatmul.f32.vlgmr.msra.gmra.mxu2 %v195_v33  ;;  %7554 = vst [vmem:[#allocation35_spill] sm:$0xff] %v4545_v58  ;;  %v4565_v33 = vld [vmem:[#allocation5 + $0x208] sm:$0xff] }
  0x3a   :  { %326 = vmatpush.msrb.mxu1 %v4481_v36  ;;  %366 = vmatpush.msrb.mxu3 %v4483_v37  ;;  %7555 = vst [vmem:[#allocation36_spill] sm:$0xff] %v4547_v59 }
  0x3b   :  { %346 = vmatpush.msrb.mxu2 %v4485_v38  ;;  %307 = vmatpush.msrb.mxu0 %v4489_v39  ;;  %7556 = vst [vmem:[#allocation37_spill] sm:$0xff] %v4551_v60 }
  0x3c   :  { %327 = vmatpush.msrb.mxu1 %v4491_v40  ;;  %367 = vmatpush.msrb.mxu3 %v4494_v41  ;;  %7557 = vst [vmem:[#allocation38_spill] sm:$0xff] %v4553_v61 }
  0x3d   :  { %347 = vmatpush.msrb.mxu2 %v4496_v42  ;;  %308 = vmatpush.msrb.mxu0 %v4500_v43  ;;  %7558 = vst [vmem:[#allocation39_spill] sm:$0xff] %v4557_v62 }
  0x3e   :  { %328 = vmatpush.msrb.mxu1 %v4502_v44  ;;  %368 = vmatpush.msrb.mxu3 %v4506_v45  ;;  %7559 = vst [vmem:[#allocation40_spill] sm:$0xff] %v4559_v63 }
  0x3f   :  { %348 = vmatpush.msrb.mxu2 %v4508_v46  ;;  %309 = vmatpush.msrb.mxu0 %v4512_v47  ;;  %7560 = vst [vmem:[#allocation41_spill] sm:$0xff] %v4563_v1 }
  0x40   :  { %329 = vmatpush.msrb.mxu1 %v4514_v48  ;;  %369 = vmatpush.msrb.mxu3 %v4518_v49  ;;  %7561 = vst [vmem:[#allocation42_spill] sm:$0xff] %v4565_v33 }
  0x41   :  { %225 = vmatmul.f32.gmra.mxu0 %v196_v50  ;;  %248 = vmatmul.f32.gmra.mxu1 %v196_v50  ;;  %7563 = vst [vmem:[#allocation44_spill] sm:$0xff] %v4573_v0 }
  0x42   :  { %294 = vmatmul.f32.gmra.mxu3 %v196_v50  ;;  %349 = vmatpush.msrb.mxu2 %v4527_v51 }
  0x43   :  { %310 = vmatpush.msrb.mxu0 %v4529_v52  ;;  %271 = vmatmul.f32.gmra.mxu2 %v196_v50  ;;  %v4569_v50 = vld [vmem:[#allocation5 + $0x218] sm:$0xff] }
  0x44   :  { %330 = vmatpush.msrb.mxu1 %v4532_v53  ;;  %370 = vmatpush.msrb.mxu3 %v4534_v54  ;;  %7562 = vst [vmem:[#allocation43_spill] sm:$0xff] %v4569_v50 }
  0x45   :  { %350 = vmatpush.msrb.mxu2 %v4536_v55  ;;  %311 = vmatpush.msrb.mxu0 %v4540_v56 }
  0x46   :  { %331 = vmatpush.msrb.mxu1 %v4542_v57  ;;  %371 = vmatpush.msrb.mxu3 %v4545_v58  ;;  %v7110_v58 = vmov 0.0  }
  0x47   :  { %351 = vmatpush.msrb.mxu2 %v4547_v59  ;;  %312 = vmatpush.msrb.mxu0 %v4551_v60 }
  0x48   :  { %332 = vmatpush.msrb.mxu1 %v4553_v61  ;;  %372 = vmatpush.msrb.mxu3 %v4557_v62 }
  0x49   :  { %352 = vmatpush.msrb.mxu2 %v4559_v63  ;;  %313 = vmatpush.msrb.mxu0 %v4563_v1 }
  0x4a   :  { %333 = vmatpush.msrb.mxu1 %v4565_v33  ;;  %373 = vmatpush.msrb.mxu3 %v4569_v50 }
  0x4b   :  { %314 = vmatmul.f32.vlgmr.msrb.gmra.mxu0 %v7110_v58  ;;  %334 = vmatmul.f32.vlgmr.msrb.gmra.mxu1 %v7110_v58 }
  0x4c   :  { %353 = vmatpush.msrb.mxu2 %v4573_v0  ;;  %374 = vmatmul.f32.vlgmr.msrb.gmra.mxu3 %v7110_v58 }
  0x4d   :  { %354 = vmatmul.f32.vlgmr.msrb.gmra.mxu2 %v7110_v58  ;;  %445 = vmatpush.msra.mxu0 %v4381_v2  ;;  %v7564_v58 = vld [vmem:[#allocation35_spill] sm:$0xff] }
  0x4e   :  { %465 = vmatpush.msra.mxu1 %v4383_v3  ;;  %485 = vmatpush.msra.mxu2 %v4387_v5 }
  0x4f   :  { %505 = vmatpush.msra.mxu3 %v4385_v4  ;;  %446 = vmatpush.msra.mxu0 %v4389_v6 }
  0x50   :  { %466 = vmatpush.msra.mxu1 %v4391_v7  ;;  %486 = vmatpush.msra.mxu2 %v4397_v9 }
  0x51   :  { %506 = vmatpush.msra.mxu3 %v4395_v8  ;;  %447 = vmatpush.msra.mxu0 %v4401_v10 }
  0x52   :  { %467 = vmatpush.msra.mxu1 %v4403_v11  ;;  %487 = vmatpush.msra.mxu2 %v4409_v13 }
  0x53   :  { %507 = vmatpush.msra.mxu3 %v4407_v12  ;;  %448 = vmatpush.msra.mxu0 %v4413_v14 }
  0x54   :  { %468 = vmatpush.msra.mxu1 %v4415_v15  ;;  %488 = vmatpush.msra.mxu2 %v4421_v17 }
  0x55   :  { %508 = vmatpush.msra.mxu3 %v4419_v16  ;;  %449 = vmatpush.msra.mxu0 %v4425_v18 }
  0x56   :  { %469 = vmatpush.msra.mxu1 %v4427_v19  ;;  %489 = vmatpush.msra.mxu2 %v4433_v21 }
  0x57   :  { %509 = vmatpush.msra.mxu3 %v4431_v20  ;;  %450 = vmatpush.msra.mxu0 %v4437_v22 }
  0x58   :  { %470 = vmatpush.msra.mxu1 %v4439_v23  ;;  %490 = vmatpush.msra.mxu2 %v4445_v25 }
  0x59   :  { %510 = vmatpush.msra.mxu3 %v4443_v24  ;;  %451 = vmatpush.msra.mxu0 %v4449_v26 }
  0x5a   :  { %471 = vmatpush.msra.mxu1 %v4451_v27  ;;  %491 = vmatpush.msra.mxu2 %v4457_v29 }
  0x5b   :  { %511 = vmatpush.msra.mxu3 %v4455_v28  ;;  %452 = vmatpush.msra.mxu0 %v4461_v30 }
  0x5c   :  { %472 = vmatpush.msra.mxu1 %v4463_v31  ;;  %492 = vmatpush.msra.mxu2 %v4476_v34 }
  0x5d   :  { %512 = vmatpush.msra.mxu3 %v4467_v32  ;;  %453 = vmatpush.msra.mxu0 %v4478_v35 }
  0x5e   :  { %473 = vmatpush.msra.mxu1 %v4481_v36  ;;  %493 = vmatpush.msra.mxu2 %v4485_v38 }
  0x5f   :  { %513 = vmatpush.msra.mxu3 %v4483_v37  ;;  %454 = vmatpush.msra.mxu0 %v4489_v39 }
  0x60   :  { %474 = vmatpush.msra.mxu1 %v4491_v40  ;;  %494 = vmatpush.msra.mxu2 %v4496_v42 }
  0x61   :  { %514 = vmatpush.msra.mxu3 %v4494_v41  ;;  %455 = vmatpush.msra.mxu0 %v4500_v43 }
  0x62   :  { %475 = vmatpush.msra.mxu1 %v4502_v44  ;;  %495 = vmatpush.msra.mxu2 %v4508_v46 }
  0x63   :  { %515 = vmatpush.msra.mxu3 %v4506_v45  ;;  %456 = vmatpush.msra.mxu0 %v4512_v47 }
  0x64   :  { %476 = vmatpush.msra.mxu1 %v4514_v48  ;;  %496 = vmatpush.msra.mxu2 %v4527_v51 }
  0x65   :  { %516 = vmatpush.msra.mxu3 %v4518_v49  ;;  %457 = vmatpush.msra.mxu0 %v4529_v52 }
  0x66   :  { %477 = vmatpush.msra.mxu1 %v4532_v53  ;;  %497 = vmatpush.msra.mxu2 %v4536_v55 }
  0x67   :  { %517 = vmatpush.msra.mxu3 %v4534_v54  ;;  %458 = vmatpush.msra.mxu0 %v4540_v56 }
  0x68   :  { %478 = vmatpush.msra.mxu1 %v4542_v57  ;;  %498 = vmatpush.msra.mxu2 %v4547_v59 }
  0x69   :  { %518 = vmatpush.msra.mxu3 %v7564_v58  ;;  %459 = vmatpush.msra.mxu0 %v4551_v60 }
  0x6a   :  { %479 = vmatpush.msra.mxu1 %v4553_v61  ;;  %499 = vmatpush.msra.mxu2 %v4559_v63 }
  0x6b   :  { %519 = vmatpush.msra.mxu3 %v4557_v62  ;;  %460 = vmatpush.msra.mxu0 %v4563_v1 }
  0x6c   :  { %480 = vmatpush.msra.mxu1 %v4565_v33  ;;  %500 = vmatpush.msra.mxu2 %v4573_v0 }
  0x6d   :  { %520 = vmatpush.msra.mxu3 %v4569_v50  ;;  %610 = vmatpush.msrb.mxu0 %v4381_v2 }
  0x6e   :  { %630 = vmatpush.msrb.mxu1 %v4383_v3  ;;  %650 = vmatpush.msrb.mxu2 %v4387_v5 }
  0x6f   :  { %670 = vmatpush.msrb.mxu3 %v4385_v4  ;;  %611 = vmatpush.msrb.mxu0 %v4389_v6 }
  0x70   :  { %631 = vmatpush.msrb.mxu1 %v4391_v7  ;;  %651 = vmatpush.msrb.mxu2 %v4397_v9 }
  0x71   :  { %671 = vmatpush.msrb.mxu3 %v4395_v8  ;;  %612 = vmatpush.msrb.mxu0 %v4401_v10 }
  0x72   :  { %632 = vmatpush.msrb.mxu1 %v4403_v11  ;;  %652 = vmatpush.msrb.mxu2 %v4409_v13 }
  0x73   :  { %672 = vmatpush.msrb.mxu3 %v4407_v12  ;;  %613 = vmatpush.msrb.mxu0 %v4413_v14 }
  0x74   :  { %633 = vmatpush.msrb.mxu1 %v4415_v15  ;;  %653 = vmatpush.msrb.mxu2 %v4421_v17 }
  0x75   :  { %673 = vmatpush.msrb.mxu3 %v4419_v16  ;;  %614 = vmatpush.msrb.mxu0 %v4425_v18 }
  0x76   :  { %634 = vmatpush.msrb.mxu1 %v4427_v19  ;;  %654 = vmatpush.msrb.mxu2 %v4433_v21 }
  0x77   :  { %674 = vmatpush.msrb.mxu3 %v4431_v20  ;;  %615 = vmatpush.msrb.mxu0 %v4437_v22 }
  0x78   :  { %635 = vmatpush.msrb.mxu1 %v4439_v23  ;;  %655 = vmatpush.msrb.mxu2 %v4445_v25 }
  0x79   :  { %675 = vmatpush.msrb.mxu3 %v4443_v24  ;;  %616 = vmatpush.msrb.mxu0 %v4449_v26 }
  0x7a   :  { %636 = vmatpush.msrb.mxu1 %v4451_v27  ;;  %656 = vmatpush.msrb.mxu2 %v4457_v29 }
  0x7b   :  { %676 = vmatpush.msrb.mxu3 %v4455_v28  ;;  %617 = vmatpush.msrb.mxu0 %v4461_v30 }
  0x7c   :  { %637 = vmatpush.msrb.mxu1 %v4463_v31  ;;  %657 = vmatpush.msrb.mxu2 %v4476_v34 }
  0x7d   :  { %677 = vmatpush.msrb.mxu3 %v4467_v32  ;;  %618 = vmatpush.msrb.mxu0 %v4478_v35 }
  0x7e   :  { %638 = vmatpush.msrb.mxu1 %v4481_v36  ;;  %658 = vmatpush.msrb.mxu2 %v4485_v38 }
  0x7f   :  { %678 = vmatpush.msrb.mxu3 %v4483_v37  ;;  %619 = vmatpush.msrb.mxu0 %v4489_v39 }
  0x80   :  { %639 = vmatpush.msrb.mxu1 %v4491_v40  ;;  %659 = vmatpush.msrb.mxu2 %v4496_v42 }
  0x81   :  { %679 = vmatpush.msrb.mxu3 %v4494_v41  ;;  %620 = vmatpush.msrb.mxu0 %v4500_v43 }
  0x82   :  { %640 = vmatpush.msrb.mxu1 %v4502_v44  ;;  %660 = vmatpush.msrb.mxu2 %v4508_v46 }
  0x83   :  { %680 = vmatpush.msrb.mxu3 %v4506_v45  ;;  %621 = vmatpush.msrb.mxu0 %v4512_v47 }
  0x84   :  { %641 = vmatpush.msrb.mxu1 %v4514_v48  ;;  %661 = vmatpush.msrb.mxu2 %v4527_v51 }
  0x85   :  { %681 = vmatpush.msrb.mxu3 %v4518_v49  ;;  %622 = vmatpush.msrb.mxu0 %v4529_v52 }
  0x86   :  { %642 = vmatpush.msrb.mxu1 %v4532_v53  ;;  %662 = vmatpush.msrb.mxu2 %v4536_v55 }
  0x87   :  { %682 = vmatpush.msrb.mxu3 %v4534_v54  ;;  %623 = vmatpush.msrb.mxu0 %v4540_v56 }
  0x88   :  { %643 = vmatpush.msrb.mxu1 %v4542_v57  ;;  %663 = vmatpush.msrb.mxu2 %v4547_v59 }
  0x89   :  { %683 = vmatpush.msrb.mxu3 %v7564_v58  ;;  %624 = vmatpush.msrb.mxu0 %v4551_v60  ;;  %v192_v60 = vld [vmem:[%s7103_s3] sm:$0xf] }
  0x8a   :  { %644 = vmatpush.msrb.mxu1 %v4553_v61  ;;  %664 = vmatpush.msrb.mxu2 %v4559_v63  ;;  %v198_v61 = vperm.slane %v192_v60, 0  ;;  %v199_v63 = vperm.slane %v192_v60, 1  ;;  %v200_v53 = vperm.slane %v192_v60, 2 }
  0x8b   :  { %684 = vmatpush.msrb.mxu3 %v4557_v62  ;;  %625 = vmatpush.msrb.mxu0 %v4563_v1 }
  0x8c   :  { %645 = vmatpush.msrb.mxu1 %v4565_v33  ;;  %665 = vmatpush.msrb.mxu2 %v4573_v0  ;;  %v201_v33 = vperm.slane %v192_v60, 3 }
  0x8d   :  { %685 = vmatpush.msrb.mxu3 %v4569_v50 }
  0xb4   :  { %v223_v57 = vpop.f32.mrf.mxu0  ;;  %v246_v59 = vpop.f32.mrf.mxu1 }
  0xb5   :  { %v4720_v52 = vadd.f32 %v223_v57, %v198_v61  ;;  %v4722_v51 = vadd.f32 %v246_v59, %v199_v63 }
  0xb7   :  { %7568 = vst [vmem:[#allocation48_spill] sm:$0xff] %v4720_v52 }
  0xb8   :  { %7569 = vst [vmem:[#allocation49_spill] sm:$0xff] %v4722_v51 }
  0xbb   :  { %v292_v58 = vpop.f32.mrf.mxu3 }
  0xbc   :  { %v269_v56 = vpop.f32.mrf.mxu2  ;;  %v4728_v60 = vadd.f32 %v292_v58, %v201_v33 }
  0xbe   :  { %v226_v54 = vpop.f32.mrf.mxu0  ;;  %v249_v1 = vpop.f32.mrf.mxu1  ;;  %7571 = vst [vmem:[#allocation51_spill] sm:$0xff] %v4728_v60 }
  0xbf   :  { %v4714_v62 = vadd.f32 %v226_v54, %v198_v61  ;;  %v4716_v55 = vadd.f32 %v249_v1, %v199_v63 }
  0xc1   :  { %7565 = vst [vmem:[#allocation45_spill] sm:$0xff] %v4714_v62 }
  0xc2   :  { %7566 = vst [vmem:[#allocation46_spill] sm:$0xff] %v4716_v55 }
  0xc5   :  { %v295_v0 = vpop.f32.mrf.mxu3 }
  0xc6   :  { %v4718_v50 = vadd.f32 %v295_v0, %v201_v33  ;;  %v272_v49 = vpop.f32.mrf.mxu2 }
  0xc7   :  { %v4724_v48 = vadd.f32 %v272_v49, %v200_v53 }
  0xc8   :  { %7567 = vst [vmem:[#allocation47_spill] sm:$0xff] %v4718_v50  ;;  %v315_v47 = vpop.f32.mrf.mxu0  ;;  %v335_v54 = vpop.f32.mrf.mxu1 }
  0xc9   :  { %7570 = vst [vmem:[#allocation50_spill] sm:$0xff] %v4724_v48  ;;  %v378_v45 = vadd.f32 %v315_v47, %v4720_v52  ;;  %v379_v62 = vadd.f32 %v335_v54, %v4722_v51  ;;  %v4731_v47 = vadd.f32 %v269_v56, %v200_v53 }
  0xcb   :  { %v3656_v1 = vmul.f32 -1.442695, %v378_v45  ;;  %v3657_v55 = vmul.f32 -1.442695, %v379_v62  ;;  %7572 = vst [vmem:[#allocation52_spill] sm:$0xff] %v4731_v47 }
  0xcd   :  { %3715 = vpow2.f32 %v3656_v1 }
  0xce   :  { %3717 = vpow2.f32 %v3657_v55 }
  0xcf   :  { %v375_v0 = vpop.f32.mrf.mxu3 }
  0xd0   :  { %v381_v57 = vadd.f32 %v375_v0, %v4728_v60  ;;  %v355_v54 = vpop.f32.mrf.mxu2 }
  0xd1   :  { %v380_v55 = vadd.f32 %v355_v54, %v4731_v47 }
  0xd2   :  { %v3658_v59 = vmul.f32 -1.442695, %v381_v57 }
  0xd3   :  { %v3716_v61 = vpop.eup %3715 }
  0xd4   :  { %v3718_v63 = vpop.eup %3717  ;;  %v385_v49 = vadd.f32 1.0, %v3716_v61  ;;  %3719 = vpow2.f32 %v3658_v59 }
  0xd5   :  { %v404_v48 = vadd.f32 1.0, %v3718_v63 }
  0xd6   :  { %3721 = vrcp.f32 %v385_v49  ;;  %v397_v60 = vand.u32 2147483648, %v385_v49  ;;  %v395_v63 = vand.u32 2147483647, %v385_v49  ;;  %vm391_vm2 = vweird.f32 %v385_v49 }
  0xd7   :  { %3723 = vrcp.f32 %v404_v48  ;;  %v416_v61 = vand.u32 2147483648, %v404_v48  ;;  %v414_v56 = vand.u32 2147483647, %v404_v48  ;;  %vm410_vm3 = vweird.f32 %v404_v48 }
  0xd8   :  { %v398_v54 = vor.u32 1.1754944e-38, %v397_v60  ;;  %vm396_vm5 = vcmp.eq.f32.partialorder %v395_v63, 8.507059e+37  ;;  %v7589_v63 = vld [vmem:[#allocation36_spill] sm:$0xff] }
  0xd9   :  { %v417_v52 = vor.u32 1.1754944e-38, %v416_v61  ;;  %vm415_vm7 = vcmp.eq.f32.partialorder %v414_v56, 8.507059e+37  ;;  %v7591_v56 = vld [vmem:[#allocation37_spill] sm:$0xff] }
  0xda   :  { %v3720_v45 = vpop.eup %3719 }
  0xdb   :  { %v424_v1 = vadd.f32 1.0, %v3720_v45 }
  0xdc   :  { %v3722_v62 = vpop.eup %3721 }
  0xdd   :  { %v3724_v58 = vpop.eup %3723  ;;  %v387_v33 = vmul.f32 %v3722_v62, %v385_v49  ;;  %3725 = vrcp.f32 %v424_v1  ;;  %vm392_vm0 = vweird.f32 %v3722_v62  ;;  %v436_v60 = vand.u32 2147483648, %v424_v1 }
  0xde   :  { %v406_v50 = vmul.f32 %v3724_v58, %v404_v48  ;;  %3727 = vtanh.f32 %v380_v55  ;;  %vm411_vm1 = vweird.f32 %v3724_v58  ;;  %vm393_vm4 = vmor %vm391_vm2, %vm392_vm0  ;;  %vm430_vm9 = vweird.f32 %v424_v1 }
  0xdf   :  { %v388_v0 = vsub.f32 1.0, %v387_v33  ;;  %vm412_vm6 = vmor %vm410_vm3, %vm411_vm1  ;;  %v437_v61 = vor.u32 1.1754944e-38, %v436_v60 }
  0xe0   :  { %v407_v57 = vsub.f32 1.0, %v406_v50 }
  0xe1   :  { %v389_v59 = vmul.f32 %v3722_v62, %v388_v0 }
  0xe2   :  { %v408_v53 = vmul.f32 %v3724_v58, %v407_v57 }
  0xe3   :  { %v390_v51 = vadd.f32 %v3722_v62, %v389_v59  ;;  %v3726_v45 = vpop.eup %3725 }
  0xe4   :  { %v409_v47 = vadd.f32 %v3724_v58, %v408_v53  ;;  %v426_v46 = vmul.f32 %v3726_v45, %v424_v1  ;;  %v3728_v50 = vpop.eup %3727  ;;  %vm431_vm8 = vweird.f32 %v3726_v45  ;;  %v7590_v53 = vld [vmem:[#allocation35_spill] sm:$0xff] }
  0xe5   :  { %v394_v33 = vsel %vm393_vm4, %v3722_v62, %v390_v51  ;;  %v434_v51 = vand.u32 2147483647, %v424_v1  ;;  %vm432_vm10 = vmor %vm430_vm9, %vm431_vm8  ;;  %v7588_v1 = vld [vmem:[#allocation34_spill] sm:$0xff] }
  0xe6   :  { %v399_v55 = vsel %vm396_vm5, %v398_v54, %v394_v33  ;;  %v413_v0 = vsel %vm412_vm6, %v3724_v58, %v409_v47  ;;  %v427_v44 = vsub.f32 1.0, %v426_v46  ;;  %v7593_v54 = vld [vmem:[#allocation40_spill] sm:$0xff]  ;;  %v7594_v33 = vld [vmem:[#allocation39_spill] sm:$0xff] }
  0xe7   :  { %v418_v57 = vsel %vm415_vm7, %v417_v52, %v413_v0  ;;  %v441_v43 = vmul.f32 %v3728_v50, %v399_v55  ;;  %vm435_vm11 = vcmp.eq.f32.partialorder %v434_v51, 8.507059e+37  ;;  %v7587_v52 = vld [vmem:[#allocation33_spill] sm:$0xff]  ;;  %v7596_v55 = vld [vmem:[#allocation42_spill] sm:$0xff]  ;;  %v7597_v0 = vld [vmem:[#allocation44_spill] sm:$0xff] }
  0xe8   :  { %v440_v41 = vmul.f32 0.0, %v418_v57  ;;  %v428_v59 = vmul.f32 %v3726_v45, %v427_v44  ;;  %v7586_v44 = vld [vmem:[#allocation31_spill] sm:$0xff]  ;;  %v7595_v50 = vld [vmem:[#allocation41_spill] sm:$0xff] }
  0xe9   :  { %v7598_v57 = vld [vmem:[#allocation43_spill] sm:$0xff] }
  0xea   :  { %v4734_v49 = vadd.f32 %v441_v43, %v440_v41  ;;  %v429_v48 = vadd.f32 %v3726_v45, %v428_v59  ;;  %v7584_v41 = vld [vmem:[#allocation30_spill] sm:$0xff]  ;;  %v7585_v43 = vld [vmem:[#allocation32_spill] sm:$0xff] }
  0xec   :  { %3729 = vtanh.f32 %v4734_v49  ;;  %v433_v62 = vsel %vm432_vm10, %v3726_v45, %v429_v48  ;;  %v7592_v45 = vld [vmem:[#allocation38_spill] sm:$0xff] }
  0xed   :  { %v438_v58 = vsel %vm435_vm11, %v437_v61, %v433_v62  ;;  %v7599_v62 = vld [vmem:[#allocation48_spill] sm:$0xff] }
  0xf2   :  { %v3730_v47 = vpop.eup %3729 }
  0xf3   :  { %v4737_v46 = vmul.f32 %v3730_v47, %v438_v58  ;;  %v7600_v47 = vld [vmem:[#allocation49_spill] sm:$0xff] }
  0xf5   :  { %7573 = vst [vmem:[#allocation53_spill] sm:$0xff] %v4737_v46  ;;  %461 = vmatmul.f32.vlgmr.msra.gmra.mxu0 %v4737_v46  ;;  %481 = vmatmul.f32.vlgmr.msra.gmra.mxu1 %v4737_v46 }
  0xf6   :  { %501 = vmatmul.f32.vlgmr.msra.gmra.mxu2 %v4737_v46  ;;  %521 = vmatmul.f32.vlgmr.msra.gmra.mxu3 %v4737_v46 }
  0xf7   :  { %775 = vmatpush.msra.mxu0 %v4381_v2  ;;  %795 = vmatpush.msra.mxu1 %v4383_v3  ;;  %v7574_v2 = vld [vmem:[#allocation20_spill] sm:$0xff]  ;;  %v7575_v3 = vld [vmem:[#allocation21_spill] sm:$0xff] }
  0xf8   :  { %815 = vmatpush.msra.mxu2 %v4387_v5  ;;  %835 = vmatpush.msra.mxu3 %v4385_v4  ;;  %v7576_v4 = vld [vmem:[#allocation22_spill] sm:$0xff]  ;;  %v7577_v5 = vld [vmem:[#allocation24_spill] sm:$0xff] }
  0xf9   :  { %776 = vmatpush.msra.mxu0 %v4389_v6  ;;  %796 = vmatpush.msra.mxu1 %v4391_v7  ;;  %v7578_v6 = vld [vmem:[#allocation23_spill] sm:$0xff]  ;;  %v7579_v7 = vld [vmem:[#allocation25_spill] sm:$0xff] }
  0xfa   :  { %816 = vmatpush.msra.mxu2 %v4397_v9  ;;  %836 = vmatpush.msra.mxu3 %v4395_v8  ;;  %v7580_v8 = vld [vmem:[#allocation26_spill] sm:$0xff]  ;;  %v7581_v9 = vld [vmem:[#allocation28_spill] sm:$0xff] }
  0xfb   :  { %777 = vmatpush.msra.mxu0 %v4401_v10  ;;  %797 = vmatpush.msra.mxu1 %v4403_v11  ;;  %v7582_v10 = vld [vmem:[#allocation27_spill] sm:$0xff]  ;;  %v7583_v11 = vld [vmem:[#allocation29_spill] sm:$0xff] }
  0xfc   :  { %817 = vmatpush.msra.mxu2 %v4409_v13  ;;  %837 = vmatpush.msra.mxu3 %v4407_v12 }
  0xfd   :  { %778 = vmatpush.msra.mxu0 %v4413_v14  ;;  %798 = vmatpush.msra.mxu1 %v4415_v15 }
  0xfe   :  { %818 = vmatpush.msra.mxu2 %v4421_v17  ;;  %838 = vmatpush.msra.mxu3 %v4419_v16 }
  0xff   :  { %779 = vmatpush.msra.mxu0 %v4425_v18  ;;  %799 = vmatpush.msra.mxu1 %v4427_v19 }
 0x100   :  { %819 = vmatpush.msra.mxu2 %v4433_v21  ;;  %839 = vmatpush.msra.mxu3 %v4431_v20 }
 0x101   :  { %780 = vmatpush.msra.mxu0 %v4437_v22  ;;  %800 = vmatpush.msra.mxu1 %v4439_v23 }
 0x102   :  { %820 = vmatpush.msra.mxu2 %v4445_v25  ;;  %840 = vmatpush.msra.mxu3 %v4443_v24 }
 0x103   :  { %781 = vmatpush.msra.mxu0 %v4449_v26  ;;  %801 = vmatpush.msra.mxu1 %v4451_v27 }
 0x104   :  { %821 = vmatpush.msra.mxu2 %v4457_v29  ;;  %841 = vmatpush.msra.mxu3 %v4455_v28 }
 0x105   :  { %782 = vmatpush.msra.mxu0 %v4461_v30  ;;  %802 = vmatpush.msra.mxu1 %v4463_v31 }
 0x106   :  { %822 = vmatpush.msra.mxu2 %v4476_v34  ;;  %842 = vmatpush.msra.mxu3 %v4467_v32 }
 0x107   :  { %783 = vmatpush.msra.mxu0 %v4478_v35  ;;  %803 = vmatpush.msra.mxu1 %v4481_v36 }
 0x108   :  { %823 = vmatpush.msra.mxu2 %v4485_v38  ;;  %843 = vmatpush.msra.mxu3 %v4483_v37 }
 0x109   :  { %784 = vmatpush.msra.mxu0 %v4489_v39  ;;  %804 = vmatpush.msra.mxu1 %v4491_v40 }
 0x10a   :  { %824 = vmatpush.msra.mxu2 %v4496_v42  ;;  %844 = vmatpush.msra.mxu3 %v7574_v2 }
 0x10b   :  { %785 = vmatpush.msra.mxu0 %v7575_v3  ;;  %805 = vmatpush.msra.mxu1 %v7576_v4 }
 0x10c   :  { %825 = vmatpush.msra.mxu2 %v7577_v5  ;;  %845 = vmatpush.msra.mxu3 %v7578_v6 }
 0x10d   :  { %786 = vmatpush.msra.mxu0 %v7579_v7  ;;  %806 = vmatpush.msra.mxu1 %v7580_v8 }
 0x10e   :  { %826 = vmatpush.msra.mxu2 %v7581_v9  ;;  %846 = vmatpush.msra.mxu3 %v7582_v10 }
 0x10f   :  { %787 = vmatpush.msra.mxu0 %v7583_v11  ;;  %807 = vmatpush.msra.mxu1 %v7584_v41 }
 0x110   :  { %827 = vmatpush.msra.mxu2 %v7585_v43  ;;  %847 = vmatpush.msra.mxu3 %v7586_v44 }
 0x111   :  { %788 = vmatpush.msra.mxu0 %v7587_v52  ;;  %808 = vmatpush.msra.mxu1 %v7588_v1 }
 0x112   :  { %828 = vmatpush.msra.mxu2 %v7589_v63  ;;  %848 = vmatpush.msra.mxu3 %v7590_v53 }
 0x113   :  { %789 = vmatpush.msra.mxu0 %v7591_v56  ;;  %809 = vmatpush.msra.mxu1 %v7592_v45  ;;  %v7601_v45 = vld [vmem:[#allocation51_spill] sm:$0xff] }
 0x114   :  { %829 = vmatpush.msra.mxu2 %v7593_v54  ;;  %849 = vmatpush.msra.mxu3 %v7594_v33 }
 0x115   :  { %790 = vmatpush.msra.mxu0 %v7595_v50  ;;  %810 = vmatpush.msra.mxu1 %v7596_v55 }
 0x116   :  { %830 = vmatpush.msra.mxu2 %v7597_v0  ;;  %850 = vmatpush.msra.mxu3 %v7598_v57 }
 0x172   :  { %v462_v59 = vpop.f32.mrf.mxu0  ;;  %v482_v48 = vpop.f32.mrf.mxu1 }
 0x173   :  { %v529_v60 = vrot.slane %v462_v59, 6  ;;  %v530_v51 = vrot.slane %v482_v48, 6 }
 0x175   :  { %v537_v61 = vadd.f32 %v529_v60, %v7599_v62  ;;  %v538_v58 = vadd.f32 %v530_v51, %v7600_v47 }
 0x177   :  { %v3659_v46 = vmul.f32 -1.442695, %v537_v61  ;;  %v3660_v54 = vmul.f32 -1.442695, %v538_v58  ;;  %v7602_v58 = vld [vmem:[#allocation52_spill] sm:$0xff] }
 0x179   :  { %3731 = vpow2.f32 %v3659_v46  ;;  %v522_v33 = vpop.f32.mrf.mxu3  ;;  %v502_v59 = vpop.f32.mrf.mxu2 }
 0x17a   :  { %3733 = vpow2.f32 %v3660_v54  ;;  %v532_v50 = vrot.slane %v522_v33, 6  ;;  %v531_v48 = vrot.slane %v502_v59, 6 }
 0x17c   :  { %v540_v55 = vadd.f32 %v532_v50, %v7601_v45  ;;  %v539_v46 = vadd.f32 %v531_v48, %v7602_v58 }
 0x17e   :  { %v3661_v56 = vmul.f32 -1.442695, %v540_v55 }
 0x17f   :  { %v3732_v0 = vpop.eup %3731 }
 0x180   :  { %v3734_v53 = vpop.eup %3733  ;;  %v544_v57 = vadd.f32 1.0, %v3732_v0  ;;  %3735 = vpow2.f32 %v3661_v56 }
 0x181   :  { %v563_v63 = vadd.f32 1.0, %v3734_v53 }
 0x182   :  { %3737 = vrcp.f32 %v544_v57  ;;  %v556_v45 = vand.u32 2147483648, %v544_v57  ;;  %v554_v53 = vand.u32 2147483647, %v544_v57  ;;  %vm550_vm14 = vweird.f32 %v544_v57 }
 0x183   :  { %3739 = vrcp.f32 %v563_v63  ;;  %v575_v0 = vand.u32 2147483648, %v563_v63  ;;  %v573_v59 = vand.u32 2147483647, %v563_v63  ;;  %vm569_vm15 = vweird.f32 %v563_v63 }
 0x184   :  { %v557_v48 = vor.u32 1.1754944e-38, %v556_v45  ;;  %vm555_vm2 = vcmp.eq.f32.partialorder %v554_v53, 8.507059e+37  ;;  %v4836_v53 = vld [vmem:[#allocation5 + $0x3c8] sm:$0xff] }
 0x185   :  { %vm574_vm3 = vcmp.eq.f32.partialorder %v573_v59, 8.507059e+37  ;;  %v4839_v59 = vld [vmem:[#allocation5 + $0x3d0] sm:$0xff] }
 0x186   :  { %v3736_v60 = vpop.eup %3735 }
 0x187   :  { %v583_v51 = vadd.f32 1.0, %v3736_v60 }
 0x188   :  { %v3738_v61 = vpop.eup %3737 }
 0x189   :  { %v3740_v47 = vpop.eup %3739  ;;  %v546_v54 = vmul.f32 %v3738_v61, %v544_v57  ;;  %3741 = vrcp.f32 %v583_v51  ;;  %vm551_vm12 = vweird.f32 %v3738_v61  ;;  %vm589_vm5 = vweird.f32 %v583_v51 }
 0x18a   :  { %v565_v33 = vmul.f32 %v3740_v47, %v563_v63  ;;  %3743 = vtanh.f32 %v539_v46  ;;  %vm570_vm13 = vweird.f32 %v3740_v47  ;;  %vm552_vm0 = vmor %vm550_vm14, %vm551_vm12 }
 0x18b   :  { %v547_v50 = vsub.f32 1.0, %v546_v54  ;;  %v600_v54 = vrot.slane %v4734_v49, 6  ;;  %vm571_vm1 = vmor %vm569_vm15, %vm570_vm13  ;;  %v595_v49 = vand.u32 2147483648, %v583_v51 }
 0x18c   :  { %v566_v55 = vsub.f32 1.0, %v565_v33  ;;  %v576_v33 = vor.u32 1.1754944e-38, %v575_v0 }
 0x18d   :  { %v548_v56 = vmul.f32 %v3738_v61, %v547_v50  ;;  %v596_v0 = vor.u32 1.1754944e-38, %v595_v49 }
 0x18e   :  { %v567_v62 = vmul.f32 %v3740_v47, %v566_v55 }
 0x18f   :  { %v3742_v1 = vpop.eup %3741  ;;  %v549_v60 = vadd.f32 %v3738_v61, %v548_v56 }
 0x190   :  { %v568_v58 = vadd.f32 %v3740_v47, %v567_v62  ;;  %v585_v52 = vmul.f32 %v3742_v1, %v583_v51  ;;  %v3744_v50 = vpop.eup %3743  ;;  %vm590_vm4 = vweird.f32 %v3742_v1  ;;  %v593_v62 = vand.u32 2147483647, %v583_v51  ;;  %v4833_v51 = vld [vmem:[#allocation5 + $0x3c0] sm:$0xff] }
 0x191   :  { %v553_v46 = vsel %vm552_vm0, %v3738_v61, %v549_v60  ;;  %vm591_vm6 = vmor %vm589_vm5, %vm590_vm4  ;;  %v4842_v60 = vld [vmem:[#allocation5 + $0x3d8] sm:$0xff] }
 0x192   :  { %v558_v44 = vsel %vm555_vm2, %v557_v48, %v553_v46  ;;  %v572_v43 = vsel %vm571_vm1, %v3740_v47, %v568_v58  ;;  %v586_v55 = vsub.f32 1.0, %v585_v52  ;;  %vm594_vm7 = vcmp.eq.f32.partialorder %v593_v62, 8.507059e+37  ;;  %v4845_v48 = vld [vmem:[#allocation5 + $0x3a0] sm:$0xff] }
 0x193   :  { %v577_v41 = vsel %vm574_vm3, %v576_v33, %v572_v43  ;;  %v603_v11 = vmul.f32 %v3744_v50, %v558_v44  ;;  %v4827_v44 = vld [vmem:[#allocation5 + $0x3f0] sm:$0xff] }
 0x194   :  { %v602_v56 = vmul.f32 %v600_v54, %v577_v41  ;;  %v587_v57 = vmul.f32 %v3742_v1, %v586_v55  ;;  %v4824_v41 = vld [vmem:[#allocation5 + $0x3e8] sm:$0xff] }
 0x195   :  { %v4848_v54 = vld [vmem:[#allocation5 + $0x3a8] sm:$0xff] }
 0x196   :  { %v4812_v63 = vadd.f32 %v603_v11, %v602_v56  ;;  %v588_v45 = vadd.f32 %v3742_v1, %v587_v57  ;;  %v4821_v11 = vld [vmem:[#allocation5 + $0x3e0] sm:$0xff]  ;;  %v7623_v50 = vld [vmem:[#allocation52_spill] sm:$0xff] }
 0x198   :  { %3745 = vtanh.f32 %v4812_v63  ;;  %v592_v61 = vsel %vm591_vm6, %v3742_v1, %v588_v45  ;;  %v4830_v1 = vld [vmem:[#allocation5 + $0x3f8] sm:$0xff] }
 0x199   :  { %v597_v58 = vsel %vm594_vm7, %v596_v0, %v592_v61 }
 0x19e   :  { %v3746_v47 = vpop.eup %3745 }
 0x19f   :  { %v606_v52 = vmul.f32 %v3746_v47, %v597_v58 }
 0x1a1   :  { %v4815_v43 = vrot.slane %v606_v52, 2 }
 0x1a3   :  { %7603 = vst [vmem:[#allocation20_spill] sm:$0xff] %v4815_v43  ;;  %626 = vmatmul.f32.vlgmr.msrb.gmra.mxu0 %v4815_v43  ;;  %646 = vmatmul.f32.vlgmr.msrb.gmra.mxu1 %v4815_v43 }
 0x1a4   :  { %666 = vmatmul.f32.vlgmr.msrb.gmra.mxu2 %v4815_v43  ;;  %686 = vmatmul.f32.vlgmr.msrb.gmra.mxu3 %v4815_v43  ;;  %v5073_v43 = vld [vmem:[#allocation5 + $0x230] sm:$0xff] }
 0x1a5   :  { %940 = vmatpush.msrb.mxu0 %v4821_v11  ;;  %960 = vmatpush.msrb.mxu1 %v4824_v41 }
 0x1a6   :  { %980 = vmatpush.msrb.mxu2 %v4827_v44  ;;  %1000 = vmatpush.msrb.mxu3 %v4830_v1 }
 0x1a7   :  { %941 = vmatpush.msrb.mxu0 %v4833_v51  ;;  %961 = vmatpush.msrb.mxu1 %v4836_v53 }
 0x1a8   :  { %981 = vmatpush.msrb.mxu2 %v4839_v59  ;;  %1001 = vmatpush.msrb.mxu3 %v4842_v60 }
 0x1a9   :  { %942 = vmatpush.msrb.mxu0 %v4845_v48  ;;  %962 = vmatpush.msrb.mxu1 %v4848_v54 }
 0x1aa   :  { %982 = vmatpush.msrb.mxu2 %v4409_v13  ;;  %1002 = vmatpush.msrb.mxu3 %v4407_v12  ;;  %v7604_v12 = vld [vmem:[#allocation29_spill] sm:$0xff]  ;;  %v7605_v13 = vld [vmem:[#allocation30_spill] sm:$0xff] }
 0x1ab   :  { %943 = vmatpush.msrb.mxu0 %v4413_v14  ;;  %963 = vmatpush.msrb.mxu1 %v4415_v15  ;;  %v7606_v14 = vld [vmem:[#allocation32_spill] sm:$0xff]  ;;  %v7607_v15 = vld [vmem:[#allocation31_spill] sm:$0xff] }
 0x1ac   :  { %983 = vmatpush.msrb.mxu2 %v4421_v17  ;;  %1003 = vmatpush.msrb.mxu3 %v4419_v16  ;;  %v7608_v16 = vld [vmem:[#allocation33_spill] sm:$0xff]  ;;  %v7609_v17 = vld [vmem:[#allocation34_spill] sm:$0xff] }
 0x1ad   :  { %944 = vmatpush.msrb.mxu0 %v4425_v18  ;;  %964 = vmatpush.msrb.mxu1 %v4427_v19  ;;  %v7610_v18 = vld [vmem:[#allocation36_spill] sm:$0xff]  ;;  %v7611_v19 = vld [vmem:[#allocation35_spill] sm:$0xff] }
 0x1ae   :  { %984 = vmatpush.msrb.mxu2 %v4433_v21  ;;  %1004 = vmatpush.msrb.mxu3 %v4431_v20  ;;  %v7612_v20 = vld [vmem:[#allocation37_spill] sm:$0xff]  ;;  %v7613_v21 = vld [vmem:[#allocation38_spill] sm:$0xff] }
 0x1af   :  { %945 = vmatpush.msrb.mxu0 %v4437_v22  ;;  %965 = vmatpush.msrb.mxu1 %v4439_v23  ;;  %v7614_v22 = vld [vmem:[#allocation40_spill] sm:$0xff]  ;;  %v7615_v23 = vld [vmem:[#allocation39_spill] sm:$0xff] }
 0x1b0   :  { %985 = vmatpush.msrb.mxu2 %v4445_v25  ;;  %1005 = vmatpush.msrb.mxu3 %v4443_v24  ;;  %v7616_v24 = vld [vmem:[#allocation41_spill] sm:$0xff]  ;;  %v7617_v25 = vld [vmem:[#allocation42_spill] sm:$0xff] }
 0x1b1   :  { %946 = vmatpush.msrb.mxu0 %v4449_v26  ;;  %966 = vmatpush.msrb.mxu1 %v4451_v27  ;;  %v7618_v26 = vld [vmem:[#allocation44_spill] sm:$0xff]  ;;  %v7619_v27 = vld [vmem:[#allocation43_spill] sm:$0xff]  ;;  %7645 = vst [vmem:[#allocation42_spill] sm:$0xff] %v5073_v43 }
 0x1b2   :  { %986 = vmatpush.msrb.mxu2 %v4457_v29  ;;  %1006 = vmatpush.msrb.mxu3 %v4455_v28 }
 0x1b3   :  { %947 = vmatpush.msrb.mxu0 %v4461_v30  ;;  %967 = vmatpush.msrb.mxu1 %v4463_v31 }
 0x1b4   :  { %987 = vmatpush.msrb.mxu2 %v4476_v34  ;;  %1007 = vmatpush.msrb.mxu3 %v4467_v32  ;;  %v7620_v32 = vld [vmem:[#allocation48_spill] sm:$0xff] }
 0x1b5   :  { %948 = vmatpush.msrb.mxu0 %v4478_v35  ;;  %968 = vmatpush.msrb.mxu1 %v4481_v36  ;;  %v7621_v35 = vld [vmem:[#allocation49_spill] sm:$0xff] }
 0x1b6   :  { %988 = vmatpush.msrb.mxu2 %v4485_v38  ;;  %1008 = vmatpush.msrb.mxu3 %v4483_v37 }
 0x1b7   :  { %949 = vmatpush.msrb.mxu0 %v4489_v39  ;;  %969 = vmatpush.msrb.mxu1 %v4491_v40 }
 0x1b8   :  { %989 = vmatpush.msrb.mxu2 %v4496_v42  ;;  %1009 = vmatpush.msrb.mxu3 %v7574_v2  ;;  %v7622_v42 = vld [vmem:[#allocation51_spill] sm:$0xff] }
 0x1b9   :  { %950 = vmatpush.msrb.mxu0 %v7575_v3  ;;  %970 = vmatpush.msrb.mxu1 %v7576_v4 }
 0x1ba   :  { %990 = vmatpush.msrb.mxu2 %v7577_v5  ;;  %1010 = vmatpush.msrb.mxu3 %v7578_v6 }
 0x1bb   :  { %951 = vmatpush.msrb.mxu0 %v7579_v7  ;;  %971 = vmatpush.msrb.mxu1 %v7580_v8 }
 0x1bc   :  { %991 = vmatpush.msrb.mxu2 %v7581_v9  ;;  %1011 = vmatpush.msrb.mxu3 %v7582_v10 }
 0x1bd   :  { %952 = vmatpush.msrb.mxu0 %v7604_v12  ;;  %972 = vmatpush.msrb.mxu1 %v7605_v13 }
 0x1be   :  { %992 = vmatpush.msrb.mxu2 %v7606_v14  ;;  %1012 = vmatpush.msrb.mxu3 %v7607_v15 }
 0x1bf   :  { %953 = vmatpush.msrb.mxu0 %v7608_v16  ;;  %973 = vmatpush.msrb.mxu1 %v7609_v17 }
 0x1c0   :  { %993 = vmatpush.msrb.mxu2 %v7610_v18  ;;  %1013 = vmatpush.msrb.mxu3 %v7611_v19  ;;  %v765_v18 = vrot.slane %v4812_v63, 6 }
 0x1c1   :  { %954 = vmatpush.msrb.mxu0 %v7612_v20  ;;  %974 = vmatpush.msrb.mxu1 %v7613_v21 }
 0x1c2   :  { %994 = vmatpush.msrb.mxu2 %v7614_v22  ;;  %1014 = vmatpush.msrb.mxu3 %v7615_v23 }
 0x1c3   :  { %955 = vmatpush.msrb.mxu0 %v7616_v24  ;;  %975 = vmatpush.msrb.mxu1 %v7617_v25 }
 0x1c4   :  { %995 = vmatpush.msrb.mxu2 %v7618_v26  ;;  %1015 = vmatpush.msrb.mxu3 %v7619_v27 }
 0x220   :  { %v627_v28 = vpop.f32.mrf.mxu0  ;;  %v647_v29 = vpop.f32.mrf.mxu1 }
 0x221   :  { %v694_v30 = vrot.slane %v627_v28, 4  ;;  %v695_v31 = vrot.slane %v647_v29, 4 }
 0x223   :  { %v702_v34 = vadd.f32 %v694_v30, %v7620_v32  ;;  %v703_v36 = vadd.f32 %v695_v31, %v7621_v35 }
 0x225   :  { %v3662_v37 = vmul.f32 -1.442695, %v702_v34  ;;  %v3663_v38 = vmul.f32 -1.442695, %v703_v36 }
 0x227   :  { %3747 = vpow2.f32 %v3662_v37  ;;  %v687_v39 = vpop.f32.mrf.mxu3  ;;  %v667_v8 = vpop.f32.mrf.mxu2 }
 0x228   :  { %3749 = vpow2.f32 %v3663_v38  ;;  %v697_v40 = vrot.slane %v687_v39, 4  ;;  %v696_v9 = vrot.slane %v667_v8, 4  ;;  %v4947_v8 = vld [vmem:[#allocation5 + $0x360] sm:$0xff] }
 0x22a   :  { %v705_v2 = vadd.f32 %v697_v40, %v7622_v42  ;;  %v704_v55 = vadd.f32 %v696_v9, %v7623_v50  ;;  %v4950_v9 = vld [vmem:[#allocation5 + $0x368] sm:$0xff] }
 0x22c   :  { %v3664_v3 = vmul.f32 -1.442695, %v705_v2  ;;  %v4929_v2 = vld [vmem:[#allocation5 + $0x3b0] sm:$0xff] }
 0x22d   :  { %v3748_v4 = vpop.eup %3747 }
 0x22e   :  { %v3750_v5 = vpop.eup %3749  ;;  %v709_v6 = vadd.f32 1.0, %v3748_v4  ;;  %3751 = vpow2.f32 %v3664_v3  ;;  %v4932_v3 = vld [vmem:[#allocation5 + $0x3b8] sm:$0xff]  ;;  %v4935_v4 = vld [vmem:[#allocation5 + $0x380] sm:$0xff] }
 0x22f   :  { %v728_v7 = vadd.f32 1.0, %v3750_v5  ;;  %v4938_v5 = vld [vmem:[#allocation5 + $0x388] sm:$0xff] }
 0x230   :  { %3753 = vrcp.f32 %v709_v6  ;;  %v721_v61 = vand.u32 2147483648, %v709_v6  ;;  %v719_v58 = vand.u32 2147483647, %v709_v6  ;;  %vm715_vm10 = vweird.f32 %v709_v6 }
 0x231   :  { %3755 = vrcp.f32 %v728_v7  ;;  %v740_v0 = vand.u32 2147483648, %v728_v7  ;;  %v738_v12 = vand.u32 2147483647, %v728_v7  ;;  %vm734_vm11 = vweird.f32 %v728_v7 }
 0x232   :  { %v722_v15 = vor.u32 1.1754944e-38, %v721_v61  ;;  %vm720_vm14 = vcmp.eq.f32.partialorder %v719_v58, 8.507059e+37  ;;  %v4980_v61 = vld [vmem:[#allocation5 + $0x338] sm:$0xff]  ;;  %v4989_v58 = vld [vmem:[#allocation5 + $0x310] sm:$0xff] }
 0x233   :  { %v741_v19 = vor.u32 1.1754944e-38, %v740_v0  ;;  %vm739_vm15 = vcmp.eq.f32.partialorder %v738_v12, 8.507059e+37  ;;  %v4983_v0 = vld [vmem:[#allocation5 + $0x300] sm:$0xff] }
 0x234   :  { %v3752_v10 = vpop.eup %3751  ;;  %v4995_v12 = vld [vmem:[#allocation5 + $0x2e0] sm:$0xff] }
 0x235   :  { %v748_v33 = vadd.f32 1.0, %v3752_v10  ;;  %v4953_v10 = vld [vmem:[#allocation5 + $0x370] sm:$0xff] }
 0x236   :  { %v3754_v46 = vpop.eup %3753 }
 0x237   :  { %v3756_v56 = vpop.eup %3755  ;;  %v711_v57 = vmul.f32 %v3754_v46, %v709_v6  ;;  %3757 = vrcp.f32 %v748_v33  ;;  %vm716_vm8 = vweird.f32 %v3754_v46  ;;  %v760_v63 = vand.u32 2147483648, %v748_v33  ;;  %v4941_v6 = vld [vmem:[#allocation5 + $0x390] sm:$0xff] }
 0x238   :  { %v730_v45 = vmul.f32 %v3756_v56, %v728_v7  ;;  %3759 = vtanh.f32 %v704_v55  ;;  %vm735_vm9 = vweird.f32 %v3756_v56  ;;  %vm717_vm12 = vmor %vm715_vm10, %vm716_vm8  ;;  %vm754_vm1 = vweird.f32 %v748_v33  ;;  %v4944_v7 = vld [vmem:[#allocation5 + $0x398] sm:$0xff]  ;;  %v4962_v55 = vld [vmem:[#allocation5 + $0x348] sm:$0xff] }
 0x239   :  { %v712_v49 = vsub.f32 1.0, %v711_v57  ;;  %vm736_vm13 = vmor %vm734_vm11, %vm735_vm9  ;;  %v758_v31 = vand.u32 2147483647, %v748_v33  ;;  %v761_v36 = vor.u32 1.1754944e-38, %v760_v63  ;;  %v4968_v57 = vld [vmem:[#allocation5 + $0x358] sm:$0xff]  ;;  %v5049_v63 = vld [vmem:[#allocation5 + $0x270] sm:$0xff] }
 0x23a   :  { %v731_v62 = vsub.f32 1.0, %v730_v45  ;;  %v4971_v45 = vld [vmem:[#allocation5 + $0x320] sm:$0xff]  ;;  %7637 = vst [vmem:[#allocation34_spill] sm:$0xff] %v5049_v63 }
 0x23b   :  { %v713_v47 = vmul.f32 %v3754_v46, %v712_v49  ;;  %vm759_vm3 = vcmp.eq.f32.partialorder %v758_v31, 8.507059e+37  ;;  %v4974_v49 = vld [vmem:[#allocation5 + $0x328] sm:$0xff]  ;;  %v5052_v31 = vld [vmem:[#allocation5 + $0x278] sm:$0xff] }
 0x23c   :  { %v732_v52 = vmul.f32 %v3756_v56, %v731_v62  ;;  %v4977_v62 = vld [vmem:[#allocation5 + $0x330] sm:$0xff]  ;;  %7638 = vst [vmem:[#allocation36_spill] sm:$0xff] %v5052_v31 }
 0x23d   :  { %v3758_v13 = vpop.eup %3757  ;;  %v714_v14 = vadd.f32 %v3754_v46, %v713_v47  ;;  %v4986_v47 = vld [vmem:[#allocation5 + $0x308] sm:$0xff] }
 0x23e   :  { %v733_v16 = vadd.f32 %v3756_v56, %v732_v52  ;;  %v750_v17 = vmul.f32 %v3758_v13, %v748_v33  ;;  %v3760_v21 = vpop.eup %3759  ;;  %vm755_vm0 = vweird.f32 %v3758_v13  ;;  %v4956_v33 = vld [vmem:[#allocation5 + $0x378] sm:$0xff] }
 0x23f   :  { %v718_v20 = vsel %vm717_vm12, %v3754_v46, %v714_v14  ;;  %vm756_vm2 = vmor %vm754_vm1, %vm755_vm0  ;;  %v4959_v46 = vld [vmem:[#allocation5 + $0x340] sm:$0xff]  ;;  %v4992_v52 = vld [vmem:[#allocation5 + $0x318] sm:$0xff] }
 0x240   :  { %v723_v22 = vsel %vm720_vm14, %v722_v15, %v718_v20  ;;  %v737_v23 = vsel %vm736_vm13, %v3756_v56, %v733_v16  ;;  %v751_v24 = vsub.f32 1.0, %v750_v17  ;;  %v4965_v56 = vld [vmem:[#allocation5 + $0x350] sm:$0xff]  ;;  %v5004_v15 = vld [vmem:[#allocation5 + $0x2f8] sm:$0xff]  ;;  %v5007_v16 = vld [vmem:[#allocation5 + $0x2c0] sm:$0xff] }
 0x241   :  { %v742_v25 = vsel %vm739_vm15, %v741_v19, %v737_v23  ;;  %v768_v26 = vmul.f32 %v3760_v21, %v723_v22  ;;  %v5001_v14 = vld [vmem:[#allocation5 + $0x2f0] sm:$0xff]  ;;  %v5010_v17 = vld [vmem:[#allocation5 + $0x2c8] sm:$0xff]  ;;  %v5016_v19 = vld [vmem:[#allocation5 + $0x2d8] sm:$0xff] }
 0x242   :  { %v767_v27 = vmul.f32 %v765_v18, %v742_v25  ;;  %v752_v28 = vmul.f32 %v3758_v13, %v751_v24  ;;  %v5013_v18 = vld [vmem:[#allocation5 + $0x2d0] sm:$0xff]  ;;  %7626 = vst [vmem:[#allocation24_spill] sm:$0xff] %v5016_v19  ;;  %v5019_v20 = vld [vmem:[#allocation5 + $0x2a0] sm:$0xff]  ;;  %v5022_v21 = vld [vmem:[#allocation5 + $0x2a8] sm:$0xff] }
 0x243   :  { %7625 = vst [vmem:[#allocation22_spill] sm:$0xff] %v5013_v18  ;;  %v5025_v22 = vld [vmem:[#allocation5 + $0x2b0] sm:$0xff]  ;;  %v5028_v23 = vld [vmem:[#allocation5 + $0x2b8] sm:$0xff]  ;;  %v5031_v24 = vld [vmem:[#allocation5 + $0x280] sm:$0xff] }
 0x244   :  { %v4910_v29 = vadd.f32 %v768_v26, %v767_v27  ;;  %v753_v30 = vadd.f32 %v3758_v13, %v752_v28  ;;  %7627 = vst [vmem:[#allocation23_spill] sm:$0xff] %v5019_v20  ;;  %v5034_v25 = vld [vmem:[#allocation5 + $0x288] sm:$0xff]  ;;  %v5037_v26 = vld [vmem:[#allocation5 + $0x290] sm:$0xff]  ;;  %v5040_v27 = vld [vmem:[#allocation5 + $0x298] sm:$0xff] }
 0x245   :  { %7628 = vst [vmem:[#allocation25_spill] sm:$0xff] %v5022_v21  ;;  %v5043_v28 = vld [vmem:[#allocation5 + $0x260] sm:$0xff] }
 0x246   :  { %3761 = vtanh.f32 %v4910_v29  ;;  %v757_v34 = vsel %vm756_vm2, %v3758_v13, %v753_v30  ;;  %v4998_v13 = vld [vmem:[#allocation5 + $0x2e8] sm:$0xff]  ;;  %7629 = vst [vmem:[#allocation26_spill] sm:$0xff] %v5025_v22 }
 0x247   :  { %v762_v38 = vsel %vm759_vm3, %v761_v36, %v757_v34  ;;  %7630 = vst [vmem:[#allocation28_spill] sm:$0xff] %v5028_v23  ;;  %v5046_v30 = vld [vmem:[#allocation5 + $0x268] sm:$0xff]  ;;  %v5055_v34 = vld [vmem:[#allocation5 + $0x240] sm:$0xff] }
 0x248   :  { %7631 = vst [vmem:[#allocation27_spill] sm:$0xff] %v5031_v24  ;;  %v5058_v36 = vld [vmem:[#allocation5 + $0x248] sm:$0xff] }
 0x249   :  { %7632 = vst [vmem:[#allocation29_spill] sm:$0xff] %v5034_v25 }
 0x24a   :  { %7633 = vst [vmem:[#allocation30_spill] sm:$0xff] %v5037_v26 }
 0x24b   :  { %7634 = vst [vmem:[#allocation32_spill] sm:$0xff] %v5040_v27 }
 0x24c   :  { %v3762_v37 = vpop.eup %3761  ;;  %7635 = vst [vmem:[#allocation31_spill] sm:$0xff] %v5043_v28 }
 0x24d   :  { %v771_v39 = vmul.f32 %v3762_v37, %v762_v38  ;;  %7636 = vst [vmem:[#allocation33_spill] sm:$0xff] %v5046_v30  ;;  %v5061_v37 = vld [vmem:[#allocation5 + $0x250] sm:$0xff]  ;;  %v5064_v38 = vld [vmem:[#allocation5 + $0x258] sm:$0xff] }
 0x24e   :  { %7639 = vst [vmem:[#allocation35_spill] sm:$0xff] %v5055_v34 }
 0x24f   :  { %v4913_v40 = vrot.slane %v771_v39, 4  ;;  %7640 = vst [vmem:[#allocation37_spill] sm:$0xff] %v5058_v36  ;;  %v5067_v39 = vld [vmem:[#allocation5 + $0x220] sm:$0xff] }
 0x250   :  { %7641 = vst [vmem:[#allocation38_spill] sm:$0xff] %v5061_v37 }
 0x251   :  { %7624 = vst [vmem:[#allocation21_spill] sm:$0xff] %v4913_v40  ;;  %791 = vmatmul.f32.vlgmr.msra.gmra.mxu0 %v4913_v40  ;;  %811 = vmatmul.f32.vlgmr.msra.gmra.mxu1 %v4913_v40 }
 0x252   :  { %831 = vmatmul.f32.vlgmr.msra.gmra.mxu2 %v4913_v40  ;;  %851 = vmatmul.f32.vlgmr.msra.gmra.mxu3 %v4913_v40  ;;  %7642 = vst [vmem:[#allocation40_spill] sm:$0xff] %v5064_v38  ;;  %v5070_v40 = vld [vmem:[#allocation5 + $0x228] sm:$0xff] }
 0x253   :  { %1090 = vmatpush.msra.mxu0 %v4821_v11  ;;  %1110 = vmatpush.msra.mxu1 %v4824_v41  ;;  %7643 = vst [vmem:[#allocation39_spill] sm:$0xff] %v5067_v39 }
 0x254   :  { %1130 = vmatpush.msra.mxu2 %v4827_v44  ;;  %1150 = vmatpush.msra.mxu3 %v4830_v1  ;;  %7644 = vst [vmem:[#allocation41_spill] sm:$0xff] %v5070_v40 }
 0x255   :  { %1091 = vmatpush.msra.mxu0 %v4833_v51  ;;  %1111 = vmatpush.msra.mxu1 %v4836_v53 }
 0x256   :  { %1131 = vmatpush.msra.mxu2 %v4839_v59  ;;  %1151 = vmatpush.msra.mxu3 %v4842_v60 }
 0x257   :  { %1092 = vmatpush.msra.mxu0 %v4845_v48  ;;  %1112 = vmatpush.msra.mxu1 %v4848_v54 }
 0x258   :  { %1132 = vmatpush.msra.mxu2 %v4929_v2  ;;  %1152 = vmatpush.msra.mxu3 %v4932_v3 }
 0x259   :  { %1093 = vmatpush.msra.mxu0 %v4935_v4  ;;  %1113 = vmatpush.msra.mxu1 %v4938_v5 }
 0x25a   :  { %1133 = vmatpush.msra.mxu2 %v4941_v6  ;;  %1153 = vmatpush.msra.mxu3 %v4944_v7 }
 0x25b   :  { %1094 = vmatpush.msra.mxu0 %v4947_v8  ;;  %1114 = vmatpush.msra.mxu1 %v4950_v9 }
 0x25c   :  { %1134 = vmatpush.msra.mxu2 %v4953_v10  ;;  %1154 = vmatpush.msra.mxu3 %v4956_v33 }
 0x25d   :  { %1095 = vmatpush.msra.mxu0 %v4959_v46  ;;  %1115 = vmatpush.msra.mxu1 %v4962_v55 }
 0x25e   :  { %1135 = vmatpush.msra.mxu2 %v4965_v56  ;;  %1155 = vmatpush.msra.mxu3 %v4968_v57 }
 0x25f   :  { %1096 = vmatpush.msra.mxu0 %v4971_v45  ;;  %1116 = vmatpush.msra.mxu1 %v4974_v49 }
 0x260   :  { %1136 = vmatpush.msra.mxu2 %v4977_v62  ;;  %1156 = vmatpush.msra.mxu3 %v4980_v61 }
 0x261   :  { %1097 = vmatpush.msra.mxu0 %v4983_v0  ;;  %1117 = vmatpush.msra.mxu1 %v4986_v47 }
 0x262   :  { %1137 = vmatpush.msra.mxu2 %v4989_v58  ;;  %1157 = vmatpush.msra.mxu3 %v4992_v52 }
 0x263   :  { %1098 = vmatpush.msra.mxu0 %v4995_v12  ;;  %1118 = vmatpush.msra.mxu1 %v4998_v13 }
 0x264   :  { %1138 = vmatpush.msra.mxu2 %v5001_v14  ;;  %1158 = vmatpush.msra.mxu3 %v5004_v15 }
 0x265   :  { %1099 = vmatpush.msra.mxu0 %v5007_v16  ;;  %1119 = vmatpush.msra.mxu1 %v5010_v17 }
 0x266   :  { %1139 = vmatpush.msra.mxu2 %v5013_v18  ;;  %1159 = vmatpush.msra.mxu3 %v5016_v19 }
 0x267   :  { %1100 = vmatpush.msra.mxu0 %v5019_v20  ;;  %1120 = vmatpush.msra.mxu1 %v5022_v21 }
 0x268   :  { %1140 = vmatpush.msra.mxu2 %v5025_v22  ;;  %1160 = vmatpush.msra.mxu3 %v5028_v23 }
 0x269   :  { %1101 = vmatpush.msra.mxu0 %v5031_v24  ;;  %1121 = vmatpush.msra.mxu1 %v5034_v25 }
 0x26a   :  { %1141 = vmatpush.msra.mxu2 %v5037_v26  ;;  %1161 = vmatpush.msra.mxu3 %v5040_v27 }
 0x26b   :  { %1102 = vmatpush.msra.mxu0 %v5043_v28  ;;  %1122 = vmatpush.msra.mxu1 %v5046_v30 }
 0x26c   :  { %1142 = vmatpush.msra.mxu2 %v5049_v63  ;;  %1162 = vmatpush.msra.mxu3 %v5052_v31 }
 0x26d   :  { %1103 = vmatpush.msra.mxu0 %v5055_v34  ;;  %1123 = vmatpush.msra.mxu1 %v5058_v36  ;;  %v5076_v36 = vld [vmem:[#allocation5 + $0x238] sm:$0xff] }
 0x26e   :  { %1143 = vmatpush.msra.mxu2 %v5061_v37  ;;  %1163 = vmatpush.msra.mxu3 %v5064_v38  ;;  %7646 = vst [vmem:[#allocation44_spill] sm:$0xff] %v5076_v36  ;;  %v5079_v37 = vld [vmem:[#allocation5 + $0x200] sm:$0xff]  ;;  %v5082_v38 = vld [vmem:[#allocation5 + $0x208] sm:$0xff] }
 0x26f   :  { %1104 = vmatpush.msra.mxu0 %v5067_v39  ;;  %1124 = vmatpush.msra.mxu1 %v5070_v40  ;;  %7647 = vst [vmem:[#allocation43_spill] sm:$0xff] %v5079_v37  ;;  %v5085_v39 = vld [vmem:[#allocation5 + $0x210] sm:$0xff]  ;;  %v5088_v40 = vld [vmem:[#allocation5 + $0x218] sm:$0xff] }
 0x270   :  { %1144 = vmatpush.msra.mxu2 %v5073_v43  ;;  %1164 = vmatpush.msra.mxu3 %v5076_v36  ;;  %7648 = vst [vmem:[#allocation48_spill] sm:$0xff] %v5082_v38 }
 0x271   :  { %1105 = vmatpush.msra.mxu0 %v5079_v37  ;;  %1125 = vmatpush.msra.mxu1 %v5082_v38  ;;  %7649 = vst [vmem:[#allocation49_spill] sm:$0xff] %v5085_v39 }
 0x272   :  { %1145 = vmatpush.msra.mxu2 %v5085_v39  ;;  %7650 = vst [vmem:[#allocation51_spill] sm:$0xff] %v5088_v40  ;;  %1165 = vmatpush.msra.mxu3 %v5088_v40 }
 0x2ce   :  { %v792_v43 = vpop.f32.mrf.mxu0  ;;  %v812_v34 = vpop.f32.mrf.mxu1 }
 0x2cf   :  { %v859_v31 = vrot.slane %v792_v43, 2  ;;  %v860_v36 = vrot.slane %v812_v34, 2 }
 0x2d1   :  { %v867_v63 = vadd.f32 %v859_v31, %v7620_v32  ;;  %v868_v37 = vadd.f32 %v860_v36, %v7621_v35 }
 0x2d3   :  { %v3665_v30 = vmul.f32 -1.442695, %v867_v63  ;;  %v3666_v28 = vmul.f32 -1.442695, %v868_v37 }
 0x2d5   :  { %3763 = vpow2.f32 %v3665_v30  ;;  %v852_v38 = vpop.f32.mrf.mxu3  ;;  %v832_v43 = vpop.f32.mrf.mxu2 }
 0x2d6   :  { %3765 = vpow2.f32 %v3666_v28  ;;  %v862_v27 = vrot.slane %v852_v38, 2  ;;  %v861_v32 = vrot.slane %v832_v43, 2 }
 0x2d8   :  { %v870_v39 = vadd.f32 %v862_v27, %v7622_v42  ;;  %v869_v30 = vadd.f32 %v861_v32, %v7623_v50 }
 0x2da   :  { %v3667_v26 = vmul.f32 -1.442695, %v870_v39 }
 0x2db   :  { %v3764_v25 = vpop.eup %3763 }
 0x2dc   :  { %v3766_v24 = vpop.eup %3765  ;;  %v874_v40 = vadd.f32 1.0, %v3764_v25  ;;  %3767 = vpow2.f32 %v3667_v26 }
 0x2dd   :  { %v893_v23 = vadd.f32 1.0, %v3766_v24 }
 0x2de   :  { %3769 = vrcp.f32 %v874_v40  ;;  %v886_v37 = vand.u32 2147483648, %v874_v40  ;;  %v884_v24 = vand.u32 2147483647, %v874_v40  ;;  %vm880_vm6 = vweird.f32 %v874_v40 }
 0x2df   :  { %3771 = vrcp.f32 %v893_v23  ;;  %v905_v25 = vand.u32 2147483648, %v893_v23  ;;  %v903_v39 = vand.u32 2147483647, %v893_v23  ;;  %vm899_vm7 = vweird.f32 %v893_v23 }
 0x2e0   :  { %v887_v50 = vor.u32 1.1754944e-38, %v886_v37  ;;  %vm885_vm10 = vcmp.eq.f32.partialorder %v884_v24, 8.507059e+37 }
 0x2e1   :  { %vm904_vm11 = vcmp.eq.f32.partialorder %v903_v39, 8.507059e+37  ;;  %v7656_v39 = vld [vmem:[#allocation26_spill] sm:$0xff] }
 0x2e2   :  { %v3768_v31 = vpop.eup %3767 }
 0x2e3   :  { %v913_v35 = vadd.f32 1.0, %v3768_v31 }
 0x2e4   :  { %v3770_v63 = vpop.eup %3769 }
 0x2e5   :  { %v3772_v34 = vpop.eup %3771  ;;  %v876_v28 = vmul.f32 %v3770_v63, %v874_v40  ;;  %3773 = vrcp.f32 %v913_v35  ;;  %vm881_vm4 = vweird.f32 %v3770_v63  ;;  %vm919_vm13 = vweird.f32 %v913_v35 }
 0x2e6   :  { %v895_v36 = vmul.f32 %v3772_v34, %v893_v23  ;;  %3775 = vtanh.f32 %v869_v30  ;;  %vm900_vm5 = vweird.f32 %v3772_v34  ;;  %vm882_vm8 = vmor %vm880_vm6, %vm881_vm4 }
 0x2e7   :  { %v877_v42 = vsub.f32 1.0, %v876_v28  ;;  %v930_v28 = vrot.slane %v4910_v29, 6  ;;  %vm901_vm9 = vmor %vm899_vm7, %vm900_vm5  ;;  %v925_v29 = vand.u32 2147483648, %v913_v35 }
 0x2e8   :  { %v896_v27 = vsub.f32 1.0, %v895_v36  ;;  %v906_v36 = vor.u32 1.1754944e-38, %v905_v25  ;;  %v923_v25 = vand.u32 2147483647, %v913_v35 }
 0x2e9   :  { %v878_v26 = vmul.f32 %v3770_v63, %v877_v42  ;;  %v926_v24 = vor.u32 1.1754944e-38, %v925_v29  ;;  %v7669_v29 = vld [vmem:[#allocation40_spill] sm:$0xff] }
 0x2ea   :  { %v897_v38 = vmul.f32 %v3772_v34, %v896_v27  ;;  %vm924_vm15 = vcmp.eq.f32.partialorder %v923_v25, 8.507059e+37  ;;  %v7670_v25 = vld [vmem:[#allocation39_spill] sm:$0xff] }
 0x2eb   :  { %v3774_v43 = vpop.eup %3773  ;;  %v879_v31 = vadd.f32 %v3770_v63, %v878_v26 }
 0x2ec   :  { %v898_v32 = vadd.f32 %v3772_v34, %v897_v38  ;;  %v915_v22 = vmul.f32 %v3774_v43, %v913_v35  ;;  %v3776_v42 = vpop.eup %3775  ;;  %vm920_vm12 = vweird.f32 %v3774_v43  ;;  %v7655_v35 = vld [vmem:[#allocation25_spill] sm:$0xff] }
 0x2ed   :  { %v883_v30 = vsel %vm882_vm8, %v3770_v63, %v879_v31  ;;  %vm921_vm14 = vmor %vm919_vm13, %vm920_vm12  ;;  %v7658_v31 = vld [vmem:[#allocation27_spill] sm:$0xff] }
 0x2ee   :  { %v888_v21 = vsel %vm885_vm10, %v887_v50, %v883_v30  ;;  %v902_v20 = vsel %vm901_vm9, %v3772_v34, %v898_v32  ;;  %v916_v27 = vsub.f32 1.0, %v915_v22  ;;  %v7659_v50 = vld [vmem:[#allocation29_spill] sm:$0xff]  ;;  %v7660_v32 = vld [vmem:[#allocation30_spill] sm:$0xff] }
 0x2ef   :  { %v907_v19 = vsel %vm904_vm11, %v906_v36, %v902_v20  ;;  %v933_v18 = vmul.f32 %v3776_v42, %v888_v21  ;;  %v7654_v21 = vld [vmem:[#allocation23_spill] sm:$0xff]  ;;  %v7663_v30 = vld [vmem:[#allocation33_spill] sm:$0xff]  ;;  %v7664_v42 = vld [vmem:[#allocation34_spill] sm:$0xff] }
 0x2f0   :  { %v932_v26 = vmul.f32 %v930_v28, %v907_v19  ;;  %v917_v40 = vmul.f32 %v3774_v43, %v916_v27  ;;  %v7653_v19 = vld [vmem:[#allocation24_spill] sm:$0xff]  ;;  %v7662_v36 = vld [vmem:[#allocation31_spill] sm:$0xff] }
 0x2f1   :  { %v7661_v28 = vld [vmem:[#allocation32_spill] sm:$0xff] }
 0x2f2   :  { %v5096_v23 = vadd.f32 %v933_v18, %v932_v26  ;;  %v918_v37 = vadd.f32 %v3774_v43, %v917_v40  ;;  %v7652_v18 = vld [vmem:[#allocation22_spill] sm:$0xff]  ;;  %v7665_v27 = vld [vmem:[#allocation36_spill] sm:$0xff]  ;;  %v7666_v26 = vld [vmem:[#allocation35_spill] sm:$0xff] }
 0x2f3   :  { %v7667_v40 = vld [vmem:[#allocation37_spill] sm:$0xff] }
 0x2f4   :  { %3777 = vtanh.f32 %v5096_v23  ;;  %v922_v63 = vsel %vm921_vm14, %v3774_v43, %v918_v37  ;;  %v7657_v43 = vld [vmem:[#allocation28_spill] sm:$0xff]  ;;  %v7668_v37 = vld [vmem:[#allocation38_spill] sm:$0xff] }
 0x2f5   :  { %v927_v38 = vsel %vm924_vm15, %v926_v24, %v922_v63  ;;  %v7671_v63 = vld [vmem:[#allocation41_spill] sm:$0xff]  ;;  %v7672_v24 = vld [vmem:[#allocation42_spill] sm:$0xff] }
 0x2fa   :  { %v3778_v34 = vpop.eup %3777 }
 0x2fb   :  { %v936_v22 = vmul.f32 %v3778_v34, %v927_v38  ;;  %v7673_v34 = vld [vmem:[#allocation44_spill] sm:$0xff]  ;;  %v7674_v38 = vld [vmem:[#allocation43_spill] sm:$0xff] }
 0x2fd   :  { %v5099_v20 = vrot.slane %v936_v22, 6  ;;  %v7675_v22 = vld [vmem:[#allocation48_spill] sm:$0xff] }
 0x2ff   :  { %7651 = vst [vmem:[#allocation52_spill] sm:$0xff] %v5099_v20  ;;  %956 = vmatmul.f32.vlgmr.msrb.gmra.mxu0 %v5099_v20  ;;  %976 = vmatmul.f32.vlgmr.msrb.gmra.mxu1 %v5099_v20 }
 0x300   :  { %996 = vmatmul.f32.vlgmr.msrb.gmra.mxu2 %v5099_v20  ;;  %1016 = vmatmul.f32.vlgmr.msrb.gmra.mxu3 %v5099_v20  ;;  %v7676_v20 = vld [vmem:[#allocation49_spill] sm:$0xff] }
 0x301   :  { %1255 = vmatpush.msrb.mxu0 %v4821_v11  ;;  %1275 = vmatpush.msrb.mxu1 %v4824_v41 }
 0x302   :  { %1295 = vmatpush.msrb.mxu2 %v4827_v44  ;;  %1315 = vmatpush.msrb.mxu3 %v4830_v1 }
 0x303   :  { %1256 = vmatpush.msrb.mxu0 %v4833_v51  ;;  %1276 = vmatpush.msrb.mxu1 %v4836_v53 }
 0x304   :  { %1296 = vmatpush.msrb.mxu2 %v4839_v59  ;;  %1316 = vmatpush.msrb.mxu3 %v4842_v60 }
 0x305   :  { %1257 = vmatpush.msrb.mxu0 %v4845_v48  ;;  %1277 = vmatpush.msrb.mxu1 %v4848_v54 }
 0x306   :  { %1297 = vmatpush.msrb.mxu2 %v4929_v2  ;;  %1317 = vmatpush.msrb.mxu3 %v4932_v3 }
 0x307   :  { %1258 = vmatpush.msrb.mxu0 %v4935_v4  ;;  %1278 = vmatpush.msrb.mxu1 %v4938_v5 }
 0x308   :  { %1298 = vmatpush.msrb.mxu2 %v4941_v6  ;;  %1318 = vmatpush.msrb.mxu3 %v4944_v7 }
 0x309   :  { %1259 = vmatpush.msrb.mxu0 %v4947_v8  ;;  %1279 = vmatpush.msrb.mxu1 %v4950_v9 }
 0x30a   :  { %1299 = vmatpush.msrb.mxu2 %v4953_v10  ;;  %1319 = vmatpush.msrb.mxu3 %v4956_v33 }
 0x30b   :  { %1260 = vmatpush.msrb.mxu0 %v4959_v46  ;;  %1280 = vmatpush.msrb.mxu1 %v4962_v55 }
 0x30c   :  { %1300 = vmatpush.msrb.mxu2 %v4965_v56  ;;  %1320 = vmatpush.msrb.mxu3 %v4968_v57 }
 0x30d   :  { %1261 = vmatpush.msrb.mxu0 %v4971_v45  ;;  %1281 = vmatpush.msrb.mxu1 %v4974_v49 }
 0x30e   :  { %1301 = vmatpush.msrb.mxu2 %v4977_v62  ;;  %1321 = vmatpush.msrb.mxu3 %v4980_v61 }
 0x30f   :  { %1262 = vmatpush.msrb.mxu0 %v4983_v0  ;;  %1282 = vmatpush.msrb.mxu1 %v4986_v47 }
 0x310   :  { %1302 = vmatpush.msrb.mxu2 %v4989_v58  ;;  %1322 = vmatpush.msrb.mxu3 %v4992_v52 }
 0x311   :  { %1263 = vmatpush.msrb.mxu0 %v4995_v12  ;;  %1283 = vmatpush.msrb.mxu1 %v4998_v13 }
 0x312   :  { %1303 = vmatpush.msrb.mxu2 %v5001_v14  ;;  %1323 = vmatpush.msrb.mxu3 %v5004_v15 }
 0x313   :  { %1264 = vmatpush.msrb.mxu0 %v5007_v16  ;;  %1284 = vmatpush.msrb.mxu1 %v5010_v17 }
 0x314   :  { %1304 = vmatpush.msrb.mxu2 %v7652_v18  ;;  %1324 = vmatpush.msrb.mxu3 %v7653_v19 }
 0x315   :  { %1265 = vmatpush.msrb.mxu0 %v7654_v21  ;;  %1285 = vmatpush.msrb.mxu1 %v7655_v35 }
 0x316   :  { %1305 = vmatpush.msrb.mxu2 %v7656_v39  ;;  %1325 = vmatpush.msrb.mxu3 %v7657_v43 }
 0x317   :  { %1266 = vmatpush.msrb.mxu0 %v7658_v31  ;;  %1286 = vmatpush.msrb.mxu1 %v7659_v50 }
 0x318   :  { %1306 = vmatpush.msrb.mxu2 %v7660_v32  ;;  %1326 = vmatpush.msrb.mxu3 %v7661_v28 }
 0x319   :  { %1267 = vmatpush.msrb.mxu0 %v7662_v36  ;;  %1287 = vmatpush.msrb.mxu1 %v7663_v30 }
 0x31a   :  { %1307 = vmatpush.msrb.mxu2 %v7664_v42  ;;  %1327 = vmatpush.msrb.mxu3 %v7665_v27  ;;  %v7678_v27 = vld [vmem:[#allocation45_spill] sm:$0xff]  ;;  %v7679_v42 = vld [vmem:[#allocation46_spill] sm:$0xff] }
 0x31b   :  { %1268 = vmatpush.msrb.mxu0 %v7666_v26  ;;  %1288 = vmatpush.msrb.mxu1 %v7667_v40  ;;  %v7677_v26 = vld [vmem:[#allocation51_spill] sm:$0xff] }
 0x31c   :  { %1308 = vmatpush.msrb.mxu2 %v7668_v37  ;;  %1328 = vmatpush.msrb.mxu3 %v7669_v29 }
 0x31d   :  { %1269 = vmatpush.msrb.mxu0 %v7670_v25  ;;  %1289 = vmatpush.msrb.mxu1 %v7671_v63 }
 0x31e   :  { %1309 = vmatpush.msrb.mxu2 %v7672_v24  ;;  %1329 = vmatpush.msrb.mxu3 %v7673_v34  ;;  %v7680_v34 = vld [vmem:[#allocation47_spill] sm:$0xff] }
 0x31f   :  { %1270 = vmatpush.msrb.mxu0 %v7674_v38  ;;  %1290 = vmatpush.msrb.mxu1 %v7675_v22 }
 0x320   :  { %1310 = vmatpush.msrb.mxu2 %v7676_v20  ;;  %1330 = vmatpush.msrb.mxu3 %v7677_v26 }
 0x37c   :  { %v957_v40 = vpop.f32.mrf.mxu0  ;;  %v977_v37 = vpop.f32.mrf.mxu1 }
 0x37d   :  { %v1020_v29 = vadd.f32 %v957_v40, %v7678_v27  ;;  %v1021_v25 = vadd.f32 %v977_v37, %v7679_v42  ;;  %v7681_v37 = vld [vmem:[#allocation50_spill] sm:$0xff] }
 0x37f   :  { %v3668_v30 = vmul.f32 -1.442695, %v1020_v29  ;;  %v3669_v63 = vmul.f32 -1.442695, %v1021_v25 }
 0x381   :  { %3779 = vpow2.f32 %v3668_v30 }
 0x382   :  { %3781 = vpow2.f32 %v3669_v63 }
 0x383   :  { %v1017_v24 = vpop.f32.mrf.mxu3  ;;  %v997_v26 = vpop.f32.mrf.mxu2 }
 0x384   :  { %v1023_v36 = vadd.f32 %v1017_v24, %v7680_v34  ;;  %v1022_v29 = vadd.f32 %v997_v26, %v7681_v37 }
 0x386   :  { %v3670_v38 = vmul.f32 -1.442695, %v1023_v36 }
 0x387   :  { %v3780_v28 = vpop.eup %3779 }
 0x388   :  { %v3782_v22 = vpop.eup %3781  ;;  %v1027_v32 = vadd.f32 1.0, %v3780_v28  ;;  %3783 = vpow2.f32 %v3670_v38 }
 0x389   :  { %v1046_v20 = vadd.f32 1.0, %v3782_v22 }
 0x38a   :  { %3785 = vrcp.f32 %v1027_v32  ;;  %v1039_v36 = vand.u32 2147483648, %v1027_v32  ;;  %v1037_v38 = vand.u32 2147483647, %v1027_v32  ;;  %vm1033_vm2 = vweird.f32 %v1027_v32 }
 0x38b   :  { %3787 = vrcp.f32 %v1046_v20  ;;  %v1058_v34 = vand.u32 2147483648, %v1046_v20  ;;  %v1056_v31 = vand.u32 2147483647, %v1046_v20  ;;  %vm1052_vm3 = vweird.f32 %v1046_v20 }
 0x38c   :  { %v1040_v26 = vor.u32 1.1754944e-38, %v1039_v36  ;;  %vm1038_vm6 = vcmp.eq.f32.partialorder %v1037_v38, 8.507059e+37 }
 0x38d   :  { %vm1057_vm7 = vcmp.eq.f32.partialorder %v1056_v31, 8.507059e+37 }
 0x38e   :  { %v3784_v50 = vpop.eup %3783 }
 0x38f   :  { %v1066_v40 = vadd.f32 1.0, %v3784_v50 }
 0x390   :  { %v3786_v27 = vpop.eup %3785 }
 0x391   :  { %v3788_v25 = vpop.eup %3787  ;;  %v1029_v30 = vmul.f32 %v3786_v27, %v1027_v32  ;;  %3789 = vrcp.f32 %v1066_v40  ;;  %vm1034_vm0 = vweird.f32 %v3786_v27  ;;  %vm1072_vm9 = vweird.f32 %v1066_v40 }
 0x392   :  { %v1048_v63 = vmul.f32 %v3788_v25, %v1046_v20  ;;  %3791 = vtanh.f32 %v1022_v29  ;;  %vm1053_vm1 = vweird.f32 %v3788_v25  ;;  %vm1035_vm4 = vmor %vm1033_vm2, %vm1034_vm0  ;;  %v1083_v29 = vrot.slane %v5096_v23, 6 }
 0x393   :  { %v1030_v42 = vsub.f32 1.0, %v1029_v30  ;;  %vm1054_vm5 = vmor %vm1052_vm3, %vm1053_vm1  ;;  %v1059_v30 = vor.u32 1.1754944e-38, %v1058_v34  ;;  %v1078_v34 = vand.u32 2147483648, %v1066_v40 }
 0x394   :  { %v1049_v24 = vsub.f32 1.0, %v1048_v63 }
 0x395   :  { %v1031_v28 = vmul.f32 %v3786_v27, %v1030_v42  ;;  %v1079_v38 = vor.u32 1.1754944e-38, %v1078_v34 }
 0x396   :  { %v1050_v22 = vmul.f32 %v3788_v25, %v1049_v24 }
 0x397   :  { %v3790_v43 = vpop.eup %3789  ;;  %v1032_v50 = vadd.f32 %v3786_v27, %v1031_v28 }
 0x398   :  { %v1051_v37 = vadd.f32 %v3788_v25, %v1050_v22  ;;  %v1068_v39 = vmul.f32 %v3790_v43, %v1066_v40  ;;  %v3792_v42 = vpop.eup %3791  ;;  %vm1073_vm8 = vweird.f32 %v3790_v43 }
 0x399   :  { %v1036_v63 = vsel %vm1035_vm4, %v3786_v27, %v1032_v50  ;;  %v1076_v27 = vand.u32 2147483647, %v1066_v40  ;;  %vm1074_vm10 = vmor %vm1072_vm9, %vm1073_vm8 }
 0x39a   :  { %v1041_v35 = vsel %vm1038_vm6, %v1040_v26, %v1036_v63  ;;  %v1055_v21 = vsel %vm1054_vm5, %v3788_v25, %v1051_v37  ;;  %v1069_v24 = vsub.f32 1.0, %v1068_v39 }
 0x39b   :  { %v1060_v19 = vsel %vm1057_vm7, %v1059_v30, %v1055_v21  ;;  %v1086_v18 = vmul.f32 %v3792_v42, %v1041_v35  ;;  %vm1077_vm11 = vcmp.eq.f32.partialorder %v1076_v27, 8.507059e+37 }
 0x39c   :  { %v1085_v28 = vmul.f32 %v1083_v29, %v1060_v19  ;;  %v1070_v32 = vmul.f32 %v3790_v43, %v1069_v24  ;;  %v7712_v29 = vld [vmem:[#allocation50_spill] sm:$0xff] }
 0x39e   :  { %v5174_v20 = vadd.f32 %v1086_v18, %v1085_v28  ;;  %v1071_v36 = vadd.f32 %v3790_v43, %v1070_v32  ;;  %v7711_v18 = vld [vmem:[#allocation47_spill] sm:$0xff] }
 0x3a0   :  { %3793 = vtanh.f32 %v5174_v20  ;;  %v1075_v23 = vsel %vm1074_vm10, %v3790_v43, %v1071_v36 }
 0x3a1   :  { %v1080_v31 = vsel %vm1077_vm11, %v1079_v38, %v1075_v23 }
 0x3a6   :  { %v3794_v37 = vpop.eup %3793 }
 0x3a7   :  { %v5177_v39 = vmul.f32 %v3794_v37, %v1080_v31 }
 0x3a9   :  { %7682 = vst [vmem:[#allocation54_spill] sm:$0xff] %v5177_v39  ;;  %1106 = vmatmul.f32.vlgmr.msra.gmra.mxu0 %v5177_v39  ;;  %1126 = vmatmul.f32.vlgmr.msra.gmra.mxu1 %v5177_v39 }
 0x3aa   :  { %1146 = vmatmul.f32.vlgmr.msra.gmra.mxu2 %v5177_v39  ;;  %1166 = vmatmul.f32.vlgmr.msra.gmra.mxu3 %v5177_v39 }
 0x3ab   :  { %1420 = vmatpush.msra.mxu0 %v4821_v11  ;;  %1440 = vmatpush.msra.mxu1 %v4824_v41  ;;  %v7683_v11 = vld [vmem:[#allocation22_spill] sm:$0xff]  ;;  %v7684_v41 = vld [vmem:[#allocation24_spill] sm:$0xff] }
 0x3ac   :  { %1460 = vmatpush.msra.mxu2 %v4827_v44  ;;  %1480 = vmatpush.msra.mxu3 %v4830_v1  ;;  %v7685_v44 = vld [vmem:[#allocation23_spill] sm:$0xff]  ;;  %v7686_v1 = vld [vmem:[#allocation25_spill] sm:$0xff] }
 0x3ad   :  { %1421 = vmatpush.msra.mxu0 %v4833_v51  ;;  %1441 = vmatpush.msra.mxu1 %v4836_v53  ;;  %v7687_v51 = vld [vmem:[#allocation26_spill] sm:$0xff]  ;;  %v7688_v53 = vld [vmem:[#allocation28_spill] sm:$0xff] }
 0x3ae   :  { %1461 = vmatpush.msra.mxu2 %v4839_v59  ;;  %1481 = vmatpush.msra.mxu3 %v4842_v60  ;;  %v7689_v59 = vld [vmem:[#allocation27_spill] sm:$0xff]  ;;  %v7690_v60 = vld [vmem:[#allocation29_spill] sm:$0xff] }
 0x3af   :  { %1422 = vmatpush.msra.mxu0 %v4845_v48  ;;  %1442 = vmatpush.msra.mxu1 %v4848_v54  ;;  %v7691_v48 = vld [vmem:[#allocation30_spill] sm:$0xff]  ;;  %v7692_v54 = vld [vmem:[#allocation32_spill] sm:$0xff] }
 0x3b0   :  { %1462 = vmatpush.msra.mxu2 %v4929_v2  ;;  %1482 = vmatpush.msra.mxu3 %v4932_v3  ;;  %v7693_v2 = vld [vmem:[#allocation31_spill] sm:$0xff]  ;;  %v7694_v3 = vld [vmem:[#allocation33_spill] sm:$0xff] }
 0x3b1   :  { %1423 = vmatpush.msra.mxu0 %v4935_v4  ;;  %1443 = vmatpush.msra.mxu1 %v4938_v5  ;;  %v7695_v4 = vld [vmem:[#allocation34_spill] sm:$0xff]  ;;  %v7696_v5 = vld [vmem:[#allocation36_spill] sm:$0xff] }
 0x3b2   :  { %1463 = vmatpush.msra.mxu2 %v4941_v6  ;;  %1483 = vmatpush.msra.mxu3 %v4944_v7  ;;  %v7697_v6 = vld [vmem:[#allocation35_spill] sm:$0xff]  ;;  %v7698_v7 = vld [vmem:[#allocation37_spill] sm:$0xff] }
 0x3b3   :  { %1424 = vmatpush.msra.mxu0 %v4947_v8  ;;  %1444 = vmatpush.msra.mxu1 %v4950_v9  ;;  %v7699_v8 = vld [vmem:[#allocation38_spill] sm:$0xff]  ;;  %v7700_v9 = vld [vmem:[#allocation40_spill] sm:$0xff] }
 0x3b4   :  { %1464 = vmatpush.msra.mxu2 %v4953_v10  ;;  %1484 = vmatpush.msra.mxu3 %v4956_v33  ;;  %v7701_v10 = vld [vmem:[#allocation39_spill] sm:$0xff]  ;;  %v7702_v33 = vld [vmem:[#allocation41_spill] sm:$0xff] }
 0x3b5   :  { %1425 = vmatpush.msra.mxu0 %v4959_v46  ;;  %1445 = vmatpush.msra.mxu1 %v4962_v55  ;;  %v7703_v46 = vld [vmem:[#allocation42_spill] sm:$0xff]  ;;  %v7704_v55 = vld [vmem:[#allocation44_spill] sm:$0xff] }
 0x3b6   :  { %1465 = vmatpush.msra.mxu2 %v4965_v56  ;;  %1485 = vmatpush.msra.mxu3 %v4968_v57  ;;  %v7705_v56 = vld [vmem:[#allocation43_spill] sm:$0xff]  ;;  %v7706_v57 = vld [vmem:[#allocation48_spill] sm:$0xff] }
 0x3b7   :  { %1426 = vmatpush.msra.mxu0 %v4971_v45  ;;  %1446 = vmatpush.msra.mxu1 %v4974_v49  ;;  %v7707_v45 = vld [vmem:[#allocation49_spill] sm:$0xff]  ;;  %v7708_v49 = vld [vmem:[#allocation51_spill] sm:$0xff] }
 0x3b8   :  { %1466 = vmatpush.msra.mxu2 %v4977_v62  ;;  %1486 = vmatpush.msra.mxu3 %v4980_v61 }
 0x3b9   :  { %1427 = vmatpush.msra.mxu0 %v4983_v0  ;;  %1447 = vmatpush.msra.mxu1 %v4986_v47 }
 0x3ba   :  { %1467 = vmatpush.msra.mxu2 %v4989_v58  ;;  %1487 = vmatpush.msra.mxu3 %v4992_v52  ;;  %v7709_v58 = vld [vmem:[#allocation45_spill] sm:$0xff] }
 0x3bb   :  { %1428 = vmatpush.msra.mxu0 %v4995_v12  ;;  %1448 = vmatpush.msra.mxu1 %v4998_v13  ;;  %v7710_v12 = vld [vmem:[#allocation46_spill] sm:$0xff] }
 0x3bc   :  { %1468 = vmatpush.msra.mxu2 %v5001_v14  ;;  %1488 = vmatpush.msra.mxu3 %v5004_v15 }
 0x3bd   :  { %1429 = vmatpush.msra.mxu0 %v5007_v16  ;;  %1449 = vmatpush.msra.mxu1 %v5010_v17 }
 0x3be   :  { %1469 = vmatpush.msra.mxu2 %v7683_v11  ;;  %1489 = vmatpush.msra.mxu3 %v7684_v41 }
 0x3bf   :  { %1430 = vmatpush.msra.mxu0 %v7685_v44  ;;  %1450 = vmatpush.msra.mxu1 %v7686_v1 }
 0x3c0   :  { %1470 = vmatpush.msra.mxu2 %v7687_v51  ;;  %1490 = vmatpush.msra.mxu3 %v7688_v53 }
 0x3c1   :  { %1431 = vmatpush.msra.mxu0 %v7689_v59  ;;  %1451 = vmatpush.msra.mxu1 %v7690_v60  ;;  %v1245_v59 = vrot.slane %v5174_v20, 6 }
 0x3c2   :  { %1471 = vmatpush.msra.mxu2 %v7691_v48  ;;  %1491 = vmatpush.msra.mxu3 %v7692_v54 }
 0x3c3   :  { %1432 = vmatpush.msra.mxu0 %v7693_v2  ;;  %1452 = vmatpush.msra.mxu1 %v7694_v3 }
 0x3c4   :  { %1472 = vmatpush.msra.mxu2 %v7695_v4  ;;  %1492 = vmatpush.msra.mxu3 %v7696_v5 }
 0x3c5   :  { %1433 = vmatpush.msra.mxu0 %v7697_v6  ;;  %1453 = vmatpush.msra.mxu1 %v7698_v7 }
 0x3c6   :  { %1473 = vmatpush.msra.mxu2 %v7699_v8  ;;  %1493 = vmatpush.msra.mxu3 %v7700_v9 }
 0x3c7   :  { %1434 = vmatpush.msra.mxu0 %v7701_v10  ;;  %1454 = vmatpush.msra.mxu1 %v7702_v33 }
 0x3c8   :  { %1474 = vmatpush.msra.mxu2 %v7703_v46  ;;  %1494 = vmatpush.msra.mxu3 %v7704_v55 }
 0x3c9   :  { %1435 = vmatpush.msra.mxu0 %v7705_v56  ;;  %1455 = vmatpush.msra.mxu1 %v7706_v57 }
 0x3ca   :  { %1475 = vmatpush.msra.mxu2 %v7707_v45  ;;  %1495 = vmatpush.msra.mxu3 %v7708_v49 }
 0x426   :  { %v1107_v62 = vpop.f32.mrf.mxu0  ;;  %v1127_v61 = vpop.f32.mrf.mxu1 }
 0x427   :  { %v1174_v0 = vrot.slane %v1107_v62, 6  ;;  %v1175_v47 = vrot.slane %v1127_v61, 6 }
 0x429   :  { %v1182_v52 = vadd.f32 %v1174_v0, %v7709_v58  ;;  %v1183_v13 = vadd.f32 %v1175_v47, %v7710_v12 }
 0x42b   :  { %v3671_v14 = vmul.f32 -1.442695, %v1182_v52  ;;  %v3672_v15 = vmul.f32 -1.442695, %v1183_v13 }
 0x42d   :  { %3795 = vpow2.f32 %v3671_v14  ;;  %v1167_v16 = vpop.f32.mrf.mxu3  ;;  %v1147_v22 = vpop.f32.mrf.mxu2 }
 0x42e   :  { %3797 = vpow2.f32 %v3672_v15  ;;  %v1177_v17 = vrot.slane %v1167_v16, 6  ;;  %v1176_v50 = vrot.slane %v1147_v22, 6 }
 0x430   :  { %v1185_v19 = vadd.f32 %v1177_v17, %v7711_v18  ;;  %v1184_v42 = vadd.f32 %v1176_v50, %v7712_v29 }
 0x432   :  { %v3673_v21 = vmul.f32 -1.442695, %v1185_v19 }
 0x433   :  { %v3796_v35 = vpop.eup %3795 }
 0x434   :  { %v3798_v43 = vpop.eup %3797  ;;  %v1189_v40 = vadd.f32 1.0, %v3796_v35  ;;  %3799 = vpow2.f32 %v3673_v21 }
 0x435   :  { %v1208_v25 = vadd.f32 1.0, %v3798_v43 }
 0x436   :  { %3801 = vrcp.f32 %v1189_v40  ;;  %v1201_v27 = vand.u32 2147483648, %v1189_v40  ;;  %v1199_v37 = vand.u32 2147483647, %v1189_v40  ;;  %vm1195_vm14 = vweird.f32 %v1189_v40 }
 0x437   :  { %3803 = vrcp.f32 %v1208_v25  ;;  %v1220_v23 = vand.u32 2147483648, %v1208_v25  ;;  %v1218_v11 = vand.u32 2147483647, %v1208_v25  ;;  %vm1214_vm15 = vweird.f32 %v1208_v25 }
 0x438   :  { %v1202_v1 = vor.u32 1.1754944e-38, %v1201_v27  ;;  %vm1200_vm2 = vcmp.eq.f32.partialorder %v1199_v37, 8.507059e+37 }
 0x439   :  { %v1221_v60 = vor.u32 1.1754944e-38, %v1220_v23  ;;  %vm1219_vm3 = vcmp.eq.f32.partialorder %v1218_v11, 8.507059e+37 }
 0x43a   :  { %v3800_v26 = vpop.eup %3799 }
 0x43b   :  { %v1228_v30 = vadd.f32 1.0, %v3800_v26 }
 0x43c   :  { %v3802_v63 = vpop.eup %3801 }
 0x43d   :  { %v3804_v24 = vpop.eup %3803  ;;  %v1191_v28 = vmul.f32 %v3802_v63, %v1189_v40  ;;  %3805 = vrcp.f32 %v1228_v30  ;;  %vm1196_vm12 = vweird.f32 %v3802_v63  ;;  %v1240_v20 = vand.u32 2147483648, %v1228_v30 }
 0x43e   :  { %v1210_v32 = vmul.f32 %v3804_v24, %v1208_v25  ;;  %3807 = vtanh.f32 %v1184_v42  ;;  %vm1215_vm13 = vweird.f32 %v3804_v24  ;;  %vm1197_vm0 = vmor %vm1195_vm14, %vm1196_vm12  ;;  %vm1234_vm5 = vweird.f32 %v1228_v30 }
 0x43f   :  { %v1192_v36 = vsub.f32 1.0, %v1191_v28  ;;  %vm1216_vm1 = vmor %vm1214_vm15, %vm1215_vm13  ;;  %v1238_v33 = vand.u32 2147483647, %v1228_v30  ;;  %v1241_v55 = vor.u32 1.1754944e-38, %v1240_v20 }
 0x440   :  { %v1211_v34 = vsub.f32 1.0, %v1210_v32 }
 0x441   :  { %v1193_v38 = vmul.f32 %v3802_v63, %v1192_v36  ;;  %vm1239_vm7 = vcmp.eq.f32.partialorder %v1238_v33, 8.507059e+37 }
 0x442   :  { %v1212_v31 = vmul.f32 %v3804_v24, %v1211_v34 }
 0x443   :  { %v3806_v41 = vpop.eup %3805  ;;  %v1194_v44 = vadd.f32 %v3802_v63, %v1193_v38 }
 0x444   :  { %v1213_v51 = vadd.f32 %v3804_v24, %v1212_v31  ;;  %v1230_v53 = vmul.f32 %v3806_v41, %v1228_v30  ;;  %v3808_v54 = vpop.eup %3807  ;;  %vm1235_vm4 = vweird.f32 %v3806_v41 }
 0x445   :  { %v1198_v48 = vsel %vm1197_vm0, %v3802_v63, %v1194_v44  ;;  %vm1236_vm6 = vmor %vm1234_vm5, %vm1235_vm4 }
 0x446   :  { %v1203_v2 = vsel %vm1200_vm2, %v1202_v1, %v1198_v48  ;;  %v1217_v3 = vsel %vm1216_vm1, %v3804_v24, %v1213_v51  ;;  %v1231_v4 = vsub.f32 1.0, %v1230_v53 }
 0x447   :  { %v1222_v5 = vsel %vm1219_vm3, %v1221_v60, %v1217_v3  ;;  %v1248_v6 = vmul.f32 %v3808_v54, %v1203_v2 }
 0x448   :  { %v1247_v7 = vmul.f32 %v1245_v59, %v1222_v5  ;;  %v1232_v8 = vmul.f32 %v3806_v41, %v1231_v4 }
 0x44a   :  { %v5252_v9 = vadd.f32 %v1248_v6, %v1247_v7  ;;  %v1233_v10 = vadd.f32 %v3806_v41, %v1232_v8 }
 0x44c   :  { %3809 = vtanh.f32 %v5252_v9  ;;  %v1237_v46 = vsel %vm1236_vm6, %v3806_v41, %v1233_v10  ;;  %v1410_v59 = vrot.slane %v5252_v9, 6 }
 0x44d   :  { %v1242_v57 = vsel %vm1239_vm7, %v1241_v55, %v1237_v46 }
 0x452   :  { %v3810_v56 = vpop.eup %3809 }
 0x453   :  { %v1251_v45 = vmul.f32 %v3810_v56, %v1242_v57 }
 0x455   :  { %v5255_v49 = vrot.slane %v1251_v45, 2 }
 0x457   :  { %7713 = vst [vmem:[#allocation22_spill] sm:$0xff] %v5255_v49  ;;  %1271 = vmatmul.f32.vlgmr.msrb.gmra.mxu0 %v5255_v49  ;;  %1291 = vmatmul.f32.vlgmr.msrb.gmra.mxu1 %v5255_v49 }
 0x458   :  { %1311 = vmatmul.f32.vlgmr.msrb.gmra.mxu2 %v5255_v49  ;;  %1331 = vmatmul.f32.vlgmr.msrb.gmra.mxu3 %v5255_v49 }
 0x4d4   :  { %v1272_v62 = vpop.f32.mrf.mxu0  ;;  %v1292_v61 = vpop.f32.mrf.mxu1 }
 0x4d5   :  { %v1339_v0 = vrot.slane %v1272_v62, 4  ;;  %v1340_v47 = vrot.slane %v1292_v61, 4 }
 0x4d7   :  { %v1347_v52 = vadd.f32 %v1339_v0, %v7709_v58  ;;  %v1348_v13 = vadd.f32 %v1340_v47, %v7710_v12 }
 0x4d9   :  { %v3674_v14 = vmul.f32 -1.442695, %v1347_v52  ;;  %v3675_v15 = vmul.f32 -1.442695, %v1348_v13 }
 0x4db   :  { %3811 = vpow2.f32 %v3674_v14  ;;  %v1332_v16 = vpop.f32.mrf.mxu3  ;;  %v1312_v22 = vpop.f32.mrf.mxu2 }
 0x4dc   :  { %3813 = vpow2.f32 %v3675_v15  ;;  %v1342_v17 = vrot.slane %v1332_v16, 4  ;;  %v1341_v50 = vrot.slane %v1312_v22, 4 }
 0x4de   :  { %v1350_v19 = vadd.f32 %v1342_v17, %v7711_v18  ;;  %v1349_v42 = vadd.f32 %v1341_v50, %v7712_v29 }
 0x4e0   :  { %v3676_v21 = vmul.f32 -1.442695, %v1350_v19 }
 0x4e1   :  { %v3812_v35 = vpop.eup %3811 }
 0x4e2   :  { %v3814_v43 = vpop.eup %3813  ;;  %v1354_v40 = vadd.f32 1.0, %v3812_v35  ;;  %3815 = vpow2.f32 %v3676_v21 }
 0x4e3   :  { %v1373_v25 = vadd.f32 1.0, %v3814_v43 }
 0x4e4   :  { %3817 = vrcp.f32 %v1354_v40  ;;  %v1366_v27 = vand.u32 2147483648, %v1354_v40  ;;  %v1364_v37 = vand.u32 2147483647, %v1354_v40  ;;  %vm1360_vm10 = vweird.f32 %v1354_v40 }
 0x4e5   :  { %3819 = vrcp.f32 %v1373_v25  ;;  %v1385_v23 = vand.u32 2147483648, %v1373_v25  ;;  %v1383_v11 = vand.u32 2147483647, %v1373_v25  ;;  %vm1379_vm11 = vweird.f32 %v1373_v25 }
 0x4e6   :  { %v1367_v1 = vor.u32 1.1754944e-38, %v1366_v27  ;;  %vm1365_vm14 = vcmp.eq.f32.partialorder %v1364_v37, 8.507059e+37 }
 0x4e7   :  { %v1386_v60 = vor.u32 1.1754944e-38, %v1385_v23  ;;  %vm1384_vm15 = vcmp.eq.f32.partialorder %v1383_v11, 8.507059e+37 }
 0x4e8   :  { %v3816_v26 = vpop.eup %3815 }
 0x4e9   :  { %v1393_v30 = vadd.f32 1.0, %v3816_v26 }
 0x4ea   :  { %v3818_v63 = vpop.eup %3817 }
 0x4eb   :  { %v3820_v24 = vpop.eup %3819  ;;  %v1356_v28 = vmul.f32 %v3818_v63, %v1354_v40  ;;  %3821 = vrcp.f32 %v1393_v30  ;;  %vm1361_vm8 = vweird.f32 %v3818_v63  ;;  %v1405_v9 = vand.u32 2147483648, %v1393_v30 }
 0x4ec   :  { %v1375_v32 = vmul.f32 %v3820_v24, %v1373_v25  ;;  %3823 = vtanh.f32 %v1349_v42  ;;  %vm1380_vm9 = vweird.f32 %v3820_v24  ;;  %vm1362_vm12 = vmor %vm1360_vm10, %vm1361_vm8  ;;  %vm1399_vm1 = vweird.f32 %v1393_v30 }
 0x4ed   :  { %v1357_v36 = vsub.f32 1.0, %v1356_v28  ;;  %vm1381_vm13 = vmor %vm1379_vm11, %vm1380_vm9  ;;  %v1403_v33 = vand.u32 2147483647, %v1393_v30  ;;  %v1406_v55 = vor.u32 1.1754944e-38, %v1405_v9 }
 0x4ee   :  { %v1376_v34 = vsub.f32 1.0, %v1375_v32 }
 0x4ef   :  { %v1358_v38 = vmul.f32 %v3818_v63, %v1357_v36  ;;  %vm1404_vm3 = vcmp.eq.f32.partialorder %v1403_v33, 8.507059e+37 }
 0x4f0   :  { %v1377_v31 = vmul.f32 %v3820_v24, %v1376_v34 }
 0x4f1   :  { %v3822_v41 = vpop.eup %3821  ;;  %v1359_v44 = vadd.f32 %v3818_v63, %v1358_v38 }
 0x4f2   :  { %v1378_v51 = vadd.f32 %v3820_v24, %v1377_v31  ;;  %v1395_v53 = vmul.f32 %v3822_v41, %v1393_v30  ;;  %v3824_v54 = vpop.eup %3823  ;;  %vm1400_vm0 = vweird.f32 %v3822_v41 }
 0x4f3   :  { %v1363_v48 = vsel %vm1362_vm12, %v3818_v63, %v1359_v44  ;;  %vm1401_vm2 = vmor %vm1399_vm1, %vm1400_vm0 }
 0x4f4   :  { %v1368_v2 = vsel %vm1365_vm14, %v1367_v1, %v1363_v48  ;;  %v1382_v3 = vsel %vm1381_vm13, %v3820_v24, %v1378_v51  ;;  %v1396_v4 = vsub.f32 1.0, %v1395_v53 }
 0x4f5   :  { %v1387_v5 = vsel %vm1384_vm15, %v1386_v60, %v1382_v3  ;;  %v1413_v6 = vmul.f32 %v3824_v54, %v1368_v2 }
 0x4f6   :  { %v1412_v7 = vmul.f32 %v1410_v59, %v1387_v5  ;;  %v1397_v8 = vmul.f32 %v3822_v41, %v1396_v4 }
 0x4f8   :  { %v5266_v10 = vadd.f32 %v1413_v6, %v1412_v7  ;;  %v1398_v20 = vadd.f32 %v3822_v41, %v1397_v8 }
 0x4fa   :  { %3825 = vtanh.f32 %v5266_v10  ;;  %v1402_v46 = vsel %vm1401_vm2, %v3822_v41, %v1398_v20  ;;  %v1575_v1 = vrot.slane %v5266_v10, 6 }
 0x4fb   :  { %v1407_v57 = vsel %vm1404_vm3, %v1406_v55, %v1402_v46 }
 0x500   :  { %v3826_v56 = vpop.eup %3825 }
 0x501   :  { %v1416_v45 = vmul.f32 %v3826_v56, %v1407_v57 }
 0x503   :  { %v5269_v62 = vrot.slane %v1416_v45, 4 }
 0x505   :  { %7714 = vst [vmem:[#allocation24_spill] sm:$0xff] %v5269_v62  ;;  %1436 = vmatmul.f32.vlgmr.msra.gmra.mxu0 %v5269_v62  ;;  %1456 = vmatmul.f32.vlgmr.msra.gmra.mxu1 %v5269_v62 }
 0x506   :  { %1476 = vmatmul.f32.vlgmr.msra.gmra.mxu2 %v5269_v62  ;;  %1496 = vmatmul.f32.vlgmr.msra.gmra.mxu3 %v5269_v62 }
 0x582   :  { %v1437_v61 = vpop.f32.mrf.mxu0  ;;  %v1457_v0 = vpop.f32.mrf.mxu1 }
 0x583   :  { %v1504_v47 = vrot.slane %v1437_v61, 2  ;;  %v1505_v52 = vrot.slane %v1457_v0, 2 }
 0x585   :  { %v1512_v13 = vadd.f32 %v1504_v47, %v7709_v58  ;;  %v1513_v14 = vadd.f32 %v1505_v52, %v7710_v12 }
 0x587   :  { %v3677_v15 = vmul.f32 -1.442695, %v1512_v13  ;;  %v3678_v16 = vmul.f32 -1.442695, %v1513_v14 }
 0x589   :  { %3827 = vpow2.f32 %v3677_v15  ;;  %v1497_v17 = vpop.f32.mrf.mxu3  ;;  %v1477_v50 = vpop.f32.mrf.mxu2 }
 0x58a   :  { %3829 = vpow2.f32 %v3678_v16  ;;  %v1507_v19 = vrot.slane %v1497_v17, 2  ;;  %v1506_v58 = vrot.slane %v1477_v50, 2 }
 0x58c   :  { %v1515_v21 = vadd.f32 %v1507_v19, %v7711_v18  ;;  %v1514_v63 = vadd.f32 %v1506_v58, %v7712_v29 }
 0x58e   :  { %v3679_v35 = vmul.f32 -1.442695, %v1515_v21 }
 0x58f   :  { %v3828_v43 = vpop.eup %3827 }
 0x590   :  { %v3830_v40 = vpop.eup %3829  ;;  %v1519_v25 = vadd.f32 1.0, %v3828_v43  ;;  %3831 = vpow2.f32 %v3679_v35 }
 0x591   :  { %v1538_v22 = vadd.f32 1.0, %v3830_v40 }
 0x592   :  { %3833 = vrcp.f32 %v1519_v25  ;;  %v1531_v36 = vand.u32 2147483648, %v1519_v25  ;;  %v1529_v23 = vand.u32 2147483647, %v1519_v25  ;;  %vm1525_vm6 = vweird.f32 %v1519_v25 }
 0x593   :  { %3835 = vrcp.f32 %v1538_v22  ;;  %v1550_v34 = vand.u32 2147483648, %v1538_v22  ;;  %v1548_v37 = vand.u32 2147483647, %v1538_v22  ;;  %vm1544_vm7 = vweird.f32 %v1538_v22 }
 0x594   :  { %v1532_v29 = vor.u32 1.1754944e-38, %v1531_v36  ;;  %vm1530_vm10 = vcmp.eq.f32.partialorder %v1529_v23, 8.507059e+37 }
 0x595   :  { %v1551_v51 = vor.u32 1.1754944e-38, %v1550_v34  ;;  %vm1549_vm11 = vcmp.eq.f32.partialorder %v1548_v37, 8.507059e+37 }
 0x596   :  { %v3832_v26 = vpop.eup %3831 }
 0x597   :  { %v1558_v12 = vadd.f32 1.0, %v3832_v26 }
 0x598   :  { %v3834_v30 = vpop.eup %3833 }
 0x599   :  { %v3836_v42 = vpop.eup %3835  ;;  %v1521_v24 = vmul.f32 %v3834_v30, %v1519_v25  ;;  %3837 = vrcp.f32 %v1558_v12  ;;  %vm1526_vm4 = vweird.f32 %v3834_v30  ;;  %v1570_v8 = vand.u32 2147483648, %v1558_v12 }
 0x59a   :  { %v1540_v28 = vmul.f32 %v3836_v42, %v1538_v22  ;;  %3839 = vtanh.f32 %v1514_v63  ;;  %vm1545_vm5 = vweird.f32 %v3836_v42  ;;  %vm1527_vm8 = vmor %vm1525_vm6, %vm1526_vm4  ;;  %vm1564_vm13 = vweird.f32 %v1558_v12 }
 0x59b   :  { %v1522_v18 = vsub.f32 1.0, %v1521_v24  ;;  %vm1546_vm9 = vmor %vm1544_vm7, %vm1545_vm5  ;;  %v1568_v10 = vand.u32 2147483647, %v1558_v12  ;;  %v1571_v9 = vor.u32 1.1754944e-38, %v1570_v8 }
 0x59c   :  { %v1541_v32 = vsub.f32 1.0, %v1540_v28 }
 0x59d   :  { %v1523_v27 = vmul.f32 %v3834_v30, %v1522_v18  ;;  %vm1569_vm15 = vcmp.eq.f32.partialorder %v1568_v10, 8.507059e+37 }
 0x59e   :  { %v1542_v38 = vmul.f32 %v3836_v42, %v1541_v32 }
 0x59f   :  { %v3838_v31 = vpop.eup %3837  ;;  %v1524_v11 = vadd.f32 %v3834_v30, %v1523_v27 }
 0x5a0   :  { %v1543_v41 = vadd.f32 %v3836_v42, %v1542_v38  ;;  %v1560_v44 = vmul.f32 %v3838_v31, %v1558_v12  ;;  %v3840_v59 = vpop.eup %3839  ;;  %vm1565_vm12 = vweird.f32 %v3838_v31 }
 0x5a1   :  { %v1528_v53 = vsel %vm1527_vm8, %v3834_v30, %v1524_v11  ;;  %vm1566_vm14 = vmor %vm1564_vm13, %vm1565_vm12 }
 0x5a2   :  { %v1533_v60 = vsel %vm1530_vm10, %v1532_v29, %v1528_v53  ;;  %v1547_v48 = vsel %vm1546_vm9, %v3836_v42, %v1543_v41  ;;  %v1561_v54 = vsub.f32 1.0, %v1560_v44 }
 0x5a3   :  { %v1552_v2 = vsel %vm1549_vm11, %v1551_v51, %v1547_v48  ;;  %v1578_v3 = vmul.f32 %v3840_v59, %v1533_v60 }
 0x5a4   :  { %v1577_v4 = vmul.f32 %v1575_v1, %v1552_v2  ;;  %v1562_v5 = vmul.f32 %v3838_v31, %v1561_v54 }
 0x5a6   :  { %v1579_v6 = vadd.f32 %v1578_v3, %v1577_v4  ;;  %v1563_v7 = vadd.f32 %v3838_v31, %v1562_v5 }
 0x5a8   :  { %3841 = vtanh.f32 %v1579_v6  ;;  %v1567_v20 = vsel %vm1566_vm14, %v3838_v31, %v1563_v7 }
 0x5a9   :  { %v1572_v46 = vsel %vm1569_vm15, %v1571_v9, %v1567_v20 }
 0x5ae   :  { %v3842_v33 = vpop.eup %3841 }
 0x5af   :  { %v5286_v55 = vmul.f32 %v3842_v33, %v1572_v46 }
 0x5b1   :  { %7715 = vst [vmem:[#allocation23_spill] sm:$0xff] %v5286_v55 }
 0x5b2   :  { %4325 = dma.done.wait [#allocation4], 16384 }
 0x5b3   :  { %4326 = vsyncadd [#allocation4], 4294950912  ;;  %v5288_v56 = vld [vmem:[#allocation2 + $0x1e8] sm:$0xff]  ;;  %v5296_v61 = vld [vmem:[#allocation2 + $0x1e0] sm:$0xff] }
 0x5b4   :  { %v5290_v57 = vld [vmem:[#allocation2 + $0x1c8] sm:$0xff]  ;;  %1763 = vmatpush.msrb.mxu2 %v5288_v56  ;;  %1723 = vmatpush.msrb.mxu0 %v5296_v61  ;;  %v5303_v52 = vld [vmem:[#allocation2 + $0x1c0] sm:$0xff]  ;;  %v5467_v62 = vld [vmem:[#allocation2 + $0x1f8] sm:$0xff] }
 0x5b5   :  { %v5292_v45 = vld [vmem:[#allocation2 + $0x3e8] sm:$0xff]  ;;  %v5305_v13 = vld [vmem:[#allocation2 + $0x3e0] sm:$0xff]  ;;  %7726 = vst [vmem:[#allocation36_spill] sm:$0xff] %v5467_v62 }
 0x5b6   :  { %1783 = vmatpush.msrb.mxu3 %v5292_v45  ;;  %v5298_v0 = vld [vmem:[#allocation2 + $0x3c8] sm:$0xff]  ;;  %1764 = vmatpush.msrb.mxu2 %v5290_v57  ;;  %v5311_v15 = vld [vmem:[#allocation2 + $0x1a0] sm:$0xff] }
 0x5b7   :  { %v5301_v47 = vld [vmem:[#allocation2 + $0x1a8] sm:$0xff]  ;;  %v5313_v16 = vld [vmem:[#allocation2 + $0x3c0] sm:$0xff]  ;;  %1724 = vmatpush.msrb.mxu0 %v5303_v52  ;;  %1743 = vmatpush.msrb.mxu1 %v5305_v13 }
 0x5b8   :  { %1784 = vmatpush.msrb.mxu3 %v5298_v0  ;;  %v5309_v14 = vld [vmem:[#allocation2 + $0x3a8] sm:$0xff]  ;;  %1765 = vmatpush.msrb.mxu2 %v5301_v47  ;;  %v5323_v21 = vld [vmem:[#allocation2 + $0x180] sm:$0xff] }
 0x5b9   :  { %v5317_v17 = vld [vmem:[#allocation2 + $0x188] sm:$0xff]  ;;  %v5325_v35 = vld [vmem:[#allocation2 + $0x3a0] sm:$0xff]  ;;  %1725 = vmatpush.msrb.mxu0 %v5311_v15  ;;  %1744 = vmatpush.msrb.mxu1 %v5313_v16 }
 0x5ba   :  { %v5319_v19 = vld [vmem:[#allocation2 + $0x388] sm:$0xff]  ;;  %1785 = vmatpush.msrb.mxu3 %v5309_v14  ;;  %1766 = vmatpush.msrb.mxu2 %v5317_v17  ;;  %v5335_v25 = vld [vmem:[#allocation2 + $0x160] sm:$0xff] }
 0x5bb   :  { %v5329_v43 = vld [vmem:[#allocation2 + $0x168] sm:$0xff]  ;;  %v5337_v22 = vld [vmem:[#allocation2 + $0x380] sm:$0xff]  ;;  %1726 = vmatpush.msrb.mxu0 %v5323_v21  ;;  %1745 = vmatpush.msrb.mxu1 %v5325_v35 }
 0x5bc   :  { %v5331_v40 = vld [vmem:[#allocation2 + $0x368] sm:$0xff]  ;;  %1786 = vmatpush.msrb.mxu3 %v5319_v19  ;;  %1767 = vmatpush.msrb.mxu2 %v5329_v43  ;;  %v5347_v26 = vld [vmem:[#allocation2 + $0x140] sm:$0xff] }
 0x5bd   :  { %v5341_v50 = vld [vmem:[#allocation2 + $0x148] sm:$0xff]  ;;  %v5349_v12 = vld [vmem:[#allocation2 + $0x360] sm:$0xff]  ;;  %1727 = vmatpush.msrb.mxu0 %v5335_v25  ;;  %1746 = vmatpush.msrb.mxu1 %v5337_v22 }
 0x5be   :  { %v5343_v58 = vld [vmem:[#allocation2 + $0x348] sm:$0xff]  ;;  %1787 = vmatpush.msrb.mxu3 %v5331_v40  ;;  %1768 = vmatpush.msrb.mxu2 %v5341_v50  ;;  %v5359_v42 = vld [vmem:[#allocation2 + $0x120] sm:$0xff] }
 0x5bf   :  { %v5353_v30 = vld [vmem:[#allocation2 + $0x128] sm:$0xff]  ;;  %v5361_v24 = vld [vmem:[#allocation2 + $0x340] sm:$0xff]  ;;  %1728 = vmatpush.msrb.mxu0 %v5347_v26  ;;  %1747 = vmatpush.msrb.mxu1 %v5349_v12 }
 0x5c0   :  { %v5355_v63 = vld [vmem:[#allocation2 + $0x328] sm:$0xff]  ;;  %1788 = vmatpush.msrb.mxu3 %v5343_v58  ;;  %1769 = vmatpush.msrb.mxu2 %v5353_v30  ;;  %v5371_v32 = vld [vmem:[#allocation2 + $0x100] sm:$0xff] }
 0x5c1   :  { %v5365_v28 = vld [vmem:[#allocation2 + $0x108] sm:$0xff]  ;;  %v5373_v36 = vld [vmem:[#allocation2 + $0x320] sm:$0xff]  ;;  %1729 = vmatpush.msrb.mxu0 %v5359_v42  ;;  %1748 = vmatpush.msrb.mxu1 %v5361_v24 }
 0x5c2   :  { %v5367_v18 = vld [vmem:[#allocation2 + $0x308] sm:$0xff]  ;;  %1789 = vmatpush.msrb.mxu3 %v5355_v63  ;;  %1770 = vmatpush.msrb.mxu2 %v5365_v28  ;;  %v5383_v23 = vld [vmem:[#allocation2 + $0xe0] sm:$0xff] }
 0x5c3   :  { %v5377_v34 = vld [vmem:[#allocation2 + $0xe8] sm:$0xff]  ;;  %v5385_v38 = vld [vmem:[#allocation2 + $0x300] sm:$0xff]  ;;  %1730 = vmatpush.msrb.mxu0 %v5371_v32  ;;  %1749 = vmatpush.msrb.mxu1 %v5373_v36 }
 0x5c4   :  { %v5379_v27 = vld [vmem:[#allocation2 + $0x2e8] sm:$0xff]  ;;  %1790 = vmatpush.msrb.mxu3 %v5367_v18  ;;  %1771 = vmatpush.msrb.mxu2 %v5377_v34  ;;  %v5395_v11 = vld [vmem:[#allocation2 + $0xc0] sm:$0xff] }
 0x5c5   :  { %v5389_v37 = vld [vmem:[#allocation2 + $0xc8] sm:$0xff]  ;;  %v5397_v29 = vld [vmem:[#allocation2 + $0x2e0] sm:$0xff]  ;;  %1731 = vmatpush.msrb.mxu0 %v5383_v23  ;;  %1750 = vmatpush.msrb.mxu1 %v5385_v38 }
 0x5c6   :  { %v5391_v31 = vld [vmem:[#allocation2 + $0x2c8] sm:$0xff]  ;;  %1791 = vmatpush.msrb.mxu3 %v5379_v27  ;;  %1772 = vmatpush.msrb.mxu2 %v5389_v37  ;;  %v5407_v1 = vld [vmem:[#allocation2 + $0xa0] sm:$0xff] }
 0x5c7   :  { %v5401_v41 = vld [vmem:[#allocation2 + $0xa8] sm:$0xff]  ;;  %v5409_v51 = vld [vmem:[#allocation2 + $0x2c0] sm:$0xff]  ;;  %1732 = vmatpush.msrb.mxu0 %v5395_v11  ;;  %1751 = vmatpush.msrb.mxu1 %v5397_v29 }
 0x5c8   :  { %v5403_v44 = vld [vmem:[#allocation2 + $0x2a8] sm:$0xff]  ;;  %1792 = vmatpush.msrb.mxu3 %v5391_v31  ;;  %1773 = vmatpush.msrb.mxu2 %v5401_v41  ;;  %v5419_v60 = vld [vmem:[#allocation2 + $0x80] sm:$0xff] }
 0x5c9   :  { %v5413_v53 = vld [vmem:[#allocation2 + $0x88] sm:$0xff]  ;;  %v5421_v48 = vld [vmem:[#allocation2 + $0x2a0] sm:$0xff]  ;;  %1733 = vmatpush.msrb.mxu0 %v5407_v1  ;;  %1752 = vmatpush.msrb.mxu1 %v5409_v51 }
 0x5ca   :  { %v5415_v59 = vld [vmem:[#allocation2 + $0x288] sm:$0xff]  ;;  %1793 = vmatpush.msrb.mxu3 %v5403_v44  ;;  %1774 = vmatpush.msrb.mxu2 %v5413_v53  ;;  %v5431_v3 = vld [vmem:[#allocation2 + $0x60] sm:$0xff] }
 0x5cb   :  { %v5425_v54 = vld [vmem:[#allocation2 + $0x68] sm:$0xff]  ;;  %v5433_v4 = vld [vmem:[#allocation2 + $0x280] sm:$0xff]  ;;  %1734 = vmatpush.msrb.mxu0 %v5419_v60  ;;  %1753 = vmatpush.msrb.mxu1 %v5421_v48 }
 0x5cc   :  { %v5427_v2 = vld [vmem:[#allocation2 + $0x268] sm:$0xff]  ;;  %1794 = vmatpush.msrb.mxu3 %v5415_v59  ;;  %1775 = vmatpush.msrb.mxu2 %v5425_v54  ;;  %v5443_v7 = vld [vmem:[#allocation2 + $0x40] sm:$0xff] }
 0x5cd   :  { %7716 = vst [vmem:[#allocation25_spill] sm:$0xff] %v5427_v2  ;;  %v5437_v5 = vld [vmem:[#allocation2 + $0x48] sm:$0xff]  ;;  %v5445_v8 = vld [vmem:[#allocation2 + $0x260] sm:$0xff]  ;;  %1735 = vmatpush.msrb.mxu0 %v5431_v3  ;;  %1754 = vmatpush.msrb.mxu1 %v5433_v4 }
 0x5ce   :  { %v5439_v6 = vld [vmem:[#allocation2 + $0x248] sm:$0xff]  ;;  %1795 = vmatpush.msrb.mxu3 %v5427_v2  ;;  %7718 = vst [vmem:[#allocation28_spill] sm:$0xff] %v5443_v7  ;;  %1776 = vmatpush.msrb.mxu2 %v5437_v5  ;;  %v5455_v9 = vld [vmem:[#allocation2 + $0x20] sm:$0xff]  ;;  %v5479_v2 = vld [vmem:[#allocation2 + $0x1d8] sm:$0xff] }
 0x5cf   :  { %7717 = vst [vmem:[#allocation26_spill] sm:$0xff] %v5439_v6  ;;  %v5449_v10 = vld [vmem:[#allocation2 + $0x28] sm:$0xff]  ;;  %v5457_v33 = vld [vmem:[#allocation2 + $0x240] sm:$0xff]  ;;  %1736 = vmatpush.msrb.mxu0 %v5443_v7  ;;  %1755 = vmatpush.msrb.mxu1 %v5445_v8  ;;  %v5553_v7 = vld [vmem:[#allocation2 + $0x338] sm:$0xff] }
 0x5d0   :  { %7719 = vst [vmem:[#allocation27_spill] sm:$0xff] %v5445_v8  ;;  %v5451_v20 = vld [vmem:[#allocation2 + $0x228] sm:$0xff]  ;;  %1796 = vmatpush.msrb.mxu3 %v5439_v6  ;;  %1777 = vmatpush.msrb.mxu2 %v5449_v10  ;;  %v5469_v49 = vld [vmem:[#allocation2] sm:$0xff]  ;;  %v5475_v6 = vld [vmem:[#allocation2 + $0x3f8] sm:$0xff] }
 0x5d1   :  { %7720 = vst [vmem:[#allocation29_spill] sm:$0xff] %v5449_v10  ;;  %v5461_v46 = vld [vmem:[#allocation2 + $0x8] sm:$0xff]  ;;  %1737 = vmatpush.msrb.mxu0 %v5455_v9  ;;  %1756 = vmatpush.msrb.mxu1 %v5457_v33  ;;  %v5473_v39 = vld [vmem:[#allocation2 + $0x220] sm:$0xff]  ;;  %v5481_v10 = vld [vmem:[#allocation2 + $0x1f0] sm:$0xff] }
 0x5d2   :  { %7721 = vst [vmem:[#allocation30_spill] sm:$0xff] %v5451_v20  ;;  %v5463_v55 = vld [vmem:[#allocation2 + $0x208] sm:$0xff]  ;;  %1797 = vmatpush.msrb.mxu3 %v5451_v20  ;;  %1778 = vmatpush.msrb.mxu2 %v5461_v46  ;;  %v5485_v20 = vld [vmem:[#allocation2 + $0x200] sm:$0xff]  ;;  %v5537_v8 = vld [vmem:[#allocation2 + $0x138] sm:$0xff] }
 0x5d3   :  { %7722 = vst [vmem:[#allocation32_spill] sm:$0xff] %v5455_v9  ;;  %1738 = vmatpush.msrb.mxu0 %v5469_v49  ;;  %v5487_v9 = vld [vmem:[#allocation2 + $0x3d8] sm:$0xff]  ;;  %1757 = vmatpush.msrb.mxu1 %v5473_v39 }
 0x5d4   :  { %7723 = vst [vmem:[#allocation31_spill] sm:$0xff] %v5457_v33  ;;  %1798 = vmatpush.msrb.mxu3 %v5463_v55  ;;  %1843 = vmatpush.msra.mxu2 %v5467_v62  ;;  %v5491_v33 = vld [vmem:[#allocation2 + $0x1b8] sm:$0xff] }
 0x5d5   :  { %7724 = vst [vmem:[#allocation33_spill] sm:$0xff] %v5461_v46  ;;  %v5493_v46 = vld [vmem:[#allocation2 + $0x1d0] sm:$0xff]  ;;  %1803 = vmatpush.msra.mxu0 %v5481_v10  ;;  %v5499_v62 = vld [vmem:[#allocation2 + $0x3b8] sm:$0xff]  ;;  %1758 = vmatpush.msrb.mxu1 %v5485_v20 }
 0x5d6   :  { %7725 = vst [vmem:[#allocation34_spill] sm:$0xff] %v5463_v55  ;;  %1863 = vmatpush.msra.mxu3 %v5475_v6  ;;  %1844 = vmatpush.msra.mxu2 %v5479_v2  ;;  %v5497_v55 = vld [vmem:[#allocation2 + $0x3f0] sm:$0xff] }
 0x5d7   :  { %7727 = vst [vmem:[#allocation35_spill] sm:$0xff] %v5469_v49  ;;  %v5503_v49 = vld [vmem:[#allocation2 + $0x198] sm:$0xff]  ;;  %1804 = vmatpush.msra.mxu0 %v5493_v46  ;;  %1823 = vmatpush.msra.mxu1 %v5497_v55 }
 0x5d8   :  { %7728 = vst [vmem:[#allocation37_spill] sm:$0xff] %v5473_v39  ;;  %1864 = vmatpush.msra.mxu3 %v5487_v9  ;;  %v5505_v39 = vld [vmem:[#allocation2 + $0x1b0] sm:$0xff]  ;;  %1845 = vmatpush.msra.mxu2 %v5491_v33 }
 0x5d9   :  { %7729 = vst [vmem:[#allocation38_spill] sm:$0xff] %v5475_v6  ;;  %v5509_v6 = vld [vmem:[#allocation2 + $0x3d0] sm:$0xff]  ;;  %1805 = vmatpush.msra.mxu0 %v5505_v39 }
 0x5da   :  { %7730 = vst [vmem:[#allocation40_spill] sm:$0xff] %v5479_v2  ;;  %1865 = vmatpush.msra.mxu3 %v5499_v62  ;;  %v5513_v2 = vld [vmem:[#allocation2 + $0x178] sm:$0xff]  ;;  %1846 = vmatpush.msra.mxu2 %v5503_v49 }
 0x5db   :  { %7731 = vst [vmem:[#allocation39_spill] sm:$0xff] %v5481_v10  ;;  %v5515_v10 = vld [vmem:[#allocation2 + $0x398] sm:$0xff]  ;;  %1824 = vmatpush.msra.mxu1 %v5509_v6 }
 0x5dc   :  { %7732 = vst [vmem:[#allocation41_spill] sm:$0xff] %v5485_v20  ;;  %v7744_v20 = vld [vmem:[#allocation53_spill] sm:$0xff]  ;;  %1847 = vmatpush.msra.mxu2 %v5513_v2  ;;  %1866 = vmatpush.msra.mxu3 %v5515_v10 }
 0x5dd   :  { %7733 = vst [vmem:[#allocation42_spill] sm:$0xff] %v5487_v9  ;;  %v5519_v9 = vld [vmem:[#allocation2 + $0x190] sm:$0xff]  ;;  %1779 = vmatmul.f32.vlgmr.msrb.gmra.mxu2 %v7744_v20  ;;  %1739 = vmatmul.f32.vlgmr.msrb.gmra.mxu0 %v7744_v20 }
 0x5de   :  { %7734 = vst [vmem:[#allocation44_spill] sm:$0xff] %v5491_v33  ;;  %v5523_v33 = vld [vmem:[#allocation2 + $0x3b0] sm:$0xff]  ;;  %1806 = vmatpush.msra.mxu0 %v5519_v9 }
 0x5df   :  { %7735 = vst [vmem:[#allocation43_spill] sm:$0xff] %v5493_v46  ;;  %v5525_v46 = vld [vmem:[#allocation2 + $0x158] sm:$0xff]  ;;  %1825 = vmatpush.msra.mxu1 %v5523_v33 }
 0x5e0   :  { %7736 = vst [vmem:[#allocation48_spill] sm:$0xff] %v5497_v55  ;;  %v5531_v55 = vld [vmem:[#allocation2 + $0x170] sm:$0xff]  ;;  %1848 = vmatpush.msra.mxu2 %v5525_v46 }
 0x5e1   :  { %7737 = vst [vmem:[#allocation49_spill] sm:$0xff] %v5499_v62  ;;  %v5529_v62 = vld [vmem:[#allocation2 + $0x378] sm:$0xff]  ;;  %1807 = vmatpush.msra.mxu0 %v5531_v55 }
 0x5e2   :  { %7738 = vst [vmem:[#allocation51_spill] sm:$0xff] %v5503_v49  ;;  %v7749_v49 = vmov 0.0   ;;  %1867 = vmatpush.msra.mxu3 %v5529_v62  ;;  %1849 = vmatpush.msra.mxu2 %v5537_v8 }
 0x5e3   :  { %7739 = vst [vmem:[#allocation45_spill] sm:$0xff] %v5505_v39  ;;  %1799 = vmatmul.f32.vlgmr.msrb.gmra.mxu3 %v7749_v49  ;;  %v5535_v39 = vld [vmem:[#allocation2 + $0x390] sm:$0xff]  ;;  %1759 = vmatmul.f32.vlgmr.msrb.gmra.mxu1 %v7749_v49 }
 0x5e4   :  { %7740 = vst [vmem:[#allocation46_spill] sm:$0xff] %v5509_v6  ;;  %v5541_v6 = vld [vmem:[#allocation2 + $0x358] sm:$0xff]  ;;  %1826 = vmatpush.msra.mxu1 %v5535_v39 }
 0x5e5   :  { %7741 = vst [vmem:[#allocation47_spill] sm:$0xff] %v5513_v2  ;;  %v5547_v2 = vld [vmem:[#allocation2 + $0x370] sm:$0xff]  ;;  %1868 = vmatpush.msra.mxu3 %v5541_v6 }
 0x5e6   :  { %7742 = vst [vmem:[#allocation50_spill] sm:$0xff] %v5515_v10  ;;  %v5545_v10 = vld [vmem:[#allocation2 + $0x150] sm:$0xff]  ;;  %1827 = vmatpush.msra.mxu1 %v5547_v2 }
 0x5e7   :  { %7743 = vst [vmem:[#allocation55_spill] sm:$0xff] %v5519_v9  ;;  %v5551_v9 = vld [vmem:[#allocation2 + $0x118] sm:$0xff]  ;;  %1808 = vmatpush.msra.mxu0 %v5545_v10  ;;  %1869 = vmatpush.msra.mxu3 %v5553_v7 }
 0x5e8   :  { %7745 = vst [vmem:[#allocation53_spill] sm:$0xff] %v5523_v33  ;;  %1850 = vmatpush.msra.mxu2 %v5551_v9  ;;  %v5587_v33 = vld [vmem:[#allocation2 + $0xb8] sm:$0xff] }
 0x5e9   :  { %7746 = vst [vmem:[#allocation56_spill] sm:$0xff] %v5525_v46  ;;  %v5557_v46 = vld [vmem:[#allocation2 + $0x130] sm:$0xff] }
 0x5ea   :  { %7747 = vst [vmem:[#allocation57_spill] sm:$0xff] %v5529_v62  ;;  %v5561_v62 = vld [vmem:[#allocation2 + $0x350] sm:$0xff]  ;;  %1809 = vmatpush.msra.mxu0 %v5557_v46 }
 0x5eb   :  { %7748 = vst [vmem:[#allocation58_spill] sm:$0xff] %v5531_v55  ;;  %v5563_v55 = vld [vmem:[#allocation2 + $0xf8] sm:$0xff]  ;;  %1828 = vmatpush.msra.mxu1 %v5561_v62 }
 0x5ec   :  { %7750 = vst [vmem:[#allocation59_spill] sm:$0xff] %v5535_v39  ;;  %v5569_v39 = vld [vmem:[#allocation2 + $0x110] sm:$0xff]  ;;  %1851 = vmatpush.msra.mxu2 %v5563_v55 }
 0x5ed   :  { %7751 = vst [vmem:[#allocation60_spill] sm:$0xff] %v5537_v8  ;;  %v5567_v8 = vld [vmem:[#allocation2 + $0x318] sm:$0xff]  ;;  %1810 = vmatpush.msra.mxu0 %v5569_v39 }
 0x5ee   :  { %7752 = vst [vmem:[#allocation61_spill] sm:$0xff] %v5541_v6  ;;  %v5573_v6 = vld [vmem:[#allocation2 + $0x330] sm:$0xff]  ;;  %1870 = vmatpush.msra.mxu3 %v5567_v8 }
 0x5ef   :  { %7753 = vst [vmem:[#allocation62_spill] sm:$0xff] %v5545_v10  ;;  %v5575_v10 = vld [vmem:[#allocation2 + $0xd8] sm:$0xff]  ;;  %1829 = vmatpush.msra.mxu1 %v5573_v6 }
 0x5f0   :  { %7754 = vst [vmem:[#allocation63_spill] sm:$0xff] %v5547_v2  ;;  %v5579_v2 = vld [vmem:[#allocation2 + $0x2f8] sm:$0xff]  ;;  %1852 = vmatpush.msra.mxu2 %v5575_v10 }
 0x5f1   :  { %7755 = vst [vmem:[#allocation64_spill] sm:$0xff] %v5551_v9  ;;  %v5581_v9 = vld [vmem:[#allocation2 + $0xf0] sm:$0xff]  ;;  %1871 = vmatpush.msra.mxu3 %v5579_v2 }
 0x5f2   :  { %7756 = vst [vmem:[#allocation65_spill] sm:$0xff] %v5553_v7  ;;  %v5585_v7 = vld [vmem:[#allocation2 + $0x310] sm:$0xff]  ;;  %1811 = vmatpush.msra.mxu0 %v5581_v9  ;;  %1853 = vmatpush.msra.mxu2 %v5587_v33 }
 0x5f3   :  { %7757 = vst [vmem:[#allocation66_spill] sm:$0xff] %v5557_v46  ;;  %v5591_v46 = vld [vmem:[#allocation2 + $0x2d8] sm:$0xff]  ;;  %1830 = vmatpush.msra.mxu1 %v5585_v7 }
 0x5f4   :  { %7758 = vst [vmem:[#allocation67_spill] sm:$0xff] %v5561_v62  ;;  %v5593_v62 = vld [vmem:[#allocation2 + $0xd0] sm:$0xff]  ;;  %1872 = vmatpush.msra.mxu3 %v5591_v46 }
 0x5f5   :  { %7759 = vst [vmem:[#allocation68_spill] sm:$0xff] %v5563_v55  ;;  %v5597_v55 = vld [vmem:[#allocation2 + $0x2f0] sm:$0xff]  ;;  %1812 = vmatpush.msra.mxu0 %v5593_v62 }
 0x5f6   :  { %7760 = vst [vmem:[#allocation69_spill] sm:$0xff] %v5567_v8  ;;  %v5599_v8 = vld [vmem:[#allocation2 + $0x98] sm:$0xff]  ;;  %1831 = vmatpush.msra.mxu1 %v5597_v55 }
 0x5f7   :  { %7761 = vst [vmem:[#allocation70_spill] sm:$0xff] %v5569_v39  ;;  %v5603_v39 = vld [vmem:[#allocation2 + $0x2b8] sm:$0xff]  ;;  %1854 = vmatpush.msra.mxu2 %v5599_v8 }
 0x5f8   :  { %7762 = vst [vmem:[#allocation71_spill] sm:$0xff] %v5573_v6  ;;  %v5605_v6 = vld [vmem:[#allocation2 + $0xb0] sm:$0xff]  ;;  %1873 = vmatpush.msra.mxu3 %v5603_v39 }
 0x5f9   :  { %7763 = vst [vmem:[#allocation72_spill] sm:$0xff] %v5575_v10  ;;  %v5609_v10 = vld [vmem:[#allocation2 + $0x2d0] sm:$0xff]  ;;  %1813 = vmatpush.msra.mxu0 %v5605_v6 }
 0x5fa   :  { %7764 = vst [vmem:[#allocation73_spill] sm:$0xff] %v5579_v2  ;;  %v5611_v2 = vld [vmem:[#allocation2 + $0x78] sm:$0xff]  ;;  %1832 = vmatpush.msra.mxu1 %v5609_v10 }
 0x5fb   :  { %7765 = vst [vmem:[#allocation74_spill] sm:$0xff] %v5581_v9  ;;  %v5615_v9 = vld [vmem:[#allocation2 + $0x298] sm:$0xff]  ;;  %1855 = vmatpush.msra.mxu2 %v5611_v2 }
 0x5fc   :  { %7766 = vst [vmem:[#allocation75_spill] sm:$0xff] %v5585_v7  ;;  %v5617_v7 = vld [vmem:[#allocation2 + $0x90] sm:$0xff]  ;;  %1874 = vmatpush.msra.mxu3 %v5615_v9 }
 0x5fd   :  { %7767 = vst [vmem:[#allocation76_spill] sm:$0xff] %v5587_v33  ;;  %v5621_v33 = vld [vmem:[#allocation2 + $0x2b0] sm:$0xff]  ;;  %1814 = vmatpush.msra.mxu0 %v5617_v7 }
 0x5fe   :  { %7768 = vst [vmem:[#allocation77_spill] sm:$0xff] %v5591_v46  ;;  %v5623_v46 = vld [vmem:[#allocation2 + $0x58] sm:$0xff]  ;;  %1833 = vmatpush.msra.mxu1 %v5621_v33 }
 0x5ff   :  { %7769 = vst [vmem:[#allocation78_spill] sm:$0xff] %v5593_v62  ;;  %v5627_v62 = vld [vmem:[#allocation2 + $0x278] sm:$0xff]  ;;  %1856 = vmatpush.msra.mxu2 %v5623_v46 }
 0x600   :  { %7770 = vst [vmem:[#allocation79_spill] sm:$0xff] %v5597_v55  ;;  %v5629_v55 = vld [vmem:[#allocation2 + $0x70] sm:$0xff]  ;;  %1875 = vmatpush.msra.mxu3 %v5627_v62 }
 0x601   :  { %7771 = vst [vmem:[#allocation80_spill] sm:$0xff] %v5599_v8  ;;  %v5633_v8 = vld [vmem:[#allocation2 + $0x290] sm:$0xff]  ;;  %1815 = vmatpush.msra.mxu0 %v5629_v55 }
 0x602   :  { %7772 = vst [vmem:[#allocation81_spill] sm:$0xff] %v5603_v39  ;;  %v5635_v39 = vld [vmem:[#allocation2 + $0x38] sm:$0xff]  ;;  %1834 = vmatpush.msra.mxu1 %v5633_v8 }
 0x603   :  { %7773 = vst [vmem:[#allocation82_spill] sm:$0xff] %v5605_v6  ;;  %v5639_v6 = vld [vmem:[#allocation2 + $0x258] sm:$0xff]  ;;  %1857 = vmatpush.msra.mxu2 %v5635_v39 }
 0x604   :  { %7774 = vst [vmem:[#allocation83_spill] sm:$0xff] %v5609_v10  ;;  %v5641_v10 = vld [vmem:[#allocation2 + $0x50] sm:$0xff]  ;;  %1876 = vmatpush.msra.mxu3 %v5639_v6 }
 0x605   :  { %7775 = vst [vmem:[#allocation84_spill] sm:$0xff] %v5611_v2  ;;  %v5645_v2 = vld [vmem:[#allocation2 + $0x270] sm:$0xff]  ;;  %1816 = vmatpush.msra.mxu0 %v5641_v10 }
 0x606   :  { %7776 = vst [vmem:[#allocation85_spill] sm:$0xff] %v5615_v9  ;;  %v5647_v9 = vld [vmem:[#allocation2 + $0x18] sm:$0xff]  ;;  %1835 = vmatpush.msra.mxu1 %v5645_v2 }
 0x607   :  { %7777 = vst [vmem:[#allocation86_spill] sm:$0xff] %v5617_v7  ;;  %v5651_v7 = vld [vmem:[#allocation2 + $0x238] sm:$0xff]  ;;  %1858 = vmatpush.msra.mxu2 %v5647_v9 }
 0x608   :  { %7778 = vst [vmem:[#allocation87_spill] sm:$0xff] %v5621_v33  ;;  %v5653_v33 = vld [vmem:[#allocation2 + $0x30] sm:$0xff]  ;;  %1877 = vmatpush.msra.mxu3 %v5651_v7  ;;  %1859 = vmatmul.f32.vlgmr.msra.gmra.mxu2 %v7744_v20 }
 0x609   :  { %7779 = vst [vmem:[#allocation88_spill] sm:$0xff] %v5623_v46  ;;  %v5657_v46 = vld [vmem:[#allocation2 + $0x250] sm:$0xff]  ;;  %1817 = vmatpush.msra.mxu0 %v5653_v33  ;;  %1990 = vmatpush.msrb.mxu2 %v5288_v56 }
 0x60a   :  { %7780 = vst [vmem:[#allocation89_spill] sm:$0xff] %v5627_v62  ;;  %v5661_v62 = vld [vmem:[#allocation2 + $0x218] sm:$0xff]  ;;  %1836 = vmatpush.msra.mxu1 %v5657_v46 }
 0x60b   :  { %7781 = vst [vmem:[#allocation90_spill] sm:$0xff] %v5629_v55  ;;  %v5663_v55 = vld [vmem:[#allocation2 + $0x10] sm:$0xff]  ;;  %1878 = vmatpush.msra.mxu3 %v5661_v62  ;;  %1991 = vmatpush.msrb.mxu2 %v5290_v57 }
 0x60c   :  { %7782 = vst [vmem:[#allocation91_spill] sm:$0xff] %v5633_v8  ;;  %1818 = vmatpush.msra.mxu0 %v5663_v55  ;;  %1879 = vmatmul.f32.vlgmr.msra.gmra.mxu3 %v7749_v49 }
 0x60d   :  { %7783 = vst [vmem:[#allocation92_spill] sm:$0xff] %v5635_v39  ;;  %v5667_v39 = vld [vmem:[#allocation2 + $0x230] sm:$0xff]  ;;  %1819 = vmatmul.f32.vlgmr.msra.gmra.mxu0 %v7744_v20  ;;  %2010 = vmatpush.msrb.mxu3 %v5292_v45  ;;  %v7793_v45 = vld [vmem:[#allocation27_spill] sm:$0xff] }
 0x60e   :  { %7784 = vst [vmem:[#allocation93_spill] sm:$0xff] %v5639_v6  ;;  %v5673_v6 = vld [vmem:[#allocation2 + $0x210] sm:$0xff]  ;;  %1837 = vmatpush.msra.mxu1 %v5667_v39  ;;  %1950 = vmatpush.msrb.mxu0 %v5296_v61  ;;  %v7817_v20 = vld [vmem:[#allocation51_spill] sm:$0xff] }
 0x60f   :  { %7785 = vst [vmem:[#allocation94_spill] sm:$0xff] %v5641_v10  ;;  %1992 = vmatpush.msrb.mxu2 %v5301_v47  ;;  %2011 = vmatpush.msrb.mxu3 %v5298_v0  ;;  %v7794_v0 = vld [vmem:[#allocation25_spill] sm:$0xff] }
 0x610   :  { %7786 = vst [vmem:[#allocation95_spill] sm:$0xff] %v5645_v2  ;;  %1838 = vmatpush.msra.mxu1 %v5673_v6  ;;  %1951 = vmatpush.msrb.mxu0 %v5303_v52 }
 0x611   :  { %7787 = vst [vmem:[#allocation96_spill] sm:$0xff] %v5651_v7  ;;  %1839 = vmatmul.f32.vlgmr.msra.gmra.mxu1 %v7749_v49  ;;  %1993 = vmatpush.msrb.mxu2 %v5317_v17  ;;  %v7792_v49 = vld [vmem:[#allocation28_spill] sm:$0xff] }
 0x612   :  { %7788 = vst [vmem:[#allocation97_spill] sm:$0xff] %v5657_v46  ;;  %1970 = vmatpush.msrb.mxu1 %v5305_v13  ;;  %1952 = vmatpush.msrb.mxu0 %v5311_v15  ;;  %v7795_v13 = vld [vmem:[#allocation29_spill] sm:$0xff] }
 0x613   :  { %7789 = vst [vmem:[#allocation98_spill] sm:$0xff] %v5661_v62  ;;  %2012 = vmatpush.msrb.mxu3 %v5309_v14  ;;  %1994 = vmatpush.msrb.mxu2 %v5329_v43  ;;  %v7796_v14 = vld [vmem:[#allocation32_spill] sm:$0xff] }
 0x614   :  { %7790 = vst [vmem:[#allocation99_spill] sm:$0xff] %v5667_v39  ;;  %1971 = vmatpush.msrb.mxu1 %v5313_v16  ;;  %1953 = vmatpush.msrb.mxu0 %v5323_v21  ;;  %v7797_v16 = vld [vmem:[#allocation31_spill] sm:$0xff] }
 0x615   :  { %7791 = vst [vmem:[#allocation100_spill] sm:$0xff] %v5673_v6  ;;  %2013 = vmatpush.msrb.mxu3 %v5319_v19  ;;  %1995 = vmatpush.msrb.mxu2 %v5341_v50  ;;  %v7798_v19 = vld [vmem:[#allocation26_spill] sm:$0xff] }
 0x616   :  { %1972 = vmatpush.msrb.mxu1 %v5325_v35  ;;  %1954 = vmatpush.msrb.mxu0 %v5335_v25  ;;  %v7799_v35 = vld [vmem:[#allocation33_spill] sm:$0xff] }
 0x617   :  { %2014 = vmatpush.msrb.mxu3 %v5331_v40  ;;  %1996 = vmatpush.msrb.mxu2 %v5353_v30  ;;  %v7800_v40 = vld [vmem:[#allocation35_spill] sm:$0xff] }
 0x618   :  { %1973 = vmatpush.msrb.mxu1 %v5337_v22  ;;  %1955 = vmatpush.msrb.mxu0 %v5347_v26  ;;  %v7801_v22 = vld [vmem:[#allocation37_spill] sm:$0xff] }
 0x619   :  { %2015 = vmatpush.msrb.mxu3 %v5343_v58  ;;  %1997 = vmatpush.msrb.mxu2 %v5365_v28  ;;  %v7802_v58 = vld [vmem:[#allocation30_spill] sm:$0xff] }
 0x61a   :  { %1974 = vmatpush.msrb.mxu1 %v5349_v12  ;;  %1956 = vmatpush.msrb.mxu0 %v5359_v42  ;;  %v7803_v12 = vld [vmem:[#allocation39_spill] sm:$0xff] }
 0x61b   :  { %2016 = vmatpush.msrb.mxu3 %v5355_v63  ;;  %1998 = vmatpush.msrb.mxu2 %v5377_v34  ;;  %v7804_v63 = vld [vmem:[#allocation36_spill] sm:$0xff] }
 0x61c   :  { %1975 = vmatpush.msrb.mxu1 %v5361_v24  ;;  %1957 = vmatpush.msrb.mxu0 %v5371_v32  ;;  %v7805_v24 = vld [vmem:[#allocation41_spill] sm:$0xff] }
 0x61d   :  { %2017 = vmatpush.msrb.mxu3 %v5367_v18  ;;  %1999 = vmatpush.msrb.mxu2 %v5389_v37  ;;  %v7806_v18 = vld [vmem:[#allocation34_spill] sm:$0xff] }
 0x61e   :  { %1976 = vmatpush.msrb.mxu1 %v5373_v36  ;;  %1958 = vmatpush.msrb.mxu0 %v5383_v23  ;;  %v7807_v36 = vld [vmem:[#allocation43_spill] sm:$0xff] }
 0x61f   :  { %2018 = vmatpush.msrb.mxu3 %v5379_v27  ;;  %2000 = vmatpush.msrb.mxu2 %v5401_v41  ;;  %v7808_v27 = vld [vmem:[#allocation48_spill] sm:$0xff] }
 0x620   :  { %1977 = vmatpush.msrb.mxu1 %v5385_v38  ;;  %1959 = vmatpush.msrb.mxu0 %v5395_v11  ;;  %v7809_v38 = vld [vmem:[#allocation40_spill] sm:$0xff] }
 0x621   :  { %2019 = vmatpush.msrb.mxu3 %v5391_v31  ;;  %2001 = vmatpush.msrb.mxu2 %v5413_v53  ;;  %v7810_v31 = vld [vmem:[#allocation38_spill] sm:$0xff] }
 0x622   :  { %1978 = vmatpush.msrb.mxu1 %v5397_v29  ;;  %1960 = vmatpush.msrb.mxu0 %v5407_v1  ;;  %v7811_v29 = vld [vmem:[#allocation45_spill] sm:$0xff] }
 0x623   :  { %2020 = vmatpush.msrb.mxu3 %v5403_v44  ;;  %2002 = vmatpush.msrb.mxu2 %v5425_v54  ;;  %v7812_v44 = vld [vmem:[#allocation46_spill] sm:$0xff] }
 0x624   :  { %1979 = vmatpush.msrb.mxu1 %v5409_v51  ;;  %1961 = vmatpush.msrb.mxu0 %v5419_v60  ;;  %v7813_v51 = vld [vmem:[#allocation44_spill] sm:$0xff] }
 0x625   :  { %2021 = vmatpush.msrb.mxu3 %v5415_v59  ;;  %2003 = vmatpush.msrb.mxu2 %v5437_v5  ;;  %v7814_v59 = vld [vmem:[#allocation42_spill] sm:$0xff] }
 0x626   :  { %1980 = vmatpush.msrb.mxu1 %v5421_v48  ;;  %1962 = vmatpush.msrb.mxu0 %v5431_v3  ;;  %v7815_v48 = vld [vmem:[#allocation55_spill] sm:$0xff] }
 0x627   :  { %2022 = vmatpush.msrb.mxu3 %v7794_v0  ;;  %2004 = vmatpush.msrb.mxu2 %v7795_v13  ;;  %v7819_v0 = vld [vmem:[#allocation58_spill] sm:$0xff] }
 0x628   :  { %1981 = vmatpush.msrb.mxu1 %v5433_v4  ;;  %1963 = vmatpush.msrb.mxu0 %v7792_v49  ;;  %v7816_v4 = vld [vmem:[#allocation53_spill] sm:$0xff] }
 0x629   :  { %2023 = vmatpush.msrb.mxu3 %v7798_v19  ;;  %2005 = vmatpush.msrb.mxu2 %v7799_v35  ;;  %v7821_v19 = vld [vmem:[#allocation47_spill] sm:$0xff] }
 0x62a   :  { %1982 = vmatpush.msrb.mxu1 %v7793_v45  ;;  %1964 = vmatpush.msrb.mxu0 %v7796_v14  ;;  %v7818_v45 = vld [vmem:[#allocation49_spill] sm:$0xff] }
 0x62b   :  { %2024 = vmatpush.msrb.mxu3 %v7802_v58  ;;  %2070 = vmatpush.msra.mxu2 %v7804_v63  ;;  %v7823_v58 = vld [vmem:[#allocation62_spill] sm:$0xff] }
 0x62c   :  { %1983 = vmatpush.msrb.mxu1 %v7797_v16  ;;  %1965 = vmatpush.msrb.mxu0 %v7800_v40  ;;  %v7820_v16 = vld [vmem:[#allocation59_spill] sm:$0xff] }
 0x62d   :  { %2025 = vmatpush.msrb.mxu3 %v7806_v18  ;;  %2071 = vmatpush.msra.mxu2 %v7809_v38  ;;  %v7825_v18 = vld [vmem:[#allocation56_spill] sm:$0xff] }
 0x62e   :  { %1984 = vmatpush.msrb.mxu1 %v7801_v22  ;;  %2030 = vmatpush.msra.mxu0 %v7803_v12  ;;  %v7822_v22 = vld [vmem:[#allocation50_spill] sm:$0xff] }
 0x62f   :  { %2090 = vmatpush.msra.mxu3 %v7810_v31  ;;  %2072 = vmatpush.msra.mxu2 %v7813_v51  ;;  %v7827_v31 = vld [vmem:[#allocation66_spill] sm:$0xff] }
 0x630   :  { %1985 = vmatpush.msrb.mxu1 %v7805_v24  ;;  %2031 = vmatpush.msra.mxu0 %v7807_v36  ;;  %v7824_v24 = vld [vmem:[#allocation63_spill] sm:$0xff] }
 0x631   :  { %2091 = vmatpush.msra.mxu3 %v7814_v59  ;;  %2073 = vmatpush.msra.mxu2 %v7817_v20  ;;  %v7829_v59 = vld [vmem:[#allocation60_spill] sm:$0xff] }
 0x632   :  { %2050 = vmatpush.msra.mxu1 %v7808_v27  ;;  %2032 = vmatpush.msra.mxu0 %v7811_v29  ;;  %v7826_v27 = vld [vmem:[#allocation57_spill] sm:$0xff] }
 0x633   :  { %2092 = vmatpush.msra.mxu3 %v7818_v45  ;;  %2074 = vmatpush.msra.mxu2 %v7821_v19  ;;  %v7830_v45 = vld [vmem:[#allocation61_spill] sm:$0xff] }
 0x634   :  { %2051 = vmatpush.msra.mxu1 %v7812_v44  ;;  %2033 = vmatpush.msra.mxu0 %v7815_v48  ;;  %v7828_v44 = vld [vmem:[#allocation67_spill] sm:$0xff] }
 0x635   :  { %2093 = vmatpush.msra.mxu3 %v7822_v22  ;;  %2075 = vmatpush.msra.mxu2 %v7825_v18  ;;  %v7833_v22 = vld [vmem:[#allocation64_spill] sm:$0xff]  ;;  %v7836_v18 = vld [vmem:[#allocation75_spill] sm:$0xff] }
 0x636   :  { %2052 = vmatpush.msra.mxu1 %v7816_v4  ;;  %2034 = vmatpush.msra.mxu0 %v7819_v0  ;;  %v7832_v4 = vld [vmem:[#allocation71_spill] sm:$0xff] }
 0x637   :  { %2094 = vmatpush.msra.mxu3 %v7826_v27  ;;  %2076 = vmatpush.msra.mxu2 %v7829_v59  ;;  %v7837_v27 = vld [vmem:[#allocation68_spill] sm:$0xff]  ;;  %v7840_v59 = vld [vmem:[#allocation79_spill] sm:$0xff] }
 0x638   :  { %2053 = vmatpush.msra.mxu1 %v7820_v16  ;;  %2035 = vmatpush.msra.mxu0 %v7823_v58  ;;  %v7831_v16 = vld [vmem:[#allocation70_spill] sm:$0xff]  ;;  %v7834_v58 = vld [vmem:[#allocation65_spill] sm:$0xff] }
 0x639   :  { %2095 = vmatpush.msra.mxu3 %v7830_v45  ;;  %2077 = vmatpush.msra.mxu2 %v7833_v22  ;;  %v7841_v45 = vld [vmem:[#allocation72_spill] sm:$0xff]  ;;  %v7844_v22 = vld [vmem:[#allocation83_spill] sm:$0xff] }
 0x63a   :  { %2054 = vmatpush.msra.mxu1 %v7824_v24  ;;  %2036 = vmatpush.msra.mxu0 %v7827_v31  ;;  %v7835_v24 = vld [vmem:[#allocation74_spill] sm:$0xff]  ;;  %v7838_v31 = vld [vmem:[#allocation69_spill] sm:$0xff] }
 0x63b   :  { %2096 = vmatpush.msra.mxu3 %v7834_v58  ;;  %2078 = vmatpush.msra.mxu2 %v7837_v27  ;;  %v7845_v58 = vld [vmem:[#allocation76_spill] sm:$0xff]  ;;  %v7848_v27 = vld [vmem:[#allocation87_spill] sm:$0xff] }
 0x63c   :  { %2055 = vmatpush.msra.mxu1 %v7828_v44  ;;  %2037 = vmatpush.msra.mxu0 %v7831_v16  ;;  %v7839_v44 = vld [vmem:[#allocation78_spill] sm:$0xff]  ;;  %v7842_v16 = vld [vmem:[#allocation73_spill] sm:$0xff] }
 0x63d   :  { %2097 = vmatpush.msra.mxu3 %v7838_v31  ;;  %2079 = vmatpush.msra.mxu2 %v7841_v45  ;;  %v7849_v31 = vld [vmem:[#allocation80_spill] sm:$0xff] }
 0x63e   :  { %2056 = vmatpush.msra.mxu1 %v7832_v4  ;;  %2038 = vmatpush.msra.mxu0 %v7835_v24  ;;  %v7843_v4 = vld [vmem:[#allocation82_spill] sm:$0xff]  ;;  %v7846_v24 = vld [vmem:[#allocation77_spill] sm:$0xff] }
 0x63f   :  { %2098 = vmatpush.msra.mxu3 %v7842_v16  ;;  %2080 = vmatpush.msra.mxu2 %v7845_v58  ;;  %v7852_v16 = vld [vmem:[#allocation90_spill] sm:$0xff]  ;;  %v7854_v58 = vld [vmem:[#allocation85_spill] sm:$0xff] }
 0x640   :  { %2057 = vmatpush.msra.mxu1 %v7836_v18  ;;  %2039 = vmatpush.msra.mxu0 %v7839_v44  ;;  %v7847_v18 = vld [vmem:[#allocation86_spill] sm:$0xff]  ;;  %v7850_v44 = vld [vmem:[#allocation81_spill] sm:$0xff] }
 0x641   :  { %2099 = vmatpush.msra.mxu3 %v7846_v24  ;;  %2081 = vmatpush.msra.mxu2 %v7849_v31  ;;  %v7856_v24 = vld [vmem:[#allocation89_spill] sm:$0xff] }
 0x642   :  { %2058 = vmatpush.msra.mxu1 %v7840_v59  ;;  %2040 = vmatpush.msra.mxu0 %v7843_v4  ;;  %v7851_v59 = vld [vmem:[#allocation20_spill] sm:$0xff] }
 0x643   :  { %2100 = vmatpush.msra.mxu3 %v7850_v44  ;;  %1966 = vmatmul.f32.vlgmr.msrb.gmra.mxu0 %v7851_v59  ;;  %v7857_v44 = vld [vmem:[#allocation92_spill] sm:$0xff] }
 0x644   :  { %2059 = vmatpush.msra.mxu1 %v7844_v22  ;;  %2041 = vmatpush.msra.mxu0 %v7847_v18  ;;  %v7853_v22 = vld [vmem:[#allocation84_spill] sm:$0xff] }
 0x645   :  { %2006 = vmatmul.f32.vlgmr.msrb.gmra.mxu2 %v7851_v59  ;;  %2101 = vmatpush.msra.mxu3 %v7854_v58 }
 0x646   :  { %2060 = vmatpush.msra.mxu1 %v7848_v27  ;;  %2042 = vmatpush.msra.mxu0 %v7852_v16  ;;  %v7855_v27 = vld [vmem:[#allocation88_spill] sm:$0xff]  ;;  %v7858_v16 = vld [vmem:[#allocation93_spill] sm:$0xff] }
 0x647   :  { %2082 = vmatpush.msra.mxu2 %v7853_v22  ;;  %2102 = vmatpush.msra.mxu3 %v7856_v24 }
 0x648   :  { %2061 = vmatpush.msra.mxu1 %v5633_v8  ;;  %2043 = vmatpush.msra.mxu0 %v5641_v10 }
 0x649   :  { %2083 = vmatpush.msra.mxu2 %v7855_v27  ;;  %2103 = vmatpush.msra.mxu3 %v7858_v16 }
 0x64a   :  { %2062 = vmatpush.msra.mxu1 %v5645_v2  ;;  %2044 = vmatpush.msra.mxu0 %v5653_v33 }
 0x64b   :  { %2084 = vmatpush.msra.mxu2 %v7857_v44  ;;  %2104 = vmatpush.msra.mxu3 %v5651_v7  ;;  %v7862_v7 = vld [vmem:[#allocation21_spill] sm:$0xff] }
 0x64c   :  { %2063 = vmatpush.msra.mxu1 %v5657_v46  ;;  %2045 = vmatpush.msra.mxu0 %v5663_v55 }
 0x64d   :  { %2085 = vmatpush.msra.mxu2 %v5647_v9  ;;  %2046 = vmatmul.f32.vlgmr.msra.gmra.mxu0 %v7851_v59 }
 0x64e   :  { %2064 = vmatpush.msra.mxu1 %v5667_v39  ;;  %2086 = vmatmul.f32.vlgmr.msra.gmra.mxu2 %v7851_v59  ;;  %v7859_v59 = vld [vmem:[#allocation19_spill] sm:$0xff] }
 0x64f   :  { %2105 = vmatpush.msra.mxu3 %v5661_v62  ;;  %2177 = vmatpush.msrb.mxu0 %v5296_v61  ;;  %v5846_v62 = vperm.slane %v7859_v59, 0 }
 0x650   :  { %2065 = vmatpush.msra.mxu1 %v5673_v6  ;;  %2217 = vmatpush.msrb.mxu2 %v5288_v56  ;;  %v5849_v6 = vperm.slane %v7859_v59, 1 }
 0x651   :  { %2178 = vmatpush.msrb.mxu0 %v5303_v52  ;;  %7860 = vst [vmem:[#allocation28_spill] sm:$0xff] %v5846_v62 }
 0x652   :  { %2218 = vmatpush.msrb.mxu2 %v5290_v57  ;;  %7861 = vst [vmem:[#allocation27_spill] sm:$0xff] %v5849_v6 }
 0x653   :  { %2179 = vmatpush.msrb.mxu0 %v5311_v15 }
 0x654   :  { %2219 = vmatpush.msrb.mxu2 %v5301_v47 }
 0x655   :  { %2180 = vmatpush.msrb.mxu0 %v5323_v21 }
 0x656   :  { %2220 = vmatpush.msrb.mxu2 %v5317_v17 }
 0x657   :  { %2181 = vmatpush.msrb.mxu0 %v5335_v25 }
 0x658   :  { %2221 = vmatpush.msrb.mxu2 %v5329_v43 }
 0x659   :  { %2182 = vmatpush.msrb.mxu0 %v5347_v26 }
 0x65a   :  { %2222 = vmatpush.msrb.mxu2 %v5341_v50  ;;  %v1740_v39 = vpop.f32.mrf.mxu0 }
 0x65b   :  { %2183 = vmatpush.msrb.mxu0 %v5359_v42  ;;  %v1741_v46 = vadd.f32 %v1740_v39, %v5846_v62  ;;  %v7864_v39 = vld [vmem:[#allocation56_spill] sm:$0xff] }
 0x65c   :  { %2223 = vmatpush.msrb.mxu2 %v5353_v30 }
 0x65d   :  { %2184 = vmatpush.msrb.mxu0 %v5371_v32 }
 0x65e   :  { %2224 = vmatpush.msrb.mxu2 %v5365_v28 }
 0x65f   :  { %2185 = vmatpush.msrb.mxu0 %v5383_v23 }
 0x660   :  { %2225 = vmatpush.msrb.mxu2 %v5377_v34  ;;  %v1780_v16 = vpop.f32.mrf.mxu2  ;;  %v1760_v58 = vpop.f32.mrf.mxu1 }
 0x661   :  { %2186 = vmatpush.msrb.mxu0 %v5395_v11  ;;  %v1781_v24 = vadd.f32 %v1780_v16, %v5849_v6  ;;  %v7865_v16 = vld [vmem:[#allocation66_spill] sm:$0xff]  ;;  %v7866_v6 = vld [vmem:[#allocation60_spill] sm:$0xff] }
 0x662   :  { %2226 = vmatpush.msrb.mxu2 %v5389_v37 }
 0x663   :  { %2187 = vmatpush.msrb.mxu0 %v5407_v1 }
 0x664   :  { %2227 = vmatpush.msrb.mxu2 %v5401_v41 }
 0x665   :  { %2188 = vmatpush.msrb.mxu0 %v5419_v60 }
 0x666   :  { %2228 = vmatpush.msrb.mxu2 %v5413_v53  ;;  %v1800_v2 = vpop.f32.mrf.mxu3 }
 0x667   :  { %2189 = vmatpush.msrb.mxu0 %v5431_v3  ;;  %v1801_v8 = vadd.f32 %v1800_v2, %v1781_v24  ;;  %v7867_v2 = vld [vmem:[#allocation70_spill] sm:$0xff]  ;;  %v7868_v24 = vld [vmem:[#allocation64_spill] sm:$0xff] }
 0x668   :  { %2229 = vmatpush.msrb.mxu2 %v5425_v54 }
 0x669   :  { %2190 = vmatpush.msrb.mxu0 %v7792_v49 }
 0x66a   :  { %2230 = vmatpush.msrb.mxu2 %v5437_v5 }
 0x66b   :  { %2191 = vmatpush.msrb.mxu0 %v7796_v14 }
 0x66c   :  { %2231 = vmatpush.msrb.mxu2 %v7795_v13 }
 0x66d   :  { %2192 = vmatpush.msrb.mxu0 %v7800_v40 }
 0x66e   :  { %2232 = vmatpush.msrb.mxu2 %v7799_v35  ;;  %2193 = vmatmul.f32.vlgmr.msrb.gmra.mxu0 %v7862_v7 }
 0x66f   :  { %2257 = vmatpush.msra.mxu0 %v7803_v12  ;;  %2233 = vmatmul.f32.vlgmr.msrb.gmra.mxu2 %v7862_v7 }
 0x670   :  { %2297 = vmatpush.msra.mxu2 %v7804_v63  ;;  %v7863_v63 = vld [vmem:[#allocation62_spill] sm:$0xff] }
 0x671   :  { %2258 = vmatpush.msra.mxu0 %v7807_v36  ;;  %v1761_v36 = vadd.f32 %v1760_v58, %v1741_v46  ;;  %v7869_v46 = vld [vmem:[#allocation74_spill] sm:$0xff]  ;;  %v7870_v58 = vld [vmem:[#allocation68_spill] sm:$0xff] }
 0x672   :  { %2298 = vmatpush.msra.mxu2 %v7809_v38  ;;  %v3681_v38 = vmul.f32 -1.442695, %v1801_v8 }
 0x673   :  { %2259 = vmatpush.msra.mxu0 %v7811_v29  ;;  %v3680_v29 = vmul.f32 -1.442695, %v1761_v36 }
 0x674   :  { %2299 = vmatpush.msra.mxu2 %v7813_v51  ;;  %3907 = vpow2.f32 %v3681_v38  ;;  %v7871_v38 = vld [vmem:[#allocation78_spill] sm:$0xff] }
 0x675   :  { %2260 = vmatpush.msra.mxu0 %v7815_v48  ;;  %3909 = vpow2.f32 %v3680_v29  ;;  %v7872_v29 = vld [vmem:[#allocation76_spill] sm:$0xff] }
 0x676   :  { %2300 = vmatpush.msra.mxu2 %v7817_v20 }
 0x677   :  { %2261 = vmatpush.msra.mxu0 %v7819_v0 }
 0x678   :  { %2301 = vmatpush.msra.mxu2 %v7821_v19 }
 0x679   :  { %2262 = vmatpush.msra.mxu0 %v7863_v63 }
 0x67a   :  { %2302 = vmatpush.msra.mxu2 %v7864_v39  ;;  %v3908_v8 = vpop.eup %3907 }
 0x67b   :  { %2263 = vmatpush.msra.mxu0 %v7865_v16  ;;  %v3910_v36 = vpop.eup %3909  ;;  %v5872_v62 = vadd.f32 1.0, %v3908_v8  ;;  %v7873_v8 = vld [vmem:[#allocation90_spill] sm:$0xff] }
 0x67c   :  { %2303 = vmatpush.msra.mxu2 %v7866_v6  ;;  %v5875_v39 = vadd.f32 1.0, %v3910_v36 }
 0x67d   :  { %2264 = vmatpush.msra.mxu0 %v7867_v2  ;;  %3911 = vrcp.f32 %v5872_v62  ;;  %vm1911_vm0 = vweird.f32 %v5872_v62 }
 0x67e   :  { %2304 = vmatpush.msra.mxu2 %v7868_v24  ;;  %3913 = vrcp.f32 %v5875_v39  ;;  %vm1892_vm2 = vweird.f32 %v5875_v39 }
 0x67f   :  { %2265 = vmatpush.msra.mxu0 %v7869_v46 }
 0x680   :  { %2305 = vmatpush.msra.mxu2 %v7870_v58 }
 0x681   :  { %2266 = vmatpush.msra.mxu0 %v7871_v38  ;;  %v5894_v38 = vperm.slane %v7859_v59, 2 }
 0x682   :  { %2306 = vmatpush.msra.mxu2 %v7841_v45 }
 0x683   :  { %2267 = vmatpush.msra.mxu0 %v7843_v4  ;;  %v5886_v36 = vpop.eup %3911  ;;  %7874 = vst [vmem:[#allocation25_spill] sm:$0xff] %v5894_v38 }
 0x684   :  { %2307 = vmatpush.msra.mxu2 %v7872_v29  ;;  %v5889_v45 = vpop.eup %3913  ;;  %v1907_v4 = vmul.f32 %v5886_v36, %v5872_v62  ;;  %vm1912_vm1 = vweird.f32 %v5886_v36 }
 0x685   :  { %2268 = vmatpush.msra.mxu0 %v7847_v18  ;;  %v5897_v18 = vperm.slane %v7859_v59, 3  ;;  %vm1893_vm3 = vweird.f32 %v5889_v45  ;;  %vm5929_vm4 = vmor %vm1911_vm0, %vm1912_vm1 }
 0x686   :  { %2308 = vmatpush.msra.mxu2 %v7849_v31  ;;  %v1908_v31 = vsub.f32 1.0, %v1907_v4  ;;  %vm5935_vm5 = vmor %vm1892_vm2, %vm1893_vm3 }
 0x687   :  { %2269 = vmatpush.msra.mxu0 %v7873_v8  ;;  %7875 = vst [vmem:[#allocation29_spill] sm:$0xff] %v5897_v18 }
 0x688   :  { %2309 = vmatpush.msra.mxu2 %v7853_v22  ;;  %v1888_v22 = vmul.f32 %v5889_v45, %v5875_v39  ;;  %v1909_v4 = vmul.f32 %v5886_v36, %v1908_v31  ;;  %v7913_v31 = vld [vmem:[#allocation86_spill] sm:$0xff] }
 0x689   :  { %2270 = vmatpush.msra.mxu0 %v5641_v10 }
 0x68a   :  { %2310 = vmatpush.msra.mxu2 %v7855_v27  ;;  %v1820_v8 = vpop.f32.mrf.mxu0  ;;  %v1889_v10 = vsub.f32 1.0, %v1888_v22 }
 0x68b   :  { %2271 = vmatpush.msra.mxu0 %v5653_v33  ;;  %v1860_v29 = vpop.f32.mrf.mxu2  ;;  %v1821_v58 = vadd.f32 %v1820_v8, %v5894_v38 }
 0x68c   :  { %2311 = vmatpush.msra.mxu2 %v7857_v44  ;;  %v1861_v59 = vadd.f32 %v1860_v29, %v5897_v18  ;;  %v1890_v22 = vmul.f32 %v5889_v45, %v1889_v10  ;;  %v1910_v10 = vadd.f32 %v5886_v36, %v1909_v4  ;;  %v6022_v4 = vld [vmem:[#allocation2 + $0x348] sm:$0xff] }
 0x68d   :  { %2272 = vmatpush.msra.mxu0 %v5663_v55  ;;  %7898 = vst [vmem:[#allocation46_spill] sm:$0xff] %v6022_v4 }
 0x68e   :  { %2312 = vmatpush.msra.mxu2 %v5647_v9  ;;  %2273 = vmatmul.f32.vlgmr.msra.gmra.mxu0 %v7862_v7  ;;  %v1840_v27 = vpop.f32.mrf.mxu1 }
 0x68f   :  { %v1880_v46 = vpop.f32.mrf.mxu3  ;;  %2313 = vmatmul.f32.vlgmr.msra.gmra.mxu2 %v7862_v7  ;;  %2404 = vmatpush.msrb.mxu0 %v5296_v61  ;;  %v1841_v29 = vadd.f32 %v1840_v27, %v1821_v58  ;;  %v1898_v61 = vand.u32 2147483648, %v5875_v39  ;;  %v1896_v7 = vand.u32 2147483647, %v5875_v39  ;;  %v5992_v58 = vld [vmem:[#allocation2 + $0x3c8] sm:$0xff] }
 0x690   :  { %v1881_v44 = vadd.f32 %v1880_v46, %v1861_v59  ;;  %2444 = vmatpush.msrb.mxu2 %v5288_v56  ;;  %v1917_v56 = vand.u32 2147483648, %v5872_v62  ;;  %7889 = vst [vmem:[#allocation35_spill] sm:$0xff] %v5992_v58  ;;  %v6008_v59 = vld [vmem:[#allocation2 + $0x388] sm:$0xff] }
 0x691   :  { %2405 = vmatpush.msrb.mxu0 %v5303_v52  ;;  %v1891_v52 = vadd.f32 %v5889_v45, %v1890_v22  ;;  %vm1897_vm6 = vcmp.eq.f32.partialorder %v1896_v7, 8.507059e+37  ;;  %7894 = vst [vmem:[#allocation41_spill] sm:$0xff] %v6008_v59  ;;  %v6027_v22 = vld [vmem:[#allocation2 + $0x320] sm:$0xff] }
 0x692   :  { %v3682_v8 = vmul.f32 -1.442695, %v1881_v44  ;;  %2445 = vmatpush.msrb.mxu2 %v5290_v57  ;;  %v1899_v44 = vor.u32 1.1754944e-38, %v1898_v61  ;;  %7899 = vst [vmem:[#allocation44_spill] sm:$0xff] %v6027_v22  ;;  %v6043_v61 = vld [vmem:[#allocation2 + $0x2e0] sm:$0xff] }
 0x693   :  { %2406 = vmatpush.msrb.mxu0 %v5311_v15  ;;  %v1915_v15 = vand.u32 2147483647, %v5872_v62  ;;  %v1895_v27 = vsel %vm5935_vm5, %v5889_v45, %v1891_v52  ;;  %v1914_v62 = vsel %vm5929_vm4, %v5886_v36, %v1910_v10  ;;  %v6000_v36 = vld [vmem:[#allocation2 + $0x3a8] sm:$0xff]  ;;  %7907 = vst [vmem:[#allocation49_spill] sm:$0xff] %v6043_v61  ;;  %v7909_v7 = vld [vmem:[#allocation82_spill] sm:$0xff] }
 0x694   :  { %3915 = vpow2.f32 %v3682_v8  ;;  %2446 = vmatpush.msrb.mxu2 %v5301_v47  ;;  %v1918_v47 = vor.u32 1.1754944e-38, %v1917_v56  ;;  %7891 = vst [vmem:[#allocation30_spill] sm:$0xff] %v6000_v36  ;;  %v6035_v8 = vld [vmem:[#allocation2 + $0x300] sm:$0xff]  ;;  %v6038_v56 = vld [vmem:[#allocation2 + $0x308] sm:$0xff] }
 0x695   :  { %2407 = vmatpush.msrb.mxu0 %v5323_v21  ;;  %3917 = vtanh.f32 %v1841_v29  ;;  %vm1916_vm7 = vcmp.eq.f32.partialorder %v1915_v15, 8.507059e+37  ;;  %v6030_v29 = vld [vmem:[#allocation2 + $0x328] sm:$0xff]  ;;  %7903 = vst [vmem:[#allocation55_spill] sm:$0xff] %v6035_v8  ;;  %v6051_v57 = vld [vmem:[#allocation2 + $0x2c0] sm:$0xff] }
 0x696   :  { %2447 = vmatpush.msrb.mxu2 %v5317_v17  ;;  %v1919_v39 = vsel %vm1916_vm7, %v1918_v47, %v1914_v62  ;;  %7900 = vst [vmem:[#allocation42_spill] sm:$0xff] %v6030_v29  ;;  %v6046_v52 = vld [vmem:[#allocation2 + $0x2e8] sm:$0xff]  ;;  %v7917_v62 = vld [vmem:[#allocation90_spill] sm:$0xff] }
 0x697   :  { %2408 = vmatpush.msrb.mxu0 %v5335_v25  ;;  %v1941_v45 = vmul.f32 0.0, %v1919_v39  ;;  %7904 = vst [vmem:[#allocation51_spill] sm:$0xff] %v6038_v56  ;;  %v7910_v10 = vld [vmem:[#allocation76_spill] sm:$0xff] }
 0x698   :  { %2448 = vmatpush.msrb.mxu2 %v5329_v43  ;;  %v1900_v43 = vsel %vm1897_vm6, %v1899_v44, %v1895_v27  ;;  %7908 = vst [vmem:[#allocation58_spill] sm:$0xff] %v6046_v52  ;;  %v6054_v15 = vld [vmem:[#allocation2 + $0x2c8] sm:$0xff]  ;;  %v6059_v44 = vld [vmem:[#allocation2 + $0x2a0] sm:$0xff] }
 0x699   :  { %2409 = vmatpush.msrb.mxu0 %v5347_v26  ;;  %7911 = vst [vmem:[#allocation47_spill] sm:$0xff] %v6051_v57  ;;  %v7914_v47 = vld [vmem:[#allocation80_spill] sm:$0xff] }
 0x69a   :  { %v3916_v21 = vpop.eup %3915  ;;  %2449 = vmatpush.msrb.mxu2 %v5341_v50  ;;  %7912 = vst [vmem:[#allocation50_spill] sm:$0xff] %v6054_v15  ;;  %v6062_v27 = vld [vmem:[#allocation2 + $0x2a8] sm:$0xff] }
 0x69b   :  { %v1925_v17 = vadd.f32 1.0, %v3916_v21  ;;  %2410 = vmatpush.msrb.mxu0 %v5359_v42  ;;  %v3918_v25 = vpop.eup %3917  ;;  %7915 = vst [vmem:[#allocation57_spill] sm:$0xff] %v6059_v44  ;;  %v7918_v21 = vld [vmem:[#allocation84_spill] sm:$0xff] }
 0x69c   :  { %2450 = vmatpush.msrb.mxu2 %v5353_v30  ;;  %v1942_v46 = vmul.f32 %v3918_v25, %v1900_v43  ;;  %7916 = vst [vmem:[#allocation20_spill] sm:$0xff] %v6062_v27  ;;  %v6070_v25 = vld [vmem:[#allocation2 + $0x288] sm:$0xff]  ;;  %v7921_v43 = vld [vmem:[#allocation94_spill] sm:$0xff] }
 0x69d   :  { %3919 = vrcp.f32 %v1925_v17  ;;  %2411 = vmatpush.msrb.mxu0 %v5371_v32  ;;  %vm1931_vm9 = vweird.f32 %v1925_v17  ;;  %7920 = vst [vmem:[#allocation21_spill] sm:$0xff] %v6070_v25  ;;  %v7922_v39 = vld [vmem:[#allocation88_spill] sm:$0xff] }
 0x69e   :  { %2451 = vmatpush.msrb.mxu2 %v5365_v28  ;;  %v5958_v26 = vadd.f32 %v1942_v46, %v1941_v45  ;;  %v1937_v28 = vand.u32 2147483648, %v1925_v17  ;;  %v6075_v45 = vld [vmem:[#allocation2 + $0x260] sm:$0xff]  ;;  %v6078_v46 = vld [vmem:[#allocation2 + $0x268] sm:$0xff] }
 0x69f   :  { %2412 = vmatpush.msrb.mxu0 %v5383_v23  ;;  %7923 = vst [vmem:[#allocation62_spill] sm:$0xff] %v6075_v45 }
 0x6a0   :  { %2452 = vmatpush.msrb.mxu2 %v5377_v34  ;;  %7880 = vst [vmem:[#allocation32_spill] sm:$0xff] %v5958_v26  ;;  %3921 = vtanh.f32 %v5958_v26  ;;  %v1935_v34 = vand.u32 2147483647, %v1925_v17  ;;  %v6327_v26 = vld [vmem:[#allocation2 + $0x50] sm:$0xff] }
 0x6a1   :  { %2413 = vmatpush.msrb.mxu0 %v5395_v11  ;;  %7924 = vst [vmem:[#allocation66_spill] sm:$0xff] %v6078_v46 }
 0x6a2   :  { %2453 = vmatpush.msrb.mxu2 %v5389_v37  ;;  %v1938_v37 = vor.u32 1.1754944e-38, %v1937_v28  ;;  %vm1936_vm11 = vcmp.eq.f32.partialorder %v1935_v34, 8.507059e+37  ;;  %v6091_v28 = vld [vmem:[#allocation2 + $0x220] sm:$0xff] }
 0x6a3   :  { %v3920_v50 = vpop.eup %3919  ;;  %2414 = vmatpush.msrb.mxu0 %v5407_v1  ;;  %7928 = vst [vmem:[#allocation64_spill] sm:$0xff] %v6091_v28  ;;  %v6099_v34 = vld [vmem:[#allocation2 + $0x200] sm:$0xff] }
 0x6a4   :  { %v1927_v30 = vmul.f32 %v3920_v50, %v1925_v17  ;;  %2454 = vmatpush.msrb.mxu2 %v5401_v41  ;;  %vm1932_vm8 = vweird.f32 %v3920_v50  ;;  %v6067_v17 = vld [vmem:[#allocation2 + $0x280] sm:$0xff] }
 0x6a5   :  { %2415 = vmatpush.msrb.mxu0 %v5419_v60  ;;  %vm1933_vm10 = vmor %vm1931_vm9, %vm1932_vm8  ;;  %v7881_v60 = vld [vmem:[#allocation36_spill] sm:$0xff]  ;;  %7919 = vst [vmem:[#allocation19_spill] sm:$0xff] %v6067_v17 }
 0x6a6   :  { %v1928_v42 = vsub.f32 1.0, %v1927_v30  ;;  %2455 = vmatpush.msrb.mxu2 %v5413_v53  ;;  %v3922_v41 = vpop.eup %3921  ;;  %v6083_v30 = vld [vmem:[#allocation2 + $0x240] sm:$0xff] }
 0x6a7   :  { %2416 = vmatpush.msrb.mxu0 %v5431_v3  ;;  %7926 = vst [vmem:[#allocation60_spill] sm:$0xff] %v6083_v30 }
 0x6a8   :  { %v1929_v32 = vmul.f32 %v3920_v50, %v1928_v42  ;;  %2456 = vmatpush.msrb.mxu2 %v5425_v54  ;;  %v7882_v54 = vld [vmem:[#allocation52_spill] sm:$0xff] }
 0x6a9   :  { %2417 = vmatpush.msrb.mxu0 %v7792_v49  ;;  %v7884_v49 = vld [vmem:[#allocation40_spill] sm:$0xff]  ;;  %7930 = vst [vmem:[#allocation52_spill] sm:$0xff] %v6099_v34 }
 0x6aa   :  { %v1930_v23 = vadd.f32 %v3920_v50, %v1929_v32  ;;  %2457 = vmatpush.msrb.mxu2 %v5437_v5  ;;  %v7883_v5 = vld [vmem:[#allocation43_spill] sm:$0xff] }
 0x6ab   :  { %2418 = vmatpush.msrb.mxu0 %v7796_v14  ;;  %v7885_v14 = vld [vmem:[#allocation45_spill] sm:$0xff]  ;;  %v6086_v42 = vld [vmem:[#allocation2 + $0x248] sm:$0xff] }
 0x6ac   :  { %v1934_v11 = vsel %vm1933_vm10, %v3920_v50, %v1930_v23  ;;  %2458 = vmatpush.msrb.mxu2 %v7795_v13  ;;  %v7925_v50 = vld [vmem:[#allocation92_spill] sm:$0xff]  ;;  %7927 = vst [vmem:[#allocation70_spill] sm:$0xff] %v6086_v42 }
 0x6ad   :  { %v1939_v1 = vsel %vm1936_vm11, %v1938_v37, %v1934_v11  ;;  %2419 = vmatpush.msrb.mxu0 %v7800_v40  ;;  %v5984_v40 = vld [vmem:[#allocation2 + $0x3e8] sm:$0xff]  ;;  %v6108_v37 = vld [vmem:[#allocation2 + $0x3f8] sm:$0xff]  ;;  %v6111_v11 = vld [vmem:[#allocation2 + $0x1e0] sm:$0xff] }
 0x6ae   :  { %v1945_v53 = vmul.f32 %v3922_v41, %v1939_v1  ;;  %2459 = vmatpush.msrb.mxu2 %v7799_v35  ;;  %2420 = vmatmul.f32.vlgmr.msrb.gmra.mxu0 %v7882_v54  ;;  %v5981_v35 = vld [vmem:[#allocation2 + $0x3e0] sm:$0xff]  ;;  %7887 = vst [vmem:[#allocation26_spill] sm:$0xff] %v5984_v40  ;;  %v6094_v32 = vld [vmem:[#allocation2 + $0x228] sm:$0xff]  ;;  %v6117_v1 = vld [vmem:[#allocation2 + $0x3d0] sm:$0xff] }
 0x6af   :  { %2484 = vmatpush.msra.mxu0 %v7803_v12  ;;  %2460 = vmatmul.f32.vlgmr.msrb.gmra.mxu2 %v7882_v54  ;;  %7886 = vst [vmem:[#allocation31_spill] sm:$0xff] %v5981_v35  ;;  %v5989_v12 = vld [vmem:[#allocation2 + $0x3c0] sm:$0xff]  ;;  %v6102_v23 = vld [vmem:[#allocation2 + $0x208] sm:$0xff] }
 0x6b0   :  { %2524 = vmatpush.msra.mxu2 %v7881_v60  ;;  %v1947_v3 = vrot.slane %v1945_v53, 6  ;;  %7888 = vst [vmem:[#allocation33_spill] sm:$0xff] %v5989_v12  ;;  %v6114_v41 = vld [vmem:[#allocation2 + $0x1e8] sm:$0xff]  ;;  %v6120_v53 = vld [vmem:[#allocation2 + $0x3d8] sm:$0xff]  ;;  %v6123_v60 = vld [vmem:[#allocation2 + $0x1c0] sm:$0xff] }
 0x6b1   :  { %2485 = vmatpush.msra.mxu0 %v7883_v5  ;;  %7929 = vst [vmem:[#allocation36_spill] sm:$0xff] %v6094_v32  ;;  %v6130_v5 = vld [vmem:[#allocation2 + $0x3b8] sm:$0xff] }
 0x6b2   :  { %2525 = vmatpush.msra.mxu2 %v7884_v49  ;;  %v1948_v13 = vrot.slane %v1947_v3, 2  ;;  %7931 = vst [vmem:[#allocation43_spill] sm:$0xff] %v6102_v23  ;;  %v7936_v3 = vld [vmem:[#allocation53_spill] sm:$0xff]  ;;  %v6133_v49 = vld [vmem:[#allocation2 + $0x1a0] sm:$0xff] }
 0x6b3   :  { %2486 = vmatpush.msra.mxu0 %v7885_v14  ;;  %7933 = vst [vmem:[#allocation45_spill] sm:$0xff] %v6108_v37  ;;  %v7938_v14 = vld [vmem:[#allocation59_spill] sm:$0xff] }
 0x6b4   :  { %2526 = vmatpush.msra.mxu2 %v7813_v51  ;;  %1986 = vmatmul.f32.vlgmr.msrb.gmra.mxu1 %v1948_v13  ;;  %v5997_v51 = vld [vmem:[#allocation2 + $0x3a0] sm:$0xff] }
 0x6b5   :  { %2026 = vmatmul.f32.vlgmr.msrb.gmra.mxu3 %v1948_v13  ;;  %2197 = vmatpush.msrb.mxu1 %v5981_v35  ;;  %7890 = vst [vmem:[#allocation37_spill] sm:$0xff] %v5997_v51  ;;  %v6324_v35 = vld [vmem:[#allocation2 + $0x78] sm:$0xff] }
 0x6b6   :  { %2237 = vmatpush.msrb.mxu3 %v5984_v40  ;;  %2487 = vmatpush.msra.mxu0 %v7815_v48  ;;  %v7892_v48 = vld [vmem:[#allocation56_spill] sm:$0xff] }
 0x6b7   :  { %2527 = vmatpush.msra.mxu2 %v7817_v20  ;;  %2198 = vmatpush.msrb.mxu1 %v5989_v12  ;;  %v6005_v20 = vld [vmem:[#allocation2 + $0x380] sm:$0xff]  ;;  %7934 = vst [vmem:[#allocation56_spill] sm:$0xff] %v6117_v1  ;;  %v6318_v12 = vld [vmem:[#allocation2 + $0x98] sm:$0xff]  ;;  %v6321_v40 = vld [vmem:[#allocation2 + $0x70] sm:$0xff] }
 0x6b8   :  { %2238 = vmatpush.msrb.mxu3 %v5992_v58  ;;  %2488 = vmatpush.msra.mxu0 %v7819_v0  ;;  %7893 = vst [vmem:[#allocation39_spill] sm:$0xff] %v6005_v20  ;;  %v6011_v0 = vld [vmem:[#allocation2 + $0x360] sm:$0xff]  ;;  %v6315_v58 = vld [vmem:[#allocation2 + $0x90] sm:$0xff] }
 0x6b9   :  { %2528 = vmatpush.msra.mxu2 %v7821_v19  ;;  %2199 = vmatpush.msrb.mxu1 %v5997_v51  ;;  %7895 = vst [vmem:[#allocation34_spill] sm:$0xff] %v6011_v0  ;;  %v6014_v19 = vld [vmem:[#allocation2 + $0x368] sm:$0xff]  ;;  %v6312_v51 = vld [vmem:[#allocation2 + $0xb8] sm:$0xff] }
 0x6ba   :  { %2239 = vmatpush.msrb.mxu3 %v6000_v36  ;;  %2489 = vmatpush.msra.mxu0 %v7863_v63  ;;  %7896 = vst [vmem:[#allocation48_spill] sm:$0xff] %v6014_v19  ;;  %v6019_v63 = vld [vmem:[#allocation2 + $0x340] sm:$0xff]  ;;  %v6309_v36 = vld [vmem:[#allocation2 + $0xb0] sm:$0xff] }
 0x6bb   :  { %2529 = vmatpush.msra.mxu2 %v7892_v48  ;;  %2200 = vmatpush.msrb.mxu1 %v6005_v20  ;;  %7897 = vst [vmem:[#allocation38_spill] sm:$0xff] %v6019_v63  ;;  %v6140_v48 = vld [vmem:[#allocation2 + $0x398] sm:$0xff] }
 0x6bc   :  { %2240 = vmatpush.msrb.mxu3 %v6008_v59  ;;  %2066 = vmatmul.f32.vlgmr.msra.gmra.mxu1 %v1948_v13  ;;  %v6303_v59 = vld [vmem:[#allocation2 + $0xd0] sm:$0xff]  ;;  %v6306_v20 = vld [vmem:[#allocation2 + $0xd8] sm:$0xff] }
 0x6bd   :  { %2106 = vmatmul.f32.vlgmr.msra.gmra.mxu3 %v1948_v13  ;;  %2201 = vmatpush.msrb.mxu1 %v6011_v0  ;;  %v6136_v13 = vld [vmem:[#allocation2 + $0x1a8] sm:$0xff]  ;;  %v6300_v0 = vld [vmem:[#allocation2 + $0xf8] sm:$0xff] }
 0x6be   :  { %2241 = vmatpush.msrb.mxu3 %v6014_v19  ;;  %2490 = vmatpush.msra.mxu0 %v7865_v16  ;;  %v7902_v16 = vld [vmem:[#allocation68_spill] sm:$0xff]  ;;  %7975 = vst [vmem:[#allocation59_spill] sm:$0xff] %v6300_v0 }
 0x6bf   :  { %2530 = vmatpush.msra.mxu2 %v7866_v6  ;;  %2202 = vmatpush.msrb.mxu1 %v6019_v63  ;;  %v7901_v6 = vld [vmem:[#allocation74_spill] sm:$0xff]  ;;  %7937 = vst [vmem:[#allocation68_spill] sm:$0xff] %v6130_v5  ;;  %v6297_v19 = vld [vmem:[#allocation2 + $0xf0] sm:$0xff] }
 0x6c0   :  { %2242 = vmatpush.msrb.mxu3 %v6022_v4  ;;  %2491 = vmatpush.msra.mxu0 %v7867_v2  ;;  %v7905_v2 = vld [vmem:[#allocation78_spill] sm:$0xff]  ;;  %7935 = vst [vmem:[#allocation74_spill] sm:$0xff] %v6120_v53  ;;  %v6291_v4 = vld [vmem:[#allocation2 + $0x110] sm:$0xff] }
 0x6c1   :  { %2531 = vmatpush.msra.mxu2 %v7868_v24  ;;  %2203 = vmatpush.msrb.mxu1 %v6027_v22  ;;  %v7906_v24 = vld [vmem:[#allocation72_spill] sm:$0xff]  ;;  %7939 = vst [vmem:[#allocation78_spill] sm:$0xff] %v6140_v48  ;;  %v6288_v22 = vld [vmem:[#allocation2 + $0x138] sm:$0xff] }
 0x6c2   :  { %2243 = vmatpush.msrb.mxu3 %v6030_v29  ;;  %2492 = vmatpush.msra.mxu0 %v7901_v6  ;;  %v6143_v6 = vld [vmem:[#allocation2 + $0x180] sm:$0xff]  ;;  %v6285_v29 = vld [vmem:[#allocation2 + $0x130] sm:$0xff]  ;;  %7972 = vst [vmem:[#allocation88_spill] sm:$0xff] %v6291_v4  ;;  %v6294_v63 = vld [vmem:[#allocation2 + $0x118] sm:$0xff] }
 0x6c3   :  { %2532 = vmatpush.msra.mxu2 %v7902_v16  ;;  %2204 = vmatpush.msrb.mxu1 %v6035_v8  ;;  %v6146_v16 = vld [vmem:[#allocation2 + $0x188] sm:$0xff]  ;;  %v6282_v8 = vld [vmem:[#allocation2 + $0x158] sm:$0xff]  ;;  %7973 = vst [vmem:[#allocation92_spill] sm:$0xff] %v6294_v63 }
 0x6c4   :  { %2244 = vmatpush.msrb.mxu3 %v6038_v56  ;;  %2493 = vmatpush.msra.mxu0 %v7905_v2  ;;  %v7940_v2 = vld [vmem:[#allocation63_spill] sm:$0xff]  ;;  %v6279_v56 = vld [vmem:[#allocation2 + $0x150] sm:$0xff]  ;;  %7974 = vst [vmem:[#allocation53_spill] sm:$0xff] %v6297_v19 }
 0x6c5   :  { %2533 = vmatpush.msra.mxu2 %v7906_v24  ;;  %2205 = vmatpush.msrb.mxu1 %v6043_v61  ;;  %v6150_v24 = vld [vmem:[#allocation2 + $0x378] sm:$0xff]  ;;  %7976 = vst [vmem:[#allocation63_spill] sm:$0xff] %v6303_v59 }
 0x6c6   :  { %2245 = vmatpush.msrb.mxu3 %v6046_v52  ;;  %2494 = vmatpush.msra.mxu0 %v7909_v7  ;;  %7941 = vst [vmem:[#allocation72_spill] sm:$0xff] %v6150_v24  ;;  %v6153_v7 = vld [vmem:[#allocation2 + $0x160] sm:$0xff]  ;;  %v6273_v52 = vld [vmem:[#allocation2 + $0x170] sm:$0xff]  ;;  %v6276_v61 = vld [vmem:[#allocation2 + $0x178] sm:$0xff] }
 0x6c7   :  { %2534 = vmatpush.msra.mxu2 %v7910_v10  ;;  %2206 = vmatpush.msrb.mxu1 %v6051_v57  ;;  %v6156_v10 = vld [vmem:[#allocation2 + $0x168] sm:$0xff]  ;;  %v6270_v57 = vld [vmem:[#allocation2 + $0x198] sm:$0xff]  ;;  %7971 = vst [vmem:[#allocation94_spill] sm:$0xff] %v6276_v61 }
 0x6c8   :  { %2246 = vmatpush.msrb.mxu3 %v6054_v15  ;;  %2495 = vmatpush.msra.mxu0 %v7913_v31  ;;  %v7942_v31 = vld [vmem:[#allocation67_spill] sm:$0xff]  ;;  %v6267_v15 = vld [vmem:[#allocation2 + $0x190] sm:$0xff] }
 0x6c9   :  { %2535 = vmatpush.msra.mxu2 %v7914_v47  ;;  %2207 = vmatpush.msrb.mxu1 %v6059_v44  ;;  %v7943_v47 = vld [vmem:[#allocation61_spill] sm:$0xff]  ;;  %7977 = vst [vmem:[#allocation67_spill] sm:$0xff] %v6306_v20 }
 0x6ca   :  { %2247 = vmatpush.msrb.mxu3 %v6062_v27  ;;  %2496 = vmatpush.msra.mxu0 %v7917_v62  ;;  %v6161_v62 = vld [vmem:[#allocation2 + $0x140] sm:$0xff]  ;;  %v6261_v27 = vld [vmem:[#allocation2 + $0x1b0] sm:$0xff]  ;;  %v6264_v44 = vld [vmem:[#allocation2 + $0x1b8] sm:$0xff]  ;;  %7978 = vst [vmem:[#allocation61_spill] sm:$0xff] %v6312_v51 }
 0x6cb   :  { %2536 = vmatpush.msra.mxu2 %v7918_v21  ;;  %2208 = vmatpush.msrb.mxu1 %v6067_v17  ;;  %v6164_v21 = vld [vmem:[#allocation2 + $0x148] sm:$0xff]  ;;  %v7970_v17 = vld [vmem:[#allocation54_spill] sm:$0xff] }
 0x6cc   :  { %2248 = vmatpush.msrb.mxu3 %v6070_v25  ;;  %2497 = vmatpush.msra.mxu0 %v7921_v43  ;;  %v7944_v43 = vld [vmem:[#allocation71_spill] sm:$0xff] }
 0x6cd   :  { %2537 = vmatpush.msra.mxu2 %v7922_v39  ;;  %2209 = vmatpush.msrb.mxu1 %v6075_v45  ;;  %v7945_v39 = vld [vmem:[#allocation65_spill] sm:$0xff]  ;;  %v6241_v45 = vld [vmem:[#allocation2] sm:$0xff]  ;;  %v6244_v25 = vld [vmem:[#allocation2 + $0x8] sm:$0xff]  ;;  %7979 = vst [vmem:[#allocation71_spill] sm:$0xff] %v6315_v58 }
 0x6ce   :  { %2249 = vmatpush.msrb.mxu3 %v6078_v46  ;;  %2498 = vmatpush.msra.mxu0 %v5653_v33  ;;  %v6236_v46 = vld [vmem:[#allocation2 + $0x28] sm:$0xff]  ;;  %7980 = vst [vmem:[#allocation65_spill] sm:$0xff] %v6318_v12 }
 0x6cf   :  { %2538 = vmatpush.msra.mxu2 %v7925_v50  ;;  %2210 = vmatpush.msrb.mxu1 %v6083_v30  ;;  %v6169_v50 = vld [vmem:[#allocation2 + $0x120] sm:$0xff] }
 0x6d0   :  { %2250 = vmatpush.msrb.mxu3 %v6086_v42  ;;  %2499 = vmatpush.msra.mxu0 %v5663_v55  ;;  %v6228_v42 = vld [vmem:[#allocation2 + $0x48] sm:$0xff]  ;;  %v6233_v30 = vld [vmem:[#allocation2 + $0x20] sm:$0xff] }
 0x6d1   :  { %2539 = vmatpush.msra.mxu2 %v5647_v9  ;;  %2211 = vmatpush.msrb.mxu1 %v6091_v28  ;;  %v6105_v9 = vld [vmem:[#allocation2 + $0x3f0] sm:$0xff]  ;;  %v6225_v28 = vld [vmem:[#allocation2 + $0x40] sm:$0xff] }
 0x6d2   :  { %2251 = vmatpush.msrb.mxu3 %v6094_v32  ;;  %2500 = vmatmul.f32.vlgmr.msra.gmra.mxu0 %v7882_v54  ;;  %7932 = vst [vmem:[#allocation40_spill] sm:$0xff] %v6105_v9  ;;  %v6220_v32 = vld [vmem:[#allocation2 + $0x68] sm:$0xff] }
 0x6d3   :  { %2540 = vmatmul.f32.vlgmr.msra.gmra.mxu2 %v7882_v54  ;;  %2212 = vmatpush.msrb.mxu1 %v6099_v34  ;;  %v6126_v54 = vld [vmem:[#allocation2 + $0x1c8] sm:$0xff]  ;;  %v6217_v34 = vld [vmem:[#allocation2 + $0x60] sm:$0xff]  ;;  %7961 = vst [vmem:[#allocation80_spill] sm:$0xff] %v6220_v32 }
 0x6d4   :  { %2252 = vmatpush.msrb.mxu3 %v6102_v23  ;;  %2627 = vmatpush.msrb.mxu0 %v6111_v11  ;;  %v6212_v23 = vld [vmem:[#allocation2 + $0x88] sm:$0xff]  ;;  %7964 = vst [vmem:[#allocation90_spill] sm:$0xff] %v6225_v28 }
 0x6d5   :  { %2277 = vmatpush.msra.mxu1 %v6105_v9  ;;  %2667 = vmatpush.msrb.mxu2 %v6114_v41  ;;  %v6209_v9 = vld [vmem:[#allocation2 + $0x80] sm:$0xff] }
 0x6d6   :  { %2317 = vmatpush.msra.mxu3 %v6108_v37  ;;  %2628 = vmatpush.msrb.mxu0 %v6123_v60  ;;  %v6204_v37 = vld [vmem:[#allocation2 + $0xa8] sm:$0xff]  ;;  %7958 = vst [vmem:[#allocation86_spill] sm:$0xff] %v6209_v9 }
 0x6d7   :  { %2278 = vmatpush.msra.mxu1 %v6117_v1  ;;  %2668 = vmatpush.msrb.mxu2 %v6126_v54  ;;  %v6201_v1 = vld [vmem:[#allocation2 + $0xa0] sm:$0xff]  ;;  %7955 = vst [vmem:[#allocation76_spill] sm:$0xff] %v6204_v37 }
 0x6d8   :  { %2318 = vmatpush.msra.mxu3 %v6120_v53  ;;  %2629 = vmatpush.msrb.mxu0 %v6133_v49  ;;  %v6196_v53 = vld [vmem:[#allocation2 + $0xc8] sm:$0xff] }
 0x6d9   :  { %2279 = vmatpush.msra.mxu1 %v7936_v3  ;;  %2669 = vmatpush.msrb.mxu2 %v6136_v13  ;;  %v6172_v3 = vld [vmem:[#allocation2 + $0x128] sm:$0xff]  ;;  %7952 = vst [vmem:[#allocation82_spill] sm:$0xff] %v6196_v53 }
 0x6da   :  { %2319 = vmatpush.msra.mxu3 %v6130_v5  ;;  %2630 = vmatpush.msrb.mxu0 %v6143_v6  ;;  %v6193_v5 = vld [vmem:[#allocation2 + $0xc0] sm:$0xff] }
 0x6db   :  { %2280 = vmatpush.msra.mxu1 %v7938_v14  ;;  %2670 = vmatpush.msrb.mxu2 %v6146_v16  ;;  %v7946_v14 = vld [vmem:[#allocation75_spill] sm:$0xff] }
 0x6dc   :  { %2320 = vmatpush.msra.mxu3 %v6140_v48  ;;  %2631 = vmatpush.msrb.mxu0 %v6153_v7  ;;  %v6188_v48 = vld [vmem:[#allocation2 + $0xe8] sm:$0xff]  ;;  %7981 = vst [vmem:[#allocation75_spill] sm:$0xff] %v6321_v40 }
 0x6dd   :  { %2281 = vmatpush.msra.mxu1 %v7940_v2  ;;  %2671 = vmatpush.msrb.mxu2 %v6156_v10  ;;  %v7947_v2 = vld [vmem:[#allocation69_spill] sm:$0xff] }
 0x6de   :  { %2321 = vmatpush.msra.mxu3 %v6150_v24  ;;  %2632 = vmatpush.msrb.mxu0 %v6161_v62  ;;  %v6185_v24 = vld [vmem:[#allocation2 + $0xe0] sm:$0xff]  ;;  %7982 = vst [vmem:[#allocation69_spill] sm:$0xff] %v6324_v35 }
 0x6df   :  { %2282 = vmatpush.msra.mxu1 %v7942_v31  ;;  %2672 = vmatpush.msrb.mxu2 %v6164_v21  ;;  %v6177_v31 = vld [vmem:[#allocation2 + $0x100] sm:$0xff] }
 0x6e0   :  { %2322 = vmatpush.msra.mxu3 %v7943_v47  ;;  %2633 = vmatpush.msrb.mxu0 %v6169_v50  ;;  %v6180_v47 = vld [vmem:[#allocation2 + $0x108] sm:$0xff] }
 0x6e1   :  { %2283 = vmatpush.msra.mxu1 %v7944_v43  ;;  %2673 = vmatpush.msrb.mxu2 %v6172_v3  ;;  %v7948_v43 = vld [vmem:[#allocation79_spill] sm:$0xff] }
 0x6e2   :  { %2323 = vmatpush.msra.mxu3 %v7945_v39  ;;  %2634 = vmatpush.msrb.mxu0 %v6177_v31  ;;  %v7949_v39 = vld [vmem:[#allocation73_spill] sm:$0xff]  ;;  %7983 = vst [vmem:[#allocation79_spill] sm:$0xff] %v6327_v26 }
 0x6e3   :  { %2284 = vmatpush.msra.mxu1 %v7946_v14  ;;  %2674 = vmatpush.msrb.mxu2 %v6180_v47  ;;  %v7950_v14 = vld [vmem:[#allocation83_spill] sm:$0xff] }
 0x6e4   :  { %2324 = vmatpush.msra.mxu3 %v7947_v2  ;;  %2635 = vmatpush.msrb.mxu0 %v6185_v24  ;;  %v7951_v2 = vld [vmem:[#allocation77_spill] sm:$0xff] }
 0x6e5   :  { %2285 = vmatpush.msra.mxu1 %v7948_v43  ;;  %2675 = vmatpush.msrb.mxu2 %v6188_v48  ;;  %v7953_v43 = vld [vmem:[#allocation87_spill] sm:$0xff] }
 0x6e6   :  { %2325 = vmatpush.msra.mxu3 %v7949_v39  ;;  %2636 = vmatpush.msrb.mxu0 %v6193_v5  ;;  %v7954_v39 = vld [vmem:[#allocation81_spill] sm:$0xff] }
 0x6e7   :  { %2286 = vmatpush.msra.mxu1 %v7950_v14  ;;  %2676 = vmatpush.msrb.mxu2 %v6196_v53  ;;  %v7956_v14 = vld [vmem:[#allocation91_spill] sm:$0xff] }
 0x6e8   :  { %2326 = vmatpush.msra.mxu3 %v7951_v2  ;;  %2637 = vmatpush.msrb.mxu0 %v6201_v1  ;;  %v7957_v2 = vld [vmem:[#allocation85_spill] sm:$0xff] }
 0x6e9   :  { %2287 = vmatpush.msra.mxu1 %v7953_v43  ;;  %2677 = vmatpush.msrb.mxu2 %v6204_v37  ;;  %v7959_v43 = vld [vmem:[#allocation95_spill] sm:$0xff] }
 0x6ea   :  { %2327 = vmatpush.msra.mxu3 %v7954_v39  ;;  %2638 = vmatpush.msrb.mxu0 %v6209_v9  ;;  %v7960_v39 = vld [vmem:[#allocation89_spill] sm:$0xff] }
 0x6eb   :  { %2288 = vmatpush.msra.mxu1 %v7956_v14  ;;  %2678 = vmatpush.msrb.mxu2 %v6212_v23  ;;  %v7962_v14 = vld [vmem:[#allocation97_spill] sm:$0xff] }
 0x6ec   :  { %2328 = vmatpush.msra.mxu3 %v7957_v2  ;;  %2639 = vmatpush.msrb.mxu0 %v6217_v34  ;;  %v7963_v2 = vld [vmem:[#allocation93_spill] sm:$0xff] }
 0x6ed   :  { %2289 = vmatpush.msra.mxu1 %v7959_v43  ;;  %2679 = vmatpush.msrb.mxu2 %v6220_v32  ;;  %v7965_v43 = vld [vmem:[#allocation99_spill] sm:$0xff] }
 0x6ee   :  { %2329 = vmatpush.msra.mxu3 %v7960_v39  ;;  %2640 = vmatpush.msrb.mxu0 %v6225_v28  ;;  %v7966_v39 = vld [vmem:[#allocation96_spill] sm:$0xff] }
 0x6ef   :  { %2290 = vmatpush.msra.mxu1 %v7962_v14  ;;  %2680 = vmatpush.msrb.mxu2 %v6228_v42  ;;  %v7967_v14 = vld [vmem:[#allocation100_spill] sm:$0xff] }
 0x6f0   :  { %2330 = vmatpush.msra.mxu3 %v7963_v2  ;;  %2641 = vmatpush.msrb.mxu0 %v6233_v30  ;;  %v7968_v2 = vld [vmem:[#allocation98_spill] sm:$0xff] }
 0x6f1   :  { %2291 = vmatpush.msra.mxu1 %v7965_v43  ;;  %2681 = vmatpush.msrb.mxu2 %v6236_v46  ;;  %v6247_v43 = vld [vmem:[#allocation2 + $0x1f0] sm:$0xff] }
 0x6f2   :  { %2331 = vmatpush.msra.mxu3 %v7966_v39  ;;  %2642 = vmatpush.msrb.mxu0 %v6241_v45  ;;  %7969 = vst [vmem:[#allocation84_spill] sm:$0xff] %v6247_v43  ;;  %v6250_v39 = vld [vmem:[#allocation2 + $0x1f8] sm:$0xff] }
 0x6f3   :  { %2292 = vmatpush.msra.mxu1 %v7967_v14  ;;  %2682 = vmatpush.msrb.mxu2 %v6244_v25  ;;  %v6255_v14 = vld [vmem:[#allocation2 + $0x1d0] sm:$0xff] }
 0x6f4   :  { %2332 = vmatpush.msra.mxu3 %v7968_v2  ;;  %2707 = vmatpush.msra.mxu0 %v6247_v43  ;;  %v6258_v2 = vld [vmem:[#allocation2 + $0x1d8] sm:$0xff] }
 0x6f5   :  { %2747 = vmatpush.msra.mxu2 %v6250_v39  ;;  %2643 = vmatmul.f32.vlgmr.msrb.gmra.mxu0 %v7970_v17 }
 0x6f6   :  { %2683 = vmatmul.f32.vlgmr.msrb.gmra.mxu2 %v7970_v17  ;;  %2708 = vmatpush.msra.mxu0 %v6255_v14 }
 0x6f7   :  { %2748 = vmatpush.msra.mxu2 %v6258_v2 }
 0x6f8   :  { %2709 = vmatpush.msra.mxu0 %v6261_v27 }
 0x6f9   :  { %2749 = vmatpush.msra.mxu2 %v6264_v44 }
 0x6fa   :  { %2710 = vmatpush.msra.mxu0 %v6267_v15 }
 0x6fb   :  { %2750 = vmatpush.msra.mxu2 %v6270_v57 }
 0x6fc   :  { %2711 = vmatpush.msra.mxu0 %v6273_v52 }
 0x6fd   :  { %2751 = vmatpush.msra.mxu2 %v6276_v61 }
 0x6fe   :  { %2712 = vmatpush.msra.mxu0 %v6279_v56 }
 0x6ff   :  { %2752 = vmatpush.msra.mxu2 %v6282_v8 }
 0x700   :  { %2713 = vmatpush.msra.mxu0 %v6285_v29 }
 0x701   :  { %2753 = vmatpush.msra.mxu2 %v6288_v22 }
 0x702   :  { %2714 = vmatpush.msra.mxu0 %v6291_v4 }
 0x703   :  { %2754 = vmatpush.msra.mxu2 %v6294_v63 }
 0x704   :  { %2715 = vmatpush.msra.mxu0 %v6297_v19 }
 0x705   :  { %2755 = vmatpush.msra.mxu2 %v6300_v0 }
 0x706   :  { %2716 = vmatpush.msra.mxu0 %v6303_v59 }
 0x707   :  { %2756 = vmatpush.msra.mxu2 %v6306_v20 }
 0x708   :  { %2717 = vmatpush.msra.mxu0 %v6309_v36 }
 0x709   :  { %2757 = vmatpush.msra.mxu2 %v6312_v51  ;;  %v6330_v51 = vld [vmem:[#allocation2 + $0x58] sm:$0xff] }
 0x70a   :  { %2718 = vmatpush.msra.mxu0 %v6315_v58  ;;  %7984 = vst [vmem:[#allocation73_spill] sm:$0xff] %v6330_v51  ;;  %v6334_v58 = vld [vmem:[#allocation2 + $0x38] sm:$0xff] }
 0x70b   :  { %2758 = vmatpush.msra.mxu2 %v6318_v12  ;;  %7985 = vst [vmem:[#allocation83_spill] sm:$0xff] %v6334_v58 }
 0x70c   :  { %2719 = vmatpush.msra.mxu0 %v6321_v40  ;;  %v6338_v40 = vld [vmem:[#allocation2 + $0x18] sm:$0xff] }
 0x70d   :  { %2759 = vmatpush.msra.mxu2 %v6324_v35  ;;  %7986 = vst [vmem:[#allocation77_spill] sm:$0xff] %v6338_v40 }
 0x70e   :  { %2720 = vmatpush.msra.mxu0 %v6327_v26 }
 0x70f   :  { %2760 = vmatpush.msra.mxu2 %v6330_v51 }
 0x710   :  { %2721 = vmatpush.msra.mxu0 %v5653_v33  ;;  %v7987_v33 = vld [vmem:[#allocation28_spill] sm:$0xff] }
 0x711   :  { %2761 = vmatpush.msra.mxu2 %v6334_v58 }
 0x712   :  { %2722 = vmatpush.msra.mxu0 %v5663_v55  ;;  %v1967_v55 = vpop.f32.mrf.mxu0 }
 0x713   :  { %2762 = vmatpush.msra.mxu2 %v6338_v40  ;;  %2723 = vmatmul.f32.vlgmr.msra.gmra.mxu0 %v7970_v17 }
 0x714   :  { %2763 = vmatmul.f32.vlgmr.msra.gmra.mxu2 %v7970_v17  ;;  %2854 = vmatpush.msrb.mxu0 %v6111_v11  ;;  %v1968_v17 = vadd.f32 %v1967_v55, %v7987_v33  ;;  %v7988_v33 = vld [vmem:[#allocation27_spill] sm:$0xff] }
 0x715   :  { %2894 = vmatpush.msrb.mxu2 %v6114_v41 }
 0x716   :  { %2855 = vmatpush.msrb.mxu0 %v6123_v60 }
 0x717   :  { %2895 = vmatpush.msrb.mxu2 %v6126_v54 }
 0x718   :  { %2856 = vmatpush.msrb.mxu0 %v6133_v49 }
 0x719   :  { %2896 = vmatpush.msrb.mxu2 %v6136_v13 }
 0x71a   :  { %2857 = vmatpush.msrb.mxu0 %v6143_v6 }
 0x71b   :  { %2897 = vmatpush.msrb.mxu2 %v6146_v16 }
 0x71c   :  { %2858 = vmatpush.msrb.mxu0 %v6153_v7 }
 0x71d   :  { %2898 = vmatpush.msrb.mxu2 %v6156_v10 }
 0x71e   :  { %2859 = vmatpush.msrb.mxu0 %v6161_v62 }
 0x71f   :  { %2899 = vmatpush.msrb.mxu2 %v6164_v21 }
 0x720   :  { %2860 = vmatpush.msrb.mxu0 %v6169_v50 }
 0x721   :  { %2900 = vmatpush.msrb.mxu2 %v6172_v3 }
 0x722   :  { %2861 = vmatpush.msrb.mxu0 %v6177_v31 }
 0x723   :  { %2901 = vmatpush.msrb.mxu2 %v6180_v47 }
 0x724   :  { %2862 = vmatpush.msrb.mxu0 %v6185_v24 }
 0x725   :  { %2902 = vmatpush.msrb.mxu2 %v6188_v48 }
 0x726   :  { %2863 = vmatpush.msrb.mxu0 %v6193_v5 }
 0x727   :  { %2903 = vmatpush.msrb.mxu2 %v6196_v53  ;;  %v2007_v53 = vpop.f32.mrf.mxu2 }
 0x728   :  { %2864 = vmatpush.msrb.mxu0 %v6201_v1 }
 0x729   :  { %2904 = vmatpush.msrb.mxu2 %v6204_v37 }
 0x72a   :  { %2865 = vmatpush.msrb.mxu0 %v6209_v9 }
 0x72b   :  { %2905 = vmatpush.msrb.mxu2 %v6212_v23 }
 0x72c   :  { %2866 = vmatpush.msrb.mxu0 %v6217_v34 }
 0x72d   :  { %2906 = vmatpush.msrb.mxu2 %v6220_v32  ;;  %v7989_v32 = vld [vmem:[#allocation22_spill] sm:$0xff] }
 0x72e   :  { %2867 = vmatpush.msrb.mxu0 %v6225_v28  ;;  %v2008_v28 = vadd.f32 %v2007_v53, %v7988_v33 }
 0x72f   :  { %2907 = vmatpush.msrb.mxu2 %v6228_v42 }
 0x730   :  { %2868 = vmatpush.msrb.mxu0 %v6233_v30 }
 0x731   :  { %2908 = vmatpush.msrb.mxu2 %v6236_v46  ;;  %v1987_v37 = vpop.f32.mrf.mxu1 }
 0x732   :  { %v1988_v9 = vadd.f32 %v1987_v37, %v1968_v17  ;;  %2869 = vmatpush.msrb.mxu0 %v6241_v45 }
 0x733   :  { %2909 = vmatpush.msrb.mxu2 %v6244_v25  ;;  %2870 = vmatmul.f32.vlgmr.msrb.gmra.mxu0 %v7989_v32 }
 0x734   :  { %2934 = vmatpush.msra.mxu0 %v6247_v43  ;;  %v3683_v55 = vmul.f32 -1.442695, %v1988_v9  ;;  %2910 = vmatmul.f32.vlgmr.msrb.gmra.mxu2 %v7989_v32  ;;  %v2087_v43 = vpop.f32.mrf.mxu2 }
 0x735   :  { %2974 = vmatpush.msra.mxu2 %v6250_v39 }
 0x736   :  { %2935 = vmatpush.msra.mxu0 %v6255_v14  ;;  %3923 = vpow2.f32 %v3683_v55  ;;  %v2088_v55 = vadd.f32 %v2087_v43, %v5897_v18  ;;  %v2047_v43 = vpop.f32.mrf.mxu0  ;;  %v7990_v18 = vld [vmem:[#allocation61_spill] sm:$0xff] }
 0x737   :  { %2975 = vmatpush.msra.mxu2 %v6258_v2 }
 0x738   :  { %v2027_v37 = vpop.f32.mrf.mxu3  ;;  %2936 = vmatpush.msra.mxu0 %v6261_v27 }
 0x739   :  { %2976 = vmatpush.msra.mxu2 %v6264_v44  ;;  %v2028_v17 = vadd.f32 %v2027_v37, %v2008_v28 }
 0x73a   :  { %2937 = vmatpush.msra.mxu0 %v6267_v15 }
 0x73b   :  { %2977 = vmatpush.msra.mxu2 %v6270_v57  ;;  %v3684_v9 = vmul.f32 -1.442695, %v2028_v17 }
 0x73c   :  { %2938 = vmatpush.msra.mxu0 %v6273_v52  ;;  %v3924_v53 = vpop.eup %3923 }
 0x73d   :  { %2978 = vmatpush.msra.mxu2 %v6276_v61  ;;  %3925 = vpow2.f32 %v3684_v9  ;;  %v2113_v33 = vadd.f32 1.0, %v3924_v53 }
 0x73e   :  { %2939 = vmatpush.msra.mxu0 %v6279_v56 }
 0x73f   :  { %2979 = vmatpush.msra.mxu2 %v6282_v8  ;;  %3927 = vrcp.f32 %v2113_v33  ;;  %vm2119_vm13 = vweird.f32 %v2113_v33 }
 0x740   :  { %v2107_v28 = vpop.f32.mrf.mxu3  ;;  %2940 = vmatpush.msra.mxu0 %v6285_v29 }
 0x741   :  { %2980 = vmatpush.msra.mxu2 %v6288_v22  ;;  %v2108_v37 = vadd.f32 %v2107_v28, %v2088_v55  ;;  %v2048_v28 = vadd.f32 %v2047_v43, %v5894_v38 }
 0x742   :  { %2941 = vmatpush.msra.mxu0 %v6291_v4 }
 0x743   :  { %2981 = vmatpush.msra.mxu2 %v6294_v63  ;;  %v3926_v17 = vpop.eup %3925  ;;  %v3685_v9 = vmul.f32 -1.442695, %v2108_v37 }
 0x744   :  { %v2132_v61 = vadd.f32 1.0, %v3926_v17  ;;  %2942 = vmatpush.msra.mxu0 %v6297_v19  ;;  %v2067_v17 = vpop.f32.mrf.mxu1  ;;  %v7991_v19 = vld [vmem:[#allocation71_spill] sm:$0xff] }
 0x745   :  { %2982 = vmatpush.msra.mxu2 %v6300_v0  ;;  %3929 = vpow2.f32 %v3685_v9  ;;  %v3928_v53 = vpop.eup %3927  ;;  %v2068_v4 = vadd.f32 %v2067_v17, %v2048_v28 }
 0x746   :  { %3931 = vrcp.f32 %v2132_v61  ;;  %2943 = vmatpush.msra.mxu0 %v6303_v59  ;;  %v2115_v55 = vmul.f32 %v3928_v53, %v2113_v33  ;;  %vm2120_vm12 = vweird.f32 %v3928_v53  ;;  %v2144_v28 = vand.u32 2147483648, %v2132_v61 }
 0x747   :  { %2983 = vmatpush.msra.mxu2 %v6306_v20  ;;  %v7992_v20 = vld [vmem:[#allocation75_spill] sm:$0xff]  ;;  %vm6412_vm14 = vmor %vm2119_vm13, %vm2120_vm12  ;;  %vm2138_vm0 = vweird.f32 %v2132_v61 }
 0x748   :  { %2944 = vmatpush.msra.mxu0 %v6309_v36  ;;  %v2116_v37 = vsub.f32 1.0, %v2115_v55 }
 0x749   :  { %2984 = vmatpush.msra.mxu2 %v7990_v18  ;;  %v2125_v18 = vand.u32 2147483648, %v2113_v33 }
 0x74a   :  { %2945 = vmatpush.msra.mxu0 %v7991_v19  ;;  %v2117_v0 = vmul.f32 %v3928_v53, %v2116_v37  ;;  %v2123_v37 = vand.u32 2147483647, %v2113_v33  ;;  %v6422_v33 = vld [vmem:[#allocation2 + $0x10] sm:$0xff] }
 0x74b   :  { %2985 = vmatpush.msra.mxu2 %v6318_v12  ;;  %v3930_v9 = vpop.eup %3929 }
 0x74c   :  { %v3932_v63 = vpop.eup %3931  ;;  %v6405_v59 = vadd.f32 1.0, %v3930_v9  ;;  %2946 = vmatpush.msra.mxu0 %v7992_v20  ;;  %v2118_v38 = vadd.f32 %v3928_v53, %v2117_v0  ;;  %v6416_v9 = vld [vmem:[#allocation2 + $0x30] sm:$0xff]  ;;  %vm2124_vm1 = vcmp.eq.f32.partialorder %v2123_v37, 8.507059e+37 }
 0x74d   :  { %2986 = vmatpush.msra.mxu2 %v6324_v35  ;;  %v2134_v43 = vmul.f32 %v3932_v63, %v2132_v61  ;;  %vm2139_vm15 = vweird.f32 %v3932_v63  ;;  %v7995_v37 = vld [vmem:[#allocation32_spill] sm:$0xff] }
 0x74e   :  { %3933 = vrcp.f32 %v6405_v59  ;;  %2947 = vmatpush.msra.mxu0 %v6327_v26  ;;  %v2126_v26 = vor.u32 1.1754944e-38, %v2125_v18  ;;  %vm2140_vm2 = vmor %vm2138_vm0, %vm2139_vm15  ;;  %vm2158_vm5 = vweird.f32 %v6405_v59 }
 0x74f   :  { %2987 = vmatpush.msra.mxu2 %v6330_v51  ;;  %v2135_v55 = vsub.f32 1.0, %v2134_v43  ;;  %3935 = vtanh.f32 %v2068_v4  ;;  %v2122_v51 = vsel %vm6412_vm14, %v3928_v53, %v2118_v38  ;;  %v2142_v43 = vand.u32 2147483647, %v2132_v61 }
 0x750   :  { %2948 = vmatpush.msra.mxu0 %v6416_v9  ;;  %v2127_v17 = vsel %vm2124_vm1, %v2126_v26, %v2122_v51 }
 0x751   :  { %2988 = vmatpush.msra.mxu2 %v6334_v58  ;;  %v2136_v0 = vmul.f32 %v3932_v63, %v2135_v55  ;;  %v2145_v58 = vor.u32 1.1754944e-38, %v2144_v28  ;;  %vm2143_vm3 = vcmp.eq.f32.partialorder %v2142_v43, 8.507059e+37  ;;  %v2162_v28 = vand.u32 2147483647, %v6405_v59 }
 0x752   :  { %2949 = vmatpush.msra.mxu0 %v6422_v33 }
 0x753   :  { %2989 = vmatpush.msra.mxu2 %v6338_v40  ;;  %v2137_v4 = vadd.f32 %v3932_v63, %v2136_v0  ;;  %2950 = vmatmul.f32.vlgmr.msra.gmra.mxu0 %v7989_v32  ;;  %vm2163_vm7 = vcmp.eq.f32.partialorder %v2162_v28, 8.507059e+37  ;;  %v8006_v28 = vld [vmem:[#allocation80_spill] sm:$0xff] }
 0x754   :  { %2990 = vmatmul.f32.vlgmr.msra.gmra.mxu2 %v7989_v32  ;;  %v3934_v55 = vpop.eup %3933  ;;  %3081 = vmatpush.msrb.mxu0 %v6111_v11 }
 0x755   :  { %3121 = vmatpush.msrb.mxu2 %v6114_v41  ;;  %v2141_v18 = vsel %vm2140_vm2, %v3932_v63, %v2137_v4  ;;  %v2154_v38 = vmul.f32 %v3934_v55, %v6405_v59  ;;  %v3936_v53 = vpop.eup %3935  ;;  %vm2159_vm4 = vweird.f32 %v3934_v55  ;;  %v2164_v63 = vand.u32 2147483648, %v6405_v59 }
 0x756   :  { %v2146_v61 = vsel %vm2143_vm3, %v2145_v58, %v2141_v18  ;;  %3082 = vmatpush.msrb.mxu0 %v6123_v60  ;;  %v2169_v0 = vmul.f32 %v3936_v53, %v2127_v17  ;;  %vm2160_vm6 = vmor %vm2158_vm5, %vm2159_vm4  ;;  %v7998_v53 = vld [vmem:[#allocation31_spill] sm:$0xff] }
 0x757   :  { %3122 = vmatpush.msrb.mxu2 %v6126_v54  ;;  %v2168_v32 = vmul.f32 %v2146_v61, %v7995_v37  ;;  %v2155_v40 = vsub.f32 1.0, %v2154_v38  ;;  %v2165_v43 = vor.u32 1.1754944e-38, %v2164_v63  ;;  %v7997_v38 = vld [vmem:[#allocation82_spill] sm:$0xff]  ;;  %v8000_v37 = vld [vmem:[#allocation76_spill] sm:$0xff] }
 0x758   :  { %3083 = vmatpush.msrb.mxu0 %v6133_v49  ;;  %v7999_v61 = vld [vmem:[#allocation26_spill] sm:$0xff] }
 0x759   :  { %3123 = vmatpush.msrb.mxu2 %v6136_v13  ;;  %v6436_v26 = vadd.f32 %v2169_v0, %v2168_v32  ;;  %v2156_v51 = vmul.f32 %v3934_v55, %v2155_v40  ;;  %v8001_v32 = vld [vmem:[#allocation33_spill] sm:$0xff]  ;;  %v8002_v0 = vld [vmem:[#allocation35_spill] sm:$0xff]  ;;  %v8005_v63 = vld [vmem:[#allocation30_spill] sm:$0xff] }
 0x75a   :  { %3084 = vmatpush.msrb.mxu0 %v6143_v6 }
 0x75b   :  { %7996 = vst [vmem:[#allocation87_spill] sm:$0xff] %v6436_v26  ;;  %3124 = vmatpush.msrb.mxu2 %v6146_v16  ;;  %3937 = vtanh.f32 %v6436_v26  ;;  %v2157_v58 = vadd.f32 %v3934_v55, %v2156_v51  ;;  %v8003_v51 = vld [vmem:[#allocation86_spill] sm:$0xff]  ;;  %v8042_v26 = vld [vmem:[#allocation56_spill] sm:$0xff] }
 0x75c   :  { %3085 = vmatpush.msrb.mxu0 %v6153_v7 }
 0x75d   :  { %3125 = vmatpush.msrb.mxu2 %v6156_v10  ;;  %v2161_v40 = vsel %vm2160_vm6, %v3934_v55, %v2157_v58  ;;  %v8004_v58 = vld [vmem:[#allocation37_spill] sm:$0xff] }
 0x75e   :  { %3086 = vmatpush.msrb.mxu0 %v6161_v62  ;;  %v2166_v17 = vsel %vm2163_vm7, %v2165_v43, %v2161_v40  ;;  %v8007_v40 = vld [vmem:[#allocation39_spill] sm:$0xff]  ;;  %v8008_v43 = vld [vmem:[#allocation41_spill] sm:$0xff] }
 0x75f   :  { %3126 = vmatpush.msrb.mxu2 %v6164_v21 }
 0x760   :  { %3087 = vmatpush.msrb.mxu0 %v6169_v50 }
 0x761   :  { %3127 = vmatpush.msrb.mxu2 %v6172_v3  ;;  %v3938_v4 = vpop.eup %3937 }
 0x762   :  { %v2172_v18 = vmul.f32 %v3938_v4, %v2166_v17  ;;  %3088 = vmatpush.msrb.mxu0 %v6177_v31  ;;  %v8009_v4 = vld [vmem:[#allocation34_spill] sm:$0xff]  ;;  %v8010_v17 = vld [vmem:[#allocation48_spill] sm:$0xff] }
 0x763   :  { %3128 = vmatpush.msrb.mxu2 %v6180_v47 }
 0x764   :  { %v2174_v59 = vrot.slane %v2172_v18, 4  ;;  %3089 = vmatpush.msrb.mxu0 %v6185_v24  ;;  %v8011_v18 = vld [vmem:[#allocation90_spill] sm:$0xff] }
 0x765   :  { %3129 = vmatpush.msrb.mxu2 %v6188_v48 }
 0x766   :  { %v2175_v55 = vrot.slane %v2174_v59, 4  ;;  %3090 = vmatpush.msrb.mxu0 %v6193_v5  ;;  %v8012_v59 = vld [vmem:[#allocation38_spill] sm:$0xff] }
 0x767   :  { %3130 = vmatpush.msrb.mxu2 %v7997_v38 }
 0x768   :  { %2213 = vmatmul.f32.vlgmr.msrb.gmra.mxu1 %v2175_v55  ;;  %2253 = vmatmul.f32.vlgmr.msrb.gmra.mxu3 %v2175_v55 }
 0x769   :  { %2424 = vmatpush.msrb.mxu1 %v7998_v53  ;;  %2464 = vmatpush.msrb.mxu3 %v7999_v61  ;;  %v8013_v53 = vld [vmem:[#allocation46_spill] sm:$0xff]  ;;  %v8014_v61 = vld [vmem:[#allocation44_spill] sm:$0xff] }
 0x76a   :  { %3091 = vmatpush.msrb.mxu0 %v6201_v1  ;;  %3131 = vmatpush.msrb.mxu2 %v8000_v37 }
 0x76b   :  { %2425 = vmatpush.msrb.mxu1 %v8001_v32  ;;  %2465 = vmatpush.msrb.mxu3 %v8002_v0  ;;  %v8015_v32 = vld [vmem:[#allocation42_spill] sm:$0xff]  ;;  %v8017_v0 = vld [vmem:[#allocation51_spill] sm:$0xff] }
 0x76c   :  { %3092 = vmatpush.msrb.mxu0 %v8003_v51  ;;  %3132 = vmatpush.msrb.mxu2 %v6212_v23 }
 0x76d   :  { %2426 = vmatpush.msrb.mxu1 %v8004_v58  ;;  %2466 = vmatpush.msrb.mxu3 %v8005_v63  ;;  %v8018_v58 = vld [vmem:[#allocation84_spill] sm:$0xff]  ;;  %v8019_v63 = vld [vmem:[#allocation49_spill] sm:$0xff] }
 0x76e   :  { %3093 = vmatpush.msrb.mxu0 %v6217_v34  ;;  %3133 = vmatpush.msrb.mxu2 %v8006_v28 }
 0x76f   :  { %2427 = vmatpush.msrb.mxu1 %v8007_v40  ;;  %2467 = vmatpush.msrb.mxu3 %v8008_v43  ;;  %v8020_v40 = vld [vmem:[#allocation58_spill] sm:$0xff]  ;;  %v8021_v43 = vld [vmem:[#allocation47_spill] sm:$0xff] }
 0x770   :  { %2293 = vmatmul.f32.vlgmr.msra.gmra.mxu1 %v2175_v55  ;;  %2333 = vmatmul.f32.vlgmr.msra.gmra.mxu3 %v2175_v55  ;;  %v8016_v55 = vld [vmem:[#allocation55_spill] sm:$0xff] }
 0x771   :  { %2428 = vmatpush.msrb.mxu1 %v8009_v4  ;;  %2468 = vmatpush.msrb.mxu3 %v8010_v17  ;;  %v8022_v4 = vld [vmem:[#allocation50_spill] sm:$0xff]  ;;  %v8023_v17 = vld [vmem:[#allocation57_spill] sm:$0xff] }
 0x772   :  { %3094 = vmatpush.msrb.mxu0 %v8011_v18  ;;  %3134 = vmatpush.msrb.mxu2 %v6228_v42 }
 0x773   :  { %2429 = vmatpush.msrb.mxu1 %v8012_v59  ;;  %2469 = vmatpush.msrb.mxu3 %v8013_v53  ;;  %v8024_v59 = vld [vmem:[#allocation20_spill] sm:$0xff]  ;;  %v8025_v53 = vld [vmem:[#allocation19_spill] sm:$0xff] }
 0x774   :  { %3095 = vmatpush.msrb.mxu0 %v6233_v30  ;;  %3135 = vmatpush.msrb.mxu2 %v6236_v46 }
 0x775   :  { %2430 = vmatpush.msrb.mxu1 %v8014_v61  ;;  %2470 = vmatpush.msrb.mxu3 %v8015_v32  ;;  %v8026_v61 = vld [vmem:[#allocation21_spill] sm:$0xff]  ;;  %v8027_v32 = vld [vmem:[#allocation94_spill] sm:$0xff] }
 0x776   :  { %3096 = vmatpush.msrb.mxu0 %v6241_v45  ;;  %3136 = vmatpush.msrb.mxu2 %v6244_v25 }
 0x777   :  { %2431 = vmatpush.msrb.mxu1 %v8016_v55  ;;  %2471 = vmatpush.msrb.mxu3 %v8017_v0  ;;  %v8028_v55 = vld [vmem:[#allocation62_spill] sm:$0xff] }
 0x778   :  { %3161 = vmatpush.msra.mxu0 %v8018_v58  ;;  %3201 = vmatpush.msra.mxu2 %v6250_v39  ;;  %v8029_v0 = vld [vmem:[#allocation66_spill] sm:$0xff] }
 0x779   :  { %2432 = vmatpush.msrb.mxu1 %v8019_v63  ;;  %2472 = vmatpush.msrb.mxu3 %v8020_v40  ;;  %v8030_v63 = vld [vmem:[#allocation60_spill] sm:$0xff]  ;;  %v8031_v40 = vld [vmem:[#allocation70_spill] sm:$0xff] }
 0x77a   :  { %3162 = vmatpush.msra.mxu0 %v6255_v14  ;;  %3202 = vmatpush.msra.mxu2 %v6258_v2 }
 0x77b   :  { %2433 = vmatpush.msrb.mxu1 %v8021_v43  ;;  %2473 = vmatpush.msrb.mxu3 %v8022_v4  ;;  %v8032_v43 = vld [vmem:[#allocation64_spill] sm:$0xff] }
 0x77c   :  { %3163 = vmatpush.msra.mxu0 %v6261_v27  ;;  %3203 = vmatpush.msra.mxu2 %v6264_v44  ;;  %v8033_v4 = vld [vmem:[#allocation36_spill] sm:$0xff] }
 0x77d   :  { %2434 = vmatpush.msrb.mxu1 %v8023_v17  ;;  %2474 = vmatpush.msrb.mxu3 %v8024_v59  ;;  %v8034_v17 = vld [vmem:[#allocation88_spill] sm:$0xff] }
 0x77e   :  { %3164 = vmatpush.msra.mxu0 %v6267_v15  ;;  %3204 = vmatpush.msra.mxu2 %v6270_v57  ;;  %v8035_v59 = vld [vmem:[#allocation92_spill] sm:$0xff] }
 0x77f   :  { %2435 = vmatpush.msrb.mxu1 %v8025_v53  ;;  %2475 = vmatpush.msrb.mxu3 %v8026_v61  ;;  %v8036_v53 = vld [vmem:[#allocation52_spill] sm:$0xff]  ;;  %v8037_v61 = vld [vmem:[#allocation43_spill] sm:$0xff] }
 0x780   :  { %3165 = vmatpush.msra.mxu0 %v6273_v52  ;;  %3205 = vmatpush.msra.mxu2 %v8027_v32 }
 0x781   :  { %2436 = vmatpush.msrb.mxu1 %v8028_v55  ;;  %2476 = vmatpush.msrb.mxu3 %v8029_v0  ;;  %v8038_v55 = vld [vmem:[#allocation40_spill] sm:$0xff]  ;;  %v8039_v0 = vld [vmem:[#allocation45_spill] sm:$0xff] }
 0x782   :  { %3166 = vmatpush.msra.mxu0 %v6279_v56  ;;  %3206 = vmatpush.msra.mxu2 %v6282_v8 }
 0x783   :  { %2437 = vmatpush.msrb.mxu1 %v8030_v63  ;;  %2477 = vmatpush.msrb.mxu3 %v8031_v40  ;;  %v8040_v63 = vld [vmem:[#allocation53_spill] sm:$0xff]  ;;  %v8041_v40 = vld [vmem:[#allocation59_spill] sm:$0xff] }
 0x784   :  { %3167 = vmatpush.msra.mxu0 %v6285_v29  ;;  %3207 = vmatpush.msra.mxu2 %v6288_v22 }
 0x785   :  { %2438 = vmatpush.msrb.mxu1 %v8032_v43  ;;  %2478 = vmatpush.msrb.mxu3 %v8033_v4  ;;  %v8043_v43 = vld [vmem:[#allocation74_spill] sm:$0xff]  ;;  %v8044_v4 = vld [vmem:[#allocation63_spill] sm:$0xff] }
 0x786   :  { %3168 = vmatpush.msra.mxu0 %v8034_v17  ;;  %3208 = vmatpush.msra.mxu2 %v8035_v59  ;;  %v8045_v17 = vld [vmem:[#allocation67_spill] sm:$0xff]  ;;  %v6524_v59 = vld [vmem:[#allocation2 + $0x3b0] sm:$0xff] }
 0x787   :  { %2439 = vmatpush.msrb.mxu1 %v8036_v53  ;;  %2479 = vmatpush.msrb.mxu3 %v8037_v61  ;;  %8046 = vst [vmem:[#allocation81_spill] sm:$0xff] %v6524_v59  ;;  %v8047_v53 = vld [vmem:[#allocation68_spill] sm:$0xff]  ;;  %v8048_v61 = vld [vmem:[#allocation61_spill] sm:$0xff] }
 0x788   :  { %3169 = vmatpush.msra.mxu0 %v8040_v63  ;;  %3209 = vmatpush.msra.mxu2 %v8041_v40 }
 0x789   :  { %2504 = vmatpush.msra.mxu1 %v8038_v55  ;;  %2544 = vmatpush.msra.mxu3 %v8039_v0  ;;  %v6530_v55 = vld [vmem:[#allocation2 + $0x390] sm:$0xff] }
 0x78a   :  { %3170 = vmatpush.msra.mxu0 %v8044_v4  ;;  %3210 = vmatpush.msra.mxu2 %v8045_v17  ;;  %8049 = vst [vmem:[#allocation91_spill] sm:$0xff] %v6530_v55  ;;  %v6536_v0 = vld [vmem:[#allocation2 + $0x370] sm:$0xff] }
 0x78b   :  { %2505 = vmatpush.msra.mxu1 %v8042_v26  ;;  %2545 = vmatpush.msra.mxu3 %v8043_v43  ;;  %v8050_v26 = vld [vmem:[#allocation78_spill] sm:$0xff]  ;;  %8051 = vst [vmem:[#allocation85_spill] sm:$0xff] %v6536_v0  ;;  %v8052_v43 = vld [vmem:[#allocation72_spill] sm:$0xff] }
 0x78c   :  { %3171 = vmatpush.msra.mxu0 %v6309_v36  ;;  %3211 = vmatpush.msra.mxu2 %v8048_v61 }
 0x78d   :  { %2506 = vmatpush.msra.mxu1 %v6524_v59  ;;  %2546 = vmatpush.msra.mxu3 %v8047_v53  ;;  %v8053_v53 = vld [vmem:[#allocation24_spill] sm:$0xff] }
 0x78e   :  { %3172 = vmatpush.msra.mxu0 %v7991_v19  ;;  %3212 = vmatpush.msra.mxu2 %v6318_v12  ;;  %v6542_v59 = vld [vmem:[#allocation2 + $0x350] sm:$0xff] }
 0x78f   :  { %2507 = vmatpush.msra.mxu1 %v6530_v55  ;;  %2547 = vmatpush.msra.mxu3 %v8050_v26  ;;  %8054 = vst [vmem:[#allocation95_spill] sm:$0xff] %v6542_v59  ;;  %v6545_v55 = vld [vmem:[#allocation2 + $0x358] sm:$0xff]  ;;  %v6550_v26 = vld [vmem:[#allocation2 + $0x330] sm:$0xff] }
 0x790   :  { %3097 = vmatmul.f32.vlgmr.msrb.gmra.mxu0 %v8053_v53  ;;  %3137 = vmatmul.f32.vlgmr.msrb.gmra.mxu2 %v8053_v53  ;;  %8055 = vst [vmem:[#allocation89_spill] sm:$0xff] %v6545_v55  ;;  %v8059_v12 = vld [vmem:[#allocation73_spill] sm:$0xff] }
 0x791   :  { %2508 = vmatpush.msra.mxu1 %v6536_v0  ;;  %2548 = vmatpush.msra.mxu3 %v8052_v43  ;;  %8056 = vst [vmem:[#allocation97_spill] sm:$0xff] %v6550_v26  ;;  %v6553_v43 = vld [vmem:[#allocation2 + $0x338] sm:$0xff]  ;;  %v8058_v0 = vld [vmem:[#allocation79_spill] sm:$0xff] }
 0x792   :  { %3173 = vmatpush.msra.mxu0 %v7992_v20  ;;  %3213 = vmatpush.msra.mxu2 %v6324_v35  ;;  %8057 = vst [vmem:[#allocation93_spill] sm:$0xff] %v6553_v43  ;;  %v8062_v35 = vld [vmem:[#allocation83_spill] sm:$0xff] }
 0x793   :  { %2509 = vmatpush.msra.mxu1 %v6542_v59  ;;  %2549 = vmatpush.msra.mxu3 %v6545_v55  ;;  %v6558_v59 = vld [vmem:[#allocation2 + $0x310] sm:$0xff]  ;;  %v6561_v55 = vld [vmem:[#allocation2 + $0x318] sm:$0xff] }
 0x794   :  { %3174 = vmatpush.msra.mxu0 %v8058_v0  ;;  %3214 = vmatpush.msra.mxu2 %v8059_v12  ;;  %8060 = vst [vmem:[#allocation99_spill] sm:$0xff] %v6558_v59  ;;  %v8065_v12 = vld [vmem:[#allocation77_spill] sm:$0xff] }
 0x795   :  { %2510 = vmatpush.msra.mxu1 %v6550_v26  ;;  %2550 = vmatpush.msra.mxu3 %v6553_v43  ;;  %8061 = vst [vmem:[#allocation96_spill] sm:$0xff] %v6561_v55  ;;  %v6566_v26 = vld [vmem:[#allocation2 + $0x2f0] sm:$0xff]  ;;  %v6569_v43 = vld [vmem:[#allocation2 + $0x2f8] sm:$0xff] }
 0x796   :  { %3175 = vmatpush.msra.mxu0 %v6416_v9  ;;  %3215 = vmatpush.msra.mxu2 %v8062_v35  ;;  %8063 = vst [vmem:[#allocation100_spill] sm:$0xff] %v6566_v26 }
 0x797   :  { %2511 = vmatpush.msra.mxu1 %v6558_v59  ;;  %2551 = vmatpush.msra.mxu3 %v6561_v55  ;;  %8064 = vst [vmem:[#allocation98_spill] sm:$0xff] %v6569_v43  ;;  %v6574_v59 = vld [vmem:[#allocation2 + $0x2d0] sm:$0xff]  ;;  %v6577_v55 = vld [vmem:[#allocation2 + $0x2d8] sm:$0xff] }
 0x798   :  { %3176 = vmatpush.msra.mxu0 %v6422_v33  ;;  %3216 = vmatpush.msra.mxu2 %v8065_v12  ;;  %8066 = vst [vmem:[#allocation54_spill] sm:$0xff] %v6574_v59 }
 0x799   :  { %2512 = vmatpush.msra.mxu1 %v6566_v26  ;;  %2552 = vmatpush.msra.mxu3 %v6569_v43  ;;  %8067 = vst [vmem:[#allocation22_spill] sm:$0xff] %v6577_v55  ;;  %v6582_v26 = vld [vmem:[#allocation2 + $0x2b0] sm:$0xff]  ;;  %v6585_v43 = vld [vmem:[#allocation2 + $0x2b8] sm:$0xff] }
 0x79a   :  { %3177 = vmatmul.f32.vlgmr.msra.gmra.mxu0 %v8053_v53  ;;  %3217 = vmatmul.f32.vlgmr.msra.gmra.mxu2 %v8053_v53  ;;  %8068 = vst [vmem:[#allocation71_spill] sm:$0xff] %v6582_v26  ;;  %v6598_v53 = vld [vmem:[#allocation2 + $0x270] sm:$0xff] }
 0x79b   :  { %2513 = vmatpush.msra.mxu1 %v6574_v59  ;;  %2553 = vmatpush.msra.mxu3 %v6577_v55  ;;  %8069 = vst [vmem:[#allocation75_spill] sm:$0xff] %v6585_v43  ;;  %v6590_v59 = vld [vmem:[#allocation2 + $0x290] sm:$0xff]  ;;  %v6593_v55 = vld [vmem:[#allocation2 + $0x298] sm:$0xff] }
 0x79c   :  { %3311 = vmatpush.msrb.mxu0 %v6111_v11  ;;  %3351 = vmatpush.msrb.mxu2 %v6114_v41  ;;  %8070 = vst [vmem:[#allocation32_spill] sm:$0xff] %v6590_v59  ;;  %v6606_v11 = vld [vmem:[#allocation2 + $0x250] sm:$0xff]  ;;  %v6609_v41 = vld [vmem:[#allocation2 + $0x258] sm:$0xff] }
 0x79d   :  { %2514 = vmatpush.msra.mxu1 %v6582_v26  ;;  %2554 = vmatpush.msra.mxu3 %v6585_v43  ;;  %8071 = vst [vmem:[#allocation82_spill] sm:$0xff] %v6593_v55  ;;  %v6601_v43 = vld [vmem:[#allocation2 + $0x278] sm:$0xff] }
 0x79e   :  { %3312 = vmatpush.msrb.mxu0 %v6123_v60  ;;  %3352 = vmatpush.msrb.mxu2 %v6126_v54  ;;  %8072 = vst [vmem:[#allocation31_spill] sm:$0xff] %v6598_v53  ;;  %v6614_v60 = vld [vmem:[#allocation2 + $0x230] sm:$0xff]  ;;  %v6617_v54 = vld [vmem:[#allocation2 + $0x238] sm:$0xff] }
 0x79f   :  { %2515 = vmatpush.msra.mxu1 %v6590_v59  ;;  %2555 = vmatpush.msra.mxu3 %v6593_v55  ;;  %8073 = vst [vmem:[#allocation26_spill] sm:$0xff] %v6601_v43 }
 0x7a0   :  { %3313 = vmatpush.msrb.mxu0 %v6133_v49  ;;  %3353 = vmatpush.msrb.mxu2 %v6136_v13  ;;  %8074 = vst [vmem:[#allocation76_spill] sm:$0xff] %v6606_v11  ;;  %v6622_v49 = vld [vmem:[#allocation2 + $0x210] sm:$0xff]  ;;  %v6625_v13 = vld [vmem:[#allocation2 + $0x218] sm:$0xff] }
 0x7a1   :  { %2516 = vmatpush.msra.mxu1 %v6598_v53  ;;  %2556 = vmatpush.msra.mxu3 %v6601_v43  ;;  %8075 = vst [vmem:[#allocation33_spill] sm:$0xff] %v6609_v41 }
 0x7a2   :  { %3314 = vmatpush.msrb.mxu0 %v6143_v6  ;;  %3354 = vmatpush.msrb.mxu2 %v6146_v16  ;;  %8076 = vst [vmem:[#allocation35_spill] sm:$0xff] %v6614_v60 }
 0x7a3   :  { %2517 = vmatpush.msra.mxu1 %v6606_v11  ;;  %2557 = vmatpush.msra.mxu3 %v6609_v41  ;;  %8077 = vst [vmem:[#allocation86_spill] sm:$0xff] %v6617_v54 }
 0x7a4   :  { %3315 = vmatpush.msrb.mxu0 %v6153_v7  ;;  %3355 = vmatpush.msrb.mxu2 %v6156_v10  ;;  %8078 = vst [vmem:[#allocation37_spill] sm:$0xff] %v6622_v49 }
 0x7a5   :  { %2518 = vmatpush.msra.mxu1 %v6614_v60  ;;  %2558 = vmatpush.msra.mxu3 %v6617_v54  ;;  %8079 = vst [vmem:[#allocation30_spill] sm:$0xff] %v6625_v13 }
 0x7a6   :  { %3316 = vmatpush.msrb.mxu0 %v6161_v62  ;;  %3356 = vmatpush.msrb.mxu2 %v6164_v21  ;;  %v8088_v21 = vld [vmem:[#allocation25_spill] sm:$0xff] }
 0x7a7   :  { %2519 = vmatpush.msra.mxu1 %v6622_v49  ;;  %2559 = vmatpush.msra.mxu3 %v6625_v13 }
 0x7a8   :  { %3317 = vmatpush.msrb.mxu0 %v6169_v50  ;;  %3357 = vmatpush.msrb.mxu2 %v6172_v3 }
 0x7aa   :  { %3318 = vmatpush.msrb.mxu0 %v6177_v31  ;;  %3358 = vmatpush.msrb.mxu2 %v6180_v47 }
 0x7ac   :  { %3319 = vmatpush.msrb.mxu0 %v6185_v24  ;;  %3359 = vmatpush.msrb.mxu2 %v6188_v48 }
 0x7ae   :  { %3320 = vmatpush.msrb.mxu0 %v6193_v5  ;;  %3360 = vmatpush.msrb.mxu2 %v7997_v38 }
 0x7b0   :  { %3321 = vmatpush.msrb.mxu0 %v6201_v1  ;;  %3361 = vmatpush.msrb.mxu2 %v8000_v37 }
 0x7b2   :  { %3322 = vmatpush.msrb.mxu0 %v8003_v51  ;;  %3362 = vmatpush.msrb.mxu2 %v6212_v23 }
 0x7b4   :  { %3323 = vmatpush.msrb.mxu0 %v6217_v34  ;;  %3363 = vmatpush.msrb.mxu2 %v8006_v28 }
 0x7b6   :  { %3324 = vmatpush.msrb.mxu0 %v8011_v18  ;;  %3364 = vmatpush.msrb.mxu2 %v6228_v42 }
 0x7b8   :  { %3325 = vmatpush.msrb.mxu0 %v6233_v30  ;;  %3365 = vmatpush.msrb.mxu2 %v6236_v46 }
 0x7ba   :  { %3326 = vmatpush.msrb.mxu0 %v6241_v45  ;;  %3366 = vmatpush.msrb.mxu2 %v6244_v25  ;;  %v8080_v25 = vld [vmem:[#allocation88_spill] sm:$0xff] }
 0x7bc   :  { %3391 = vmatpush.msra.mxu0 %v8018_v58  ;;  %3431 = vmatpush.msra.mxu2 %v6250_v39 }
 0x7be   :  { %3392 = vmatpush.msra.mxu0 %v6255_v14  ;;  %3432 = vmatpush.msra.mxu2 %v6258_v2 }
 0x7c0   :  { %3393 = vmatpush.msra.mxu0 %v6261_v27  ;;  %3433 = vmatpush.msra.mxu2 %v6264_v44  ;;  %v8081_v27 = vld [vmem:[#allocation92_spill] sm:$0xff]  ;;  %v8086_v44 = vld [vmem:[#allocation27_spill] sm:$0xff] }
 0x7c2   :  { %3394 = vmatpush.msra.mxu0 %v6267_v15  ;;  %3434 = vmatpush.msra.mxu2 %v6270_v57 }
 0x7c4   :  { %3395 = vmatpush.msra.mxu0 %v6273_v52  ;;  %3435 = vmatpush.msra.mxu2 %v8027_v32  ;;  %v2234_v52 = vpop.f32.mrf.mxu2 }
 0x7c5   :  { %v2235_v45 = vadd.f32 %v2234_v52, %v8086_v44 }
 0x7c6   :  { %3396 = vmatpush.msra.mxu0 %v6279_v56  ;;  %3436 = vmatpush.msra.mxu2 %v6282_v8  ;;  %v8084_v8 = vld [vmem:[#allocation73_spill] sm:$0xff] }
 0x7c8   :  { %3397 = vmatpush.msra.mxu0 %v6285_v29  ;;  %3437 = vmatpush.msra.mxu2 %v6288_v22  ;;  %v8082_v29 = vld [vmem:[#allocation65_spill] sm:$0xff] }
 0x7c9   :  { %v8083_v22 = vld [vmem:[#allocation69_spill] sm:$0xff] }
 0x7ca   :  { %3398 = vmatpush.msra.mxu0 %v8080_v25  ;;  %3438 = vmatpush.msra.mxu2 %v8081_v27 }
 0x7cc   :  { %3399 = vmatpush.msra.mxu0 %v8040_v63  ;;  %3439 = vmatpush.msra.mxu2 %v8041_v40  ;;  %v2314_v42 = vpop.f32.mrf.mxu2 }
 0x7ce   :  { %3400 = vmatpush.msra.mxu0 %v8044_v4  ;;  %3440 = vmatpush.msra.mxu2 %v8045_v17 }
 0x7d0   :  { %3401 = vmatpush.msra.mxu0 %v6309_v36  ;;  %3441 = vmatpush.msra.mxu2 %v8048_v61  ;;  %v2194_v36 = vpop.f32.mrf.mxu0 }
 0x7d2   :  { %3402 = vmatpush.msra.mxu0 %v7991_v19  ;;  %3442 = vmatpush.msra.mxu2 %v8082_v29  ;;  %v8085_v19 = vld [vmem:[#allocation28_spill] sm:$0xff] }
 0x7d3   :  { %v2195_v56 = vadd.f32 %v2194_v36, %v8085_v19 }
 0x7d4   :  { %3403 = vmatpush.msra.mxu0 %v7992_v20  ;;  %3443 = vmatpush.msra.mxu2 %v8083_v22 }
 0x7d6   :  { %3404 = vmatpush.msra.mxu0 %v8058_v0  ;;  %3444 = vmatpush.msra.mxu2 %v8084_v8  ;;  %v8089_v8 = vld [vmem:[#allocation87_spill] sm:$0xff] }
 0x7d8   :  { %3405 = vmatpush.msra.mxu0 %v6416_v9  ;;  %3445 = vmatpush.msra.mxu2 %v8062_v35  ;;  %v8087_v35 = vld [vmem:[#allocation29_spill] sm:$0xff]  ;;  %v2274_v7 = vpop.f32.mrf.mxu0 }
 0x7d9   :  { %v2315_v1 = vadd.f32 %v2314_v42, %v8087_v35  ;;  %v2275_v50 = vadd.f32 %v2274_v7, %v8088_v21  ;;  %v6702_v7 = vld [vmem:[#allocation2 + $0x3a0] sm:$0xff] }
 0x7da   :  { %3406 = vmatpush.msra.mxu0 %v6422_v33  ;;  %3446 = vmatpush.msra.mxu2 %v8065_v12 }
 0x7e5   :  { %v2214_v57 = vpop.f32.mrf.mxu1 }
 0x7e6   :  { %v2215_v20 = vadd.f32 %v2214_v57, %v2195_v56 }
 0x7e8   :  { %v3686_v15 = vmul.f32 -1.442695, %v2215_v20 }
 0x7ea   :  { %3939 = vpow2.f32 %v3686_v15 }
 0x7eb   :  { %v2254_v46 = vpop.f32.mrf.mxu3 }
 0x7ec   :  { %v2255_v30 = vadd.f32 %v2254_v46, %v2235_v45 }
 0x7ed   :  { %v2294_v31 = vpop.f32.mrf.mxu1 }
 0x7ee   :  { %v3687_v34 = vmul.f32 -1.442695, %v2255_v30  ;;  %v2295_v2 = vadd.f32 %v2294_v31, %v2275_v50  ;;  %v6711_v50 = vld [vmem:[#allocation2 + $0x388] sm:$0xff] }
 0x7ef   :  { %v6717_v31 = vld [vmem:[#allocation2 + $0x368] sm:$0xff] }
 0x7f0   :  { %v3940_v23 = vpop.eup %3939  ;;  %3941 = vpow2.f32 %v3687_v34 }
 0x7f1   :  { %v2340_v5 = vadd.f32 1.0, %v3940_v23 }
 0x7f3   :  { %3943 = vrcp.f32 %v2340_v5  ;;  %v2334_v12 = vpop.f32.mrf.mxu3  ;;  %v2352_v37 = vand.u32 2147483648, %v2340_v5  ;;  %vm2346_vm9 = vweird.f32 %v2340_v5  ;;  %v2350_v28 = vand.u32 2147483647, %v2340_v5 }
 0x7f4   :  { %v2335_v48 = vadd.f32 %v2334_v12, %v2315_v1 }
 0x7f5   :  { %v2353_v63 = vor.u32 1.1754944e-38, %v2352_v37  ;;  %vm2351_vm13 = vcmp.eq.f32.partialorder %v2350_v28, 8.507059e+37  ;;  %v6741_v37 = vld [vmem:[#allocation2 + $0x2e8] sm:$0xff] }
 0x7f6   :  { %v3942_v6 = vpop.eup %3941  ;;  %v3688_v16 = vmul.f32 -1.442695, %v2335_v48  ;;  %v6690_v48 = vld [vmem:[#allocation2 + $0x3e0] sm:$0xff]  ;;  %v6747_v28 = vld [vmem:[#allocation2 + $0x2c8] sm:$0xff] }
 0x7f7   :  { %v2359_v24 = vadd.f32 1.0, %v3942_v6  ;;  %v6693_v6 = vld [vmem:[#allocation2 + $0x3e8] sm:$0xff] }
 0x7f8   :  { %3945 = vpow2.f32 %v3688_v16  ;;  %v6696_v16 = vld [vmem:[#allocation2 + $0x3c0] sm:$0xff] }
 0x7f9   :  { %v3944_v10 = vpop.eup %3943  ;;  %3947 = vrcp.f32 %v2359_v24  ;;  %v2371_v18 = vand.u32 2147483648, %v2359_v24  ;;  %v2369_v17 = vand.u32 2147483647, %v2359_v24  ;;  %vm2365_vm12 = vweird.f32 %v2359_v24 }
 0x7fa   :  { %v2342_v62 = vmul.f32 %v3944_v10, %v2340_v5  ;;  %vm2347_vm8 = vweird.f32 %v3944_v10 }
 0x7fb   :  { %vm2348_vm10 = vmor %vm2346_vm9, %vm2347_vm8  ;;  %v2372_v61 = vor.u32 1.1754944e-38, %v2371_v18  ;;  %vm2370_vm15 = vcmp.eq.f32.partialorder %v2369_v17, 8.507059e+37  ;;  %v6750_v18 = vld [vmem:[#allocation2 + $0x2a0] sm:$0xff]  ;;  %v6759_v17 = vld [vmem:[#allocation2 + $0x288] sm:$0xff] }
 0x7fc   :  { %v2343_v3 = vsub.f32 1.0, %v2342_v62  ;;  %v6708_v62 = vld [vmem:[#allocation2 + $0x380] sm:$0xff] }
 0x7fe   :  { %v3946_v47 = vpop.eup %3945  ;;  %v2344_v39 = vmul.f32 %v3944_v10, %v2343_v3  ;;  %v6714_v3 = vld [vmem:[#allocation2 + $0x360] sm:$0xff] }
 0x7ff   :  { %v3948_v14 = vpop.eup %3947  ;;  %v2379_v9 = vadd.f32 1.0, %v3946_v47  ;;  %v6720_v47 = vld [vmem:[#allocation2 + $0x340] sm:$0xff] }
 0x800   :  { %v2361_v33 = vmul.f32 %v3948_v14, %v2359_v24  ;;  %v2345_v38 = vadd.f32 %v3944_v10, %v2344_v39  ;;  %vm2366_vm11 = vweird.f32 %v3948_v14  ;;  %v6699_v24 = vld [vmem:[#allocation2 + $0x3c8] sm:$0xff] }
 0x801   :  { %3949 = vrcp.f32 %v2379_v9  ;;  %vm2367_vm14 = vmor %vm2365_vm12, %vm2366_vm11  ;;  %v2391_v45 = vand.u32 2147483648, %v2379_v9  ;;  %vm2385_vm1 = vweird.f32 %v2379_v9  ;;  %v2389_v46 = vand.u32 2147483647, %v2379_v9  ;;  %v6723_v39 = vld [vmem:[#allocation2 + $0x348] sm:$0xff] }
 0x802   :  { %v2362_v51 = vsub.f32 1.0, %v2361_v33  ;;  %3951 = vtanh.f32 %v2295_v2  ;;  %v2349_v32 = vsel %vm2348_vm10, %v3944_v10, %v2345_v38  ;;  %v6705_v10 = vld [vmem:[#allocation2 + $0x3a8] sm:$0xff]  ;;  %v6738_v38 = vld [vmem:[#allocation2 + $0x2e0] sm:$0xff] }
 0x803   :  { %v2354_v0 = vsel %vm2351_vm13, %v2353_v63, %v2349_v32  ;;  %v2392_v42 = vor.u32 1.1754944e-38, %v2391_v45  ;;  %vm2390_vm3 = vcmp.eq.f32.partialorder %v2389_v46, 8.507059e+37  ;;  %v6729_v2 = vld [vmem:[#allocation2 + $0x328] sm:$0xff]  ;;  %v6756_v32 = vld [vmem:[#allocation2 + $0x280] sm:$0xff]  ;;  %v6803_v45 = vld [vmem:[#allocation2 + $0x398] sm:$0xff] }
 0x804   :  { %v2363_v58 = vmul.f32 %v3948_v14, %v2362_v51  ;;  %v6735_v33 = vld [vmem:[#allocation2 + $0x308] sm:$0xff]  ;;  %v6744_v51 = vld [vmem:[#allocation2 + $0x2c0] sm:$0xff]  ;;  %8093 = vst [vmem:[#allocation39_spill] sm:$0xff] %v6803_v45  ;;  %v8094_v46 = vld [vmem:[#allocation85_spill] sm:$0xff] }
 0x805   :  { %v6762_v63 = vld [vmem:[#allocation2 + $0x260] sm:$0xff] }
 0x806   :  { %v2364_v40 = vadd.f32 %v3948_v14, %v2363_v58  ;;  %v6753_v58 = vld [vmem:[#allocation2 + $0x2a8] sm:$0xff] }
 0x807   :  { %v3950_v4 = vpop.eup %3949 }
 0x808   :  { %v2368_v25 = vsel %vm2367_vm14, %v3948_v14, %v2364_v40  ;;  %v2381_v27 = vmul.f32 %v3950_v4, %v2379_v9  ;;  %v3952_v29 = vpop.eup %3951  ;;  %vm2386_vm0 = vweird.f32 %v3950_v4  ;;  %v6726_v14 = vld [vmem:[#allocation2 + $0x320] sm:$0xff]  ;;  %v6765_v40 = vld [vmem:[#allocation2 + $0x268] sm:$0xff] }
 0x809   :  { %v2373_v22 = vsel %vm2370_vm15, %v2372_v61, %v2368_v25  ;;  %v2396_v56 = vmul.f32 %v3952_v29, %v2354_v0  ;;  %vm2387_vm2 = vmor %vm2385_vm1, %vm2386_vm0  ;;  %v6732_v9 = vld [vmem:[#allocation2 + $0x300] sm:$0xff]  ;;  %v6771_v61 = vld [vmem:[#allocation2 + $0x248] sm:$0xff] }
 0x80a   :  { %v2395_v36 = vmul.f32 %v2373_v22, %v8089_v8  ;;  %v2382_v52 = vsub.f32 1.0, %v2381_v27  ;;  %v6774_v0 = vld [vmem:[#allocation2 + $0x220] sm:$0xff]  ;;  %v6777_v25 = vld [vmem:[#allocation2 + $0x228] sm:$0xff]  ;;  %v6786_v22 = vld [vmem:[#allocation2 + $0x3f0] sm:$0xff] }
 0x80b   :  { %v6780_v27 = vld [vmem:[#allocation2 + $0x200] sm:$0xff]  ;;  %v6783_v29 = vld [vmem:[#allocation2 + $0x208] sm:$0xff]  ;;  %v6789_v8 = vld [vmem:[#allocation2 + $0x3f8] sm:$0xff] }
 0x80c   :  { %v6687_v57 = vadd.f32 %v2396_v56, %v2395_v36  ;;  %v2383_v20 = vmul.f32 %v3950_v4, %v2382_v52  ;;  %v6792_v36 = vld [vmem:[#allocation2 + $0x3d0] sm:$0xff]  ;;  %v6795_v56 = vld [vmem:[#allocation2 + $0x3d8] sm:$0xff] }
 0x80d   :  { %v8090_v52 = vld [vmem:[#allocation81_spill] sm:$0xff] }
 0x80e   :  { %3953 = vtanh.f32 %v6687_v57  ;;  %v2384_v15 = vadd.f32 %v3950_v4, %v2383_v20  ;;  %v6799_v20 = vld [vmem:[#allocation2 + $0x3b8] sm:$0xff] }
 0x80f   :  { %8091 = vst [vmem:[#allocation80_spill] sm:$0xff] %v6799_v20 }
 0x810   :  { %v2388_v30 = vsel %vm2387_vm2, %v3950_v4, %v2384_v15  ;;  %v6768_v4 = vld [vmem:[#allocation2 + $0x240] sm:$0xff] }
 0x811   :  { %v2393_v23 = vsel %vm2390_vm3, %v2392_v42, %v2388_v30  ;;  %v8092_v15 = vld [vmem:[#allocation91_spill] sm:$0xff]  ;;  %v6807_v30 = vld [vmem:[#allocation2 + $0x378] sm:$0xff] }
 0x812   :  { %8095 = vst [vmem:[#allocation41_spill] sm:$0xff] %v6807_v30  ;;  %v8096_v42 = vld [vmem:[#allocation95_spill] sm:$0xff] }
 0x814   :  { %v3954_v34 = vpop.eup %3953 }
 0x815   :  { %v2399_v1 = vmul.f32 %v3954_v34, %v2393_v23  ;;  %v8097_v34 = vld [vmem:[#allocation89_spill] sm:$0xff] }
 0x816   :  { %v8098_v23 = vld [vmem:[#allocation97_spill] sm:$0xff] }
 0x817   :  { %v2401_v5 = vrot.slane %v2399_v1, 2  ;;  %v8099_v1 = vld [vmem:[#allocation93_spill] sm:$0xff] }
 0x819   :  { %v2402_v12 = vrot.slane %v2401_v5, 6  ;;  %v8100_v5 = vld [vmem:[#allocation99_spill] sm:$0xff] }
 0x81b   :  { %2440 = vmatmul.f32.vlgmr.msrb.gmra.mxu1 %v2402_v12  ;;  %2480 = vmatmul.f32.vlgmr.msrb.gmra.mxu3 %v2402_v12 }
 0x81c   :  { %2647 = vmatpush.msrb.mxu1 %v6690_v48  ;;  %2687 = vmatpush.msrb.mxu3 %v6693_v6 }
 0x81e   :  { %2648 = vmatpush.msrb.mxu1 %v6696_v16  ;;  %2688 = vmatpush.msrb.mxu3 %v6699_v24 }
 0x820   :  { %2649 = vmatpush.msrb.mxu1 %v6702_v7  ;;  %2689 = vmatpush.msrb.mxu3 %v6705_v10 }
 0x822   :  { %2650 = vmatpush.msrb.mxu1 %v6708_v62  ;;  %2690 = vmatpush.msrb.mxu3 %v6711_v50 }
 0x823   :  { %2520 = vmatmul.f32.vlgmr.msra.gmra.mxu1 %v2402_v12  ;;  %2560 = vmatmul.f32.vlgmr.msra.gmra.mxu3 %v2402_v12  ;;  %v8101_v12 = vld [vmem:[#allocation96_spill] sm:$0xff] }
 0x824   :  { %2651 = vmatpush.msrb.mxu1 %v6714_v3  ;;  %2691 = vmatpush.msrb.mxu3 %v6717_v31 }
 0x826   :  { %2652 = vmatpush.msrb.mxu1 %v6720_v47  ;;  %2692 = vmatpush.msrb.mxu3 %v6723_v39 }
 0x828   :  { %2653 = vmatpush.msrb.mxu1 %v6726_v14  ;;  %2693 = vmatpush.msrb.mxu3 %v6729_v2 }
 0x82a   :  { %2654 = vmatpush.msrb.mxu1 %v6732_v9  ;;  %2694 = vmatpush.msrb.mxu3 %v6735_v33 }
 0x82c   :  { %2655 = vmatpush.msrb.mxu1 %v6738_v38  ;;  %2695 = vmatpush.msrb.mxu3 %v6741_v37 }
 0x82e   :  { %2656 = vmatpush.msrb.mxu1 %v6744_v51  ;;  %2696 = vmatpush.msrb.mxu3 %v6747_v28 }
 0x830   :  { %2657 = vmatpush.msrb.mxu1 %v6750_v18  ;;  %2697 = vmatpush.msrb.mxu3 %v6753_v58 }
 0x832   :  { %2658 = vmatpush.msrb.mxu1 %v6756_v32  ;;  %2698 = vmatpush.msrb.mxu3 %v6759_v17 }
 0x834   :  { %2659 = vmatpush.msrb.mxu1 %v6762_v63  ;;  %2699 = vmatpush.msrb.mxu3 %v6765_v40 }
 0x836   :  { %2660 = vmatpush.msrb.mxu1 %v6768_v4  ;;  %2700 = vmatpush.msrb.mxu3 %v6771_v61 }
 0x838   :  { %2661 = vmatpush.msrb.mxu1 %v6774_v0  ;;  %2701 = vmatpush.msrb.mxu3 %v6777_v25 }
 0x83a   :  { %2662 = vmatpush.msrb.mxu1 %v6780_v27  ;;  %2702 = vmatpush.msrb.mxu3 %v6783_v29 }
 0x83c   :  { %2727 = vmatpush.msra.mxu1 %v6786_v22  ;;  %2767 = vmatpush.msra.mxu3 %v6789_v8 }
 0x83e   :  { %2728 = vmatpush.msra.mxu1 %v6792_v36  ;;  %2768 = vmatpush.msra.mxu3 %v6795_v56 }
 0x840   :  { %2729 = vmatpush.msra.mxu1 %v8090_v52  ;;  %2769 = vmatpush.msra.mxu3 %v6799_v20  ;;  %v8105_v20 = vld [vmem:[#allocation22_spill] sm:$0xff] }
 0x842   :  { %2730 = vmatpush.msra.mxu1 %v8092_v15  ;;  %2770 = vmatpush.msra.mxu3 %v6803_v45  ;;  %v8102_v15 = vld [vmem:[#allocation100_spill] sm:$0xff]  ;;  %v8103_v45 = vld [vmem:[#allocation98_spill] sm:$0xff] }
 0x844   :  { %2731 = vmatpush.msra.mxu1 %v8094_v46  ;;  %2771 = vmatpush.msra.mxu3 %v6807_v30  ;;  %v8104_v46 = vld [vmem:[#allocation54_spill] sm:$0xff] }
 0x846   :  { %2732 = vmatpush.msra.mxu1 %v8096_v42  ;;  %2772 = vmatpush.msra.mxu3 %v8097_v34  ;;  %v8106_v42 = vld [vmem:[#allocation75_spill] sm:$0xff] }
 0x848   :  { %2733 = vmatpush.msra.mxu1 %v8098_v23  ;;  %2773 = vmatpush.msra.mxu3 %v8099_v1 }
 0x84a   :  { %2734 = vmatpush.msra.mxu1 %v8100_v5  ;;  %2774 = vmatpush.msra.mxu3 %v8101_v12 }
 0x84c   :  { %2735 = vmatpush.msra.mxu1 %v8102_v15  ;;  %2775 = vmatpush.msra.mxu3 %v8103_v45 }
 0x84e   :  { %2736 = vmatpush.msra.mxu1 %v8104_v46  ;;  %2776 = vmatpush.msra.mxu3 %v8105_v20 }
 0x850   :  { %2737 = vmatpush.msra.mxu1 %v6582_v26  ;;  %2777 = vmatpush.msra.mxu3 %v8106_v42  ;;  %v2421_v42 = vpop.f32.mrf.mxu0 }
 0x852   :  { %2738 = vmatpush.msra.mxu1 %v6590_v59  ;;  %2778 = vmatpush.msra.mxu3 %v6593_v55  ;;  %v2422_v59 = vadd.f32 %v2421_v42, %v8085_v19  ;;  %v2461_v55 = vpop.f32.mrf.mxu2 }
 0x854   :  { %2739 = vmatpush.msra.mxu1 %v6598_v53  ;;  %2779 = vmatpush.msra.mxu3 %v6601_v43  ;;  %v2462_v43 = vadd.f32 %v2461_v55, %v8086_v44 }
 0x856   :  { %2740 = vmatpush.msra.mxu1 %v6606_v11  ;;  %2780 = vmatpush.msra.mxu3 %v6609_v41 }
 0x858   :  { %2741 = vmatpush.msra.mxu1 %v6614_v60  ;;  %2781 = vmatpush.msra.mxu3 %v6617_v54 }
 0x85a   :  { %2742 = vmatpush.msra.mxu1 %v6622_v49  ;;  %2782 = vmatpush.msra.mxu3 %v6625_v13  ;;  %v2541_v46 = vpop.f32.mrf.mxu2 }
 0x85b   :  { %v2542_v49 = vadd.f32 %v2541_v46, %v8087_v35 }
 0x898   :  { %v2441_v26 = vpop.f32.mrf.mxu1 }
 0x899   :  { %v2442_v53 = vadd.f32 %v2441_v26, %v2422_v59  ;;  %v2501_v59 = vpop.f32.mrf.mxu0 }
 0x89b   :  { %v3689_v20 = vmul.f32 -1.442695, %v2442_v53 }
 0x89d   :  { %3955 = vpow2.f32 %v3689_v20 }
 0x89e   :  { %v2481_v11 = vpop.f32.mrf.mxu3 }
 0x89f   :  { %v2482_v41 = vadd.f32 %v2481_v11, %v2462_v43  ;;  %v2502_v43 = vadd.f32 %v2501_v59, %v8088_v21 }
 0x8a0   :  { %v2521_v11 = vpop.f32.mrf.mxu1 }
 0x8a1   :  { %v3690_v60 = vmul.f32 -1.442695, %v2482_v41  ;;  %v2522_v46 = vadd.f32 %v2521_v11, %v2502_v43 }
 0x8a3   :  { %v3956_v45 = vpop.eup %3955  ;;  %3957 = vpow2.f32 %v3690_v60 }
 0x8a4   :  { %v2567_v54 = vadd.f32 1.0, %v3956_v45 }
 0x8a6   :  { %3959 = vrcp.f32 %v2567_v54  ;;  %v2561_v13 = vpop.f32.mrf.mxu3  ;;  %vm2573_vm5 = vweird.f32 %v2567_v54 }
 0x8a7   :  { %v2562_v15 = vadd.f32 %v2561_v13, %v2542_v49  ;;  %v2579_v49 = vand.u32 2147483648, %v2567_v54 }
 0x8a9   :  { %v3958_v42 = vpop.eup %3957  ;;  %v3691_v19 = vmul.f32 -1.442695, %v2562_v15  ;;  %v2580_v21 = vor.u32 1.1754944e-38, %v2579_v49 }
 0x8aa   :  { %v2586_v12 = vadd.f32 1.0, %v3958_v42 }
 0x8ab   :  { %3961 = vpow2.f32 %v3691_v19  ;;  %v2577_v19 = vand.u32 2147483647, %v2567_v54 }
 0x8ac   :  { %v3960_v26 = vpop.eup %3959  ;;  %3963 = vrcp.f32 %v2586_v12  ;;  %v2598_v15 = vand.u32 2147483648, %v2586_v12  ;;  %vm2592_vm8 = vweird.f32 %v2586_v12 }
 0x8ad   :  { %v2569_v55 = vmul.f32 %v3960_v26, %v2567_v54  ;;  %vm2574_vm4 = vweird.f32 %v3960_v26  ;;  %vm2578_vm9 = vcmp.eq.f32.partialorder %v2577_v19, 8.507059e+37 }
 0x8ae   :  { %vm2575_vm6 = vmor %vm2573_vm5, %vm2574_vm4  ;;  %v2599_v11 = vor.u32 1.1754944e-38, %v2598_v15 }
 0x8af   :  { %v2570_v53 = vsub.f32 1.0, %v2569_v55  ;;  %v2596_v55 = vand.u32 2147483647, %v2586_v12 }
 0x8b1   :  { %v3962_v41 = vpop.eup %3961  ;;  %v2571_v60 = vmul.f32 %v3960_v26, %v2570_v53  ;;  %vm2597_vm11 = vcmp.eq.f32.partialorder %v2596_v55, 8.507059e+37  ;;  %v8112_v55 = vld [vmem:[#allocation97_spill] sm:$0xff] }
 0x8b2   :  { %v3964_v20 = vpop.eup %3963  ;;  %v2606_v45 = vadd.f32 1.0, %v3962_v41 }
 0x8b3   :  { %v2588_v35 = vmul.f32 %v3964_v20, %v2586_v12  ;;  %v2572_v44 = vadd.f32 %v3960_v26, %v2571_v60  ;;  %vm2593_vm7 = vweird.f32 %v3964_v20 }
 0x8b4   :  { %3965 = vrcp.f32 %v2606_v45  ;;  %vm2594_vm10 = vmor %vm2592_vm8, %vm2593_vm7  ;;  %vm2612_vm13 = vweird.f32 %v2606_v45  ;;  %v2616_v49 = vand.u32 2147483647, %v2606_v45 }
 0x8b5   :  { %v2589_v13 = vsub.f32 1.0, %v2588_v35  ;;  %3967 = vtanh.f32 %v2522_v46  ;;  %v2576_v59 = vsel %vm2575_vm6, %v3960_v26, %v2572_v44  ;;  %v2618_v26 = vand.u32 2147483648, %v2606_v45 }
 0x8b6   :  { %v2581_v41 = vsel %vm2578_vm9, %v2580_v21, %v2576_v59  ;;  %vm2617_vm15 = vcmp.eq.f32.partialorder %v2616_v49, 8.507059e+37  ;;  %v8111_v59 = vld [vmem:[#allocation95_spill] sm:$0xff]  ;;  %v8127_v49 = vld [vmem:[#allocation33_spill] sm:$0xff] }
 0x8b7   :  { %v2590_v42 = vmul.f32 %v3964_v20, %v2589_v13 }
 0x8b9   :  { %v2591_v43 = vadd.f32 %v3964_v20, %v2590_v42 }
 0x8ba   :  { %v3966_v53 = vpop.eup %3965 }
 0x8bb   :  { %v2595_v60 = vsel %vm2594_vm10, %v3964_v20, %v2591_v43  ;;  %v2608_v35 = vmul.f32 %v3966_v53, %v2606_v45  ;;  %v3968_v5 = vpop.eup %3967  ;;  %vm2613_vm12 = vweird.f32 %v3966_v53  ;;  %v2619_v20 = vor.u32 1.1754944e-38, %v2618_v26  ;;  %v8110_v45 = vld [vmem:[#allocation85_spill] sm:$0xff]  ;;  %v8126_v26 = vld [vmem:[#allocation76_spill] sm:$0xff] }
 0x8bc   :  { %v2600_v54 = vsel %vm2597_vm11, %v2599_v11, %v2595_v60  ;;  %v2623_v46 = vmul.f32 %v3968_v5, %v2581_v41  ;;  %vm2614_vm14 = vmor %vm2612_vm13, %vm2613_vm12  ;;  %v8109_v5 = vld [vmem:[#allocation39_spill] sm:$0xff]  ;;  %v8113_v43 = vld [vmem:[#allocation93_spill] sm:$0xff] }
 0x8bd   :  { %v2622_v1 = vmul.f32 %v2600_v54, %v6687_v57  ;;  %v2609_v13 = vsub.f32 1.0, %v2608_v35  ;;  %v8107_v57 = vld [vmem:[#allocation80_spill] sm:$0xff]  ;;  %v8117_v41 = vld [vmem:[#allocation98_spill] sm:$0xff]  ;;  %v8120_v54 = vld [vmem:[#allocation71_spill] sm:$0xff] }
 0x8be   :  { %v8116_v11 = vld [vmem:[#allocation100_spill] sm:$0xff]  ;;  %v8118_v60 = vld [vmem:[#allocation54_spill] sm:$0xff] }
 0x8bf   :  { %v6837_v23 = vadd.f32 %v2623_v46, %v2622_v1  ;;  %v2610_v44 = vmul.f32 %v3966_v53, %v2609_v13  ;;  %v8108_v1 = vld [vmem:[#allocation91_spill] sm:$0xff]  ;;  %v8119_v35 = vld [vmem:[#allocation22_spill] sm:$0xff] }
 0x8c0   :  { %v8121_v46 = vld [vmem:[#allocation75_spill] sm:$0xff]  ;;  %v8123_v13 = vld [vmem:[#allocation82_spill] sm:$0xff] }
 0x8c1   :  { %3969 = vtanh.f32 %v6837_v23  ;;  %v2611_v12 = vadd.f32 %v3966_v53, %v2610_v44  ;;  %v8124_v44 = vld [vmem:[#allocation31_spill] sm:$0xff] }
 0x8c3   :  { %v2615_v21 = vsel %vm2614_vm14, %v3966_v53, %v2611_v12  ;;  %v8114_v53 = vld [vmem:[#allocation99_spill] sm:$0xff]  ;;  %v8125_v12 = vld [vmem:[#allocation26_spill] sm:$0xff] }
 0x8c4   :  { %v2620_v15 = vsel %vm2617_vm15, %v2619_v20, %v2615_v21  ;;  %v8128_v21 = vld [vmem:[#allocation35_spill] sm:$0xff]  ;;  %v8129_v20 = vld [vmem:[#allocation86_spill] sm:$0xff] }
 0x8c7   :  { %v3970_v19 = vpop.eup %3969 }
 0x8c8   :  { %v2626_v42 = vmul.f32 %v3970_v19, %v2620_v15  ;;  %v8130_v19 = vld [vmem:[#allocation37_spill] sm:$0xff]  ;;  %v8131_v15 = vld [vmem:[#allocation30_spill] sm:$0xff] }
 0x8ca   :  { %2663 = vmatmul.f32.vlgmr.msrb.gmra.mxu1 %v2626_v42  ;;  %2703 = vmatmul.f32.vlgmr.msrb.gmra.mxu3 %v2626_v42 }
 0x8cb   :  { %2874 = vmatpush.msrb.mxu1 %v6690_v48  ;;  %2914 = vmatpush.msrb.mxu3 %v6693_v6 }
 0x8cd   :  { %2875 = vmatpush.msrb.mxu1 %v6696_v16  ;;  %2915 = vmatpush.msrb.mxu3 %v6699_v24 }
 0x8cf   :  { %2876 = vmatpush.msrb.mxu1 %v6702_v7  ;;  %2916 = vmatpush.msrb.mxu3 %v6705_v10 }
 0x8d1   :  { %2877 = vmatpush.msrb.mxu1 %v6708_v62  ;;  %2917 = vmatpush.msrb.mxu3 %v6711_v50 }
 0x8d2   :  { %2743 = vmatmul.f32.vlgmr.msra.gmra.mxu1 %v2626_v42  ;;  %2783 = vmatmul.f32.vlgmr.msra.gmra.mxu3 %v2626_v42  ;;  %v2644_v42 = vpop.f32.mrf.mxu0 }
 0x8d3   :  { %2878 = vmatpush.msrb.mxu1 %v6714_v3  ;;  %2918 = vmatpush.msrb.mxu3 %v6717_v31 }
 0x8d5   :  { %2879 = vmatpush.msrb.mxu1 %v6720_v47  ;;  %2919 = vmatpush.msrb.mxu3 %v6723_v39 }
 0x8d7   :  { %2880 = vmatpush.msrb.mxu1 %v6726_v14  ;;  %2920 = vmatpush.msrb.mxu3 %v6729_v2 }
 0x8d9   :  { %2881 = vmatpush.msrb.mxu1 %v6732_v9  ;;  %2921 = vmatpush.msrb.mxu3 %v6735_v33 }
 0x8db   :  { %2882 = vmatpush.msrb.mxu1 %v6738_v38  ;;  %2922 = vmatpush.msrb.mxu3 %v6741_v37 }
 0x8dd   :  { %2883 = vmatpush.msrb.mxu1 %v6744_v51  ;;  %2923 = vmatpush.msrb.mxu3 %v6747_v28 }
 0x8df   :  { %2884 = vmatpush.msrb.mxu1 %v6750_v18  ;;  %2924 = vmatpush.msrb.mxu3 %v6753_v58 }
 0x8e1   :  { %2885 = vmatpush.msrb.mxu1 %v6756_v32  ;;  %2925 = vmatpush.msrb.mxu3 %v6759_v17 }
 0x8e3   :  { %2886 = vmatpush.msrb.mxu1 %v6762_v63  ;;  %2926 = vmatpush.msrb.mxu3 %v6765_v40 }
 0x8e5   :  { %2887 = vmatpush.msrb.mxu1 %v6768_v4  ;;  %2927 = vmatpush.msrb.mxu3 %v6771_v61 }
 0x8e7   :  { %2888 = vmatpush.msrb.mxu1 %v6774_v0  ;;  %2928 = vmatpush.msrb.mxu3 %v6777_v25 }
 0x8e9   :  { %2889 = vmatpush.msrb.mxu1 %v6780_v27  ;;  %2929 = vmatpush.msrb.mxu3 %v6783_v29 }
 0x8eb   :  { %2954 = vmatpush.msra.mxu1 %v6786_v22  ;;  %2994 = vmatpush.msra.mxu3 %v6789_v8 }
 0x8ed   :  { %2955 = vmatpush.msra.mxu1 %v6792_v36  ;;  %2995 = vmatpush.msra.mxu3 %v6795_v56 }
 0x8ef   :  { %2956 = vmatpush.msra.mxu1 %v8090_v52  ;;  %2996 = vmatpush.msra.mxu3 %v8107_v57  ;;  %v8115_v52 = vld [vmem:[#allocation96_spill] sm:$0xff] }
 0x8f1   :  { %2957 = vmatpush.msra.mxu1 %v8108_v1  ;;  %2997 = vmatpush.msra.mxu3 %v8109_v5  ;;  %v8132_v1 = vld [vmem:[#allocation28_spill] sm:$0xff] }
 0x8f3   :  { %2958 = vmatpush.msra.mxu1 %v8110_v45  ;;  %2998 = vmatpush.msra.mxu3 %v6807_v30  ;;  %v2645_v45 = vadd.f32 %v2644_v42, %v8132_v1 }
 0x8f5   :  { %2959 = vmatpush.msra.mxu1 %v8111_v59  ;;  %2999 = vmatpush.msra.mxu3 %v8097_v34  ;;  %v8122_v34 = vld [vmem:[#allocation32_spill] sm:$0xff]  ;;  %v2684_v59 = vpop.f32.mrf.mxu2 }
 0x8f7   :  { %2960 = vmatpush.msra.mxu1 %v8112_v55  ;;  %3000 = vmatpush.msra.mxu3 %v8113_v43 }
 0x8f9   :  { %2961 = vmatpush.msra.mxu1 %v8114_v53  ;;  %3001 = vmatpush.msra.mxu3 %v8115_v52  ;;  %v8133_v52 = vld [vmem:[#allocation27_spill] sm:$0xff] }
 0x8fb   :  { %2962 = vmatpush.msra.mxu1 %v8116_v11  ;;  %3002 = vmatpush.msra.mxu3 %v8117_v41  ;;  %v2685_v11 = vadd.f32 %v2684_v59, %v8133_v52 }
 0x8fd   :  { %2963 = vmatpush.msra.mxu1 %v8118_v60  ;;  %3003 = vmatpush.msra.mxu3 %v8119_v35  ;;  %v2764_v35 = vpop.f32.mrf.mxu2 }
 0x8ff   :  { %2964 = vmatpush.msra.mxu1 %v8120_v54  ;;  %3004 = vmatpush.msra.mxu3 %v8121_v46 }
 0x901   :  { %2965 = vmatpush.msra.mxu1 %v8122_v34  ;;  %3005 = vmatpush.msra.mxu3 %v8123_v13  ;;  %v8134_v34 = vld [vmem:[#allocation29_spill] sm:$0xff] }
 0x902   :  { %v2765_v13 = vadd.f32 %v2764_v35, %v8134_v34 }
 0x903   :  { %2966 = vmatpush.msra.mxu1 %v8124_v44  ;;  %3006 = vmatpush.msra.mxu3 %v8125_v12 }
 0x905   :  { %2967 = vmatpush.msra.mxu1 %v8126_v26  ;;  %3007 = vmatpush.msra.mxu3 %v8127_v49 }
 0x907   :  { %2968 = vmatpush.msra.mxu1 %v8128_v21  ;;  %3008 = vmatpush.msra.mxu3 %v8129_v20 }
 0x909   :  { %2969 = vmatpush.msra.mxu1 %v8130_v19  ;;  %3009 = vmatpush.msra.mxu3 %v8131_v15 }
 0x947   :  { %v2664_v55 = vpop.f32.mrf.mxu1 }
 0x948   :  { %v2665_v43 = vadd.f32 %v2664_v55, %v2645_v45  ;;  %v2724_v45 = vpop.f32.mrf.mxu0 }
 0x94a   :  { %v3692_v53 = vmul.f32 -1.442695, %v2665_v43  ;;  %v8135_v43 = vld [vmem:[#allocation25_spill] sm:$0xff] }
 0x94c   :  { %3971 = vpow2.f32 %v3692_v53  ;;  %v2725_v53 = vadd.f32 %v2724_v45, %v8135_v43 }
 0x94d   :  { %v2704_v41 = vpop.f32.mrf.mxu3 }
 0x94e   :  { %v2705_v60 = vadd.f32 %v2704_v41, %v2685_v11 }
 0x94f   :  { %v2744_v41 = vpop.f32.mrf.mxu1 }
 0x950   :  { %v3693_v54 = vmul.f32 -1.442695, %v2705_v60  ;;  %v2745_v35 = vadd.f32 %v2744_v41, %v2725_v53 }
 0x952   :  { %v3972_v46 = vpop.eup %3971  ;;  %3973 = vpow2.f32 %v3693_v54 }
 0x953   :  { %v2790_v19 = vadd.f32 1.0, %v3972_v46 }
 0x955   :  { %3975 = vrcp.f32 %v2790_v19  ;;  %v2784_v15 = vpop.f32.mrf.mxu3  ;;  %vm2796_vm1 = vweird.f32 %v2790_v19 }
 0x956   :  { %v2785_v20 = vadd.f32 %v2784_v15, %v2765_v13  ;;  %v2802_v15 = vand.u32 2147483648, %v2790_v19 }
 0x958   :  { %v3974_v42 = vpop.eup %3973  ;;  %v3694_v1 = vmul.f32 -1.442695, %v2785_v20  ;;  %v2803_v43 = vor.u32 1.1754944e-38, %v2802_v15 }
 0x959   :  { %v2809_v21 = vadd.f32 1.0, %v3974_v42 }
 0x95a   :  { %3977 = vpow2.f32 %v3694_v1  ;;  %v2800_v1 = vand.u32 2147483647, %v2790_v19 }
 0x95b   :  { %v3976_v55 = vpop.eup %3975  ;;  %3979 = vrcp.f32 %v2809_v21  ;;  %v2821_v13 = vand.u32 2147483648, %v2809_v21  ;;  %vm2815_vm4 = vweird.f32 %v2809_v21 }
 0x95c   :  { %v2792_v59 = vmul.f32 %v3976_v55, %v2790_v19  ;;  %vm2797_vm0 = vweird.f32 %v3976_v55  ;;  %vm2801_vm5 = vcmp.eq.f32.partialorder %v2800_v1, 8.507059e+37 }
 0x95d   :  { %vm2798_vm2 = vmor %vm2796_vm1, %vm2797_vm0  ;;  %v2822_v41 = vor.u32 1.1754944e-38, %v2821_v13 }
 0x95e   :  { %v2793_v11 = vsub.f32 1.0, %v2792_v59  ;;  %v2819_v59 = vand.u32 2147483647, %v2809_v21 }
 0x960   :  { %v3978_v60 = vpop.eup %3977  ;;  %v2794_v54 = vmul.f32 %v3976_v55, %v2793_v11  ;;  %vm2820_vm7 = vcmp.eq.f32.partialorder %v2819_v59, 8.507059e+37  ;;  %v6960_v59 = vld [vmem:[#allocation2 + $0x350] sm:$0xff] }
 0x961   :  { %v3980_v52 = vpop.eup %3979  ;;  %v2829_v46 = vadd.f32 1.0, %v3978_v60  ;;  %8137 = vst [vmem:[#allocation48_spill] sm:$0xff] %v6960_v59 }
 0x962   :  { %v2811_v34 = vmul.f32 %v3980_v52, %v2809_v21  ;;  %v2795_v49 = vadd.f32 %v3976_v55, %v2794_v54  ;;  %vm2816_vm3 = vweird.f32 %v3980_v52 }
 0x963   :  { %3981 = vrcp.f32 %v2829_v46  ;;  %vm2817_vm6 = vmor %vm2815_vm4, %vm2816_vm3  ;;  %vm2835_vm9 = vweird.f32 %v2829_v46  ;;  %v2839_v15 = vand.u32 2147483647, %v2829_v46 }
 0x964   :  { %v2812_v20 = vsub.f32 1.0, %v2811_v34  ;;  %3983 = vtanh.f32 %v2745_v35  ;;  %v2799_v45 = vsel %vm2798_vm2, %v3976_v55, %v2795_v49  ;;  %v2841_v55 = vand.u32 2147483648, %v2829_v46 }
 0x965   :  { %v2804_v60 = vsel %vm2801_vm5, %v2803_v43, %v2799_v45  ;;  %vm2840_vm11 = vcmp.eq.f32.partialorder %v2839_v15, 8.507059e+37  ;;  %v6956_v45 = vld [vmem:[#allocation2 + $0x370] sm:$0xff]  ;;  %v6999_v15 = vld [vmem:[#allocation2 + $0x298] sm:$0xff] }
 0x966   :  { %v2813_v42 = vmul.f32 %v3980_v52, %v2812_v20  ;;  %v2842_v43 = vor.u32 1.1754944e-38, %v2841_v55  ;;  %8136 = vst [vmem:[#allocation34_spill] sm:$0xff] %v6956_v45  ;;  %v6996_v55 = vld [vmem:[#allocation2 + $0x290] sm:$0xff] }
 0x967   :  { %8149 = vst [vmem:[#allocation50_spill] sm:$0xff] %v6996_v55 }
 0x968   :  { %v2814_v53 = vadd.f32 %v3980_v52, %v2813_v42  ;;  %8150 = vst [vmem:[#allocation57_spill] sm:$0xff] %v6999_v15 }
 0x969   :  { %v3982_v11 = vpop.eup %3981 }
 0x96a   :  { %v2818_v54 = vsel %vm2817_vm6, %v3980_v52, %v2814_v53  ;;  %v2831_v34 = vmul.f32 %v3982_v11, %v2829_v46  ;;  %v3984_v26 = vpop.eup %3983  ;;  %vm2836_vm8 = vweird.f32 %v3982_v11  ;;  %v6952_v46 = vld [vmem:[#allocation2 + $0x390] sm:$0xff]  ;;  %v6963_v53 = vld [vmem:[#allocation2 + $0x358] sm:$0xff] }
 0x96b   :  { %v2823_v19 = vsel %vm2820_vm7, %v2822_v41, %v2818_v54  ;;  %v2846_v35 = vmul.f32 %v3984_v26, %v2804_v60  ;;  %vm2837_vm10 = vmor %vm2835_vm9, %vm2836_vm8  ;;  %8138 = vst [vmem:[#allocation90_spill] sm:$0xff] %v6963_v53  ;;  %v6969_v41 = vld [vmem:[#allocation2 + $0x338] sm:$0xff]  ;;  %v6972_v60 = vld [vmem:[#allocation2 + $0x310] sm:$0xff] }
 0x96c   :  { %v2845_v12 = vmul.f32 %v2823_v19, %v6837_v23  ;;  %v2832_v20 = vsub.f32 1.0, %v2831_v34  ;;  %8140 = vst [vmem:[#allocation46_spill] sm:$0xff] %v6969_v41  ;;  %v6975_v54 = vld [vmem:[#allocation2 + $0x318] sm:$0xff]  ;;  %v6978_v34 = vld [vmem:[#allocation2 + $0x2f0] sm:$0xff] }
 0x96d   :  { %8141 = vst [vmem:[#allocation44_spill] sm:$0xff] %v6972_v60  ;;  %v6981_v19 = vld [vmem:[#allocation2 + $0x2f8] sm:$0xff] }
 0x96e   :  { %v6909_v44 = vadd.f32 %v2846_v35, %v2845_v12  ;;  %v2833_v49 = vmul.f32 %v3982_v11, %v2832_v20  ;;  %v6948_v12 = vld [vmem:[#allocation2 + $0x3b0] sm:$0xff]  ;;  %8142 = vst [vmem:[#allocation42_spill] sm:$0xff] %v6975_v54  ;;  %v6987_v20 = vld [vmem:[#allocation2 + $0x2d8] sm:$0xff] }
 0x96f   :  { %8143 = vst [vmem:[#allocation55_spill] sm:$0xff] %v6978_v34  ;;  %v6984_v35 = vld [vmem:[#allocation2 + $0x2d0] sm:$0xff] }
 0x970   :  { %3985 = vtanh.f32 %v6909_v44  ;;  %v2834_v21 = vadd.f32 %v3982_v11, %v2833_v49  ;;  %8144 = vst [vmem:[#allocation51_spill] sm:$0xff] %v6981_v19  ;;  %v6990_v49 = vld [vmem:[#allocation2 + $0x2b0] sm:$0xff] }
 0x971   :  { %8145 = vst [vmem:[#allocation84_spill] sm:$0xff] %v6984_v35 }
 0x972   :  { %v2838_v52 = vsel %vm2837_vm10, %v3982_v11, %v2834_v21  ;;  %v6966_v11 = vld [vmem:[#allocation2 + $0x330] sm:$0xff]  ;;  %8146 = vst [vmem:[#allocation49_spill] sm:$0xff] %v6987_v20  ;;  %v6993_v21 = vld [vmem:[#allocation2 + $0x2b8] sm:$0xff] }
 0x973   :  { %v2843_v13 = vsel %vm2840_vm11, %v2842_v43, %v2838_v52  ;;  %8139 = vst [vmem:[#allocation38_spill] sm:$0xff] %v6966_v11  ;;  %v8151_v52 = vld [vmem:[#allocation31_spill] sm:$0xff]  ;;  %v8152_v43 = vld [vmem:[#allocation26_spill] sm:$0xff] }
 0x974   :  { %8147 = vst [vmem:[#allocation58_spill] sm:$0xff] %v6990_v49 }
 0x975   :  { %8148 = vst [vmem:[#allocation47_spill] sm:$0xff] %v6993_v21 }
 0x976   :  { %v3986_v1 = vpop.eup %3985 }
 0x977   :  { %v2849_v42 = vmul.f32 %v3986_v1, %v2843_v13  ;;  %v8153_v1 = vld [vmem:[#allocation76_spill] sm:$0xff]  ;;  %v8154_v13 = vld [vmem:[#allocation33_spill] sm:$0xff] }
 0x979   :  { %v2851_v23 = vrot.slane %v2849_v42, 6  ;;  %v8155_v42 = vld [vmem:[#allocation35_spill] sm:$0xff] }
 0x97b   :  { %v2852_v26 = vrot.slane %v2851_v23, 2  ;;  %v8156_v23 = vld [vmem:[#allocation86_spill] sm:$0xff] }
 0x97d   :  { %2890 = vmatmul.f32.vlgmr.msrb.gmra.mxu1 %v2852_v26  ;;  %2930 = vmatmul.f32.vlgmr.msrb.gmra.mxu3 %v2852_v26 }
 0x97e   :  { %3101 = vmatpush.msrb.mxu1 %v6690_v48  ;;  %3141 = vmatpush.msrb.mxu3 %v6693_v6 }
 0x980   :  { %3102 = vmatpush.msrb.mxu1 %v6696_v16  ;;  %3142 = vmatpush.msrb.mxu3 %v6699_v24 }
 0x982   :  { %3103 = vmatpush.msrb.mxu1 %v6702_v7  ;;  %3143 = vmatpush.msrb.mxu3 %v6705_v10 }
 0x984   :  { %3104 = vmatpush.msrb.mxu1 %v6708_v62  ;;  %3144 = vmatpush.msrb.mxu3 %v6711_v50 }
 0x985   :  { %2970 = vmatmul.f32.vlgmr.msra.gmra.mxu1 %v2852_v26  ;;  %3010 = vmatmul.f32.vlgmr.msra.gmra.mxu3 %v2852_v26  ;;  %v8157_v26 = vld [vmem:[#allocation37_spill] sm:$0xff] }
 0x986   :  { %3105 = vmatpush.msrb.mxu1 %v6714_v3  ;;  %3145 = vmatpush.msrb.mxu3 %v6717_v31 }
 0x988   :  { %3106 = vmatpush.msrb.mxu1 %v6720_v47  ;;  %3146 = vmatpush.msrb.mxu3 %v6723_v39 }
 0x98a   :  { %3107 = vmatpush.msrb.mxu1 %v6726_v14  ;;  %3147 = vmatpush.msrb.mxu3 %v6729_v2 }
 0x98c   :  { %3108 = vmatpush.msrb.mxu1 %v6732_v9  ;;  %3148 = vmatpush.msrb.mxu3 %v6735_v33 }
 0x98e   :  { %3109 = vmatpush.msrb.mxu1 %v6738_v38  ;;  %3149 = vmatpush.msrb.mxu3 %v6741_v37 }
 0x990   :  { %3110 = vmatpush.msrb.mxu1 %v6744_v51  ;;  %3150 = vmatpush.msrb.mxu3 %v6747_v28 }
 0x992   :  { %3111 = vmatpush.msrb.mxu1 %v6750_v18  ;;  %3151 = vmatpush.msrb.mxu3 %v6753_v58 }
 0x994   :  { %3112 = vmatpush.msrb.mxu1 %v6756_v32  ;;  %3152 = vmatpush.msrb.mxu3 %v6759_v17 }
 0x996   :  { %3113 = vmatpush.msrb.mxu1 %v6762_v63  ;;  %3153 = vmatpush.msrb.mxu3 %v6765_v40 }
 0x998   :  { %3114 = vmatpush.msrb.mxu1 %v6768_v4  ;;  %3154 = vmatpush.msrb.mxu3 %v6771_v61 }
 0x99a   :  { %3115 = vmatpush.msrb.mxu1 %v6774_v0  ;;  %3155 = vmatpush.msrb.mxu3 %v6777_v25 }
 0x99c   :  { %3116 = vmatpush.msrb.mxu1 %v6780_v27  ;;  %3156 = vmatpush.msrb.mxu3 %v6783_v29 }
 0x99e   :  { %3181 = vmatpush.msra.mxu1 %v6786_v22  ;;  %3221 = vmatpush.msra.mxu3 %v6789_v8 }
 0x9a0   :  { %3182 = vmatpush.msra.mxu1 %v6792_v36  ;;  %3222 = vmatpush.msra.mxu3 %v6795_v56 }
 0x9a2   :  { %3183 = vmatpush.msra.mxu1 %v6948_v12  ;;  %3223 = vmatpush.msra.mxu3 %v8107_v57 }
 0x9a4   :  { %3184 = vmatpush.msra.mxu1 %v6952_v46  ;;  %3224 = vmatpush.msra.mxu3 %v8109_v5 }
 0x9a6   :  { %3185 = vmatpush.msra.mxu1 %v6956_v45  ;;  %3225 = vmatpush.msra.mxu3 %v6807_v30 }
 0x9a8   :  { %3186 = vmatpush.msra.mxu1 %v6960_v59  ;;  %3226 = vmatpush.msra.mxu3 %v6963_v53 }
 0x9aa   :  { %3187 = vmatpush.msra.mxu1 %v6966_v11  ;;  %3227 = vmatpush.msra.mxu3 %v6969_v41 }
 0x9ac   :  { %3188 = vmatpush.msra.mxu1 %v6972_v60  ;;  %3228 = vmatpush.msra.mxu3 %v6975_v54 }
 0x9ae   :  { %3189 = vmatpush.msra.mxu1 %v6978_v34  ;;  %3229 = vmatpush.msra.mxu3 %v6981_v19 }
 0x9b0   :  { %3190 = vmatpush.msra.mxu1 %v6984_v35  ;;  %3230 = vmatpush.msra.mxu3 %v6987_v20 }
 0x9b2   :  { %3191 = vmatpush.msra.mxu1 %v6990_v49  ;;  %3231 = vmatpush.msra.mxu3 %v6993_v21  ;;  %v8158_v21 = vld [vmem:[#allocation30_spill] sm:$0xff]  ;;  %v8159_v49 = vld [vmem:[#allocation28_spill] sm:$0xff] }
 0x9b4   :  { %3192 = vmatpush.msra.mxu1 %v6996_v55  ;;  %3232 = vmatpush.msra.mxu3 %v6999_v15  ;;  %v2871_v55 = vpop.f32.mrf.mxu0  ;;  %v2911_v15 = vpop.f32.mrf.mxu2 }
 0x9b5   :  { %v2872_v20 = vadd.f32 %v2871_v55, %v8159_v49 }
 0x9b6   :  { %3193 = vmatpush.msra.mxu1 %v8151_v52  ;;  %3233 = vmatpush.msra.mxu3 %v8152_v43  ;;  %v8160_v43 = vld [vmem:[#allocation27_spill] sm:$0xff] }
 0x9b7   :  { %v2912_v34 = vadd.f32 %v2911_v15, %v8160_v43  ;;  %v8162_v15 = vld [vmem:[#allocation25_spill] sm:$0xff] }
 0x9b8   :  { %3194 = vmatpush.msra.mxu1 %v8153_v1  ;;  %3234 = vmatpush.msra.mxu3 %v8154_v13 }
 0x9ba   :  { %3195 = vmatpush.msra.mxu1 %v8155_v42  ;;  %3235 = vmatpush.msra.mxu3 %v8156_v23  ;;  %v8161_v23 = vld [vmem:[#allocation29_spill] sm:$0xff] }
 0x9bc   :  { %3196 = vmatpush.msra.mxu1 %v8157_v26  ;;  %3236 = vmatpush.msra.mxu3 %v8158_v21  ;;  %v2991_v54 = vpop.f32.mrf.mxu2 }
 0x9bd   :  { %v2992_v26 = vadd.f32 %v2991_v54, %v8161_v23 }
 0x9fa   :  { %v2891_v35 = vpop.f32.mrf.mxu1 }
 0x9fb   :  { %v2892_v52 = vadd.f32 %v2891_v35, %v2872_v20  ;;  %v2951_v35 = vpop.f32.mrf.mxu0 }
 0x9fd   :  { %v3695_v19 = vmul.f32 -1.442695, %v2892_v52 }
 0x9ff   :  { %3987 = vpow2.f32 %v3695_v19 }
 0xa00   :  { %v2931_v1 = vpop.f32.mrf.mxu3 }
 0xa01   :  { %v2932_v13 = vadd.f32 %v2931_v1, %v2912_v34  ;;  %v2952_v34 = vadd.f32 %v2951_v35, %v8162_v15 }
 0xa02   :  { %v2971_v1 = vpop.f32.mrf.mxu1 }
 0xa03   :  { %v3696_v42 = vmul.f32 -1.442695, %v2932_v13  ;;  %v2972_v54 = vadd.f32 %v2971_v1, %v2952_v34 }
 0xa05   :  { %v3988_v60 = vpop.eup %3987  ;;  %3989 = vpow2.f32 %v3696_v42 }
 0xa06   :  { %v3017_v41 = vadd.f32 1.0, %v3988_v60 }
 0xa08   :  { %3991 = vrcp.f32 %v3017_v41  ;;  %v3011_v21 = vpop.f32.mrf.mxu3  ;;  %vm3023_vm13 = vweird.f32 %v3017_v41 }
 0xa09   :  { %v3012_v11 = vadd.f32 %v3011_v21, %v2992_v26  ;;  %v3029_v26 = vand.u32 2147483648, %v3017_v41 }
 0xa0b   :  { %v3990_v55 = vpop.eup %3989  ;;  %v3697_v49 = vmul.f32 -1.442695, %v3012_v11  ;;  %v3030_v15 = vor.u32 1.1754944e-38, %v3029_v26 }
 0xa0c   :  { %v3036_v53 = vadd.f32 1.0, %v3990_v55 }
 0xa0d   :  { %3993 = vpow2.f32 %v3697_v49  ;;  %v3027_v49 = vand.u32 2147483647, %v3017_v41 }
 0xa0e   :  { %v3992_v20 = vpop.eup %3991  ;;  %3995 = vrcp.f32 %v3036_v53  ;;  %v3048_v21 = vand.u32 2147483648, %v3036_v53  ;;  %vm3042_vm0 = vweird.f32 %v3036_v53 }
 0xa0f   :  { %v3019_v19 = vmul.f32 %v3992_v20, %v3017_v41  ;;  %vm3024_vm12 = vweird.f32 %v3992_v20  ;;  %vm3028_vm1 = vcmp.eq.f32.partialorder %v3027_v49, 8.507059e+37 }
 0xa10   :  { %vm3025_vm14 = vmor %vm3023_vm13, %vm3024_vm12  ;;  %v3049_v1 = vor.u32 1.1754944e-38, %v3048_v21 }
 0xa11   :  { %v3020_v52 = vsub.f32 1.0, %v3019_v19  ;;  %v3046_v19 = vand.u32 2147483647, %v3036_v53 }
 0xa13   :  { %v3994_v13 = vpop.eup %3993  ;;  %v3021_v42 = vmul.f32 %v3992_v20, %v3020_v52  ;;  %vm3047_vm3 = vcmp.eq.f32.partialorder %v3046_v19, 8.507059e+37 }
 0xa14   :  { %v3996_v43 = vpop.eup %3995  ;;  %v3056_v60 = vadd.f32 1.0, %v3994_v13 }
 0xa15   :  { %v3038_v23 = vmul.f32 %v3996_v43, %v3036_v53  ;;  %v3022_v59 = vadd.f32 %v3992_v20, %v3021_v42  ;;  %vm3043_vm15 = vweird.f32 %v3996_v43 }
 0xa16   :  { %3997 = vrcp.f32 %v3056_v60  ;;  %vm3044_vm2 = vmor %vm3042_vm0, %vm3043_vm15  ;;  %vm3062_vm5 = vweird.f32 %v3056_v60  ;;  %v3066_v26 = vand.u32 2147483647, %v3056_v60 }
 0xa17   :  { %v3039_v11 = vsub.f32 1.0, %v3038_v23  ;;  %3999 = vtanh.f32 %v2972_v54  ;;  %v3026_v35 = vsel %vm3025_vm14, %v3992_v20, %v3022_v59  ;;  %v3068_v20 = vand.u32 2147483648, %v3056_v60 }
 0xa18   :  { %v3031_v13 = vsel %vm3028_vm1, %v3030_v15, %v3026_v35  ;;  %vm3067_vm7 = vcmp.eq.f32.partialorder %v3066_v26, 8.507059e+37  ;;  %v8183_v35 = vld [vmem:[#allocation29_spill] sm:$0xff] }
 0xa19   :  { %v3040_v55 = vmul.f32 %v3996_v43, %v3039_v11  ;;  %v3069_v15 = vor.u32 1.1754944e-38, %v3068_v20 }
 0xa1b   :  { %v3041_v34 = vadd.f32 %v3996_v43, %v3040_v55 }
 0xa1c   :  { %v3998_v52 = vpop.eup %3997 }
 0xa1d   :  { %v3045_v42 = vsel %vm3044_vm2, %v3996_v43, %v3041_v34  ;;  %v3058_v23 = vmul.f32 %v3998_v52, %v3056_v60  ;;  %v4000_v30 = vpop.eup %3999  ;;  %vm3063_vm4 = vweird.f32 %v3998_v52 }
 0xa1e   :  { %v3050_v41 = vsel %vm3047_vm3, %v3049_v1, %v3045_v42  ;;  %v3073_v54 = vmul.f32 %v4000_v30, %v3031_v13  ;;  %vm3064_vm6 = vmor %vm3062_vm5, %vm3063_vm4 }
 0xa1f   :  { %v3072_v45 = vmul.f32 %v3050_v41, %v6909_v44  ;;  %v3059_v11 = vsub.f32 1.0, %v3058_v23 }
 0xa21   :  { %v7015_v5 = vadd.f32 %v3073_v54, %v3072_v45  ;;  %v3060_v59 = vmul.f32 %v3998_v52, %v3059_v11 }
 0xa23   :  { %4001 = vtanh.f32 %v7015_v5  ;;  %v3061_v53 = vadd.f32 %v3998_v52, %v3060_v59  ;;  %v8184_v59 = vld [vmem:[#allocation25_spill] sm:$0xff] }
 0xa25   :  { %v3065_v43 = vsel %vm3064_vm6, %v3998_v52, %v3061_v53 }
 0xa26   :  { %v3070_v21 = vsel %vm3067_vm7, %v3069_v15, %v3065_v43 }
 0xa29   :  { %v4002_v49 = vpop.eup %4001 }
 0xa2a   :  { %v3076_v55 = vmul.f32 %v4002_v49, %v3070_v21 }
 0xa2c   :  { %v3078_v44 = vrot.slane %v3076_v55, 4 }
 0xa2e   :  { %v3079_v30 = vrot.slane %v3078_v44, 4 }
 0xa30   :  { %3117 = vmatmul.f32.vlgmr.msrb.gmra.mxu1 %v3079_v30  ;;  %3157 = vmatmul.f32.vlgmr.msrb.gmra.mxu3 %v3079_v30 }
 0xa31   :  { %3331 = vmatpush.msrb.mxu1 %v6690_v48  ;;  %3371 = vmatpush.msrb.mxu3 %v6693_v6  ;;  %v8163_v48 = vld [vmem:[#allocation39_spill] sm:$0xff]  ;;  %v8164_v6 = vld [vmem:[#allocation34_spill] sm:$0xff] }
 0xa33   :  { %3332 = vmatpush.msrb.mxu1 %v6696_v16  ;;  %3372 = vmatpush.msrb.mxu3 %v6699_v24  ;;  %v8165_v16 = vld [vmem:[#allocation41_spill] sm:$0xff]  ;;  %v8166_v24 = vld [vmem:[#allocation48_spill] sm:$0xff] }
 0xa35   :  { %3333 = vmatpush.msrb.mxu1 %v6702_v7  ;;  %3373 = vmatpush.msrb.mxu3 %v6705_v10  ;;  %v8167_v7 = vld [vmem:[#allocation90_spill] sm:$0xff] }
 0xa36   :  { %v8168_v10 = vld [vmem:[#allocation38_spill] sm:$0xff] }
 0xa37   :  { %3334 = vmatpush.msrb.mxu1 %v6708_v62  ;;  %3374 = vmatpush.msrb.mxu3 %v6711_v50  ;;  %v8169_v62 = vld [vmem:[#allocation46_spill] sm:$0xff]  ;;  %v8170_v50 = vld [vmem:[#allocation44_spill] sm:$0xff] }
 0xa38   :  { %3197 = vmatmul.f32.vlgmr.msra.gmra.mxu1 %v3079_v30  ;;  %3237 = vmatmul.f32.vlgmr.msra.gmra.mxu3 %v3079_v30 }
 0xa39   :  { %3335 = vmatpush.msrb.mxu1 %v6714_v3  ;;  %3375 = vmatpush.msrb.mxu3 %v6717_v31  ;;  %v8171_v3 = vld [vmem:[#allocation42_spill] sm:$0xff]  ;;  %v8172_v31 = vld [vmem:[#allocation55_spill] sm:$0xff] }
 0xa3b   :  { %3336 = vmatpush.msrb.mxu1 %v6720_v47  ;;  %3376 = vmatpush.msrb.mxu3 %v6723_v39  ;;  %v8173_v47 = vld [vmem:[#allocation51_spill] sm:$0xff]  ;;  %v8174_v39 = vld [vmem:[#allocation84_spill] sm:$0xff] }
 0xa3d   :  { %3337 = vmatpush.msrb.mxu1 %v6726_v14  ;;  %3377 = vmatpush.msrb.mxu3 %v6729_v2  ;;  %v8175_v14 = vld [vmem:[#allocation49_spill] sm:$0xff]  ;;  %v8176_v2 = vld [vmem:[#allocation58_spill] sm:$0xff] }
 0xa3f   :  { %3338 = vmatpush.msrb.mxu1 %v6732_v9  ;;  %3378 = vmatpush.msrb.mxu3 %v6735_v33  ;;  %v8177_v9 = vld [vmem:[#allocation47_spill] sm:$0xff]  ;;  %v8178_v33 = vld [vmem:[#allocation50_spill] sm:$0xff] }
 0xa41   :  { %3339 = vmatpush.msrb.mxu1 %v6738_v38  ;;  %3379 = vmatpush.msrb.mxu3 %v6741_v37  ;;  %v8179_v38 = vld [vmem:[#allocation57_spill] sm:$0xff] }
 0xa42   :  { %v4219_v37 = vld [vmem:[#allocation2 + $0x270] sm:$0xff] }
 0xa43   :  { %3340 = vmatpush.msrb.mxu1 %v6744_v51  ;;  %3380 = vmatpush.msrb.mxu3 %v6747_v28  ;;  %v4220_v51 = vld [vmem:[#allocation2 + $0x278] sm:$0xff]  ;;  %v4221_v28 = vld [vmem:[#allocation2 + $0x250] sm:$0xff] }
 0xa45   :  { %3341 = vmatpush.msrb.mxu1 %v6750_v18  ;;  %3381 = vmatpush.msrb.mxu3 %v6753_v58  ;;  %v4222_v18 = vld [vmem:[#allocation2 + $0x258] sm:$0xff]  ;;  %v4223_v58 = vld [vmem:[#allocation2 + $0x230] sm:$0xff] }
 0xa47   :  { %3342 = vmatpush.msrb.mxu1 %v6756_v32  ;;  %3382 = vmatpush.msrb.mxu3 %v6759_v17  ;;  %v4224_v32 = vld [vmem:[#allocation2 + $0x238] sm:$0xff]  ;;  %v4225_v17 = vld [vmem:[#allocation2 + $0x210] sm:$0xff] }
 0xa49   :  { %3343 = vmatpush.msrb.mxu1 %v6762_v63  ;;  %3383 = vmatpush.msrb.mxu3 %v6765_v40  ;;  %v4226_v63 = vld [vmem:[#allocation2 + $0x218] sm:$0xff]  ;;  %v3098_v40 = vpop.f32.mrf.mxu0 }
 0xa4b   :  { %3344 = vmatpush.msrb.mxu1 %v6768_v4  ;;  %3384 = vmatpush.msrb.mxu3 %v6771_v61  ;;  %v8180_v4 = vld [vmem:[#allocation28_spill] sm:$0xff] }
 0xa4c   :  { %v3099_v61 = vadd.f32 %v3098_v40, %v8180_v4 }
 0xa4d   :  { %3345 = vmatpush.msrb.mxu1 %v6774_v0  ;;  %3385 = vmatpush.msrb.mxu3 %v6777_v25  ;;  %v3138_v0 = vpop.f32.mrf.mxu2 }
 0xa4f   :  { %3346 = vmatpush.msrb.mxu1 %v6780_v27  ;;  %3386 = vmatpush.msrb.mxu3 %v6783_v29 }
 0xa51   :  { %3411 = vmatpush.msra.mxu1 %v6786_v22  ;;  %3451 = vmatpush.msra.mxu3 %v6789_v8  ;;  %v8181_v22 = vld [vmem:[#allocation27_spill] sm:$0xff]  ;;  %v3178_v41 = vpop.f32.mrf.mxu0 }
 0xa52   :  { %v3139_v8 = vadd.f32 %v3138_v0, %v8181_v22  ;;  %v3179_v53 = vadd.f32 %v3178_v41, %v8184_v59 }
 0xa53   :  { %3412 = vmatpush.msra.mxu1 %v6792_v36  ;;  %3452 = vmatpush.msra.mxu3 %v6795_v56 }
 0xa55   :  { %3413 = vmatpush.msra.mxu1 %v6948_v12  ;;  %3453 = vmatpush.msra.mxu3 %v8107_v57  ;;  %v3218_v57 = vpop.f32.mrf.mxu2 }
 0xa56   :  { %v3219_v19 = vadd.f32 %v3218_v57, %v8183_v35 }
 0xa57   :  { %3414 = vmatpush.msra.mxu1 %v6952_v46  ;;  %3454 = vmatpush.msra.mxu3 %v8163_v48  ;;  %v8182_v46 = vld [vmem:[#allocation23_spill] sm:$0xff] }
 0xa58   :  { %v3307_v45 = vrot.slane %v8182_v46, 6 }
 0xa59   :  { %3415 = vmatpush.msra.mxu1 %v8164_v6  ;;  %3455 = vmatpush.msra.mxu3 %v8165_v16 }
 0xa5a   :  { %3327 = vmatmul.f32.vlgmr.msrb.gmra.mxu0 %v3307_v45  ;;  %3367 = vmatmul.f32.vlgmr.msrb.gmra.mxu2 %v3307_v45 }
 0xa5b   :  { %3416 = vmatpush.msra.mxu1 %v8166_v24  ;;  %3456 = vmatpush.msra.mxu3 %v8167_v7 }
 0xa5d   :  { %3417 = vmatpush.msra.mxu1 %v8168_v10  ;;  %3457 = vmatpush.msra.mxu3 %v8169_v62 }
 0xa5f   :  { %3418 = vmatpush.msra.mxu1 %v8170_v50  ;;  %3458 = vmatpush.msra.mxu3 %v8171_v3 }
 0xa61   :  { %3419 = vmatpush.msra.mxu1 %v8172_v31  ;;  %3459 = vmatpush.msra.mxu3 %v8173_v47 }
 0xa62   :  { %3407 = vmatmul.f32.vlgmr.msra.gmra.mxu0 %v3307_v45  ;;  %3447 = vmatmul.f32.vlgmr.msra.gmra.mxu2 %v3307_v45 }
 0xa63   :  { %3420 = vmatpush.msra.mxu1 %v8174_v39  ;;  %3460 = vmatpush.msra.mxu3 %v8175_v14 }
 0xa65   :  { %3421 = vmatpush.msra.mxu1 %v8176_v2  ;;  %3461 = vmatpush.msra.mxu3 %v8177_v9 }
 0xa67   :  { %3422 = vmatpush.msra.mxu1 %v8178_v33  ;;  %3462 = vmatpush.msra.mxu3 %v8179_v38 }
 0xa69   :  { %3423 = vmatpush.msra.mxu1 %v4219_v37  ;;  %3463 = vmatpush.msra.mxu3 %v4220_v51 }
 0xa6b   :  { %3424 = vmatpush.msra.mxu1 %v4221_v28  ;;  %3464 = vmatpush.msra.mxu3 %v4222_v18 }
 0xa6d   :  { %3425 = vmatpush.msra.mxu1 %v4223_v58  ;;  %3465 = vmatpush.msra.mxu3 %v4224_v32 }
 0xa6f   :  { %3426 = vmatpush.msra.mxu1 %v4225_v17  ;;  %3466 = vmatpush.msra.mxu3 %v4226_v63 }
 0xaad   :  { %v3118_v25 = vpop.f32.mrf.mxu1 }
 0xaae   :  { %v3119_v27 = vadd.f32 %v3118_v25, %v3099_v61 }
 0xab0   :  { %v3698_v29 = vmul.f32 -1.442695, %v3119_v27 }
 0xab2   :  { %4003 = vpow2.f32 %v3698_v29 }
 0xab3   :  { %v3158_v36 = vpop.f32.mrf.mxu3 }
 0xab4   :  { %v3159_v56 = vadd.f32 %v3158_v36, %v3139_v8 }
 0xab5   :  { %v3198_v26 = vpop.f32.mrf.mxu1 }
 0xab6   :  { %v3699_v12 = vmul.f32 -1.442695, %v3159_v56  ;;  %v3199_v21 = vadd.f32 %v3198_v26, %v3179_v53 }
 0xab8   :  { %v4004_v60 = vpop.eup %4003  ;;  %4005 = vpow2.f32 %v3699_v12 }
 0xab9   :  { %v3244_v34 = vadd.f32 1.0, %v4004_v60 }
 0xabb   :  { %4007 = vrcp.f32 %v3244_v34  ;;  %v3238_v52 = vpop.f32.mrf.mxu3  ;;  %v3256_v48 = vand.u32 2147483648, %v3244_v34  ;;  %vm3250_vm9 = vweird.f32 %v3244_v34  ;;  %v3254_v16 = vand.u32 2147483647, %v3244_v34 }
 0xabc   :  { %v3239_v1 = vadd.f32 %v3238_v52, %v3219_v19 }
 0xabd   :  { %v3257_v50 = vor.u32 1.1754944e-38, %v3256_v48  ;;  %vm3255_vm13 = vcmp.eq.f32.partialorder %v3254_v16, 8.507059e+37 }
 0xabe   :  { %v4006_v13 = vpop.eup %4005  ;;  %v3700_v42 = vmul.f32 -1.442695, %v3239_v1 }
 0xabf   :  { %v3263_v23 = vadd.f32 1.0, %v4006_v13 }
 0xac0   :  { %4009 = vpow2.f32 %v3700_v42 }
 0xac1   :  { %v4008_v54 = vpop.eup %4007  ;;  %4011 = vrcp.f32 %v3263_v23  ;;  %v3275_v24 = vand.u32 2147483648, %v3263_v23  ;;  %v3273_v62 = vand.u32 2147483647, %v3263_v23  ;;  %vm3269_vm12 = vweird.f32 %v3263_v23 }
 0xac2   :  { %v3246_v11 = vmul.f32 %v4008_v54, %v3244_v34  ;;  %vm3251_vm8 = vweird.f32 %v4008_v54 }
 0xac3   :  { %vm3252_vm10 = vmor %vm3250_vm9, %vm3251_vm8  ;;  %v3276_v47 = vor.u32 1.1754944e-38, %v3275_v24  ;;  %vm3274_vm15 = vcmp.eq.f32.partialorder %v3273_v62, 8.507059e+37 }
 0xac4   :  { %v3247_v20 = vsub.f32 1.0, %v3246_v11 }
 0xac6   :  { %v4010_v43 = vpop.eup %4009  ;;  %v3248_v15 = vmul.f32 %v4008_v54, %v3247_v20 }
 0xac7   :  { %v4012_v49 = vpop.eup %4011  ;;  %v3283_v55 = vadd.f32 1.0, %v4010_v43 }
 0xac8   :  { %v3265_v44 = vmul.f32 %v4012_v49, %v3263_v23  ;;  %v3249_v30 = vadd.f32 %v4008_v54, %v3248_v15  ;;  %vm3270_vm11 = vweird.f32 %v4012_v49 }
 0xac9   :  { %4013 = vrcp.f32 %v3283_v55  ;;  %vm3271_vm14 = vmor %vm3269_vm12, %vm3270_vm11  ;;  %v3295_v32 = vand.u32 2147483648, %v3283_v55  ;;  %vm3289_vm1 = vweird.f32 %v3283_v55  ;;  %v3293_v17 = vand.u32 2147483647, %v3283_v55 }
 0xaca   :  { %v3266_v6 = vsub.f32 1.0, %v3265_v44  ;;  %4015 = vtanh.f32 %v3199_v21  ;;  %v3253_v10 = vsel %vm3252_vm10, %v4008_v54, %v3249_v30 }
 0xacb   :  { %v3258_v39 = vsel %vm3255_vm13, %v3257_v50, %v3253_v10  ;;  %v3296_v40 = vor.u32 1.1754944e-38, %v3295_v32  ;;  %vm3294_vm3 = vcmp.eq.f32.partialorder %v3293_v17, 8.507059e+37 }
 0xacc   :  { %v3267_v7 = vmul.f32 %v4012_v49, %v3266_v6 }
 0xace   :  { %v3268_v3 = vadd.f32 %v4012_v49, %v3267_v7 }
 0xacf   :  { %v4014_v31 = vpop.eup %4013 }
 0xad0   :  { %v3272_v14 = vsel %vm3271_vm14, %v4012_v49, %v3268_v3  ;;  %v3285_v2 = vmul.f32 %v4014_v31, %v3283_v55  ;;  %v4016_v9 = vpop.eup %4015  ;;  %vm3290_vm0 = vweird.f32 %v4014_v31 }
 0xad1   :  { %v3277_v33 = vsel %vm3274_vm15, %v3276_v47, %v3272_v14  ;;  %v3300_v37 = vmul.f32 %v4016_v9, %v3258_v39  ;;  %vm3291_vm2 = vmor %vm3289_vm1, %vm3290_vm0 }
 0xad2   :  { %v3299_v38 = vmul.f32 %v3277_v33, %v7015_v5  ;;  %v3286_v51 = vsub.f32 1.0, %v3285_v2 }
 0xad4   :  { %v7080_v28 = vadd.f32 %v3300_v37, %v3299_v38  ;;  %v3287_v18 = vmul.f32 %v4014_v31, %v3286_v51 }
 0xad6   :  { %4017 = vtanh.f32 %v7080_v28  ;;  %v3288_v58 = vadd.f32 %v4014_v31, %v3287_v18 }
 0xad7   :  { %v3328_v29 = vpop.f32.mrf.mxu0 }
 0xad8   :  { %v3292_v63 = vsel %vm3291_vm2, %v4014_v31, %v3288_v58  ;;  %v3329_v8 = vadd.f32 %v3328_v29, %v8180_v4 }
 0xad9   :  { %v3297_v0 = vsel %vm3294_vm3, %v3296_v40, %v3292_v63 }
 0xadc   :  { %v4018_v61 = vpop.eup %4017 }
 0xadd   :  { %v3303_v25 = vmul.f32 %v4018_v61, %v3297_v0  ;;  %v3368_v36 = vpop.f32.mrf.mxu2 }
 0xade   :  { %v3369_v46 = vadd.f32 %v3368_v36, %v8181_v22 }
 0xadf   :  { %v3305_v5 = vrot.slane %v3303_v25, 2  ;;  %v3408_v11 = vpop.f32.mrf.mxu0 }
 0xae0   :  { %v3409_v20 = vadd.f32 %v3408_v11, %v8184_v59 }
 0xae1   :  { %v3308_v27 = vrot.slane %v3305_v5, 6 }
 0xae3   :  { %3347 = vmatmul.f32.vlgmr.msrb.gmra.mxu1 %v3308_v27  ;;  %3387 = vmatmul.f32.vlgmr.msrb.gmra.mxu3 %v3308_v27 }
 0xae5   :  { %v3448_v19 = vpop.f32.mrf.mxu2 }
 0xae6   :  { %v3449_v1 = vadd.f32 %v3448_v19, %v8183_v35 }
 0xaeb   :  { %3427 = vmatmul.f32.vlgmr.msra.gmra.mxu1 %v3308_v27  ;;  %3467 = vmatmul.f32.vlgmr.msra.gmra.mxu3 %v3308_v27 }
 0xb60   :  { %v3348_v56 = vpop.f32.mrf.mxu1 }
 0xb61   :  { %v3349_v57 = vadd.f32 %v3348_v56, %v3329_v8 }
 0xb63   :  { %v3701_v12 = vmul.f32 -1.442695, %v3349_v57 }
 0xb65   :  { %4019 = vpow2.f32 %v3701_v12 }
 0xb66   :  { %v3388_v45 = vpop.f32.mrf.mxu3 }
 0xb67   :  { %v3389_v60 = vadd.f32 %v3388_v45, %v3369_v46 }
 0xb68   :  { %v3428_v43 = vpop.f32.mrf.mxu1 }
 0xb69   :  { %v3702_v34 = vmul.f32 -1.442695, %v3389_v60  ;;  %v3429_v35 = vadd.f32 %v3428_v43, %v3409_v20 }
 0xb6b   :  { %v4020_v52 = vpop.eup %4019  ;;  %4021 = vpow2.f32 %v3702_v34 }
 0xb6c   :  { %v3474_v13 = vadd.f32 1.0, %v4020_v52 }
 0xb6e   :  { %4023 = vrcp.f32 %v3474_v13  ;;  %v3468_v42 = vpop.f32.mrf.mxu3  ;;  %v3486_v48 = vand.u32 2147483648, %v3474_v13  ;;  %vm3480_vm5 = vweird.f32 %v3474_v13  ;;  %v3484_v16 = vand.u32 2147483647, %v3474_v13 }
 0xb6f   :  { %v3469_v23 = vadd.f32 %v3468_v42, %v3449_v1 }
 0xb70   :  { %v3487_v62 = vor.u32 1.1754944e-38, %v3486_v48  ;;  %vm3485_vm9 = vcmp.eq.f32.partialorder %v3484_v16, 8.507059e+37 }
 0xb71   :  { %v4022_v4 = vpop.eup %4021  ;;  %v3703_v41 = vmul.f32 -1.442695, %v3469_v23 }
 0xb72   :  { %v3493_v54 = vadd.f32 1.0, %v4022_v4 }
 0xb73   :  { %4025 = vpow2.f32 %v3703_v41 }
 0xb74   :  { %v4024_v53 = vpop.eup %4023  ;;  %4027 = vrcp.f32 %v3493_v54  ;;  %v3505_v24 = vand.u32 2147483648, %v3493_v54  ;;  %v3503_v10 = vand.u32 2147483647, %v3493_v54  ;;  %vm3499_vm8 = vweird.f32 %v3493_v54 }
 0xb75   :  { %v3476_v22 = vmul.f32 %v4024_v53, %v3474_v13  ;;  %vm3481_vm4 = vweird.f32 %v4024_v53 }
 0xb76   :  { %vm3482_vm6 = vmor %vm3480_vm5, %vm3481_vm4  ;;  %v3506_v31 = vor.u32 1.1754944e-38, %v3505_v24  ;;  %vm3504_vm11 = vcmp.eq.f32.partialorder %v3503_v10, 8.507059e+37 }
 0xb77   :  { %v3477_v26 = vsub.f32 1.0, %v3476_v22 }
 0xb79   :  { %v4026_v15 = vpop.eup %4025  ;;  %v3478_v49 = vmul.f32 %v4024_v53, %v3477_v26 }
 0xb7a   :  { %v4028_v21 = vpop.eup %4027  ;;  %v3513_v55 = vadd.f32 1.0, %v4026_v15 }
 0xb7b   :  { %v3495_v44 = vmul.f32 %v4028_v21, %v3493_v54  ;;  %v3479_v30 = vadd.f32 %v4024_v53, %v3478_v49  ;;  %vm3500_vm7 = vweird.f32 %v4028_v21 }
 0xb7c   :  { %4029 = vrcp.f32 %v3513_v55  ;;  %vm3501_vm10 = vmor %vm3499_vm8, %vm3500_vm7  ;;  %v3525_v32 = vand.u32 2147483648, %v3513_v55  ;;  %vm3519_vm13 = vweird.f32 %v3513_v55  ;;  %v3523_v17 = vand.u32 2147483647, %v3513_v55 }
 0xb7d   :  { %v3496_v6 = vsub.f32 1.0, %v3495_v44  ;;  %4031 = vtanh.f32 %v3429_v35  ;;  %v3483_v59 = vsel %vm3482_vm6, %v4024_v53, %v3479_v30 }
 0xb7e   :  { %v3488_v47 = vsel %vm3485_vm9, %v3487_v62, %v3483_v59  ;;  %v3526_v40 = vor.u32 1.1754944e-38, %v3525_v32  ;;  %vm3524_vm15 = vcmp.eq.f32.partialorder %v3523_v17, 8.507059e+37 }
 0xb7f   :  { %v3497_v7 = vmul.f32 %v4028_v21, %v3496_v6 }
 0xb81   :  { %v3498_v50 = vadd.f32 %v4028_v21, %v3497_v7 }
 0xb82   :  { %v4030_v3 = vpop.eup %4029 }
 0xb83   :  { %v3502_v39 = vsel %vm3501_vm10, %v4028_v21, %v3498_v50  ;;  %v3515_v14 = vmul.f32 %v4030_v3, %v3513_v55  ;;  %v4032_v2 = vpop.eup %4031  ;;  %vm3520_vm12 = vweird.f32 %v4030_v3 }
 0xb84   :  { %v3507_v9 = vsel %vm3504_vm11, %v3506_v31, %v3502_v39  ;;  %v3530_v38 = vmul.f32 %v4032_v2, %v3488_v47  ;;  %vm3521_vm14 = vmor %vm3519_vm13, %vm3520_vm12 }
 0xb85   :  { %v3529_v33 = vmul.f32 %v3507_v9, %v7080_v28  ;;  %v3516_v37 = vsub.f32 1.0, %v3515_v14 }
 0xb87   :  { %v3531_v51 = vadd.f32 %v3530_v38, %v3529_v33  ;;  %v3517_v18 = vmul.f32 %v4030_v3, %v3516_v37 }
 0xb89   :  { %4033 = vtanh.f32 %v3531_v51  ;;  %v3518_v58 = vadd.f32 %v4030_v3, %v3517_v18 }
 0xb8b   :  { %v3522_v63 = vsel %vm3521_vm14, %v4030_v3, %v3518_v58 }
 0xb8c   :  { %v3527_v0 = vsel %vm3524_vm15, %v3526_v40, %v3522_v63 }
 0xb8f   :  { %v4034_v61 = vpop.eup %4033 }
 0xb90   :  { %v3533_v25 = vmul.f32 %v4034_v61, %v3527_v0 }
 0xb91   :  { %4327 = dma.done.wait [#allocation4 + $0x1], 4096 }
 0xb92   :  { %4328 = vsyncadd [#allocation4 + $0x1], 4294963200  ;;  %v3555_v28 = vld [vmem:[#allocation3 + $0x78] sm:$0xff]  ;;  %v3554_v5 = vld [vmem:[#allocation3 + $0x70] sm:$0xff]  ;;  %s4337_s23 = smov [#allocation8]   ;;  %s3632_s27 = sshll.u32 %s7106_s6, 4  ;;  %s3633_s27 = int_to_ptr.hbm [resolvable:$true] %s3632_s27 }
 0xb93   :  { %3580 = vmatpush.msrb.mxu0 %v3555_v28  ;;  %v3553_v27 = vld [vmem:[#allocation3 + $0x68] sm:$0xff]  ;;  %v3552_v29 = vld [vmem:[#allocation3 + $0x60] sm:$0xff]  ;;  %v3572_v8 = vld [vmem:[#allocation3 + $0xf8] sm:$0xff]  ;;  %s3630_s24 = sshll.u32 %s4337_s23, 4  ;;  %s3631_s24 = int_to_ptr.vmem [resolvable:$true] %s3630_s24 }
 0xb94   :  { %v3551_v36 = vld [vmem:[#allocation3 + $0x58] sm:$0xff]  ;;  %3604 = vmatpush.msrb.mxu1 %v3572_v8  ;;  %v3571_v56 = vld [vmem:[#allocation3 + $0xf0] sm:$0xff]  ;;  %v3570_v57 = vld [vmem:[#allocation3 + $0xe8] sm:$0xff] }
 0xb95   :  { %3581 = vmatpush.msrb.mxu0 %v3554_v5  ;;  %v3550_v12 = vld [vmem:[#allocation3 + $0x50] sm:$0xff]  ;;  %v3569_v46 = vld [vmem:[#allocation3 + $0xe0] sm:$0xff]  ;;  %v3549_v45 = vld [vmem:[#allocation3 + $0x48] sm:$0xff] }
 0xb96   :  { %3605 = vmatpush.msrb.mxu1 %v3571_v56  ;;  %v3568_v60 = vld [vmem:[#allocation3 + $0xd8] sm:$0xff]  ;;  %v3548_v19 = vld [vmem:[#allocation3 + $0x40] sm:$0xff]  ;;  %v3567_v34 = vld [vmem:[#allocation3 + $0xd0] sm:$0xff] }
 0xb97   :  { %3582 = vmatpush.msrb.mxu0 %v3553_v27  ;;  %v3547_v52 = vld [vmem:[#allocation3 + $0x38] sm:$0xff]  ;;  %v3566_v1 = vld [vmem:[#allocation3 + $0xc8] sm:$0xff]  ;;  %v3546_v13 = vld [vmem:[#allocation3 + $0x30] sm:$0xff] }
 0xb98   :  { %3606 = vmatpush.msrb.mxu1 %v3570_v57  ;;  %v3565_v42 = vld [vmem:[#allocation3 + $0xc0] sm:$0xff]  ;;  %v3545_v23 = vld [vmem:[#allocation3 + $0x28] sm:$0xff]  ;;  %v3564_v4 = vld [vmem:[#allocation3 + $0xb8] sm:$0xff] }
 0xb99   :  { %3583 = vmatpush.msrb.mxu0 %v3552_v29  ;;  %v3544_v41 = vld [vmem:[#allocation3 + $0x20] sm:$0xff]  ;;  %v3563_v54 = vld [vmem:[#allocation3 + $0xb0] sm:$0xff]  ;;  %v3543_v11 = vld [vmem:[#allocation3 + $0x18] sm:$0xff] }
 0xb9a   :  { %3607 = vmatpush.msrb.mxu1 %v3569_v46  ;;  %v3562_v53 = vld [vmem:[#allocation3 + $0xa8] sm:$0xff]  ;;  %v3542_v22 = vld [vmem:[#allocation3 + $0x10] sm:$0xff]  ;;  %v3538_v20 = vld [vmem:[%s7101_s1] sm:$0x3] }
 0xb9b   :  { %3584 = vmatpush.msrb.mxu0 %v3551_v36  ;;  %v3561_v26 = vld [vmem:[#allocation3 + $0xa0] sm:$0xff]  ;;  %v3541_v43 = vld [vmem:[#allocation3 + $0x8] sm:$0xff]  ;;  %v3560_v15 = vld [vmem:[#allocation3 + $0x98] sm:$0xff]  ;;  %v3539_v21 = vadd.f32 %v3538_v20, %v3533_v25 }
 0xb9c   :  { %3608 = vmatpush.msrb.mxu1 %v3568_v60  ;;  %v3540_v49 = vld [vmem:[#allocation3] sm:$0xff]  ;;  %v3559_v35 = vld [vmem:[#allocation3 + $0x90] sm:$0xff]  ;;  %v3558_v55 = vld [vmem:[#allocation3 + $0x88] sm:$0xff] }
 0xb9d   :  { %3585 = vmatpush.msrb.mxu0 %v3550_v12  ;;  %v3557_v44 = vld [vmem:[#allocation3 + $0x80] sm:$0xff]  ;;  %v3704_v30 = vld [vmem:[%s7103_s3 + $0x8] sm:$0xf]  ;;  %v3705_v7 = vld [vmem:[%s7103_s3 + $0xc] sm:$0xf] }
 0xb9e   :  { %3609 = vmatpush.msrb.mxu1 %v3567_v34  ;;  %v3578_v48 = vperm.slane %v3704_v30, 0  ;;  %v3602_v59 = vperm.slane %v3705_v7, 0 }
 0xb9f   :  { %3586 = vmatpush.msrb.mxu0 %v3549_v45 }
 0xba0   :  { %3610 = vmatpush.msrb.mxu1 %v3566_v1 }
 0xba1   :  { %3587 = vmatpush.msrb.mxu0 %v3548_v19 }
 0xba2   :  { %3611 = vmatpush.msrb.mxu1 %v3565_v42 }
 0xba3   :  { %3588 = vmatpush.msrb.mxu0 %v3547_v52 }
 0xba4   :  { %3612 = vmatpush.msrb.mxu1 %v3564_v4 }
 0xba5   :  { %3589 = vmatpush.msrb.mxu0 %v3546_v13 }
 0xba6   :  { %3613 = vmatpush.msrb.mxu1 %v3563_v54 }
 0xba7   :  { %3590 = vmatpush.msrb.mxu0 %v3545_v23 }
 0xba8   :  { %3614 = vmatpush.msrb.mxu1 %v3562_v53 }
 0xba9   :  { %3591 = vmatpush.msrb.mxu0 %v3544_v41 }
 0xbaa   :  { %3615 = vmatpush.msrb.mxu1 %v3561_v26 }
 0xbab   :  { %3592 = vmatpush.msrb.mxu0 %v3543_v11 }
 0xbac   :  { %3616 = vmatpush.msrb.mxu1 %v3560_v15 }
 0xbad   :  { %3593 = vmatpush.msrb.mxu0 %v3542_v22 }
 0xbae   :  { %3617 = vmatpush.msrb.mxu1 %v3559_v35 }
 0xbaf   :  { %3594 = vmatpush.msrb.mxu0 %v3541_v43 }
 0xbb0   :  { %3618 = vmatpush.msrb.mxu1 %v3558_v55 }
 0xbb1   :  { %3595 = vmatpush.msrb.mxu0 %v3540_v49 }
 0xbb2   :  { %3596 = vmatmul.f32.vlgmr.msrb.gmra.mxu0 %v3539_v21  ;;  %3619 = vmatpush.msrb.mxu1 %v3557_v44 }
 0xc2f   :  { %v3597_v6 = vpop.f32.mrf.mxu0 }
 0xc30   :  { %v3598_v16 = vadd.f32 %v3597_v6, %v3578_v48 }
 0xc32   :  { %v3600_v24 = vmax.f32 %v3598_v16, 0.0 }
 0xc34   :  { %3620 = vmatmul.f32.vlgmr.msrb.gmra.mxu1 %v3600_v24 }
 0xcb1   :  { %v3621_v10 = vpop.f32.mrf.mxu1 }
 0xcb2   :  { %v3622_v62 = vadd.f32 %v3621_v10, %v3602_v59 }
 0xcb4   :  { %3624 = vst [vmem:[#allocation8] sm:$0x3] %v3622_v62 }
 0xcb5   :  { %3635 = dma.vmem_to_hbm [thread:$0]  %s3631_s24, 32, %s3633_s27, [#allocation7]  }
 0xcb6   :  { %4329 = dma.done.wait [#allocation7], 32  }
 0xcb7   :  { %4330 = vsyncadd [#allocation7], 4294967264 }
 0xcb8   :  { %3640 = vsyncpa [#allocation6], 1 }
 0xcb9   :  { %3641 = vsyncpa [#allocation7], 1 }
 0xcba   :  { %3642 = vsyncmov [#allocation4] }
 0xcbd   :  { %s3643_s28 = vpop.sfrf %3642 }
 0xcbe   :  { %p3706_p0 = scmp.ne.s32.totalorder %s3643_s28, 0 }
 0xcc0   :  { %3647 = shalt.err (%p3706_p0)  }
 0xcc1   :  { %3649 = vsyncmov [#allocation4 + $0x1] }
 0xcc4   :  { %s3650_s3 = vpop.sfrf %3649 }
 0xcc5   :  { %p3707_p1 = scmp.ne.s32.totalorder %s3650_s3, 0 }
 0xcc7   :  { %3654 = shalt.err (%p3707_p1)  }

</bundles_post_ra>
